<compile_context>
chip_gen: v6e
topology: v6e:2x2x1
jax: 0.10.0
libtpu: 0.0.40
codegen_flags: <defaults>
</compile_context>

<pallas_src>
import jax
import jax.numpy as jnp
from jax.experimental import pallas as pl
from jax.experimental.pallas import tpu as pltpu

EPS = 1e-5
LANE = 128


def _round_up(x, m):
    return (x + m - 1) // m * m


def _vmem_capacity_bytes():
    """Physical VMEM of the local TPU generation (conservative fallback)."""
    try:
        info = pltpu.get_tpu_info()
        for name in ("vmem_capacity_bytes", "vmem_size_bytes", "vmem_bytes"):
            v = getattr(info, name, None)
            if v:
                return int(v)
    except Exception:
        pass
    return 64 << 20   # v7x-sized fallback: safe on every generation


def _vreg_bytes(shape, dtype):
    """Approximate padded VMEM footprint of one buffer (lane/sublane tiling)."""
    it = jnp.dtype(dtype).itemsize
    shape = tuple(int(d) for d in shape)
    if len(shape) < 2:
        shape = (1,) * (2 - len(shape)) + shape
    sub = 8 * max(1, 4 // it)
    lead = 1
    for d in shape[:-2]:
        lead *= d
    return lead * _round_up(shape[-2], sub) * _round_up(shape[-1], LANE) * it


def _choose_row_tile(h, w, target_m):
    """Row tile TH: multiple of 8 (or == H when H <= 8), TH*W near target_m."""
    if h <= 8:
        return h
    th = max(8, (target_m // max(w, 1)) // 8 * 8)
    th = min(th, _round_up(h, 8))
    # prefer an exact divisor of H (avoids the masked tail) when one is close
    for cand in range(th, 7, -8):
        if h % cand == 0:
            return cand
    return th


def _conv_bn_relu_stage(x_nhwc, w, gamma, beta, out_dtype):
    """One Conv2d(3x3, stride=1, pad=1) + BatchNorm2d(train) + ReLU stage.

    x_nhwc : (N, H, W, Cin) activations (real channel count, f32 or bf16).
    w      : (Cout, Cin, 3, 3) PyTorch-layout conv weight.
    gamma, beta : (Cout,) BatchNorm affine parameters.
    Returns (N, H, W, Cout) in out_dtype.
    """
    n, h, wd, c = (int(d) for d in x_nhwc.shape)
    cout, cin = int(w.shape[0]), int(w.shape[1])
    assert cin == c
    cp = _round_up(cout, LANE)          # lane-dense matmul N dim
    k9 = 9 * cin                        # folded im2col contraction dim

    cap = _vmem_capacity_bytes()
    target_m = 2048 if cap >= (96 << 20) else 1024
    th = _choose_row_tile(h, wd, target_m)
    n_hb = -(-h // th)
    h_pad = n_hb * th

    # ---- weights: (Cout, Cin, 3, 3) -> (9*Cin, Cp), Cout zero-padded, bf16 ----
    wt = jnp.transpose(w, (2, 3, 1, 0)).reshape(k9, cout)
    wt = jnp.pad(wt, ((0, 0), (0, cp - cout))).astype(jnp.bfloat16)

    # ---- spatial pad + halo row-blocking of the activation (bf16) -------------
    xp = jnp.pad(x_nhwc.astype(jnp.bfloat16),
                 ((0, 0), (1, h_pad - h + 1), (1, 1), (0, 0)))
    rows = (jnp.arange(n_hb) * th)[:, None] + jnp.arange(th + 2)[None, :]
    x_halo = xp[:, rows].reshape(n * n_hb, th + 2, wd + 2, c)

    # ---------------- pass A: im2col conv matmul + per-block stats -------------
    def conv_stats_kernel(x_ref, w_ref, conv_ref, stats_ref, patch_ref):
        # x_ref   : (1, TH+2, W+2, C)  halo row-block (bf16)
        # w_ref   : (9*C, Cp)          folded-tap weight matrix (bf16)
        # conv_ref: (1, TH*W, Cout)    raw conv output block (bf16)
        # stats_ref: (1, 1, 2, Cp)     [sum; sum of squares] for this block
        # patch_ref: (TH, W, 9*C)      VMEM im2col patch (bf16 scratch)
        for ky in range(3):
            for kx in range(3):
                t = ky * 3 + kx
                patch_ref[:, :, t * c:(t + 1) * c] = (
                    x_ref[0, ky:ky + th, kx:kx + wd, :])
        patch = patch_ref[...].reshape(th * wd, k9)
        acc = jnp.dot(patch, w_ref[...],
                      preferred_element_type=jnp.float32)          # (M, Cp)
        if h % th:   # static: mask tail rows out of stats and output
            rem = h - pl.program_id(1) * th
            row = jax.lax.broadcasted_iota(jnp.int32, (th * wd, 1), 0) // wd
            acc = jnp.where(row < rem, acc, 0.0)
        s1 = jnp.sum(acc, axis=0, keepdims=True)
        s2 = jnp.sum(acc * acc, axis=0, keepdims=True)
        stats_ref[...] = jnp.concatenate([s1, s2], axis=0).reshape(1, 1, 2, cp)
        conv_ref[...] = (acc[:, :cout].astype(jnp.bfloat16)
                         .reshape(1, th * wd, cout))

    need_a = (2 * (_vreg_bytes((th + 2, wd + 2, c), jnp.bfloat16)
                   + _vreg_bytes((k9, cp), jnp.bfloat16)
                   + _vreg_bytes((th * wd, cout), jnp.bfloat16)
                   + _vreg_bytes((2, cp), jnp.float32))
              + _vreg_bytes((th, wd, k9), jnp.bfloat16)
              + 2 * _vreg_bytes((th * wd, cp), jnp.float32))
    vmem_a = int(min(max(2 * need_a, 16 << 20), cap // 2))

    conv, stats = pl.pallas_call(
        conv_stats_kernel,
        out_shape=(
            jax.ShapeDtypeStruct((n, h_pad * wd, cout), jnp.bfloat16),
            jax.ShapeDtypeStruct((n, n_hb, 2, cp), jnp.float32),
        ),
        grid=(n, n_hb),
        in_specs=[
            pl.BlockSpec((1, th + 2, wd + 2, c),
                         lambda i, j: (i * n_hb + j, 0, 0, 0)),
            pl.BlockSpec((k9, cp), lambda i, j: (0, 0)),
        ],
        out_specs=(
            pl.BlockSpec((1, th * wd, cout), lambda i, j: (i, j, 0)),
            pl.BlockSpec((1, 1, 2, cp), lambda i, j: (i, j, 0, 0)),
        ),
        scratch_shapes=[pltpu.VMEM((th, wd, k9), jnp.bfloat16)],
        compiler_params=pltpu.CompilerParams(
            dimension_semantics=("parallel", "parallel"),
            vmem_limit_bytes=vmem_a),
        cost_estimate=pl.CostEstimate(
            flops=2 * n * h_pad * wd * k9 * cp,
            transcendentals=0,
            bytes_accessed=(x_halo.size * 2 + wt.size * 2
                            + n * h_pad * wd * cout * 2
                            + n * n_hb * 2 * cp * 4)),
    )(x_halo, wt)

    # ------------- finalize global batch statistics (tiny, plain XLA) ----------
    # Note: variance uses E[x^2]-E[x]^2 in f32; the bf16 rounding of the conv
    # values dominates any f32 cancellation for these activation scales.
    m = n * h * wd
    psum = jnp.sum(stats[:, :, 0, :cout], axis=(0, 1))
    psq = jnp.sum(stats[:, :, 1, :cout], axis=(0, 1))
    mean = psum / m
    var = jnp.maximum(psq / m - mean * mean, 0.0)
    scale = gamma.astype(jnp.float32) * jax.lax.rsqrt(var + EPS)
    shift = beta.astype(jnp.float32) - mean * scale
    scale_row = jnp.tile(scale, wd).reshape(1, 1, wd * cout)   # (w, c)-flattened
    shift_row = jnp.tile(shift, wd).reshape(1, 1, wd * cout)

    # ----------------- pass B: normalize + ReLU (lane-dense rows) --------------
    conv_rows = conv.reshape(n, h_pad, wd * cout)              # free reinterpret

    def bn_relu_kernel(conv_ref, scale_ref, shift_ref, out_ref):
        y = conv_ref[...].astype(jnp.float32) * scale_ref[...] + shift_ref[...]
        out_ref[...] = jnp.maximum(y, 0.0).astype(out_ref.dtype)

    need_b = 2 * (2 * _vreg_bytes((th, wd * cout), jnp.float32)
                  + 2 * _vreg_bytes((1, wd * cout), jnp.float32))
    vmem_b = int(min(max(2 * need_b, 16 << 20), cap // 2))

    y = pl.pallas_call(
        bn_relu_kernel,
        out_shape=jax.ShapeDtypeStruct((n, h_pad, wd * cout), out_dtype),
        grid=(n, n_hb),
        in_specs=[
            pl.BlockSpec((1, th, wd * cout), lambda i, j: (i, j, 0)),
            pl.BlockSpec((1, 1, wd * cout), lambda i, j: (0, 0, 0)),
            pl.BlockSpec((1, 1, wd * cout), lambda i, j: (0, 0, 0)),
        ],
        out_specs=pl.BlockSpec((1, th, wd * cout), lambda i, j: (i, j, 0)),
        compiler_params=pltpu.CompilerParams(
            dimension_semantics=("parallel", "parallel"),
            vmem_limit_bytes=vmem_b),
        cost_estimate=pl.CostEstimate(
            flops=3 * n * h_pad * wd * cout,
            transcendentals=0,
            bytes_accessed=n * h_pad * wd * cout
                           * (2 + jnp.dtype(out_dtype).itemsize)),
    )(conv_rows, scale_row, shift_row)

    return y.reshape(n, h_pad, wd, cout)[:, :h]


@jax.jit
def conv_block_forward(x_nchw, params):
    """Pallas equivalent of conv_block.forward (training-mode BatchNorm).

    The Conv2d biases b1/b2 are accepted but unused: with batch-statistics
    BatchNorm directly after each conv they cancel out of the forward
    activations exactly (mean(conv + b) = mean(conv) + b).
    """
    x = jnp.transpose(x_nchw, (0, 2, 3, 1))                  # NCHW -> NHWC
    x = _conv_bn_relu_stage(x, params["w1"], params["gamma1"], params["beta1"],
                            jnp.bfloat16)                    # bf16 inter-stage
    x = _conv_bn_relu_stage(x, params["w2"], params["gamma2"], params["beta2"],
                            jnp.float32)
    return jnp.transpose(x, (0, 3, 1, 2))                    # NHWC -> NCHW


def _reference_forward(x_nchw, params):
    """Pure-JAX f32 reference with PyTorch training-mode BatchNorm semantics."""
    def stage(x, w, b, gamma, beta):
        y = jax.lax.conv_general_dilated(
            x, w, window_strides=(1, 1), padding=((1, 1), (1, 1)),
            dimension_numbers=("NCHW", "OIHW", "NCHW"))
        y = y + b.reshape(1, -1, 1, 1)
        mean = jnp.mean(y, axis=(0, 2, 3), keepdims=True)
        var = jnp.mean((y - mean) ** 2, axis=(0, 2, 3), keepdims=True)
        y = (y - mean) * jax.lax.rsqrt(var + EPS)
        y = y * gamma.reshape(1, -1, 1, 1) + beta.reshape(1, -1, 1, 1)
        return jnp.maximum(y, 0.0)

    x = stage(x_nchw, params["w1"], params["b1"], params["gamma1"], params["beta1"])
    x = stage(x, params["w2"], params["b2"], params["gamma2"], params["beta2"])
    return x


def init_params(key, input_channels, output_channels):
    k1, k2, k3, k4 = jax.random.split(key, 4)
    fan1 = input_channels * 9
    fan2 = output_channels * 9
    return {
        # Conv2d #1: weight (Cout, Cin, 3, 3), bias (Cout,)
        "w1": (jax.random.normal(k1, (output_channels, input_channels, 3, 3),
                                 jnp.float32) / jnp.sqrt(fan1)),
        "b1": jax.random.normal(k2, (output_channels,), jnp.float32) * 0.01,
        # BatchNorm2d #1 affine params (PyTorch default init: gamma=1, beta=0)
        "gamma1": jnp.ones((output_channels,), jnp.float32),
        "beta1": jnp.zeros((output_channels,), jnp.float32),
        # Conv2d #2: weight (Cout, Cout, 3, 3), bias (Cout,)
        "w2": (jax.random.normal(k3, (output_channels, output_channels, 3, 3),
                                 jnp.float32) / jnp.sqrt(fan2)),
        "b2": jax.random.normal(k4, (output_channels,), jnp.float32) * 0.01,
        # BatchNorm2d #2 affine params
        "gamma2": jnp.ones((output_channels,), jnp.float32),
        "beta2": jnp.zeros((output_channels,), jnp.float32),
    }


if __name__ == "__main__":
    key = jax.random.PRNGKey(0)
    kx, kp = jax.random.split(key)

    N, CIN, COUT, H, W = 2, 4, 8, 16, 16
    x = jax.random.normal(kx, (N, CIN, H, W), jnp.float32)   # NCHW, like PyTorch
    params = init_params(kp, CIN, COUT)

    out = conv_block_forward(x, params)
    out = jax.block_until_ready(out)

    assert out.shape == (N, COUT, H, W), out.shape
    assert out.dtype == jnp.float32
    assert bool(jnp.all(jnp.isfinite(out)))
    assert bool(jnp.all(out >= 0.0))            # ReLU output

    # Numerical check against a pure-JAX f32 reference (tolerance covers the
    # intentional bf16 MXU inputs, bf16 conv intermediates, and bf16
    # inter-stage activation).
    ref = _reference_forward(x, params)
    max_err = float(jnp.max(jnp.abs(out - ref)))
    assert max_err < 0.25, f"max |err| vs reference = {max_err}"

    print("KERNEL_OK")
</pallas_src>

<mosaic_0001>
module attributes {stable_mosaic.version = 11 : i64} {
  func.func @conv_stats_kernel(%arg0: i32, %arg1: i32, %arg2: memref<1x18x18x4xbf16, #tpu.memory_space<vmem>>, %arg3: memref<36x128xbf16, #tpu.memory_space<vmem>>, %arg4: memref<1x256x8xbf16, #tpu.memory_space<vmem>>, %arg5: memref<1x1x2x128xf32, #tpu.memory_space<vmem>>, %arg6: memref<16x16x36xbf16, #tpu.memory_space<vmem>>) attributes {dimension_semantics = [#tpu.dimension_semantics<parallel>, #tpu.dimension_semantics<parallel>], iteration_bounds = array<i64: 2, 1>, scalar_prefetch = 0 : i64, scratch_operands = 1 : i64, tpu.core_type = #tpu.core_type<tc>, window_params = [{transform_indices = @transform_0, window_bounds = array<i64: 1, 18, 18, 4>}, {pipeline_mode = #tpu.pipeline_mode<synchronous>, transform_indices = @transform_1, window_bounds = array<i64: 36, 128>}, {transform_indices = @transform_2, window_bounds = array<i64: 1, 256, 8>}, {transform_indices = @transform_3, window_bounds = array<i64: 1, 1, 2, 128>}]} {
    %c0 = arith.constant 0 : index
    %c0_0 = arith.constant 0 : index
    %c0_1 = arith.constant 0 : index
    %c0_2 = arith.constant 0 : index
    %0 = vector.load %arg2[%c0, %c0_0, %c0_1, %c0_2] : memref<1x18x18x4xbf16, #tpu.memory_space<vmem>>, vector<1x16x16x4xbf16>
    %1 = vector.shape_cast %0 : vector<1x16x16x4xbf16> to vector<16x16x4xbf16>
    %c0_3 = arith.constant 0 : index
    %c0_4 = arith.constant 0 : index
    %c0_5 = arith.constant 0 : index
    %2 = vector.load %arg6[%c0_3, %c0_4, %c0_5] : memref<16x16x36xbf16, #tpu.memory_space<vmem>>, vector<16x16x4xbf16>
    tpu.vector_store %arg6[%c0_3, %c0_4, %c0_5], %1 {strides = array<i32>} : memref<16x16x36xbf16, #tpu.memory_space<vmem>>, vector<16x16x4xbf16>,
    %c0_6 = arith.constant 0 : index
    %c0_7 = arith.constant 0 : index
    %c1 = arith.constant 1 : index
    %c0_8 = arith.constant 0 : index
    %3 = vector.load %arg2[%c0_6, %c0_7, %c1, %c0_8] : memref<1x18x18x4xbf16, #tpu.memory_space<vmem>>, vector<1x16x16x4xbf16>
    %4 = vector.shape_cast %3 : vector<1x16x16x4xbf16> to vector<16x16x4xbf16>
    %c0_9 = arith.constant 0 : index
    %c0_10 = arith.constant 0 : index
    %c4 = arith.constant 4 : index
    %5 = vector.load %arg6[%c0_9, %c0_10, %c4] : memref<16x16x36xbf16, #tpu.memory_space<vmem>>, vector<16x16x4xbf16>
    tpu.vector_store %arg6[%c0_9, %c0_10, %c4], %4 {strides = array<i32>} : memref<16x16x36xbf16, #tpu.memory_space<vmem>>, vector<16x16x4xbf16>,
    %c0_11 = arith.constant 0 : index
    %c0_12 = arith.constant 0 : index
    %c2 = arith.constant 2 : index
    %c0_13 = arith.constant 0 : index
    %6 = vector.load %arg2[%c0_11, %c0_12, %c2, %c0_13] : memref<1x18x18x4xbf16, #tpu.memory_space<vmem>>, vector<1x16x16x4xbf16>
    %7 = vector.shape_cast %6 : vector<1x16x16x4xbf16> to vector<16x16x4xbf16>
    %c0_14 = arith.constant 0 : index
    %c0_15 = arith.constant 0 : index
    %c8 = arith.constant 8 : index
    %8 = vector.load %arg6[%c0_14, %c0_15, %c8] : memref<16x16x36xbf16, #tpu.memory_space<vmem>>, vector<16x16x4xbf16>
    tpu.vector_store %arg6[%c0_14, %c0_15, %c8], %7 {strides = array<i32>} : memref<16x16x36xbf16, #tpu.memory_space<vmem>>, vector<16x16x4xbf16>,
    %c0_16 = arith.constant 0 : index
    %c1_17 = arith.constant 1 : index
    %c0_18 = arith.constant 0 : index
    %c0_19 = arith.constant 0 : index
    %9 = vector.load %arg2[%c0_16, %c1_17, %c0_18, %c0_19] : memref<1x18x18x4xbf16, #tpu.memory_space<vmem>>, vector<1x16x16x4xbf16>
    %10 = vector.shape_cast %9 : vector<1x16x16x4xbf16> to vector<16x16x4xbf16>
    %c0_20 = arith.constant 0 : index
    %c0_21 = arith.constant 0 : index
    %c12 = arith.constant 12 : index
    %11 = vector.load %arg6[%c0_20, %c0_21, %c12] : memref<16x16x36xbf16, #tpu.memory_space<vmem>>, vector<16x16x4xbf16>
    tpu.vector_store %arg6[%c0_20, %c0_21, %c12], %10 {strides = array<i32>} : memref<16x16x36xbf16, #tpu.memory_space<vmem>>, vector<16x16x4xbf16>,
    %c0_22 = arith.constant 0 : index
    %c1_23 = arith.constant 1 : index
    %c1_24 = arith.constant 1 : index
    %c0_25 = arith.constant 0 : index
    %12 = vector.load %arg2[%c0_22, %c1_23, %c1_24, %c0_25] : memref<1x18x18x4xbf16, #tpu.memory_space<vmem>>, vector<1x16x16x4xbf16>
    %13 = vector.shape_cast %12 : vector<1x16x16x4xbf16> to vector<16x16x4xbf16>
    %c0_26 = arith.constant 0 : index
    %c0_27 = arith.constant 0 : index
    %c16 = arith.constant 16 : index
    %14 = vector.load %arg6[%c0_26, %c0_27, %c16] : memref<16x16x36xbf16, #tpu.memory_space<vmem>>, vector<16x16x4xbf16>
    tpu.vector_store %arg6[%c0_26, %c0_27, %c16], %13 {strides = array<i32>} : memref<16x16x36xbf16, #tpu.memory_space<vmem>>, vector<16x16x4xbf16>,
    %c0_28 = arith.constant 0 : index
    %c1_29 = arith.constant 1 : index
    %c2_30 = arith.constant 2 : index
    %c0_31 = arith.constant 0 : index
    %15 = vector.load %arg2[%c0_28, %c1_29, %c2_30, %c0_31] : memref<1x18x18x4xbf16, #tpu.memory_space<vmem>>, vector<1x16x16x4xbf16>
    %16 = vector.shape_cast %15 : vector<1x16x16x4xbf16> to vector<16x16x4xbf16>
    %c0_32 = arith.constant 0 : index
    %c0_33 = arith.constant 0 : index
    %c20 = arith.constant 20 : index
    %17 = vector.load %arg6[%c0_32, %c0_33, %c20] : memref<16x16x36xbf16, #tpu.memory_space<vmem>>, vector<16x16x4xbf16>
    tpu.vector_store %arg6[%c0_32, %c0_33, %c20], %16 {strides = array<i32>} : memref<16x16x36xbf16, #tpu.memory_space<vmem>>, vector<16x16x4xbf16>,
    %c0_34 = arith.constant 0 : index
    %c2_35 = arith.constant 2 : index
    %c0_36 = arith.constant 0 : index
    %c0_37 = arith.constant 0 : index
    %18 = vector.load %arg2[%c0_34, %c2_35, %c0_36, %c0_37] : memref<1x18x18x4xbf16, #tpu.memory_space<vmem>>, vector<1x16x16x4xbf16>
    %19 = vector.shape_cast %18 : vector<1x16x16x4xbf16> to vector<16x16x4xbf16>
    %c0_38 = arith.constant 0 : index
    %c0_39 = arith.constant 0 : index
    %c24 = arith.constant 24 : index
    %20 = vector.load %arg6[%c0_38, %c0_39, %c24] : memref<16x16x36xbf16, #tpu.memory_space<vmem>>, vector<16x16x4xbf16>
    tpu.vector_store %arg6[%c0_38, %c0_39, %c24], %19 {strides = array<i32>} : memref<16x16x36xbf16, #tpu.memory_space<vmem>>, vector<16x16x4xbf16>,
    %c0_40 = arith.constant 0 : index
    %c2_41 = arith.constant 2 : index
    %c1_42 = arith.constant 1 : index
    %c0_43 = arith.constant 0 : index
    %21 = vector.load %arg2[%c0_40, %c2_41, %c1_42, %c0_43] : memref<1x18x18x4xbf16, #tpu.memory_space<vmem>>, vector<1x16x16x4xbf16>
    %22 = vector.shape_cast %21 : vector<1x16x16x4xbf16> to vector<16x16x4xbf16>
    %c0_44 = arith.constant 0 : index
    %c0_45 = arith.constant 0 : index
    %c28 = arith.constant 28 : index
    %23 = vector.load %arg6[%c0_44, %c0_45, %c28] : memref<16x16x36xbf16, #tpu.memory_space<vmem>>, vector<16x16x4xbf16>
    tpu.vector_store %arg6[%c0_44, %c0_45, %c28], %22 {strides = array<i32>} : memref<16x16x36xbf16, #tpu.memory_space<vmem>>, vector<16x16x4xbf16>,
    %c0_46 = arith.constant 0 : index
    %c2_47 = arith.constant 2 : index
    %c2_48 = arith.constant 2 : index
    %c0_49 = arith.constant 0 : index
    %24 = vector.load %arg2[%c0_46, %c2_47, %c2_48, %c0_49] : memref<1x18x18x4xbf16, #tpu.memory_space<vmem>>, vector<1x16x16x4xbf16>
    %25 = vector.shape_cast %24 : vector<1x16x16x4xbf16> to vector<16x16x4xbf16>
    %c0_50 = arith.constant 0 : index
    %c0_51 = arith.constant 0 : index
    %c32 = arith.constant 32 : index
    %26 = vector.load %arg6[%c0_50, %c0_51, %c32] : memref<16x16x36xbf16, #tpu.memory_space<vmem>>, vector<16x16x4xbf16>
    tpu.vector_store %arg6[%c0_50, %c0_51, %c32], %25 {strides = array<i32>} : memref<16x16x36xbf16, #tpu.memory_space<vmem>>, vector<16x16x4xbf16>,
    %c0_52 = arith.constant 0 : index
    %c0_53 = arith.constant 0 : index
    %c0_54 = arith.constant 0 : index
    %27 = vector.load %arg6[%c0_52, %c0_53, %c0_54] : memref<16x16x36xbf16, #tpu.memory_space<vmem>>, vector<16x16x36xbf16>
    %28 = vector.shape_cast %27 : vector<16x16x36xbf16> to vector<256x36xbf16>
    %c0_55 = arith.constant 0 : index
    %c0_56 = arith.constant 0 : index
    %29 = vector.load %arg3[%c0_55, %c0_56] : memref<36x128xbf16, #tpu.memory_space<vmem>>, vector<36x128xbf16>
    %cst = arith.constant dense<0.000000e+00> : vector<256x128xf32>
    %30 = tpu.matmul %28, %29, %cst {dimension_numbers = #tpu.dot_dimension_numbers<[1], [0], [0], [1], [0, 0, 1, 1], [], []>} : vector<256x36xbf16>, vector<36x128xbf16>, vector<256x128xf32> -> vector<256x128xf32>
    %cst_57 = arith.constant dense<0.000000e+00> : vector<128xf32>
    %31 = vector.multi_reduction <add>, %30, %cst_57 [0] : vector<256x128xf32> to vector<128xf32>
    %32 = vector.shape_cast %31 : vector<128xf32> to vector<1x128xf32>
    %33 = arith.mulf %30, %30 : vector<256x128xf32>
    %cst_58 = arith.constant dense<0.000000e+00> : vector<128xf32>
    %34 = vector.multi_reduction <add>, %33, %cst_58 [0] : vector<256x128xf32> to vector<128xf32>
    %35 = vector.shape_cast %34 : vector<128xf32> to vector<1x128xf32>
    %36 = tpu.concatenate %32, %35 in 0 : vector<1x128xf32>, vector<1x128xf32> -> vector<2x128xf32>
    %37 = vector.shape_cast %36 : vector<2x128xf32> to vector<1x1x2x128xf32>
    %c0_59 = arith.constant 0 : index
    %c0_60 = arith.constant 0 : index
    %c0_61 = arith.constant 0 : index
    %c0_62 = arith.constant 0 : index
    %38 = vector.load %arg5[%c0_59, %c0_60, %c0_61, %c0_62] : memref<1x1x2x128xf32, #tpu.memory_space<vmem>>, vector<1x1x2x128xf32>
    tpu.vector_store %arg5[%c0_59, %c0_60, %c0_61, %c0_62], %37 {strides = array<i32>} : memref<1x1x2x128xf32, #tpu.memory_space<vmem>>, vector<1x1x2x128xf32>,
    %39 = vector.extract_strided_slice %30 {offsets = [0, 0], sizes = [256, 8], strides = [1, 1]} : vector<256x128xf32> to vector<256x8xf32>
    %40 = arith.truncf %39 : vector<256x8xf32> to vector<256x8xbf16>
    %41 = vector.shape_cast %40 : vector<256x8xbf16> to vector<1x256x8xbf16>
    %c0_63 = arith.constant 0 : index
    %c0_64 = arith.constant 0 : index
    %c0_65 = arith.constant 0 : index
    %42 = vector.load %arg4[%c0_63, %c0_64, %c0_65] : memref<1x256x8xbf16, #tpu.memory_space<vmem>>, vector<1x256x8xbf16>
    tpu.vector_store %arg4[%c0_63, %c0_64, %c0_65], %41 {strides = array<i32>} : memref<1x256x8xbf16, #tpu.memory_space<vmem>>, vector<1x256x8xbf16>,
    return
  }
  func.func @transform_0(%arg0: i32, %arg1: i32) -> (i32, i32, i32, i32) {
    %c1_i32 = arith.constant 1 : i32
    %0 = arith.muli %arg0, %c1_i32 : i32
    %1 = arith.addi %0, %arg1 : i32
    %c0_i32 = arith.constant 0 : i32
    %c0_i32_0 = arith.constant 0 : i32
    %c0_i32_1 = arith.constant 0 : i32
    %c0_i32_2 = arith.constant 0 : i32
    return %1, %c0_i32, %c0_i32_0, %c0_i32_1 : i32, i32, i32, i32
  }
  func.func @transform_1(%arg0: i32, %arg1: i32) -> (i32, i32) {
    %c0_i32 = arith.constant 0 : i32
    %c0_i32_0 = arith.constant 0 : i32
    %c0_i32_1 = arith.constant 0 : i32
    return %c0_i32, %c0_i32_0 : i32, i32
  }
  func.func @transform_2(%arg0: i32, %arg1: i32) -> (i32, i32, i32) {
    %c0_i32 = arith.constant 0 : i32
    %c0_i32_0 = arith.constant 0 : i32
    return %arg0, %arg1, %c0_i32 : i32, i32, i32
  }
  func.func @transform_3(%arg0: i32, %arg1: i32) -> (i32, i32, i32, i32) {
    %c0_i32 = arith.constant 0 : i32
    %c0_i32_0 = arith.constant 0 : i32
    %c0_i32_1 = arith.constant 0 : i32
    return %arg0, %arg1, %c0_i32, %c0_i32_0 : i32, i32, i32, i32
  }
}

module attributes {stable_mosaic.version = 11 : i64} {
  func.func @bn_relu_kernel(%arg0: i32, %arg1: i32, %arg2: memref<1x16x128xbf16, #tpu.memory_space<vmem>>, %arg3: memref<1x1x128xf32, #tpu.memory_space<vmem>>, %arg4: memref<1x1x128xf32, #tpu.memory_space<vmem>>, %arg5: memref<1x16x128xbf16, #tpu.memory_space<vmem>>) attributes {dimension_semantics = [#tpu.dimension_semantics<parallel>, #tpu.dimension_semantics<parallel>], iteration_bounds = array<i64: 2, 1>, scalar_prefetch = 0 : i64, scratch_operands = 0 : i64, tpu.core_type = #tpu.core_type<tc>, window_params = [{transform_indices = @transform_0, window_bounds = array<i64: 1, 16, 128>}, {pipeline_mode = #tpu.pipeline_mode<synchronous>, transform_indices = @transform_1, window_bounds = array<i64: 1, 1, 128>}, {pipeline_mode = #tpu.pipeline_mode<synchronous>, transform_indices = @transform_2, window_bounds = array<i64: 1, 1, 128>}, {transform_indices = @transform_3, window_bounds = array<i64: 1, 16, 128>}]} {
    %c0 = arith.constant 0 : index
    %c0_0 = arith.constant 0 : index
    %c0_1 = arith.constant 0 : index
    %0 = vector.load %arg2[%c0, %c0_0, %c0_1] : memref<1x16x128xbf16, #tpu.memory_space<vmem>>, vector<1x16x128xbf16>
    %1 = arith.extf %0 : vector<1x16x128xbf16> to vector<1x16x128xf32>
    %c0_2 = arith.constant 0 : index
    %c0_3 = arith.constant 0 : index
    %c0_4 = arith.constant 0 : index
    %2 = vector.load %arg3[%c0_2, %c0_3, %c0_4] : memref<1x1x128xf32, #tpu.memory_space<vmem>>, vector<1x1x128xf32>
    %3 = vector.broadcast %2 : vector<1x1x128xf32> to vector<1x16x128xf32>
    %4 = arith.mulf %1, %3 : vector<1x16x128xf32>
    %c0_5 = arith.constant 0 : index
    %c0_6 = arith.constant 0 : index
    %c0_7 = arith.constant 0 : index
    %5 = vector.load %arg4[%c0_5, %c0_6, %c0_7] : memref<1x1x128xf32, #tpu.memory_space<vmem>>, vector<1x1x128xf32>
    %6 = vector.broadcast %5 : vector<1x1x128xf32> to vector<1x16x128xf32>
    %7 = arith.addf %4, %6 : vector<1x16x128xf32>
    %cst = arith.constant 0.000000e+00 : f32
    %8 = vector.broadcast %cst : f32 to vector<1x16x128xf32>
    %9 = arith.maximumf %7, %8 : vector<1x16x128xf32>
    %10 = arith.truncf %9 : vector<1x16x128xf32> to vector<1x16x128xbf16>
    %c0_8 = arith.constant 0 : index
    %c0_9 = arith.constant 0 : index
    %c0_10 = arith.constant 0 : index
    %11 = vector.load %arg5[%c0_8, %c0_9, %c0_10] : memref<1x16x128xbf16, #tpu.memory_space<vmem>>, vector<1x16x128xbf16>
    tpu.vector_store %arg5[%c0_8, %c0_9, %c0_10], %10 {strides = array<i32>} : memref<1x16x128xbf16, #tpu.memory_space<vmem>>, vector<1x16x128xbf16>,
    return
  }
  func.func @transform_0(%arg0: i32, %arg1: i32) -> (i32, i32, i32) {
    %c0_i32 = arith.constant 0 : i32
    %c0_i32_0 = arith.constant 0 : i32
    return %arg0, %arg1, %c0_i32 : i32, i32, i32
  }
  func.func @transform_1(%arg0: i32, %arg1: i32) -> (i32, i32, i32) {
    %c0_i32 = arith.constant 0 : i32
    %c0_i32_0 = arith.constant 0 : i32
    %c0_i32_1 = arith.constant 0 : i32
    %c0_i32_2 = arith.constant 0 : i32
    return %c0_i32, %c0_i32_0, %c0_i32_1 : i32, i32, i32
  }
  func.func @transform_2(%arg0: i32, %arg1: i32) -> (i32, i32, i32) {
    %c0_i32 = arith.constant 0 : i32
    %c0_i32_0 = arith.constant 0 : i32
    %c0_i32_1 = arith.constant 0 : i32
    %c0_i32_2 = arith.constant 0 : i32
    return %c0_i32, %c0_i32_0, %c0_i32_1 : i32, i32, i32
  }
  func.func @transform_3(%arg0: i32, %arg1: i32) -> (i32, i32, i32) {
    %c0_i32 = arith.constant 0 : i32
    %c0_i32_0 = arith.constant 0 : i32
    return %arg0, %arg1, %c0_i32 : i32, i32, i32
  }
}

module attributes {stable_mosaic.version = 11 : i64} {
  func.func @conv_stats_kernel(%arg0: i32, %arg1: i32, %arg2: memref<1x18x18x8xbf16, #tpu.memory_space<vmem>>, %arg3: memref<72x128xbf16, #tpu.memory_space<vmem>>, %arg4: memref<1x256x8xbf16, #tpu.memory_space<vmem>>, %arg5: memref<1x1x2x128xf32, #tpu.memory_space<vmem>>, %arg6: memref<16x16x72xbf16, #tpu.memory_space<vmem>>) attributes {dimension_semantics = [#tpu.dimension_semantics<parallel>, #tpu.dimension_semantics<parallel>], iteration_bounds = array<i64: 2, 1>, scalar_prefetch = 0 : i64, scratch_operands = 1 : i64, tpu.core_type = #tpu.core_type<tc>, window_params = [{transform_indices = @transform_0, window_bounds = array<i64: 1, 18, 18, 8>}, {pipeline_mode = #tpu.pipeline_mode<synchronous>, transform_indices = @transform_1, window_bounds = array<i64: 72, 128>}, {transform_indices = @transform_2, window_bounds = array<i64: 1, 256, 8>}, {transform_indices = @transform_3, window_bounds = array<i64: 1, 1, 2, 128>}]} {
    %c0 = arith.constant 0 : index
    %c0_0 = arith.constant 0 : index
    %c0_1 = arith.constant 0 : index
    %c0_2 = arith.constant 0 : index
    %0 = vector.load %arg2[%c0, %c0_0, %c0_1, %c0_2] : memref<1x18x18x8xbf16, #tpu.memory_space<vmem>>, vector<1x16x16x8xbf16>
    %1 = vector.shape_cast %0 : vector<1x16x16x8xbf16> to vector<16x16x8xbf16>
    %c0_3 = arith.constant 0 : index
    %c0_4 = arith.constant 0 : index
    %c0_5 = arith.constant 0 : index
    %2 = vector.load %arg6[%c0_3, %c0_4, %c0_5] : memref<16x16x72xbf16, #tpu.memory_space<vmem>>, vector<16x16x8xbf16>
    tpu.vector_store %arg6[%c0_3, %c0_4, %c0_5], %1 {strides = array<i32>} : memref<16x16x72xbf16, #tpu.memory_space<vmem>>, vector<16x16x8xbf16>,
    %c0_6 = arith.constant 0 : index
    %c0_7 = arith.constant 0 : index
    %c1 = arith.constant 1 : index
    %c0_8 = arith.constant 0 : index
    %3 = vector.load %arg2[%c0_6, %c0_7, %c1, %c0_8] : memref<1x18x18x8xbf16, #tpu.memory_space<vmem>>, vector<1x16x16x8xbf16>
    %4 = vector.shape_cast %3 : vector<1x16x16x8xbf16> to vector<16x16x8xbf16>
    %c0_9 = arith.constant 0 : index
    %c0_10 = arith.constant 0 : index
    %c8 = arith.constant 8 : index
    %5 = vector.load %arg6[%c0_9, %c0_10, %c8] : memref<16x16x72xbf16, #tpu.memory_space<vmem>>, vector<16x16x8xbf16>
    tpu.vector_store %arg6[%c0_9, %c0_10, %c8], %4 {strides = array<i32>} : memref<16x16x72xbf16, #tpu.memory_space<vmem>>, vector<16x16x8xbf16>,
    %c0_11 = arith.constant 0 : index
    %c0_12 = arith.constant 0 : index
    %c2 = arith.constant 2 : index
    %c0_13 = arith.constant 0 : index
    %6 = vector.load %arg2[%c0_11, %c0_12, %c2, %c0_13] : memref<1x18x18x8xbf16, #tpu.memory_space<vmem>>, vector<1x16x16x8xbf16>
    %7 = vector.shape_cast %6 : vector<1x16x16x8xbf16> to vector<16x16x8xbf16>
    %c0_14 = arith.constant 0 : index
    %c0_15 = arith.constant 0 : index
    %c16 = arith.constant 16 : index
    %8 = vector.load %arg6[%c0_14, %c0_15, %c16] : memref<16x16x72xbf16, #tpu.memory_space<vmem>>, vector<16x16x8xbf16>
    tpu.vector_store %arg6[%c0_14, %c0_15, %c16], %7 {strides = array<i32>} : memref<16x16x72xbf16, #tpu.memory_space<vmem>>, vector<16x16x8xbf16>,
    %c0_16 = arith.constant 0 : index
    %c1_17 = arith.constant 1 : index
    %c0_18 = arith.constant 0 : index
    %c0_19 = arith.constant 0 : index
    %9 = vector.load %arg2[%c0_16, %c1_17, %c0_18, %c0_19] : memref<1x18x18x8xbf16, #tpu.memory_space<vmem>>, vector<1x16x16x8xbf16>
    %10 = vector.shape_cast %9 : vector<1x16x16x8xbf16> to vector<16x16x8xbf16>
    %c0_20 = arith.constant 0 : index
    %c0_21 = arith.constant 0 : index
    %c24 = arith.constant 24 : index
    %11 = vector.load %arg6[%c0_20, %c0_21, %c24] : memref<16x16x72xbf16, #tpu.memory_space<vmem>>, vector<16x16x8xbf16>
    tpu.vector_store %arg6[%c0_20, %c0_21, %c24], %10 {strides = array<i32>} : memref<16x16x72xbf16, #tpu.memory_space<vmem>>, vector<16x16x8xbf16>,
    %c0_22 = arith.constant 0 : index
    %c1_23 = arith.constant 1 : index
    %c1_24 = arith.constant 1 : index
    %c0_25 = arith.constant 0 : index
    %12 = vector.load %arg2[%c0_22, %c1_23, %c1_24, %c0_25] : memref<1x18x18x8xbf16, #tpu.memory_space<vmem>>, vector<1x16x16x8xbf16>
    %13 = vector.shape_cast %12 : vector<1x16x16x8xbf16> to vector<16x16x8xbf16>
    %c0_26 = arith.constant 0 : index
    %c0_27 = arith.constant 0 : index
    %c32 = arith.constant 32 : index
    %14 = vector.load %arg6[%c0_26, %c0_27, %c32] : memref<16x16x72xbf16, #tpu.memory_space<vmem>>, vector<16x16x8xbf16>
    tpu.vector_store %arg6[%c0_26, %c0_27, %c32], %13 {strides = array<i32>} : memref<16x16x72xbf16, #tpu.memory_space<vmem>>, vector<16x16x8xbf16>,
    %c0_28 = arith.constant 0 : index
    %c1_29 = arith.constant 1 : index
    %c2_30 = arith.constant 2 : index
    %c0_31 = arith.constant 0 : index
    %15 = vector.load %arg2[%c0_28, %c1_29, %c2_30, %c0_31] : memref<1x18x18x8xbf16, #tpu.memory_space<vmem>>, vector<1x16x16x8xbf16>
    %16 = vector.shape_cast %15 : vector<1x16x16x8xbf16> to vector<16x16x8xbf16>
    %c0_32 = arith.constant 0 : index
    %c0_33 = arith.constant 0 : index
    %c40 = arith.constant 40 : index
    %17 = vector.load %arg6[%c0_32, %c0_33, %c40] : memref<16x16x72xbf16, #tpu.memory_space<vmem>>, vector<16x16x8xbf16>
    tpu.vector_store %arg6[%c0_32, %c0_33, %c40], %16 {strides = array<i32>} : memref<16x16x72xbf16, #tpu.memory_space<vmem>>, vector<16x16x8xbf16>,
    %c0_34 = arith.constant 0 : index
    %c2_35 = arith.constant 2 : index
    %c0_36 = arith.constant 0 : index
    %c0_37 = arith.constant 0 : index
    %18 = vector.load %arg2[%c0_34, %c2_35, %c0_36, %c0_37] : memref<1x18x18x8xbf16, #tpu.memory_space<vmem>>, vector<1x16x16x8xbf16>
    %19 = vector.shape_cast %18 : vector<1x16x16x8xbf16> to vector<16x16x8xbf16>
    %c0_38 = arith.constant 0 : index
    %c0_39 = arith.constant 0 : index
    %c48 = arith.constant 48 : index
    %20 = vector.load %arg6[%c0_38, %c0_39, %c48] : memref<16x16x72xbf16, #tpu.memory_space<vmem>>, vector<16x16x8xbf16>
    tpu.vector_store %arg6[%c0_38, %c0_39, %c48], %19 {strides = array<i32>} : memref<16x16x72xbf16, #tpu.memory_space<vmem>>, vector<16x16x8xbf16>,
    %c0_40 = arith.constant 0 : index
    %c2_41 = arith.constant 2 : index
    %c1_42 = arith.constant 1 : index
    %c0_43 = arith.constant 0 : index
    %21 = vector.load %arg2[%c0_40, %c2_41, %c1_42, %c0_43] : memref<1x18x18x8xbf16, #tpu.memory_space<vmem>>, vector<1x16x16x8xbf16>
    %22 = vector.shape_cast %21 : vector<1x16x16x8xbf16> to vector<16x16x8xbf16>
    %c0_44 = arith.constant 0 : index
    %c0_45 = arith.constant 0 : index
    %c56 = arith.constant 56 : index
    %23 = vector.load %arg6[%c0_44, %c0_45, %c56] : memref<16x16x72xbf16, #tpu.memory_space<vmem>>, vector<16x16x8xbf16>
    tpu.vector_store %arg6[%c0_44, %c0_45, %c56], %22 {strides = array<i32>} : memref<16x16x72xbf16, #tpu.memory_space<vmem>>, vector<16x16x8xbf16>,
    %c0_46 = arith.constant 0 : index
    %c2_47 = arith.constant 2 : index
    %c2_48 = arith.constant 2 : index
    %c0_49 = arith.constant 0 : index
    %24 = vector.load %arg2[%c0_46, %c2_47, %c2_48, %c0_49] : memref<1x18x18x8xbf16, #tpu.memory_space<vmem>>, vector<1x16x16x8xbf16>
    %25 = vector.shape_cast %24 : vector<1x16x16x8xbf16> to vector<16x16x8xbf16>
    %c0_50 = arith.constant 0 : index
    %c0_51 = arith.constant 0 : index
    %c64 = arith.constant 64 : index
    %26 = vector.load %arg6[%c0_50, %c0_51, %c64] : memref<16x16x72xbf16, #tpu.memory_space<vmem>>, vector<16x16x8xbf16>
    tpu.vector_store %arg6[%c0_50, %c0_51, %c64], %25 {strides = array<i32>} : memref<16x16x72xbf16, #tpu.memory_space<vmem>>, vector<16x16x8xbf16>,
    %c0_52 = arith.constant 0 : index
    %c0_53 = arith.constant 0 : index
    %c0_54 = arith.constant 0 : index
    %27 = vector.load %arg6[%c0_52, %c0_53, %c0_54] : memref<16x16x72xbf16, #tpu.memory_space<vmem>>, vector<16x16x72xbf16>
    %28 = vector.shape_cast %27 : vector<16x16x72xbf16> to vector<256x72xbf16>
    %c0_55 = arith.constant 0 : index
    %c0_56 = arith.constant 0 : index
    %29 = vector.load %arg3[%c0_55, %c0_56] : memref<72x128xbf16, #tpu.memory_space<vmem>>, vector<72x128xbf16>
    %cst = arith.constant dense<0.000000e+00> : vector<256x128xf32>
    %30 = tpu.matmul %28, %29, %cst {dimension_numbers = #tpu.dot_dimension_numbers<[1], [0], [0], [1], [0, 0, 1, 1], [], []>} : vector<256x72xbf16>, vector<72x128xbf16>, vector<256x128xf32> -> vector<256x128xf32>
    %cst_57 = arith.constant dense<0.000000e+00> : vector<128xf32>
    %31 = vector.multi_reduction <add>, %30, %cst_57 [0] : vector<256x128xf32> to vector<128xf32>
    %32 = vector.shape_cast %31 : vector<128xf32> to vector<1x128xf32>
    %33 = arith.mulf %30, %30 : vector<256x128xf32>
    %cst_58 = arith.constant dense<0.000000e+00> : vector<128xf32>
    %34 = vector.multi_reduction <add>, %33, %cst_58 [0] : vector<256x128xf32> to vector<128xf32>
    %35 = vector.shape_cast %34 : vector<128xf32> to vector<1x128xf32>
    %36 = tpu.concatenate %32, %35 in 0 : vector<1x128xf32>, vector<1x128xf32> -> vector<2x128xf32>
    %37 = vector.shape_cast %36 : vector<2x128xf32> to vector<1x1x2x128xf32>
    %c0_59 = arith.constant 0 : index
    %c0_60 = arith.constant 0 : index
    %c0_61 = arith.constant 0 : index
    %c0_62 = arith.constant 0 : index
    %38 = vector.load %arg5[%c0_59, %c0_60, %c0_61, %c0_62] : memref<1x1x2x128xf32, #tpu.memory_space<vmem>>, vector<1x1x2x128xf32>
    tpu.vector_store %arg5[%c0_59, %c0_60, %c0_61, %c0_62], %37 {strides = array<i32>} : memref<1x1x2x128xf32, #tpu.memory_space<vmem>>, vector<1x1x2x128xf32>,
    %39 = vector.extract_strided_slice %30 {offsets = [0, 0], sizes = [256, 8], strides = [1, 1]} : vector<256x128xf32> to vector<256x8xf32>
    %40 = arith.truncf %39 : vector<256x8xf32> to vector<256x8xbf16>
    %41 = vector.shape_cast %40 : vector<256x8xbf16> to vector<1x256x8xbf16>
    %c0_63 = arith.constant 0 : index
    %c0_64 = arith.constant 0 : index
    %c0_65 = arith.constant 0 : index
    %42 = vector.load %arg4[%c0_63, %c0_64, %c0_65] : memref<1x256x8xbf16, #tpu.memory_space<vmem>>, vector<1x256x8xbf16>
    tpu.vector_store %arg4[%c0_63, %c0_64, %c0_65], %41 {strides = array<i32>} : memref<1x256x8xbf16, #tpu.memory_space<vmem>>, vector<1x256x8xbf16>,
    return
  }
  func.func @transform_0(%arg0: i32, %arg1: i32) -> (i32, i32, i32, i32) {
    %c1_i32 = arith.constant 1 : i32
    %0 = arith.muli %arg0, %c1_i32 : i32
    %1 = arith.addi %0, %arg1 : i32
    %c0_i32 = arith.constant 0 : i32
    %c0_i32_0 = arith.constant 0 : i32
    %c0_i32_1 = arith.constant 0 : i32
    %c0_i32_2 = arith.constant 0 : i32
    return %1, %c0_i32, %c0_i32_0, %c0_i32_1 : i32, i32, i32, i32
  }
  func.func @transform_1(%arg0: i32, %arg1: i32) -> (i32, i32) {
    %c0_i32 = arith.constant 0 : i32
    %c0_i32_0 = arith.constant 0 : i32
    %c0_i32_1 = arith.constant 0 : i32
    return %c0_i32, %c0_i32_0 : i32, i32
  }
  func.func @transform_2(%arg0: i32, %arg1: i32) -> (i32, i32, i32) {
    %c0_i32 = arith.constant 0 : i32
    %c0_i32_0 = arith.constant 0 : i32
    return %arg0, %arg1, %c0_i32 : i32, i32, i32
  }
  func.func @transform_3(%arg0: i32, %arg1: i32) -> (i32, i32, i32, i32) {
    %c0_i32 = arith.constant 0 : i32
    %c0_i32_0 = arith.constant 0 : i32
    %c0_i32_1 = arith.constant 0 : i32
    return %arg0, %arg1, %c0_i32, %c0_i32_0 : i32, i32, i32, i32
  }
}

module attributes {stable_mosaic.version = 11 : i64} {
  func.func @bn_relu_kernel(%arg0: i32, %arg1: i32, %arg2: memref<1x16x128xbf16, #tpu.memory_space<vmem>>, %arg3: memref<1x1x128xf32, #tpu.memory_space<vmem>>, %arg4: memref<1x1x128xf32, #tpu.memory_space<vmem>>, %arg5: memref<1x16x128xf32, #tpu.memory_space<vmem>>) attributes {dimension_semantics = [#tpu.dimension_semantics<parallel>, #tpu.dimension_semantics<parallel>], iteration_bounds = array<i64: 2, 1>, scalar_prefetch = 0 : i64, scratch_operands = 0 : i64, tpu.core_type = #tpu.core_type<tc>, window_params = [{transform_indices = @transform_0, window_bounds = array<i64: 1, 16, 128>}, {pipeline_mode = #tpu.pipeline_mode<synchronous>, transform_indices = @transform_1, window_bounds = array<i64: 1, 1, 128>}, {pipeline_mode = #tpu.pipeline_mode<synchronous>, transform_indices = @transform_2, window_bounds = array<i64: 1, 1, 128>}, {transform_indices = @transform_3, window_bounds = array<i64: 1, 16, 128>}]} {
    %c0 = arith.constant 0 : index
    %c0_0 = arith.constant 0 : index
    %c0_1 = arith.constant 0 : index
    %0 = vector.load %arg2[%c0, %c0_0, %c0_1] : memref<1x16x128xbf16, #tpu.memory_space<vmem>>, vector<1x16x128xbf16>
    %1 = arith.extf %0 : vector<1x16x128xbf16> to vector<1x16x128xf32>
    %c0_2 = arith.constant 0 : index
    %c0_3 = arith.constant 0 : index
    %c0_4 = arith.constant 0 : index
    %2 = vector.load %arg3[%c0_2, %c0_3, %c0_4] : memref<1x1x128xf32, #tpu.memory_space<vmem>>, vector<1x1x128xf32>
    %3 = vector.broadcast %2 : vector<1x1x128xf32> to vector<1x16x128xf32>
    %4 = arith.mulf %1, %3 : vector<1x16x128xf32>
    %c0_5 = arith.constant 0 : index
    %c0_6 = arith.constant 0 : index
    %c0_7 = arith.constant 0 : index
    %5 = vector.load %arg4[%c0_5, %c0_6, %c0_7] : memref<1x1x128xf32, #tpu.memory_space<vmem>>, vector<1x1x128xf32>
    %6 = vector.broadcast %5 : vector<1x1x128xf32> to vector<1x16x128xf32>
    %7 = arith.addf %4, %6 : vector<1x16x128xf32>
    %cst = arith.constant 0.000000e+00 : f32
    %8 = vector.broadcast %cst : f32 to vector<1x16x128xf32>
    %9 = arith.maximumf %7, %8 : vector<1x16x128xf32>
    %c0_8 = arith.constant 0 : index
    %c0_9 = arith.constant 0 : index
    %c0_10 = arith.constant 0 : index
    %10 = vector.load %arg5[%c0_8, %c0_9, %c0_10] : memref<1x16x128xf32, #tpu.memory_space<vmem>>, vector<1x16x128xf32>
    tpu.vector_store %arg5[%c0_8, %c0_9, %c0_10], %9 {strides = array<i32>} : memref<1x16x128xf32, #tpu.memory_space<vmem>>, vector<1x16x128xf32>,
    return
  }
  func.func @transform_0(%arg0: i32, %arg1: i32) -> (i32, i32, i32) {
    %c0_i32 = arith.constant 0 : i32
    %c0_i32_0 = arith.constant 0 : i32
    return %arg0, %arg1, %c0_i32 : i32, i32, i32
  }
  func.func @transform_1(%arg0: i32, %arg1: i32) -> (i32, i32, i32) {
    %c0_i32 = arith.constant 0 : i32
    %c0_i32_0 = arith.constant 0 : i32
    %c0_i32_1 = arith.constant 0 : i32
    %c0_i32_2 = arith.constant 0 : i32
    return %c0_i32, %c0_i32_0, %c0_i32_1 : i32, i32, i32
  }
  func.func @transform_2(%arg0: i32, %arg1: i32) -> (i32, i32, i32) {
    %c0_i32 = arith.constant 0 : i32
    %c0_i32_0 = arith.constant 0 : i32
    %c0_i32_1 = arith.constant 0 : i32
    %c0_i32_2 = arith.constant 0 : i32
    return %c0_i32, %c0_i32_0, %c0_i32_1 : i32, i32, i32
  }
  func.func @transform_3(%arg0: i32, %arg1: i32) -> (i32, i32, i32) {
    %c0_i32 = arith.constant 0 : i32
    %c0_i32_0 = arith.constant 0 : i32
    return %arg0, %arg1, %c0_i32 : i32, i32, i32
  }
}

</mosaic_0001>

<bundles_post_ra>
// kernel: tile.23
= control target key start
LH: loop header
LB: loop body
LE: loop exit
PB: predicated region body
PF: predicated region fallthrough
CT: control target
= control target key end

     0   :  { %s28_s0 = inlined_call_operand.vmem [shape: f32[8], index: 0, kind: input, shape index: {}]   ;;  %s29_s1 = inlined_call_operand.vmem [shape: f32[16,8], index: 1, kind: output, shape index: {}]  }
   0x1   :  { %v4_v0 = vld [vmem:[%s28_s0] ss:$0 sm:$0xff] }
   0x2   :  { %5 = vst [vmem:[%s29_s1] sm:$0xff] %v4_v0  ;;  %8 = vst [vmem:[%s29_s1 + $0x8] sm:$0xff] %v4_v0 }

// kernel: tile.24
= control target key start
LH: loop header
LB: loop body
LE: loop exit
PB: predicated region body
PF: predicated region fallthrough
CT: control target
= control target key end

     0   :  { %s133_s10 = smov 120   ;;  %s134_s11 = smov 104   ;;  %vm3_vm0 = vcmask 64512   ;;  %vm9_vm1 = vcmask 1048512   ;;  %vm15_vm2 = vcmask 982912   ;;  %vm21_vm3 = vcmask 917312   ;;  %s209_s0 = inlined_call_operand.vmem [shape: f32[16,8], index: 0, kind: input, shape index: {}]   ;;  %s210_s1 = inlined_call_operand.vmem [shape: f32[1,1,128], index: 1, kind: output, shape index: {}]  }
   0x1   :  { %v103_v0 = vld [vmem:[%s209_s0 + $0xf] sm:$0x1]   ;;  %v105_v1 = vld [vmem:[%s209_s0 + $0xd] sm:$0x1]   ;;  %v104_v2 = vld [vmem:[%s209_s0 + $0xe] sm:$0x1]  }
   0x2   :  { %7 = vrot.lane.b32.xlu0 %v103_v0, %s133_s10  ;;  %19 = vrot.lane.b32.xlu1 %v105_v1, %s134_s11  ;;  %v106_v3 = vld [vmem:[%s209_s0 + $0xc] sm:$0x1]   ;;  %s135_s16 = smov 112   ;;  %s136_s17 = smov 96   ;;  %v107_v4 = vld [vmem:[%s209_s0 + $0xb] sm:$0x1]  }
   0x3   :  { %v108_v5 = vld [vmem:[%s209_s0 + $0xa] sm:$0x1]   ;;  %v2_v6 = vld [vmem:[%s209_s0] sm:$0x1]   ;;  %s137_s24 = smov 88   ;;  %s138_s25 = smov 80  }
   0x4   :  { %4 = vst.msk [vmem:[#allocation0] sm:$0x1] %vm3_vm0, %v2_v6   ;;  %v109_v7 = vld [vmem:[%s209_s0 + $0x9] sm:$0x1]   ;;  %v110_v8 = vld [vmem:[%s209_s0 + $0x8] sm:$0x1]  }
   0x5   :  { %s139_s30 = smov 72   ;;  %s140_s2 = smov 64   ;;  %v111_v9 = vld [vmem:[%s209_s0 + $0x7] sm:$0x1]   ;;  %v112_v10 = vld [vmem:[%s209_s0 + $0x6] sm:$0x1]  }
   0x6   :  { %13 = vrot.lane.b32.xlu0 %v104_v2, %s135_s16  ;;  %25 = vrot.lane.b32.xlu1 %v106_v3, %s136_s17  ;;  %s141_s7 = smov 56   ;;  %s142_s8 = smov 48   ;;  %v113_v11 = vld [vmem:[%s209_s0 + $0x5] sm:$0x1]   ;;  %v114_v12 = vld [vmem:[%s209_s0 + $0x4] sm:$0x1]  }
   0x7   :  { %s143_s13 = smov 40   ;;  %s144_s14 = smov 32   ;;  %v115_v13 = vld [vmem:[%s209_s0 + $0x3] sm:$0x1]   ;;  %v116_v14 = vld [vmem:[%s209_s0 + $0x2] sm:$0x1]  }
   0x8   :  { %s145_s19 = smov 24   ;;  %s146_s20 = smov 16   ;;  %v117_v15 = vld [vmem:[%s209_s0 + $0x1] sm:$0x1]   ;;  %vm27_vm4 = vcmask 851712   ;;  %vm33_vm5 = vcmask 786112  }
   0x9   :  { %s147_s0 = smov 8   ;;  %vm39_vm6 = vcmask 720512   ;;  %vm45_vm7 = vcmask 654912   ;;  %vm51_vm8 = vcmask 589312   ;;  %vm57_vm9 = vcmask 523712  }
   0xa   :  { %31 = vrot.lane.b32.xlu0 %v107_v4, %s137_s24  ;;  %37 = vrot.lane.b32.xlu1 %v108_v5, %s138_s25  ;;  %vm63_vm10 = vcmask 458112   ;;  %vm69_vm11 = vcmask 392512   ;;  %vm75_vm12 = vcmask 326912   ;;  %vm81_vm13 = vcmask 261312  }
   0xb   :  { %vm87_vm14 = vcmask 195712   ;;  %vm93_vm15 = vcmask 130112  }
   0xe   :  { %43 = vrot.lane.b32.xlu0 %v109_v7, %s139_s30  ;;  %49 = vrot.lane.b32.xlu1 %v110_v8, %s140_s2 }
  0x12   :  { %55 = vrot.lane.b32.xlu0 %v111_v9, %s141_s7  ;;  %61 = vrot.lane.b32.xlu1 %v112_v10, %s142_s8 }
  0x16   :  { %67 = vrot.lane.b32.xlu0 %v113_v11, %s143_s13  ;;  %73 = vrot.lane.b32.xlu1 %v114_v12, %s144_s14 }
  0x1a   :  { %79 = vrot.lane.b32.xlu0 %v115_v13, %s145_s19  ;;  %85 = vrot.lane.b32.xlu1 %v116_v14, %s146_s20 }
  0x1e   :  { %91 = vrot.lane.b32.xlu0 %v117_v15, %s147_s0 }
  0x74   :  { %v8_v16 = vpop.permute.xlu0 %7   ;;  %v20_v17 = vpop.permute.xlu1 %19  }
  0x75   :  { %10 = vst.msk [vmem:[#allocation0] sm:$0x1] %vm9_vm1, %v8_v16  }
  0x78   :  { %v14_v18 = vpop.permute.xlu0 %13   ;;  %v26_v19 = vpop.permute.xlu1 %25  }
  0x79   :  { %16 = vst.msk [vmem:[#allocation0] sm:$0x1] %vm15_vm2, %v14_v18  }
  0x7a   :  { %22 = vst.msk [vmem:[#allocation0] sm:$0x1] %vm21_vm3, %v20_v17  }
  0x7b   :  { %28 = vst.msk [vmem:[#allocation0] sm:$0x1] %vm27_vm4, %v26_v19  }
  0x7c   :  { %v32_v20 = vpop.permute.xlu0 %31   ;;  %v38_v21 = vpop.permute.xlu1 %37  }
  0x7d   :  { %34 = vst.msk [vmem:[#allocation0] sm:$0x1] %vm33_vm5, %v32_v20  }
  0x7e   :  { %40 = vst.msk [vmem:[#allocation0] sm:$0x1] %vm39_vm6, %v38_v21  }
  0x80   :  { %v44_v22 = vpop.permute.xlu0 %43   ;;  %v50_v23 = vpop.permute.xlu1 %49  }
  0x81   :  { %46 = vst.msk [vmem:[#allocation0] sm:$0x1] %vm45_vm7, %v44_v22  }
  0x82   :  { %52 = vst.msk [vmem:[#allocation0] sm:$0x1] %vm51_vm8, %v50_v23  }
  0x84   :  { %v56_v24 = vpop.permute.xlu0 %55   ;;  %v62_v25 = vpop.permute.xlu1 %61  }
  0x85   :  { %58 = vst.msk [vmem:[#allocation0] sm:$0x1] %vm57_vm9, %v56_v24  }
  0x86   :  { %64 = vst.msk [vmem:[#allocation0] sm:$0x1] %vm63_vm10, %v62_v25  }
  0x88   :  { %v68_v26 = vpop.permute.xlu0 %67   ;;  %v74_v27 = vpop.permute.xlu1 %73  }
  0x89   :  { %70 = vst.msk [vmem:[#allocation0] sm:$0x1] %vm69_vm11, %v68_v26  }
  0x8a   :  { %76 = vst.msk [vmem:[#allocation0] sm:$0x1] %vm75_vm12, %v74_v27  }
  0x8c   :  { %v80_v28 = vpop.permute.xlu0 %79   ;;  %v86_v29 = vpop.permute.xlu1 %85  }
  0x8d   :  { %82 = vst.msk [vmem:[#allocation0] sm:$0x1] %vm81_vm13, %v80_v28  }
  0x8e   :  { %88 = vst.msk [vmem:[#allocation0] sm:$0x1] %vm87_vm14, %v86_v29  }
  0x90   :  { %v92_v30 = vpop.permute.xlu0 %91  }
  0x91   :  { %94 = vst.msk [vmem:[#allocation0] sm:$0x1] %vm93_vm15, %v92_v30  }
  0x98   :  { %v99_v31 = vld [vmem:[#allocation0] sm:$0x1] }
  0x99   :  { %102 = vst [vmem:[%s210_s1] sm:$0x1] %v99_v31 }

// kernel: conv_block_forward.5
= control target key start
LH: loop header
LB: loop body
LE: loop exit
PB: predicated region body
PF: predicated region fallthrough
CT: control target
= control target key end

     0   :  { %s427_s12 = smov 0   ;;  %s429_s13 = smov 0   ;;  %s463_s0 = inlined_call_operand.vmem [shape: bf16[2,16,128], index: 0, kind: input, shape index: {}]   ;;  %s464_s1 = inlined_call_operand.vmem [shape: f32[1,1,128], index: 1, kind: input, shape index: {}]   ;;  %s465_s2 = inlined_call_operand.vmem [shape: f32[1,1,128], index: 2, kind: input, shape index: {}]   ;;  %s466_s3 = inlined_call_operand.vmem [shape: bf16[2,16,128], index: 3, kind: output, shape index: {}]  }
   0x1   :  { %s431_s14 = smov 0  }
   0x2 LB: > { %s25_s15 = sadd.s32 1, %s401_s13  ;;  %p335_p0 = scmp.ge.s32.totalorder %s405_s14, 1  ;;  %s405_s14 = sphi %s431_s14, %s13_s14   ;;  %s401_s13 = sphi %s429_s13, %s468_s13   ;;  %s397_s12 = sphi %s427_s12, %s467_s12  }
   0x3   : > { %p27_p1 = scmp.ge.s32.totalorder %s25_s15, 2  ;;  %p158_p2 = scmp.lt.s32.totalorder %s405_s14, 3 }
   0x5   : > { %s470_s15 = smov (%p27_p1, %s25_s15), 0  ;;  %p159_p3 = pnand %p335_p0, %p158_p2 }
   0x6   : > { %p191_p4 = scmp.lt.s32.totalorder (!%p159_p3), %s397_s12, 1 }
   0x7   : > { %162 = sbr.rel (%p159_p3) target bundleno = 27 (0x1b), region = 32 }
   0xc   : > { %s472_s12 = smov (!%p191_p4, %s397_s12), 1  ;;  %v340_v1 = vld [vmem:[%s464_s1] ss:$0 sm:$0xff] }
   0xd   : > { %s346_s16 = sshll.u32 %s472_s12, 3  ;;  %v341_v4 = vld [vmem:[%s465_s2] ss:$0 sm:$0xff] }
   0xe   : > { %s198_s19 = scalar_lea.vmem %s463_s0, %s346_s16  ;;  %s208_s26 = scalar_lea.vmem %s466_s3, %s346_s16 }
   0xf   : > { %v351_v0 = vld [vmem:[%s198_s19] sm:$0xff]  }
  0x10   : > { %v352_v2 = vunpack.c.l.bf16 %v351_v0  ;;  %v353_v3 = vunpack.c.h.bf16 %v351_v0 }
  0x12   : > { %v221_v5 = vmul.f32 %v352_v2, %v340_v1  ;;  %v222_v6 = vmul.f32 %v353_v3, %v340_v1 }
  0x14   : > { %v230_v7 = vadd.f32 %v341_v4, %v221_v5  ;;  %v231_v8 = vadd.f32 %v341_v4, %v222_v6 }
  0x16   : > { %v232_v9 = vmax.f32 %v230_v7, 0.0  ;;  %v233_v10 = vmax.f32 %v231_v8, 0.0 }
  0x18   : > { %v357_v11 = vpack.c.bf16 %v233_v10, %v232_v9 }
  0x1a   : > { %358 = vst [vmem:[%s208_s26] sm:$0xff] %v357_v11  }
  0x1b PF: > { %s13_s14 = sadd.s32 1, %s405_s14   ;;  %s467_s12 = smov %s401_s13 }
  0x1c   : > { %p10_p5 = scmp.ge.s32.totalorder %s13_s14, 4   ;;  %s468_s13 = smov %s470_s15 }
  0x1e   :  { %12 = sbr.rel (!%p10_p5) target bundleno = 2 (0x2), region = 62 }

// kernel: conv_block_forward.7
= control target key start
LH: loop header
LB: loop body
LE: loop exit
PB: predicated region body
PF: predicated region fallthrough
CT: control target
= control target key end

     0   :  { %s410_s12 = smov 0   ;;  %s412_s13 = smov 0   ;;  %s446_s0 = inlined_call_operand.vmem [shape: bf16[2,16,128], index: 0, kind: input, shape index: {}]   ;;  %s447_s1 = inlined_call_operand.vmem [shape: f32[1,1,128], index: 1, kind: input, shape index: {}]   ;;  %s448_s2 = inlined_call_operand.vmem [shape: f32[1,1,128], index: 2, kind: input, shape index: {}]   ;;  %s449_s3 = inlined_call_operand.vmem [shape: f32[2,16,128], index: 3, kind: output, shape index: {}]  }
   0x1   :  { %s414_s14 = smov 0  }
   0x2 LB: > { %s25_s15 = sadd.s32 1, %s384_s13  ;;  %p327_p0 = scmp.ge.s32.totalorder %s388_s14, 1  ;;  %s388_s14 = sphi %s414_s14, %s13_s14   ;;  %s384_s13 = sphi %s412_s13, %s451_s13   ;;  %s380_s12 = sphi %s410_s12, %s450_s12  }
   0x3   : > { %p27_p1 = scmp.ge.s32.totalorder %s25_s15, 2  ;;  %p158_p2 = scmp.lt.s32.totalorder %s388_s14, 3 }
   0x5   : > { %s453_s15 = smov (%p27_p1, %s25_s15), 0  ;;  %p159_p3 = pnand %p327_p0, %p158_p2 }
   0x6   : > { %p191_p4 = scmp.lt.s32.totalorder (!%p159_p3), %s380_s12, 1 }
   0x7   : > { %162 = sbr.rel (%p159_p3) target bundleno = 25 (0x19), region = 32 }
   0xc   : > { %s455_s12 = smov (!%p191_p4, %s380_s12), 1  ;;  %v332_v1 = vld [vmem:[%s447_s1] ss:$0 sm:$0xff] }
   0xd   : > { %s336_s16 = sshll.u32 %s455_s12, 3  ;;  %v333_v4 = vld [vmem:[%s448_s2] ss:$0 sm:$0xff]  ;;  %s337_s24 = sshll.u32 %s455_s12, 4 }
   0xe   : > { %s198_s19 = scalar_lea.vmem %s446_s0, %s336_s16  ;;  %s208_s27 = scalar_lea.vmem %s449_s3, %s337_s24 }
   0xf   : > { %v339_v0 = vld [vmem:[%s198_s19] sm:$0xff]  }
  0x10   : > { %v340_v2 = vunpack.c.l.bf16 %v339_v0  ;;  %v341_v3 = vunpack.c.h.bf16 %v339_v0 }
  0x12   : > { %v221_v5 = vmul.f32 %v340_v2, %v332_v1  ;;  %v222_v6 = vmul.f32 %v341_v3, %v332_v1 }
  0x14   : > { %v230_v7 = vadd.f32 %v333_v4, %v221_v5  ;;  %v231_v8 = vadd.f32 %v333_v4, %v222_v6 }
  0x16   : > { %v232_v9 = vmax.f32 %v230_v7, 0.0  ;;  %v233_v10 = vmax.f32 %v231_v8, 0.0 }
  0x18   : > { %234 = vst [vmem:[%s208_s27] sm:$0xff] %v232_v9  ;;  %235 = vst [vmem:[%s208_s27 + $0x8] sm:$0xff] %v233_v10 }
  0x19 PF: > { %s13_s14 = sadd.s32 1, %s388_s14   ;;  %s450_s12 = smov %s384_s13 }
  0x1a   : > { %p10_p5 = scmp.ge.s32.totalorder %s13_s14, 4   ;;  %s451_s13 = smov %s453_s15 }
  0x1c   :  { %12 = sbr.rel (!%p10_p5) target bundleno = 2 (0x2), region = 62 }

// kernel: conv_block_forward.4
= control target key start
LH: loop header
LB: loop body
LE: loop exit
PB: predicated region body
PF: predicated region fallthrough
CT: control target
= control target key end

     0   :  { %s4696_s12 = smov 0   ;;  %s4698_s13 = smov 0   ;;  %s6243_s0 = inlined_call_operand.vmem [shape: bf16[2,18,18,4], index: 0, kind: input, shape index: {}]   ;;  %s6244_s1 = inlined_call_operand.vmem [shape: bf16[36,128], index: 1, kind: input, shape index: {}]   ;;  %s6245_s2 = inlined_call_operand.vmem [shape: bf16[2,256,8], index: 2, kind: output, shape index: {0}]   ;;  %s6246_s3 = inlined_call_operand.vmem [shape: f32[2,1,2,128], index: 3, kind: output, shape index: {1}]  }
   0x1   :  { %s4700_s14 = smov 0  }
   0x2 LB: > { %s26_s15 = sadd.s32 1, %s4662_s13  ;;  %p4116_p0 = scmp.ge.s32.totalorder %s4666_s14, 1  ;;  %s4666_s14 = sphi %s4700_s14, %s14_s14   ;;  %s4662_s13 = sphi %s4698_s13, %s6252_s13   ;;  %s4658_s12 = sphi %s4696_s12, %s6251_s12  }
   0x3   : > { %p28_p1 = scmp.ge.s32.totalorder %s26_s15, 2  ;;  %p160_p2 = scmp.lt.s32.totalorder %s4666_s14, 3 }
   0x5   : > { %s6254_s15 = smov (%p28_p1, %s26_s15), 0  ;;  %p161_p3 = pnand %p4116_p0, %p160_p2 }
   0x6   : > { %p197_p4 = scmp.lt.s32.totalorder (!%p161_p3), %s4658_s12, 1  ;;  %s4668_s20 = smov (!%p161_p3), 4  }
   0x7   : > { %164 = sbr.rel (%p161_p3) target bundleno = 879 (0x36f), region = 28  ;;  %s4669_s21 = smov (!%p161_p3), 8  }
   0x8   : > { %s4670_s22 = smov (!%p161_p3), 12   ;;  %s4671_s23 = smov (!%p161_p3), 16  }
   0x9   : > { %s4672_s24 = smov (!%p161_p3), 20   ;;  %s4673_s25 = smov (!%p161_p3), 24  }
   0xa   : > { %s4674_s30 = smov (!%p161_p3), 28   ;;  %s4675_s6 = smov (!%p161_p3), 32  }
   0xc   : > { %s6256_s12 = smov (!%p197_p4, %s4658_s12), 1  ;;  %vm334_vm0 = vsmask.f32 3328  ;;  %vm335_vm1 = vsmask.f32 7440  ;;  %vm253_vm3 = vcmask 27648  }
   0xd   : > { %s4592_s16 = smul.u32 216, %s6256_s12  ;;  %vm4731_vm2 = vmor %vm334_vm0, %vm335_vm1  ;;  %vm946_vm4 = vcmask 1042432   ;;  %vm947_vm5 = vcmask 1046532   ;;  %vm817_vm7 = vcmask 60448   ;;  %vm1157_vm8 = vcmask 93248   ;;  %s4494_s7 = sshll.u32 %s6256_s12, 7 }
   0xe   : > { %vm4875_vm6 = vmor %vm946_vm4, %vm947_vm5  ;;  %vm3555_vm9 = vcmask 1041408   ;;  %vm1351_vm10 = vcmask 126048   ;;  %vm1912_vm11 = vcmask 158848   ;;  %vm2249_vm12 = vcmask 191648   ;;  %s6104_s10 = scalar_lea.vmem %s6245_s2, %s4494_s7  ;;  %s4120_s11 = sshll.u32 %s6256_s12, 1 }
   0xf   : > { %s4720_s19 = scalar_lea.vmem %s6243_s0, %s4592_s16  ;;  %vm2443_vm13 = vcmask 224448   ;;  %vm3004_vm14 = vcmask 257248   ;;  %vm3341_vm15 = vcmask 290048   ;;  %vm3506_vm0 = vcmask 293888   ;;  %s219_s18 = scalar_lea.vmem %s6246_s3, %s4120_s11 }
  0x10   : > { %v289_v0 = vld [vmem:[%s4720_s19 + $0xc] sm:$0xf]  ;;  %v290_v1 = vld [vmem:[%s4720_s19 + $0x10] sm:$0xf]  ;;  %v286_v2 = vld [vmem:[%s4720_s19] sm:$0xf] }
  0x11   : > { %v362_v3 = vshrl.u32 %v289_v0, 16  ;;  %v365_v4 = vshll.u32 %v289_v0, 16  ;;  %v371_v5 = vshll.u32 %v290_v1, 16  ;;  %v375_v6 = vshrl.u32 %v290_v1, 16  ;;  %v287_v7 = vld [vmem:[%s4720_s19 + $0x4] sm:$0xf] }
  0x12   : > { %v338_v8 = vshrl.u32 %v286_v2, 16  ;;  %v341_v9 = vshll.u32 %v286_v2, 16  ;;  %v347_v10 = vshll.u32 %v287_v7, 16  ;;  %v351_v11 = vshrl.u32 %v287_v7, 16  ;;  %v291_v12 = vld [vmem:[%s4720_s19 + $0x14] sm:$0x1] }
  0x13   : > { %v364_v13 = vrot.slane %v362_v3, 4  ;;  %v367_v14 = vrot.slane %v365_v4, 5  ;;  %v373_v15 = vrot.slane %v371_v5, 5  ;;  %v377_v16 = vrot.slane %v375_v6, 4  ;;  %v288_v17 = vld [vmem:[%s4720_s19 + $0x8] sm:$0x1] }
  0x14   : > { %v340_v18 = vrot.slane %v338_v8, 4  ;;  %v343_v19 = vrot.slane %v341_v9, 5  ;;  %v349_v20 = vrot.slane %v347_v10, 5  ;;  %v353_v21 = vrot.slane %v351_v11, 4  ;;  %v293_v22 = vld [vmem:[%s4720_s19 + $0x1c] sm:$0xf] }
  0x15   : > { %v368_v23 = vor.u32 %v367_v14, %v364_v13  ;;  %v378_v24 = vor.u32 %v377_v16, %v373_v15  ;;  %v381_v25 = vshll.u32 %v291_v12, 16  ;;  %v357_v26 = vshll.u32 %v288_v17, 16  ;;  %v294_v30 = vld [vmem:[%s4720_s19 + $0x20] sm:$0x1]  ;;  %v292_v33 = vld [vmem:[%s4720_s19 + $0x18] sm:$0xf] }
  0x16   : > { %v344_v28 = vor.u32 %v343_v19, %v340_v18  ;;  %v354_v29 = vor.u32 %v353_v21, %v349_v20  ;;  %v395_v31 = vshll.u32 %v293_v22, 16  ;;  %v399_v32 = vshrl.u32 %v293_v22, 16  ;;  %v296_v42 = vld [vmem:[%s4720_s19 + $0x28] sm:$0xf]  ;;  %v297_v47 = vld [vmem:[%s4720_s19 + $0x2c] sm:$0x1] }
  0x17   : > { %v369_v34 = vrot.slane %v368_v23, 4  ;;  %v379_v35 = vrot.slane %v378_v24, 4  ;;  %v383_v36 = vrot.slane %v381_v25, 5  ;;  %v359_v37 = vrot.slane %v357_v26, 5  ;;  %v295_v48 = vld [vmem:[%s4720_s19 + $0x24] sm:$0xf] }
  0x18   : > { %v345_v38 = vrot.slane %v344_v28, 4  ;;  %v355_v39 = vrot.slane %v354_v29, 4  ;;  %v397_v40 = vrot.slane %v395_v31, 5  ;;  %v401_v41 = vrot.slane %v399_v32, 4  ;;  %v299_v53 = vld [vmem:[%s4720_s19 + $0x34] sm:$0xf] }
  0x19   : > { %v374_v43 = vsel %vm4731_vm2, %v369_v34, %v373_v15  ;;  %v384_v44 = vsel %vm4731_vm2, %v379_v35, %v383_v36  ;;  %v405_v45 = vshll.u32 %v294_v30, 16  ;;  %v386_v46 = vshrl.u32 %v292_v33, 16  ;;  %v300_v62 = vld [vmem:[%s4720_s19 + $0x38] sm:$0x1]  ;;  %v298_v3 = vld [vmem:[%s4720_s19 + $0x30] sm:$0xf] }
  0x1a   : > { %725 = vrot.lane.b32.xlu1 %v374_v43, %s4668_s20  ;;  %v350_v49 = vsel %vm4731_vm2, %v345_v38, %v349_v20  ;;  %v360_v50 = vsel %vm4731_vm2, %v355_v39, %v359_v37  ;;  %v402_v51 = vor.u32 %v401_v41, %v397_v40  ;;  %v389_v52 = vshll.u32 %v292_v33, 16  ;;  %v302_v8 = vld [vmem:[%s4720_s19 + $0x40] sm:$0xf]  ;;  %v303_v17 = vld [vmem:[%s4720_s19 + $0x44] sm:$0x1] }
  0x1b   : > { %721 = vrot.lane.b32.xlu0 %v350_v49, %s4668_s20  ;;  %v407_v54 = vrot.slane %v405_v45, 5  ;;  %v388_v55 = vrot.slane %v386_v46, 4  ;;  %v419_v56 = vshll.u32 %v296_v42, 16  ;;  %v423_v57 = vshrl.u32 %v296_v42, 16  ;;  %v301_v22 = vld [vmem:[%s4720_s19 + $0x3c] sm:$0xf] }
  0x1c   : > { %v403_v58 = vrot.slane %v402_v51, 4  ;;  %v391_v59 = vrot.slane %v389_v52, 5  ;;  %v429_v60 = vshll.u32 %v297_v47, 16  ;;  %v410_v61 = vshrl.u32 %v295_v48, 16  ;;  %v305_v28 = vld [vmem:[%s4720_s19 + $0x4c] sm:$0xf] }
  0x1d   : > { %v421_v63 = vrot.slane %v419_v56, 5  ;;  %v425_v0 = vrot.slane %v423_v57, 4  ;;  %v413_v1 = vshll.u32 %v295_v48, 16  ;;  %v443_v2 = vshll.u32 %v299_v53, 16  ;;  %v306_v37 = vld [vmem:[%s4720_s19 + $0x50] sm:$0x1] }
  0x1e   : > { %727 = vrot.lane.b32.xlu1 %v384_v44, %s4668_s20  ;;  %v408_v4 = vsel %vm4731_vm2, %v403_v58, %v407_v54  ;;  %v392_v5 = vor.u32 %v391_v59, %v388_v55  ;;  %v431_v6 = vrot.slane %v429_v60, 5  ;;  %v412_v7 = vrot.slane %v410_v61, 4  ;;  %v304_v42 = vld [vmem:[%s4720_s19 + $0x48] sm:$0xf]  ;;  %v308_v47 = vld [vmem:[%s4720_s19 + $0x58] sm:$0xf] }
  0x1f   : > { %723 = vrot.lane.b32.xlu0 %v360_v50, %s4668_s20  ;;  %v426_v9 = vor.u32 %v425_v0, %v421_v63  ;;  %v415_v10 = vrot.slane %v413_v1, 5  ;;  %v445_v11 = vrot.slane %v443_v2, 5  ;;  %v447_v12 = vshrl.u32 %v299_v53, 16  ;;  %v309_v56 = vld [vmem:[%s4720_s19 + $0x5c] sm:$0x1] }
  0x20   : > { %v393_v13 = vrot.slane %v392_v5, 4  ;;  %v453_v14 = vshll.u32 %v300_v62, 16  ;;  %v434_v15 = vshrl.u32 %v298_v3, 16  ;;  %v437_v16 = vshll.u32 %v298_v3, 16  ;;  %v307_v61 = vld [vmem:[%s4720_s19 + $0x54] sm:$0xf] }
  0x21   : > { %v427_v18 = vrot.slane %v426_v9, 4  ;;  %v416_v19 = vor.u32 %v415_v10, %v412_v7  ;;  %v449_v20 = vrot.slane %v447_v12, 4  ;;  %v467_v21 = vshll.u32 %v302_v8, 16 }
  0x22   : > { %731 = vrot.lane.b32.xlu1 %v408_v4, %s4668_s20  ;;  %v398_v23 = vsel %vm4731_vm2, %v393_v13, %v397_v40  ;;  %v455_v24 = vrot.slane %v453_v14, 5  ;;  %v436_v25 = vrot.slane %v434_v15, 4  ;;  %v439_v26 = vrot.slane %v437_v16, 5  ;;  %v312_v15 = vld [vmem:[%s4720_s19 + $0x68] sm:$0x1] }
  0x23   : > { %729 = vrot.lane.b32.xlu0 %v398_v23, %s4668_s20  ;;  %v432_v29 = vsel %vm4731_vm2, %v427_v18, %v431_v6  ;;  %v417_v30 = vrot.slane %v416_v19, 4  ;;  %v450_v31 = vor.u32 %v449_v20, %v445_v11  ;;  %v469_v32 = vrot.slane %v467_v21, 5  ;;  %v311_v6 = vld [vmem:[%s4720_s19 + $0x64] sm:$0xf]  ;;  %v310_v16 = vld [vmem:[%s4720_s19 + $0x60] sm:$0xf] }
  0x24   : > { %v440_v33 = vor.u32 %v439_v26, %v436_v25  ;;  %v471_v34 = vshrl.u32 %v302_v8, 16  ;;  %v477_v35 = vshll.u32 %v303_v17, 16  ;;  %v458_v36 = vshrl.u32 %v301_v22, 16  ;;  %v314_v25 = vld [vmem:[%s4720_s19 + $0x70] sm:$0xf] }
  0x25   : > { %v422_v38 = vsel %vm4731_vm2, %v417_v30, %v421_v63  ;;  %v451_v39 = vrot.slane %v450_v31, 4  ;;  %v461_v40 = vshll.u32 %v301_v22, 16  ;;  %v491_v41 = vshll.u32 %v305_v28, 16 }
  0x26   : > { %735 = vrot.lane.b32.xlu1 %v432_v29, %s4668_s20  ;;  %v441_v43 = vrot.slane %v440_v33, 4  ;;  %v473_v44 = vrot.slane %v471_v34, 4  ;;  %v479_v45 = vrot.slane %v477_v35, 5  ;;  %v460_v46 = vrot.slane %v458_v36, 4  ;;  %v315_v35 = vld [vmem:[%s4720_s19 + $0x74] sm:$0x1] }
  0x27   : > { %733 = vrot.lane.b32.xlu0 %v422_v38, %s4668_s20  ;;  %v456_v48 = vsel %vm4731_vm2, %v451_v39, %v455_v24  ;;  %v463_v49 = vrot.slane %v461_v40, 5  ;;  %v493_v50 = vrot.slane %v491_v41, 5  ;;  %v495_v51 = vshrl.u32 %v305_v28, 16  ;;  %v313_v36 = vld [vmem:[%s4720_s19 + $0x6c] sm:$0xf] }
  0x28   : > { %v446_v52 = vsel %vm4731_vm2, %v441_v43, %v445_v11  ;;  %v474_v53 = vor.u32 %v473_v44, %v469_v32  ;;  %v501_v54 = vshll.u32 %v306_v37, 16  ;;  %v482_v55 = vshrl.u32 %v304_v42, 16 }
  0x29   : > { %v464_v57 = vor.u32 %v463_v49, %v460_v46  ;;  %v497_v58 = vrot.slane %v495_v51, 4  ;;  %v485_v59 = vshll.u32 %v304_v42, 16  ;;  %v515_v60 = vshll.u32 %v308_v47, 16 }
  0x2a   : > { %739 = vrot.lane.b32.xlu1 %v456_v48, %s4668_s20  ;;  %v475_v62 = vrot.slane %v474_v53, 4  ;;  %v503_v63 = vrot.slane %v501_v54, 5  ;;  %v484_v0 = vrot.slane %v482_v55, 4  ;;  %v519_v1 = vshrl.u32 %v308_v47, 16  ;;  %v318_v54 = vld [vmem:[%s4720_s19 + $0x80] sm:$0x1] }
  0x2b   : > { %737 = vrot.lane.b32.xlu0 %v446_v52, %s4668_s20  ;;  %v465_v2 = vrot.slane %v464_v57, 4  ;;  %v498_v3 = vor.u32 %v497_v58, %v493_v50  ;;  %v487_v4 = vrot.slane %v485_v59, 5  ;;  %v517_v5 = vrot.slane %v515_v60, 5  ;;  %v316_v55 = vld [vmem:[%s4720_s19 + $0x78] sm:$0xf] }
  0x2c   : > { %v480_v7 = vsel %vm4731_vm2, %v475_v62, %v479_v45  ;;  %v521_v8 = vrot.slane %v519_v1, 4  ;;  %v525_v9 = vshll.u32 %v309_v56, 16  ;;  %v506_v10 = vshrl.u32 %v307_v61, 16  ;;  %v317_v45 = vld [vmem:[%s4720_s19 + $0x7c] sm:$0xf] }
  0x2d   : > { %v470_v11 = vsel %vm4731_vm2, %v465_v2, %v469_v32  ;;  %v499_v12 = vrot.slane %v498_v3, 4  ;;  %v488_v13 = vor.u32 %v487_v4, %v484_v0  ;;  %v509_v14 = vshll.u32 %v307_v61, 16  ;;  %v320_v0 = vld [vmem:[%s4720_s19 + $0x88] sm:$0xf] }
  0x2e   : > { %743 = vrot.lane.b32.xlu1 %v480_v7, %s4668_s20  ;;  %v522_v17 = vor.u32 %v521_v8, %v517_v5  ;;  %v527_v18 = vrot.slane %v525_v9, 5  ;;  %v508_v19 = vrot.slane %v506_v10, 4  ;;  %v539_v20 = vshll.u32 %v311_v6, 16  ;;  %v319_v10 = vld [vmem:[%s4720_s19 + $0x84] sm:$0xf] }
  0x2f   : > { %741 = vrot.lane.b32.xlu0 %v470_v11, %s4668_s20  ;;  %v504_v21 = vsel %vm4731_vm2, %v499_v12, %v503_v63  ;;  %v489_v22 = vrot.slane %v488_v13, 4  ;;  %v511_v23 = vrot.slane %v509_v14, 5  ;;  %v543_v24 = vshrl.u32 %v311_v6, 16 }
  0x30   : > { %v523_v26 = vrot.slane %v522_v17, 4  ;;  %v541_v28 = vrot.slane %v539_v20, 5  ;;  %v549_v29 = vshll.u32 %v312_v15, 16  ;;  %v530_v30 = vshrl.u32 %v310_v16, 16 }
  0x31   : > { %v494_v31 = vsel %vm4731_vm2, %v489_v22, %v493_v50  ;;  %v512_v32 = vor.u32 %v511_v23, %v508_v19  ;;  %v545_v33 = vrot.slane %v543_v24, 4  ;;  %v533_v34 = vshll.u32 %v310_v16, 16  ;;  %v323_v19 = vld [vmem:[%s4720_s19 + $0x94] sm:$0xf]  ;;  %v324_v24 = vld [vmem:[%s4720_s19 + $0x98] sm:$0x1] }
  0x32   : > { %747 = vrot.lane.b32.xlu1 %v504_v21, %s4668_s20  ;;  %v528_v37 = vsel %vm4731_vm2, %v523_v26, %v527_v18  ;;  %v551_v38 = vrot.slane %v549_v29, 5  ;;  %v532_v39 = vrot.slane %v530_v30, 4  ;;  %v563_v40 = vshll.u32 %v314_v25, 16  ;;  %v322_v30 = vld [vmem:[%s4720_s19 + $0x90] sm:$0xf] }
  0x33   : > { %745 = vrot.lane.b32.xlu0 %v494_v31, %s4668_s20  ;;  %v513_v41 = vrot.slane %v512_v32, 4  ;;  %v546_v42 = vor.u32 %v545_v33, %v541_v28  ;;  %v535_v43 = vrot.slane %v533_v34, 5  ;;  %v567_v44 = vshrl.u32 %v314_v25, 16 }
  0x34   : > { %v565_v46 = vrot.slane %v563_v40, 5  ;;  %v573_v47 = vshll.u32 %v315_v35, 16  ;;  %v554_v48 = vshrl.u32 %v313_v36, 16  ;;  %v557_v49 = vshll.u32 %v313_v36, 16 }
  0x35   : > { %v518_v50 = vsel %vm4731_vm2, %v513_v41, %v517_v5  ;;  %v547_v51 = vrot.slane %v546_v42, 4  ;;  %v536_v52 = vor.u32 %v535_v43, %v532_v39  ;;  %v569_v53 = vrot.slane %v567_v44, 4  ;;  %v321_v5 = vld [vmem:[%s4720_s19 + $0x8c] sm:$0x1]  ;;  %v326_v39 = vld [vmem:[%s4720_s19 + $0xa0] sm:$0xf] }
  0x36   : > { %751 = vrot.lane.b32.xlu1 %v528_v37, %s4668_s20  ;;  %v575_v56 = vrot.slane %v573_v47, 5  ;;  %v556_v57 = vrot.slane %v554_v48, 4  ;;  %v559_v58 = vrot.slane %v557_v49, 5  ;;  %v587_v59 = vshll.u32 %v317_v45, 16  ;;  %v327_v48 = vld [vmem:[%s4720_s19 + $0xa4] sm:$0x1] }
  0x37   : > { %749 = vrot.lane.b32.xlu0 %v518_v50, %s4668_s20  ;;  %v552_v60 = vsel %vm4731_vm2, %v547_v51, %v551_v38  ;;  %v537_v61 = vrot.slane %v536_v52, 4  ;;  %v570_v62 = vor.u32 %v569_v53, %v565_v46  ;;  %v591_v63 = vshrl.u32 %v317_v45, 16  ;;  %v325_v49 = vld [vmem:[%s4720_s19 + $0x9c] sm:$0xf] }
  0x38   : > { %v560_v1 = vor.u32 %v559_v58, %v556_v57  ;;  %v589_v2 = vrot.slane %v587_v59, 5  ;;  %v597_v3 = vshll.u32 %v318_v54, 16  ;;  %v578_v4 = vshrl.u32 %v316_v55, 16  ;;  %v329_v58 = vld [vmem:[%s4720_s19 + $0xac] sm:$0xf] }
  0x39   : > { %v542_v6 = vsel %vm4731_vm2, %v537_v61, %v541_v28  ;;  %v571_v7 = vrot.slane %v570_v62, 4  ;;  %v593_v8 = vrot.slane %v591_v63, 4  ;;  %v581_v9 = vshll.u32 %v316_v55, 16 }
  0x3a   : > { %755 = vrot.lane.b32.xlu1 %v552_v60, %s4668_s20  ;;  %v561_v11 = vrot.slane %v560_v1, 4  ;;  %v599_v12 = vrot.slane %v597_v3, 5  ;;  %v580_v13 = vrot.slane %v578_v4, 4  ;;  %v611_v14 = vshll.u32 %v320_v0, 16  ;;  %v330_v3 = vld [vmem:[%s4720_s19 + $0xb0] sm:$0x1] }
  0x3b   : > { %753 = vrot.lane.b32.xlu0 %v542_v6, %s4668_s20  ;;  %v576_v15 = vsel %vm4731_vm2, %v571_v7, %v575_v56  ;;  %v594_v16 = vor.u32 %v593_v8, %v589_v2  ;;  %v583_v17 = vrot.slane %v581_v9, 5  ;;  %v615_v18 = vshrl.u32 %v320_v0, 16  ;;  %v328_v4 = vld [vmem:[%s4720_s19 + $0xa8] sm:$0xf] }
  0x3c   : > { %v566_v20 = vsel %vm4731_vm2, %v561_v11, %v565_v46  ;;  %v613_v21 = vrot.slane %v611_v14, 5  ;;  %v621_v22 = vshll.u32 %v321_v5, 16  ;;  %v602_v23 = vshrl.u32 %v319_v10, 16 }
  0x3d   : > { %v595_v25 = vrot.slane %v594_v16, 4  ;;  %v584_v26 = vor.u32 %v583_v17, %v580_v13  ;;  %v617_v28 = vrot.slane %v615_v18, 4  ;;  %v605_v29 = vshll.u32 %v319_v10, 16  ;;  %v332_v13 = vld [vmem:[%s4720_s19 + $0xb8] sm:$0xf] }
  0x3e   : > { %759 = vrot.lane.b32.xlu1 %v576_v15, %s4668_s20  ;;  %v623_v31 = vrot.slane %v621_v22, 5  ;;  %v604_v32 = vrot.slane %v602_v23, 4  ;;  %v635_v33 = vshll.u32 %v323_v19, 16  ;;  %v639_v34 = vshrl.u32 %v323_v19, 16  ;;  %v333_v22 = vld [vmem:[%s4720_s19 + $0xbc] sm:$0x1] }
  0x3f   : > { %757 = vrot.lane.b32.xlu0 %v566_v20, %s4668_s20  ;;  %v600_v35 = vsel %vm4731_vm2, %v595_v25, %v599_v12  ;;  %v585_v36 = vrot.slane %v584_v26, 4  ;;  %v618_v37 = vor.u32 %v617_v28, %v613_v21  ;;  %v607_v38 = vrot.slane %v605_v29, 5  ;;  %v331_v23 = vld [vmem:[%s4720_s19 + $0xb4] sm:$0xf] }
  0x40   : > { %v637_v40 = vrot.slane %v635_v33, 5  ;;  %v641_v41 = vrot.slane %v639_v34, 4  ;;  %v645_v42 = vshll.u32 %v324_v24, 16  ;;  %v626_v43 = vshrl.u32 %v322_v30, 16 }
  0x41   : > { %v590_v44 = vsel %vm4731_vm2, %v585_v36, %v589_v2  ;;  %v619_v45 = vrot.slane %v618_v37, 4  ;;  %v608_v46 = vor.u32 %v607_v38, %v604_v32  ;;  %v629_v47 = vshll.u32 %v322_v30, 16  ;;  %v851_v37 = vld [vmem:[%s4720_s19 + $0x4] sm:$0xf] }
  0x42   : > { %763 = vrot.lane.b32.xlu1 %v600_v35, %s4668_s20  ;;  %v642_v50 = vor.u32 %v641_v41, %v637_v40  ;;  %v647_v51 = vrot.slane %v645_v42, 5  ;;  %v628_v52 = vrot.slane %v626_v43, 4  ;;  %v659_v53 = vshll.u32 %v326_v39, 16 }
  0x43   : > { %761 = vrot.lane.b32.xlu0 %v590_v44, %s4668_s20  ;;  %v624_v54 = vsel %vm4731_vm2, %v619_v45, %v623_v31  ;;  %v609_v55 = vrot.slane %v608_v46, 4  ;;  %v631_v56 = vrot.slane %v629_v47, 5  ;;  %v663_v57 = vshrl.u32 %v326_v39, 16 }
  0x44   : > { %v643_v59 = vrot.slane %v642_v50, 4  ;;  %v661_v60 = vrot.slane %v659_v53, 5  ;;  %v669_v61 = vshll.u32 %v327_v48, 16  ;;  %v650_v62 = vshrl.u32 %v325_v49, 16  ;;  %v852_v48 = vld [vmem:[%s4720_s19 + $0x8] sm:$0x1] }
  0x45   : > { %v614_v63 = vsel %vm4731_vm2, %v609_v55, %v613_v21  ;;  %v632_v0 = vor.u32 %v631_v56, %v628_v52  ;;  %v665_v1 = vrot.slane %v663_v57, 4  ;;  %v653_v2 = vshll.u32 %v325_v49, 16  ;;  %v223_v56 = vld [vmem:[%s4720_s19 + $0xc] sm:$0xf] }
  0x46   : > { %767 = vrot.lane.b32.xlu1 %v624_v54, %s4668_s20  ;;  %v648_v5 = vsel %vm4731_vm2, %v643_v59, %v647_v51  ;;  %v671_v6 = vrot.slane %v669_v61, 5  ;;  %v652_v7 = vrot.slane %v650_v62, 4  ;;  %v683_v8 = vshll.u32 %v329_v58, 16  ;;  %v854_v51 = vld [vmem:[%s4720_s19 + $0x10] sm:$0xf] }
  0x47   : > { %765 = vrot.lane.b32.xlu0 %v614_v63, %s4668_s20  ;;  %v633_v9 = vrot.slane %v632_v0, 4  ;;  %v666_v10 = vor.u32 %v665_v1, %v661_v60  ;;  %v655_v11 = vrot.slane %v653_v2, 5  ;;  %v687_v12 = vshrl.u32 %v329_v58, 16  ;;  %v850_v54 = vld [vmem:[%s4720_s19] sm:$0xe] }
  0x48   : > { %v685_v14 = vrot.slane %v683_v8, 5  ;;  %v693_v15 = vshll.u32 %v330_v3, 16  ;;  %v674_v16 = vshrl.u32 %v328_v4, 16  ;;  %v677_v17 = vshll.u32 %v328_v4, 16  ;;  %256 = vst.msk [vmem:[#allocation2 + $0x8] sm:$0xf] %vm253_vm3, %v223_v56 }
  0x49   : > { %v638_v18 = vsel %vm4731_vm2, %v633_v9, %v637_v40  ;;  %v667_v19 = vrot.slane %v666_v10, 4  ;;  %v656_v20 = vor.u32 %v655_v11, %v652_v7  ;;  %v689_v21 = vrot.slane %v687_v12, 4  ;;  %v221_v61 = vld [vmem:[%s4720_s19] sm:$0xf]  ;;  %v855_v0 = vld [vmem:[%s4720_s19 + $0x14] sm:$0x1] }
  0x4a   : > { %771 = vrot.lane.b32.xlu1 %v648_v5, %s4668_s20  ;;  %v695_v24 = vrot.slane %v693_v15, 5  ;;  %v676_v25 = vrot.slane %v674_v16, 4  ;;  %v679_v26 = vrot.slane %v677_v17, 5  ;;  %v707_v28 = vshll.u32 %v332_v13, 16  ;;  %v857_v1 = vld [vmem:[%s4720_s19 + $0x1c] sm:$0xf] }
  0x4b   : > { %769 = vrot.lane.b32.xlu0 %v638_v18, %s4668_s20  ;;  %v672_v29 = vsel %vm4731_vm2, %v667_v19, %v671_v6  ;;  %v657_v30 = vrot.slane %v656_v20, 4  ;;  %v690_v31 = vor.u32 %v689_v21, %v685_v14  ;;  %v711_v32 = vshrl.u32 %v332_v13, 16  ;;  %254 = vst.msk [vmem:[#allocation2] sm:$0xf] %vm253_vm3, %v221_v61  ;;  %v853_v3 = vld [vmem:[%s4720_s19 + $0xc] sm:$0xe] }
  0x4c   : > { %v680_v33 = vor.u32 %v679_v26, %v676_v25  ;;  %v709_v34 = vrot.slane %v707_v28, 5  ;;  %v717_v35 = vshll.u32 %v333_v22, 16  ;;  %v698_v36 = vshrl.u32 %v331_v23, 16  ;;  %v224_v4 = vld [vmem:[%s4720_s19 + $0x10] sm:$0xf] }
  0x4d   : > { %v662_v38 = vsel %vm4731_vm2, %v657_v30, %v661_v60  ;;  %v691_v39 = vrot.slane %v690_v31, 4  ;;  %v713_v40 = vrot.slane %v711_v32, 4  ;;  %v701_v41 = vshll.u32 %v331_v23, 16  ;;  %v222_v5 = vld [vmem:[%s4720_s19 + $0x4] sm:$0xf] }
  0x4e   : > { %775 = vrot.lane.b32.xlu1 %v672_v29, %s4668_s20  ;;  %v681_v42 = vrot.slane %v680_v33, 4  ;;  %v719_v43 = vrot.slane %v717_v35, 5  ;;  %v700_v44 = vrot.slane %v698_v36, 4  ;;  %v951_v49 = vrot.slane %v851_v37, 5  ;;  %257 = vst.msk [vmem:[#allocation2 + $0xc] sm:$0xf] %vm253_vm3, %v224_v4 }
  0x4f   : > { %773 = vrot.lane.b32.xlu0 %v662_v38, %s4668_s20  ;;  %v696_v45 = vsel %vm4731_vm2, %v691_v39, %v695_v24  ;;  %v714_v46 = vor.u32 %v713_v40, %v709_v34  ;;  %v703_v47 = vrot.slane %v701_v41, 5  ;;  %v954_v55 = vrot.slane %v852_v48, 5  ;;  %255 = vst.msk [vmem:[#allocation2 + $0x4] sm:$0xf] %vm253_vm3, %v222_v5  ;;  %v858_v12 = vld [vmem:[%s4720_s19 + $0x20] sm:$0x1] }
  0x50   : > { %v686_v50 = vsel %vm4731_vm2, %v681_v42, %v685_v14  ;;  %v953_v59 = vrot.slane %v951_v49, 4  ;;  %v958_v60 = vrot.slane %v854_v51, 5  ;;  %v4121_v63 = vrot.slane %v850_v54, 9  ;;  %v860_v13 = vld [vmem:[%s4720_s19 + $0x28] sm:$0xf] }
  0x51   : > { %v715_v52 = vrot.slane %v714_v46, 4  ;;  %v704_v53 = vor.u32 %v703_v47, %v700_v44  ;;  %v961_v8 = vrot.slane %v855_v0, 5  ;;  %v965_v9 = vrot.slane %v857_v1, 5  ;;  %v856_v14 = vld [vmem:[%s4720_s19 + $0x18] sm:$0xe] }
  0x52   : > { %779 = vrot.lane.b32.xlu1 %v696_v45, %s4668_s20  ;;  %v955_v6 = vsel %vm4875_vm6, %v953_v59, %v954_v55  ;;  %v960_v7 = vrot.slane %v958_v60, 4  ;;  %v952_v10 = vsel %vm4875_vm6, %v4121_v63, %v951_v49  ;;  %v4122_v11 = vrot.slane %v853_v3, 9  ;;  %v226_v15 = vld [vmem:[%s4720_s19 + $0x1c] sm:$0xf]  ;;  %v225_v16 = vld [vmem:[%s4720_s19 + $0x18] sm:$0xf] }
  0x53   : > { %777 = vrot.lane.b32.xlu0 %v686_v50, %s4668_s20  ;;  %v720_v57 = vsel %vm4731_vm2, %v715_v52, %v719_v43  ;;  %v705_v58 = vrot.slane %v704_v53, 4  ;;  %259 = vst.msk [vmem:[#allocation2 + $0x14] sm:$0xf] %vm253_vm3, %v226_v15  ;;  %v967_v18 = vrot.slane %v965_v9, 4  ;;  %v968_v19 = vrot.slane %v858_v12, 5 }
  0x54   : > { %v962_v17 = vsel %vm4875_vm6, %v960_v7, %v961_v8  ;;  %v972_v20 = vrot.slane %v860_v13, 5  ;;  %258 = vst.msk [vmem:[#allocation2 + $0x10] sm:$0xf] %vm253_vm3, %v225_v16  ;;  %v959_v21 = vsel %vm4875_vm6, %v4122_v11, %v958_v60  ;;  %v4123_v22 = vrot.slane %v856_v14, 9  ;;  %v861_v23 = vld [vmem:[%s4720_s19 + $0x2c] sm:$0x1] }
  0x55   : > { %v710_v2 = vsel %vm4731_vm2, %v705_v58, %v709_v34  ;;  %v863_v24 = vld [vmem:[%s4720_s19 + $0x34] sm:$0xf]  ;;  %v859_v25 = vld [vmem:[%s4720_s19 + $0x24] sm:$0xe]  ;;  %v228_v26 = vld [vmem:[%s4720_s19 + $0x28] sm:$0xf]  ;;  %v969_v29 = vsel %vm4875_vm6, %v967_v18, %v968_v19 }
  0x56   : > { %783 = vrot.lane.b32.xlu1 %v720_v57, %s4668_s20  ;;  %261 = vst.msk [vmem:[#allocation2 + $0x1c] sm:$0xf] %vm253_vm3, %v228_v26  ;;  %v227_v28 = vld [vmem:[%s4720_s19 + $0x24] sm:$0xf]  ;;  %v974_v30 = vrot.slane %v972_v20, 4  ;;  %v975_v31 = vrot.slane %v861_v23, 5  ;;  %v966_v34 = vsel %vm4875_vm6, %v4123_v22, %v965_v9 }
  0x57   : > { %781 = vrot.lane.b32.xlu0 %v710_v2, %s4668_s20  ;;  %v864_v32 = vld [vmem:[%s4720_s19 + $0x38] sm:$0x1]  ;;  %v979_v33 = vrot.slane %v863_v24, 5  ;;  %260 = vst.msk [vmem:[#allocation2 + $0x18] sm:$0xf] %vm253_vm3, %v227_v28  ;;  %v4124_v35 = vrot.slane %v859_v25, 9 }
  0x58   : > { %v866_v36 = vld [vmem:[%s4720_s19 + $0x40] sm:$0xf]  ;;  %v230_v37 = vld [vmem:[%s4720_s19 + $0x34] sm:$0xf]  ;;  %v862_v38 = vld [vmem:[%s4720_s19 + $0x30] sm:$0xe]  ;;  %v976_v41 = vsel %vm4875_vm6, %v974_v30, %v975_v31 }
  0x59   : > { %263 = vst.msk [vmem:[#allocation2 + $0x24] sm:$0xf] %vm253_vm3, %v230_v37  ;;  %v229_v39 = vld [vmem:[%s4720_s19 + $0x30] sm:$0xf]  ;;  %v867_v40 = vld [vmem:[%s4720_s19 + $0x44] sm:$0x1]  ;;  %v973_v46 = vsel %vm4875_vm6, %v4124_v35, %v972_v20 }
  0x5a   : > { %1063 = vrot.lane.b32.xlu1 %v955_v6, %s4669_s21  ;;  %262 = vst.msk [vmem:[#allocation2 + $0x20] sm:$0xf] %vm253_vm3, %v229_v39  ;;  %v981_v42 = vrot.slane %v979_v33, 4  ;;  %v982_v43 = vrot.slane %v864_v32, 5  ;;  %v986_v44 = vrot.slane %v866_v36, 5  ;;  %v4125_v47 = vrot.slane %v862_v38, 9 }
  0x5b   : > { %1061 = vrot.lane.b32.xlu0 %v952_v10, %s4669_s21  ;;  %v232_v45 = vld [vmem:[%s4720_s19 + $0x40] sm:$0xf]  ;;  %v869_v48 = vld [vmem:[%s4720_s19 + $0x4c] sm:$0xf]  ;;  %v231_v49 = vld [vmem:[%s4720_s19 + $0x3c] sm:$0xf] }
  0x5c   : > { %265 = vst.msk [vmem:[#allocation2 + $0x2c] sm:$0xf] %vm253_vm3, %v232_v45  ;;  %v865_v50 = vld [vmem:[%s4720_s19 + $0x3c] sm:$0xe]  ;;  %264 = vst.msk [vmem:[#allocation2 + $0x28] sm:$0xf] %vm253_vm3, %v231_v49  ;;  %v983_v53 = vsel %vm4875_vm6, %v981_v42, %v982_v43  ;;  %v980_v58 = vsel %vm4875_vm6, %v4125_v47, %v979_v33 }
  0x5d   : > { %v870_v51 = vld [vmem:[%s4720_s19 + $0x50] sm:$0x1]  ;;  %v234_v52 = vld [vmem:[%s4720_s19 + $0x4c] sm:$0xf]  ;;  %v988_v54 = vrot.slane %v986_v44, 4  ;;  %v989_v55 = vrot.slane %v867_v40, 5 }
  0x5e   : > { %1067 = vrot.lane.b32.xlu1 %v962_v17, %s4669_s21  ;;  %v993_v56 = vrot.slane %v869_v48, 5  ;;  %267 = vst.msk [vmem:[#allocation2 + $0x34] sm:$0xf] %vm253_vm3, %v234_v52  ;;  %v233_v57 = vld [vmem:[%s4720_s19 + $0x48] sm:$0xf]  ;;  %v4126_v59 = vrot.slane %v865_v50, 9 }
  0x5f   : > { %1065 = vrot.lane.b32.xlu0 %v959_v21, %s4669_s21  ;;  %v872_v60 = vld [vmem:[%s4720_s19 + $0x58] sm:$0xf]  ;;  %266 = vst.msk [vmem:[#allocation2 + $0x30] sm:$0xf] %vm253_vm3, %v233_v57  ;;  %v868_v63 = vld [vmem:[%s4720_s19 + $0x48] sm:$0xe]  ;;  %v990_v5 = vsel %vm4875_vm6, %v988_v54, %v989_v55 }
  0x60   : > { %v236_v61 = vld [vmem:[%s4720_s19 + $0x58] sm:$0xf]  ;;  %v873_v0 = vld [vmem:[%s4720_s19 + $0x5c] sm:$0x1]  ;;  %v235_v1 = vld [vmem:[%s4720_s19 + $0x54] sm:$0xf]  ;;  %v987_v10 = vsel %vm4875_vm6, %v4126_v59, %v986_v44 }
  0x61   : > { %269 = vst.msk [vmem:[#allocation2 + $0x3c] sm:$0xf] %vm253_vm3, %v236_v61  ;;  %v996_v2 = vrot.slane %v870_v51, 5  ;;  %268 = vst.msk [vmem:[#allocation2 + $0x38] sm:$0xf] %vm253_vm3, %v235_v1  ;;  %v995_v6 = vrot.slane %v993_v56, 4 }
  0x62   : > { %1071 = vrot.lane.b32.xlu1 %v969_v29, %s4669_s21  ;;  %v238_v3 = vld [vmem:[%s4720_s19 + $0x64] sm:$0xf]  ;;  %v237_v4 = vld [vmem:[%s4720_s19 + $0x60] sm:$0xf]  ;;  %v1000_v7 = vrot.slane %v872_v60, 5  ;;  %v4127_v11 = vrot.slane %v868_v63, 9 }
  0x63   : > { %1069 = vrot.lane.b32.xlu0 %v966_v34, %s4669_s21  ;;  %271 = vst.msk [vmem:[#allocation2 + $0x44] sm:$0xf] %vm253_vm3, %v238_v3  ;;  %270 = vst.msk [vmem:[#allocation2 + $0x40] sm:$0xf] %vm253_vm3, %v237_v4  ;;  %v240_v8 = vld [vmem:[%s4720_s19 + $0x70] sm:$0xf]  ;;  %v997_v19 = vsel %vm4875_vm6, %v995_v6, %v996_v2 }
  0x64   : > { %v239_v9 = vld [vmem:[%s4720_s19 + $0x6c] sm:$0xf]  ;;  %v875_v12 = vld [vmem:[%s4720_s19 + $0x64] sm:$0xf]  ;;  %273 = vst.msk [vmem:[#allocation2 + $0x4c] sm:$0xf] %vm253_vm3, %v240_v8  ;;  %v994_v24 = vsel %vm4875_vm6, %v4127_v11, %v993_v56 }
  0x65   : > { %272 = vst.msk [vmem:[#allocation2 + $0x48] sm:$0xf] %vm253_vm3, %v239_v9  ;;  %v242_v13 = vld [vmem:[%s4720_s19 + $0x7c] sm:$0xf]  ;;  %v871_v14 = vld [vmem:[%s4720_s19 + $0x54] sm:$0xe] }
  0x66   : > { %1075 = vrot.lane.b32.xlu1 %v976_v41, %s4669_s21  ;;  %275 = vst.msk [vmem:[#allocation2 + $0x54] sm:$0xf] %vm253_vm3, %v242_v13  ;;  %v241_v15 = vld [vmem:[%s4720_s19 + $0x78] sm:$0xf]  ;;  %v1003_v16 = vrot.slane %v873_v0, 5  ;;  %v1002_v20 = vrot.slane %v1000_v7, 4 }
  0x67   : > { %1073 = vrot.lane.b32.xlu0 %v973_v46, %s4669_s21  ;;  %274 = vst.msk [vmem:[#allocation2 + $0x50] sm:$0xf] %vm253_vm3, %v241_v15  ;;  %v244_v17 = vld [vmem:[%s4720_s19 + $0x88] sm:$0xf]  ;;  %v243_v18 = vld [vmem:[%s4720_s19 + $0x84] sm:$0xf] }
  0x68   : > { %v1007_v21 = vrot.slane %v875_v12, 5  ;;  %277 = vst.msk [vmem:[#allocation2 + $0x5c] sm:$0xf] %vm253_vm3, %v244_v17  ;;  %276 = vst.msk [vmem:[#allocation2 + $0x58] sm:$0xf] %vm253_vm3, %v243_v18  ;;  %v4128_v25 = vrot.slane %v871_v14, 9  ;;  %v1004_v32 = vsel %vm4875_vm6, %v1002_v20, %v1003_v16 }
  0x69   : > { %v246_v22 = vld [vmem:[%s4720_s19 + $0x94] sm:$0xf]  ;;  %v245_v23 = vld [vmem:[%s4720_s19 + $0x90] sm:$0xf]  ;;  %v876_v26 = vld [vmem:[%s4720_s19 + $0x68] sm:$0x1] }
  0x6a   : > { %1079 = vrot.lane.b32.xlu1 %v983_v53, %s4669_s21  ;;  %v878_v28 = vld [vmem:[%s4720_s19 + $0x70] sm:$0xf]  ;;  %279 = vst.msk [vmem:[#allocation2 + $0x64] sm:$0xf] %vm253_vm3, %v246_v22  ;;  %278 = vst.msk [vmem:[#allocation2 + $0x60] sm:$0xf] %vm253_vm3, %v245_v23  ;;  %v1001_v36 = vsel %vm4875_vm6, %v4128_v25, %v1000_v7 }
  0x6b   : > { %1077 = vrot.lane.b32.xlu0 %v980_v58, %s4669_s21  ;;  %v874_v29 = vld [vmem:[%s4720_s19 + $0x60] sm:$0xe]  ;;  %v247_v31 = vld [vmem:[%s4720_s19 + $0x9c] sm:$0xf]  ;;  %v1009_v33 = vrot.slane %v1007_v21, 4  ;;  %v1010_v34 = vrot.slane %v876_v26, 5 }
  0x6c   : > { %v248_v30 = vld [vmem:[%s4720_s19 + $0xa0] sm:$0xf]  ;;  %v1014_v35 = vrot.slane %v878_v28, 5  ;;  %280 = vst.msk [vmem:[#allocation2 + $0x68] sm:$0xf] %vm253_vm3, %v247_v31  ;;  %v4129_v37 = vrot.slane %v874_v29, 9 }
  0x6d   : > { %281 = vst.msk [vmem:[#allocation2 + $0x6c] sm:$0xf] %vm253_vm3, %v248_v30  ;;  %v879_v38 = vld [vmem:[%s4720_s19 + $0x74] sm:$0x1]  ;;  %v881_v39 = vld [vmem:[%s4720_s19 + $0x7c] sm:$0xf]  ;;  %v1011_v43 = vsel %vm4875_vm6, %v1009_v33, %v1010_v34 }
  0x6e   : > { %1083 = vrot.lane.b32.xlu1 %v990_v5, %s4669_s21  ;;  %v877_v40 = vld [vmem:[%s4720_s19 + $0x6c] sm:$0xe]  ;;  %v249_v42 = vld [vmem:[%s4720_s19 + $0xa8] sm:$0xf]  ;;  %v1016_v44 = vrot.slane %v1014_v35, 4  ;;  %v1017_v45 = vrot.slane %v879_v38, 5  ;;  %v1008_v48 = vsel %vm4875_vm6, %v4129_v37, %v1007_v21 }
  0x6f   : > { %1081 = vrot.lane.b32.xlu0 %v987_v10, %s4669_s21  ;;  %v250_v41 = vld [vmem:[%s4720_s19 + $0xac] sm:$0xf]  ;;  %282 = vst.msk [vmem:[#allocation2 + $0x70] sm:$0xf] %vm253_vm3, %v249_v42  ;;  %v882_v46 = vld [vmem:[%s4720_s19 + $0x80] sm:$0x1] }
  0x70   : > { %283 = vst.msk [vmem:[#allocation2 + $0x74] sm:$0xf] %vm253_vm3, %v250_v41  ;;  %v1021_v47 = vrot.slane %v881_v39, 5  ;;  %v4130_v49 = vrot.slane %v877_v40, 9  ;;  %v884_v50 = vld [vmem:[%s4720_s19 + $0x88] sm:$0xf]  ;;  %v1018_v54 = vsel %vm4875_vm6, %v1016_v44, %v1017_v45 }
  0x71   : > { %v252_v51 = vld [vmem:[%s4720_s19 + $0xb8] sm:$0xf]  ;;  %v251_v53 = vld [vmem:[%s4720_s19 + $0xb4] sm:$0xf]  ;;  %v1024_v56 = vrot.slane %v882_v46, 5  ;;  %v1028_v57 = vrot.slane %v884_v50, 5 }
  0x72   : > { %1087 = vrot.lane.b32.xlu1 %v997_v19, %s4669_s21  ;;  %v880_v52 = vld [vmem:[%s4720_s19 + $0x78] sm:$0xe]  ;;  %285 = vst.msk [vmem:[#allocation2 + $0x7c] sm:$0xf] %vm253_vm3, %v252_v51  ;;  %284 = vst.msk [vmem:[#allocation2 + $0x78] sm:$0xf] %vm253_vm3, %v251_v53  ;;  %v1015_v58 = vsel %vm4875_vm6, %v4130_v49, %v1014_v35 }
  0x73   : > { %1085 = vrot.lane.b32.xlu0 %v994_v24, %s4669_s21  ;;  %v1023_v55 = vrot.slane %v1021_v47, 4  ;;  %v4131_v59 = vrot.slane %v880_v52, 9  ;;  %v885_v60 = vld [vmem:[%s4720_s19 + $0x8c] sm:$0x1]  ;;  %v887_v61 = vld [vmem:[%s4720_s19 + $0x94] sm:$0xf] }
  0x74   : > { %v883_v63 = vld [vmem:[%s4720_s19 + $0x84] sm:$0xe]  ;;  %v1030_v1 = vrot.slane %v1028_v57, 4  ;;  %v1031_v2 = vrot.slane %v885_v60, 5  ;;  %v1035_v3 = vrot.slane %v887_v61, 5  ;;  %vm3957_vm1 = vcmask 60416  }
  0x75   : > { %v1025_v0 = vsel %vm4875_vm6, %v1023_v55, %v1024_v56  ;;  %v1022_v4 = vsel %vm4875_vm6, %v4131_v59, %v1021_v47  ;;  %v4132_v5 = vrot.slane %v883_v63, 9  ;;  %v888_v6 = vld [vmem:[%s4720_s19 + $0x98] sm:$0x1]  ;;  %v890_v7 = vld [vmem:[%s4720_s19 + $0xa0] sm:$0xf] }
  0x76   : > { %1091 = vrot.lane.b32.xlu1 %v1004_v32, %s4669_s21  ;;  %v886_v8 = vld [vmem:[%s4720_s19 + $0x90] sm:$0xe]  ;;  %v1032_v9 = vsel %vm4875_vm6, %v1030_v1, %v1031_v2  ;;  %v1037_v10 = vrot.slane %v1035_v3, 4  ;;  %v1038_v11 = vrot.slane %v888_v6, 5  ;;  %v1042_v12 = vrot.slane %v890_v7, 5 }
  0x77   : > { %1089 = vrot.lane.b32.xlu0 %v1001_v36, %s4669_s21  ;;  %v1029_v13 = vsel %vm4875_vm6, %v4132_v5, %v1028_v57  ;;  %v4133_v14 = vrot.slane %v886_v8, 9  ;;  %v891_v15 = vld [vmem:[%s4720_s19 + $0xa4] sm:$0x1]  ;;  %v893_v16 = vld [vmem:[%s4720_s19 + $0xac] sm:$0xf] }
  0x78   : > { %v889_v17 = vld [vmem:[%s4720_s19 + $0x9c] sm:$0xe]  ;;  %v1039_v18 = vsel %vm4875_vm6, %v1037_v10, %v1038_v11  ;;  %v1044_v19 = vrot.slane %v1042_v12, 4  ;;  %v1045_v20 = vrot.slane %v891_v15, 5  ;;  %v1049_v21 = vrot.slane %v893_v16, 5 }
  0x79   : > { %v1036_v22 = vsel %vm4875_vm6, %v4133_v14, %v1035_v3  ;;  %v4134_v23 = vrot.slane %v889_v17, 9  ;;  %v894_v24 = vld [vmem:[%s4720_s19 + $0xb0] sm:$0x1]  ;;  %v896_v25 = vld [vmem:[%s4720_s19 + $0xb8] sm:$0xf] }
  0x7a   : > { %1095 = vrot.lane.b32.xlu1 %v1011_v43, %s4669_s21  ;;  %v892_v26 = vld [vmem:[%s4720_s19 + $0xa8] sm:$0xe]  ;;  %v1046_v28 = vsel %vm4875_vm6, %v1044_v19, %v1045_v20  ;;  %v1051_v29 = vrot.slane %v1049_v21, 4  ;;  %v1052_v30 = vrot.slane %v894_v24, 5  ;;  %v1056_v31 = vrot.slane %v896_v25, 5 }
  0x7b   : > { %1093 = vrot.lane.b32.xlu0 %v1008_v48, %s4669_s21  ;;  %v1043_v33 = vsel %vm4875_vm6, %v4134_v23, %v1042_v12  ;;  %v4135_v34 = vrot.slane %v892_v26, 9  ;;  %v897_v35 = vld [vmem:[%s4720_s19 + $0xbc] sm:$0x1]  ;;  %v895_v37 = vld [vmem:[%s4720_s19 + $0xb4] sm:$0xe] }
  0x7c   : > { %v1053_v38 = vsel %vm4875_vm6, %v1051_v29, %v1052_v30  ;;  %v1058_v39 = vrot.slane %v1056_v31, 4  ;;  %v1059_v40 = vrot.slane %v897_v35, 5  ;;  %v4136_v43 = vrot.slane %v895_v37, 9  ;;  %v4138_v49 = vld [vmem:[%s4720_s19 + $0x10] sm:$0xf] }
  0x7d   : > { %v1050_v42 = vsel %vm4875_vm6, %v4135_v34, %v1049_v21  ;;  %v4137_v51 = vld [vmem:[%s4720_s19 + $0xc] sm:$0xf]  ;;  %v4140_v53 = vld [vmem:[%s4720_s19 + $0x1c] sm:$0xf]  ;;  %v4139_v55 = vld [vmem:[%s4720_s19 + $0x18] sm:$0xf] }
  0x7e   : > { %1099 = vrot.lane.b32.xlu1 %v1018_v54, %s4669_s21  ;;  %v1060_v45 = vsel %vm4875_vm6, %v1058_v39, %v1059_v40  ;;  %v1057_v47 = vsel %vm4875_vm6, %v4136_v43, %v1056_v31  ;;  %v4142_v57 = vld [vmem:[%s4720_s19 + $0x28] sm:$0xf]  ;;  %v4141_v59 = vld [vmem:[%s4720_s19 + $0x24] sm:$0xf]  ;;  %v4144_v61 = vld [vmem:[%s4720_s19 + $0x34] sm:$0xf] }
  0x7f   : > { %1097 = vrot.lane.b32.xlu0 %v1015_v58, %s4669_s21  ;;  %v4146_v2 = vld [vmem:[%s4720_s19 + $0x40] sm:$0xf]  ;;  %v4170_v5 = vld [vmem:[%s4720_s19 + $0x10] sm:$0xf]  ;;  %v4169_v7 = vld [vmem:[%s4720_s19 + $0xc] sm:$0xf] }
  0x80   : > { %v4148_v8 = vld [vmem:[%s4720_s19 + $0x4c] sm:$0xf]  ;;  %v1446_v10 = vshrl.u32 %v4170_v5, 16  ;;  %v4147_v12 = vld [vmem:[%s4720_s19 + $0x48] sm:$0xf]  ;;  %v1436_v14 = vshll.u32 %v4169_v7, 16 }
  0x81   : > { %v4173_v15 = vld [vmem:[%s4720_s19 + $0x1c] sm:$0xf]  ;;  %v4172_v17 = vld [vmem:[%s4720_s19 + $0x18] sm:$0xf]  ;;  %v4149_v19 = vld [vmem:[%s4720_s19 + $0x54] sm:$0xf] }
  0x82   : > { %1103 = vrot.lane.b32.xlu1 %v1025_v0, %s4669_s21  ;;  %v4143_v0 = vld [vmem:[%s4720_s19 + $0x30] sm:$0xf]  ;;  %v1448_v21 = vrot.slane %v1446_v10, 4  ;;  %v1470_v23 = vshrl.u32 %v4173_v15, 16  ;;  %v4171_v25 = vld [vmem:[%s4720_s19 + $0x14] sm:$0x1] }
  0x83   : > { %1101 = vrot.lane.b32.xlu0 %v1022_v4, %s4669_s21  ;;  %v4145_v4 = vld [vmem:[%s4720_s19 + $0x3c] sm:$0xf]  ;;  %v1457_v29 = vshrl.u32 %v4172_v17, 16  ;;  %v1460_v30 = vshll.u32 %v4172_v17, 16  ;;  %v1452_v34 = vshll.u32 %v4171_v25, 16 }
  0x84   : > { %v4174_v40 = vld [vmem:[%s4720_s19 + $0x20] sm:$0x1] }
  0x86   : > { %1107 = vrot.lane.b32.xlu1 %v1032_v9, %s4669_s21  ;;  %v1442_v9 = vshll.u32 %v4170_v5, 16 }
  0x87   : > { %1105 = vrot.lane.b32.xlu0 %v1029_v13, %s4669_s21  ;;  %v1433_v13 = vshrl.u32 %v4169_v7, 16  ;;  %v4222_v7 = vld [vmem:[%s4720_s19 + $0x20] sm:$0x1] }
  0x88   : > { %v1444_v20 = vrot.slane %v1442_v9, 5 }
  0x89   : > { %v1435_v26 = vrot.slane %v1433_v13, 4  ;;  %v4220_v13 = vld [vmem:[%s4720_s19 + $0x18] sm:$0xe] }
  0x8a   : > { %1111 = vrot.lane.b32.xlu1 %v1039_v18, %s4669_s21  ;;  %v4150_v18 = vld [vmem:[%s4720_s19 + $0x58] sm:$0xf] }
  0x8b   : > { %1109 = vrot.lane.b32.xlu0 %v1036_v22, %s4669_s21  ;;  %v1466_v22 = vshll.u32 %v4173_v15, 16 }
  0x8c   : > { %v726_v32 = vpop.permute.xlu1 %725 }
  0x8d   : > { %820 = vst.msk [vmem:[#allocation2 + $0x8] sm:$0xf] %vm817_vm7, %v726_v32  ;;  %v722_v36 = vpop.permute.xlu0 %721  ;;  %v4152_v32 = vld [vmem:[%s4720_s19 + $0x64] sm:$0xf]  ;;  %v1468_v35 = vrot.slane %v1466_v22, 5 }
  0x8e   : > { %818 = vst.msk [vmem:[#allocation2] sm:$0xf] %vm817_vm7, %v722_v36  ;;  %1115 = vrot.lane.b32.xlu1 %v1046_v28, %s4669_s21  ;;  %v1438_v28 = vrot.slane %v1436_v14, 5  ;;  %v1472_v36 = vrot.slane %v1470_v23, 4  ;;  %v4313_v14 = vld [vmem:[%s4720_s19 + $0x18] sm:$0xf] }
  0x8f   : > { %1113 = vrot.lane.b32.xlu0 %v1043_v33, %s4669_s21  ;;  %v1449_v33 = vor.u32 %v1448_v21, %v1444_v20  ;;  %v4266_v23 = vrot.slane %v4220_v13, 9  ;;  %v2528_v25 = vshll.u32 %v4313_v14, 16  ;;  %v5228_v13 = vld [vmem:[%s4720_s19 + $0x28] sm:$0xf] }
  0x90   : > { %v728_v41 = vpop.permute.xlu1 %727  ;;  %v1439_v39 = vor.u32 %v1438_v28, %v1435_v26  ;;  %v4316_v26 = vld [vmem:[%s4720_s19 + $0x24] sm:$0xf] }
  0x91   : > { %821 = vst.msk [vmem:[#allocation2 + $0xc] sm:$0xf] %vm817_vm7, %v728_v41  ;;  %v724_v44 = vpop.permute.xlu0 %723  ;;  %v1459_v41 = vrot.slane %v1457_v29, 4 }
  0x92   : > { %819 = vst.msk [vmem:[#allocation2 + $0x4] sm:$0xf] %vm817_vm7, %v724_v44  ;;  %1119 = vrot.lane.b32.xlu1 %v1053_v38, %s4669_s21  ;;  %v4151_v38 = vld [vmem:[%s4720_s19 + $0x60] sm:$0xf]  ;;  %v4154_v44 = vld [vmem:[%s4720_s19 + $0x70] sm:$0xf] }
  0x93   : > { %1117 = vrot.lane.b32.xlu0 %v1050_v42, %s4669_s21  ;;  %v1462_v42 = vrot.slane %v1460_v30, 5 }
  0x94   : > { %v732_v46 = vpop.permute.xlu1 %731 }
  0x95   : > { %823 = vst.msk [vmem:[#allocation2 + $0x14] sm:$0xf] %vm817_vm7, %v732_v46  ;;  %v730_v48 = vpop.permute.xlu0 %729  ;;  %v1454_v46 = vrot.slane %v1452_v34, 5  ;;  %v2549_v34 = vshrl.u32 %v4316_v26, 16 }
  0x96   : > { %822 = vst.msk [vmem:[#allocation2 + $0x10] sm:$0xf] %vm817_vm7, %v730_v48  ;;  %1123 = vrot.lane.b32.xlu1 %v1060_v45, %s4669_s21  ;;  %v1450_v45 = vrot.slane %v1449_v33, 4  ;;  %v1476_v48 = vshll.u32 %v4174_v40, 16  ;;  %v2530_v40 = vrot.slane %v2528_v25, 5  ;;  %v4626_v25 = vld [vmem:[%s6244_s1 + $0x8] sm:$0xff]  }
  0x97   : > { %1121 = vrot.lane.b32.xlu0 %v1057_v47, %s4669_s21  ;;  %v1473_v47 = vor.u32 %v1472_v36, %v1468_v35 }
  0x98   : > { %v736_v50 = vpop.permute.xlu1 %735 }
  0x99   : > { %825 = vst.msk [vmem:[#allocation2 + $0x1c] sm:$0xf] %vm817_vm7, %v736_v50  ;;  %v734_v52 = vpop.permute.xlu0 %733  ;;  %v4153_v50 = vld [vmem:[%s4720_s19 + $0x6c] sm:$0xf] }
  0x9a   : > { %824 = vst.msk [vmem:[#allocation2 + $0x18] sm:$0xf] %vm817_vm7, %v734_v52  ;;  %1257 = vrot.lane.b32.xlu1 %v4138_v49, %s4670_s22  ;;  %v1463_v52 = vor.u32 %v1462_v42, %v1459_v41  ;;  %v4318_v42 = vld [vmem:[%s4720_s19 + $0x2c] sm:$0x1] }
  0x9b   : > { %1255 = vrot.lane.b32.xlu0 %v4137_v51, %s4670_s22  ;;  %v1440_v51 = vrot.slane %v1439_v39, 4 }
  0x9c   : > { %v740_v54 = vpop.permute.xlu1 %739 }
  0x9d   : > { %827 = vst.msk [vmem:[#allocation2 + $0x24] sm:$0xf] %vm817_vm7, %v740_v54  ;;  %v738_v56 = vpop.permute.xlu0 %737 }
  0x9e   : > { %826 = vst.msk [vmem:[#allocation2 + $0x20] sm:$0xf] %vm817_vm7, %v738_v56  ;;  %1261 = vrot.lane.b32.xlu1 %v4140_v53, %s4670_s22  ;;  %v4218_v53 = vld [vmem:[%s4720_s19 + $0x10] sm:$0xf]  ;;  %v1474_v56 = vrot.slane %v1473_v47, 4 }
  0x9f   : > { %1259 = vrot.lane.b32.xlu0 %v4139_v55, %s4670_s22  ;;  %v1455_v55 = vsel %vm4731_vm2, %v1450_v45, %v1454_v46  ;;  %v4282_v45 = vld [vmem:[%s4720_s19 + $0x1c] sm:$0xf] }
  0xa0   : > { %v744_v58 = vpop.permute.xlu1 %743 }
  0xa1   : > { %829 = vst.msk [vmem:[#allocation2 + $0x2c] sm:$0xf] %vm817_vm7, %v744_v58  ;;  %v742_v60 = vpop.permute.xlu0 %741  ;;  %v2043_v58 = vrot.slane %v4218_v53, 5 }
  0xa2   : > { %828 = vst.msk [vmem:[#allocation2 + $0x28] sm:$0xf] %vm817_vm7, %v742_v60  ;;  %1265 = vrot.lane.b32.xlu1 %v4142_v57, %s4670_s22  ;;  %v1478_v57 = vrot.slane %v1476_v48, 5  ;;  %v2551_v48 = vrot.slane %v2549_v34, 4 }
  0xa3   : > { %1263 = vrot.lane.b32.xlu0 %v4141_v59, %s4670_s22  ;;  %v4221_v59 = vld [vmem:[%s4720_s19 + $0x1c] sm:$0xf]  ;;  %v2045_v5 = vrot.slane %v2043_v58, 4 }
  0xa4   : > { %v748_v63 = vpop.permute.xlu1 %747 }
  0xa5   : > { %831 = vst.msk [vmem:[#allocation2 + $0x34] sm:$0xf] %vm817_vm7, %v748_v63  ;;  %v746_v1 = vpop.permute.xlu0 %745  ;;  %v1464_v63 = vrot.slane %v1463_v52, 4 }
  0xa6   : > { %830 = vst.msk [vmem:[#allocation2 + $0x30] sm:$0xf] %vm817_vm7, %v746_v1  ;;  %1269 = vrot.lane.b32.xlu1 %v4144_v61, %s4670_s22  ;;  %v1445_v61 = vsel %vm4731_vm2, %v1440_v51, %v1444_v20  ;;  %v4317_v20 = vld [vmem:[%s4720_s19 + $0x28] sm:$0xf]  ;;  %v4281_v51 = vld [vmem:[%s4720_s19 + $0x18] sm:$0xf] }
  0xa7   : > { %1267 = vrot.lane.b32.xlu0 %v4143_v0, %s4670_s22  ;;  %v4219_v0 = vld [vmem:[%s4720_s19 + $0x14] sm:$0x1]  ;;  %v1469_v9 = vsel %vm4731_vm2, %v1464_v63, %v1468_v35  ;;  %v2558_v30 = vshll.u32 %v4317_v20, 16  ;;  %v2552_v35 = vshll.u32 %v4316_v26, 16 }
  0xa8   : > { %v752_v3 = vpop.permute.xlu1 %751 }
  0xa9   : > { %833 = vst.msk [vmem:[#allocation2 + $0x3c] sm:$0xf] %vm817_vm7, %v752_v3  ;;  %v750_v6 = vpop.permute.xlu0 %749  ;;  %v2050_v3 = vrot.slane %v4221_v59, 5 }
  0xaa   : > { %832 = vst.msk [vmem:[#allocation2 + $0x38] sm:$0xf] %vm817_vm7, %v750_v6  ;;  %1273 = vrot.lane.b32.xlu1 %v4146_v2, %s4670_s22  ;;  %v4217_v2 = vld [vmem:[%s4720_s19 + $0xc] sm:$0xe]  ;;  %v2046_v6 = vrot.slane %v4219_v0, 5 }
  0xab   : > { %1271 = vrot.lane.b32.xlu0 %v4145_v4, %s4670_s22  ;;  %v1479_v4 = vsel %vm4731_vm2, %v1474_v56, %v1478_v57  ;;  %v4265_v10 = vrot.slane %v4217_v2, 9  ;;  %v2052_v15 = vrot.slane %v2050_v3, 4  ;;  %v4283_v0 = vld [vmem:[%s4720_s19 + $0x24] sm:$0xf]  ;;  %v5213_v2 = vld [vmem:[%s4720_s19 + $0x20] sm:$0x1] }
  0xac   : > { %v756_v11 = vpop.permute.xlu1 %755  ;;  %v2047_v17 = vsel %vm4875_vm6, %v2045_v5, %v2046_v6  ;;  %v4175_v5 = vld [vmem:[%s4720_s19 + $0x24] sm:$0xf]  ;;  %v4625_v6 = vld [vmem:[%s6244_s1 + $0x10] ss:$0 sps:$4 sm:$0x33]  }
  0xad   : > { %835 = vst.msk [vmem:[#allocation2 + $0x44] sm:$0xf] %vm817_vm7, %v756_v11  ;;  %v754_v16 = vpop.permute.xlu0 %753  ;;  %v4314_v11 = vld [vmem:[%s4720_s19 + $0x1c] sm:$0xf]  ;;  %v2044_v22 = vsel %vm4875_vm6, %v4265_v10, %v2043_v58  ;;  %4590 = vmatprep.subr.msk.bf16.mxu0 %vm3555_vm9, %v4625_v6  ;;  %4591 = vmatprep.subr.msk.bf16.mxu1 %vm3555_vm9, %v4625_v6 }
  0xae   : > { %834 = vst.msk [vmem:[#allocation2 + $0x40] sm:$0xf] %vm817_vm7, %v754_v16  ;;  %1277 = vrot.lane.b32.xlu1 %v4148_v8, %s4670_s22  ;;  %v2053_v16 = vrot.slane %v4222_v7, 5 }
  0xaf   : > { %1275 = vrot.lane.b32.xlu0 %v4147_v12, %s4670_s22 }
  0xb0   : > { %v760_v24 = vpop.permute.xlu1 %759  ;;  %v2054_v29 = vsel %vm4875_vm6, %v2052_v15, %v2053_v16  ;;  %v3557_v15 = vsel %vm3555_vm9, %v4625_v6, 0  ;;  %v4224_v6 = vld [vmem:[%s4720_s19 + $0x28] sm:$0xf] }
  0xb1   : > { %837 = vst.msk [vmem:[#allocation2 + $0x4c] sm:$0xf] %vm817_vm7, %v760_v24  ;;  %v758_v31 = vpop.permute.xlu0 %757  ;;  %v2525_v24 = vshrl.u32 %v4313_v14, 16  ;;  %4547 = vmatpush3.bf16.msra.mxu0 %v3557_v15  ;;  %4587 = vmatpush3.bf16.msra.mxu1 %v3557_v15 }
  0xb2   : > { %836 = vst.msk [vmem:[#allocation2 + $0x48] sm:$0xf] %vm817_vm7, %v758_v31  ;;  %1281 = vrot.lane.b32.xlu1 %v4150_v18, %s4670_s22  ;;  %v2534_v18 = vshll.u32 %v4314_v11, 16  ;;  %v2562_v31 = vshrl.u32 %v4317_v20, 16  ;;  %v4179_v20 = vld [vmem:[%s4720_s19 + $0x34] sm:$0xf]  ;;  %4548 = vmatprep.subr.bf16.mxu0 %v4626_v25 }
  0xb3   : > { %1279 = vrot.lane.b32.xlu0 %v4149_v19, %s4670_s22  ;;  %v2538_v19 = vshrl.u32 %v4314_v11, 16  ;;  %v2527_v39 = vrot.slane %v2525_v24, 4  ;;  %v4178_v24 = vld [vmem:[%s4720_s19 + $0x30] sm:$0xf]  ;;  %v1514_v34 = vshll.u32 %v4179_v20, 16  ;;  %4585 = vmatprep.subr.bf16.mxu1 %v4626_v25 }
  0xb4   : > { %v764_v37 = vpop.permute.xlu1 %763 }
  0xb5   : > { %839 = vst.msk [vmem:[#allocation2 + $0x54] sm:$0xf] %vm817_vm7, %v764_v37  ;;  %v762_v43 = vpop.permute.xlu0 %761  ;;  %v2540_v33 = vrot.slane %v2538_v19, 4  ;;  %v2051_v37 = vsel %vm4875_vm6, %v4266_v23, %v2050_v3  ;;  %v2531_v52 = vor.u32 %v2530_v40, %v2527_v39  ;;  %v1484_v19 = vshll.u32 %v4175_v5, 16  ;;  %4549 = vmatpush3.bf16.msra.mxu0 %v4626_v25  ;;  %4588 = vmatpush3.bf16.msra.mxu1 %v4626_v25 }
  0xb6   : > { %838 = vst.msk [vmem:[#allocation2 + $0x50] sm:$0xf] %vm817_vm7, %v762_v43  ;;  %1285 = vrot.lane.b32.xlu1 %v4152_v32, %s4670_s22  ;;  %v5186_v32 = vrot.slane %v2534_v18, 5  ;;  %v5195_v43 = vrot.slane %v2558_v30, 5  ;;  %v1481_v18 = vshrl.u32 %v4175_v5, 16  ;;  %v1505_v40 = vshrl.u32 %v4178_v24, 16 }
  0xb7   : > { %1283 = vrot.lane.b32.xlu0 %v4151_v38, %s4670_s22  ;;  %v4315_v38 = vld [vmem:[%s4720_s19 + $0x20] sm:$0x1]  ;;  %v1486_v39 = vrot.slane %v1484_v19, 5 }
  0xb8   : > { %v768_v49 = vpop.permute.xlu1 %767  ;;  %v2541_v46 = vor.u32 %v2540_v33, %v5186_v32  ;;  %v2544_v47 = vshll.u32 %v4315_v38, 16  ;;  %v1483_v38 = vrot.slane %v1481_v18, 4  ;;  %v4223_v18 = vld [vmem:[%s4720_s19 + $0x24] sm:$0xe] }
  0xb9   : > { %841 = vst.msk [vmem:[#allocation2 + $0x5c] sm:$0xf] %vm817_vm7, %v768_v49  ;;  %v766_v54 = vpop.permute.xlu0 %765  ;;  %v2554_v49 = vrot.slane %v2552_v35, 5  ;;  %v1518_v35 = vshrl.u32 %v4179_v20, 16 }
  0xba   : > { %840 = vst.msk [vmem:[#allocation2 + $0x58] sm:$0xf] %vm817_vm7, %v766_v54  ;;  %1289 = vrot.lane.b32.xlu1 %v4154_v44, %s4670_s22  ;;  %v2564_v44 = vrot.slane %v2562_v31, 4  ;;  %v2568_v54 = vshll.u32 %v4318_v42, 16  ;;  %v2542_v57 = vrot.slane %v2541_v46, 4  ;;  %v2546_v58 = vrot.slane %v2544_v47, 5 }
  0xbb   : > { %1287 = vrot.lane.b32.xlu0 %v4153_v50, %s4670_s22  ;;  %v2555_v59 = vor.u32 %v2554_v49, %v2551_v48 }
  0xbc   : > { %v772_v60 = vpop.permute.xlu1 %771  ;;  %v2565_v56 = vor.u32 %v2564_v44, %v5195_v43  ;;  %v2547_v11 = vsel %vm4731_vm2, %v2542_v57, %v2546_v58  ;;  %v4364_v44 = vld [vmem:[%s4720_s19 + $0x24] sm:$0xe]  ;;  %v1507_v57 = vrot.slane %v1505_v40, 4 }
  0xbd   : > { %843 = vst.msk [vmem:[#allocation2 + $0x64] sm:$0xf] %vm817_vm7, %v772_v60  ;;  %v770_v1 = vpop.permute.xlu0 %769  ;;  %v5208_v60 = vld [vmem:[%s4720_s19 + $0x1c] sm:$0xf] }
  0xbe   : > { %842 = vst.msk [vmem:[#allocation2 + $0x60] sm:$0xf] %vm817_vm7, %v770_v1  ;;  %1818 = vrot.lane.b32.xlu1 %v1455_v55, %s4671_s23  ;;  %v4284_v55 = vld [vmem:[%s4720_s19 + $0x28] sm:$0xf]  ;;  %v2532_v1 = vrot.slane %v2531_v52, 4  ;;  %v2566_v7 = vrot.slane %v2565_v56, 4 }
  0xbf   : > { %1816 = vrot.lane.b32.xlu0 %v1445_v61, %s4671_s23  ;;  %v4176_v61 = vld [vmem:[%s4720_s19 + $0x28] sm:$0xf]  ;;  %v1520_v52 = vrot.slane %v1518_v35, 4  ;;  %v4180_v56 = vld [vmem:[%s4720_s19 + $0x38] sm:$0x1] }
  0xc0   : > { %v776_v8 = vpop.permute.xlu1 %775  ;;  %v1490_v10 = vshll.u32 %v4176_v61, 16  ;;  %v1494_v14 = vshrl.u32 %v4176_v61, 16 }
  0xc1   : > { %845 = vst.msk [vmem:[#allocation2 + $0x6c] sm:$0xf] %vm817_vm7, %v776_v8  ;;  %v774_v12 = vpop.permute.xlu0 %773  ;;  %v3135_v8 = vrot.slane %v5208_v60, 5 }
  0xc2   : > { %844 = vst.msk [vmem:[#allocation2 + $0x68] sm:$0xf] %vm817_vm7, %v774_v12  ;;  %1822 = vrot.lane.b32.xlu1 %v1479_v4, %s4671_s23  ;;  %v2570_v4 = vrot.slane %v2568_v54, 5  ;;  %v2556_v12 = vrot.slane %v2555_v59, 4  ;;  %v5245_v30 = vrot.slane %v1490_v10, 5  ;;  %v1496_v33 = vrot.slane %v1494_v14, 4 }
  0xc3   : > { %1820 = vrot.lane.b32.xlu0 %v1469_v9, %s4671_s23  ;;  %v4361_v9 = vld [vmem:[%s4720_s19 + $0x18] sm:$0xe]  ;;  %v4410_v54 = vrot.slane %v4364_v44, 9 }
  0xc4   : > { %v780_v21 = vpop.permute.xlu1 %779  ;;  %v4409_v23 = vrot.slane %v4361_v9, 9  ;;  %v2571_v26 = vsel %vm4731_vm2, %v2566_v7, %v2570_v4  ;;  %v2561_v31 = vsel %vm4731_vm2, %v2556_v12, %v5195_v43  ;;  %v4627_v43 = vld [vmem:[%s6244_s1] sm:$0xff]   ;;  %v1497_v49 = vor.u32 %v1496_v33, %v5245_v30  ;;  %v4227_v12 = vld [vmem:[%s4720_s19 + $0x34] sm:$0xf] }
  0xc5   : > { %847 = vst.msk [vmem:[#allocation2 + $0x74] sm:$0xf] %vm817_vm7, %v780_v21  ;;  %v778_v28 = vpop.permute.xlu0 %777  ;;  %4550 = vmatprep.subr.bf16.mxu0 %v4627_v43  ;;  %4586 = vmatprep.subr.bf16.mxu1 %v4627_v43  ;;  %v2064_v19 = vrot.slane %v4227_v12, 5 }
  0xc6   : > { %846 = vst.msk [vmem:[#allocation2 + $0x70] sm:$0xf] %vm817_vm7, %v778_v28  ;;  %2155 = vrot.lane.b32.xlu1 %v2047_v17, %s4672_s24  ;;  %v2537_v17 = vsel %vm4731_vm2, %v2532_v1, %v5186_v32  ;;  %v3137_v28 = vrot.slane %v3135_v8, 4  ;;  %v4366_v32 = vld [vmem:[%s4720_s19 + $0x2c] sm:$0x1]  ;;  %v3136_v46 = vsel %vm4875_vm6, %v4409_v23, %v3135_v8  ;;  %4551 = vmatpush3.bf16.msra.mxu0 %v4627_v43  ;;  %v1498_v61 = vrot.slane %v1497_v49, 4 }
  0xc7   : > { %2153 = vrot.lane.b32.xlu0 %v2044_v22, %s4672_s24  ;;  %v3138_v22 = vrot.slane %v5213_v2, 5  ;;  %v3145_v48 = vrot.slane %v4366_v32, 5  ;;  %4589 = vmatpush3.bf16.msra.mxu1 %v4627_v43  ;;  %v1524_v1 = vshll.u32 %v4180_v56, 16  ;;  %v4228_v23 = vld [vmem:[%s4720_s19 + $0x38] sm:$0x1]  ;;  %v2066_v32 = vrot.slane %v2064_v19, 4 }
  0xc8   : > { %v784_v36 = vpop.permute.xlu1 %783  ;;  %v2067_v33 = vrot.slane %v4228_v23, 5 }
  0xc9   : > { %849 = vst.msk [vmem:[#allocation2 + $0x7c] sm:$0xf] %vm817_vm7, %v784_v36  ;;  %v782_v41 = vpop.permute.xlu0 %781  ;;  %v1526_v10 = vrot.slane %v1524_v1, 5 }
  0xca   : > { %848 = vst.msk [vmem:[#allocation2 + $0x78] sm:$0xf] %vm817_vm7, %v782_v41  ;;  %2159 = vrot.lane.b32.xlu1 %v2054_v29, %s4672_s24  ;;  %v3142_v29 = vrot.slane %v5228_v13, 5  ;;  %v1508_v41 = vshll.u32 %v4178_v24, 16  ;;  %v2068_v49 = vsel %vm4875_vm6, %v2066_v32, %v2067_v33 }
  0xcb   : > { %2157 = vrot.lane.b32.xlu0 %v2051_v37, %s4672_s24  ;;  %v4177_v37 = vld [vmem:[%s4720_s19 + $0x2c] sm:$0x1] }
  0xcc   : > { %v1064_v50 = vpop.permute.xlu1 %1063  ;;  %v3144_v47 = vrot.slane %v3142_v29, 4  ;;  %v1510_v58 = vrot.slane %v1508_v41, 5 }
  0xcd   : > { %1159 = vst.msk [vmem:[#allocation2 + $0x4] sm:$0xf] %vm1157_vm8, %v1064_v50  ;;  %v1062_v53 = vpop.permute.xlu0 %1061  ;;  %v1500_v50 = vshll.u32 %v4177_v37, 16  ;;  %v4323_v37 = vld [vmem:[%s4720_s19 + $0x40] sm:$0xf] }
  0xce   : > { %1158 = vst.msk [vmem:[#allocation2] sm:$0xf] %vm1157_vm8, %v1062_v53  ;;  %2349 = vrot.lane.b32.xlu1 %v4282_v45, %s4673_s25  ;;  %v3139_v45 = vsel %vm4875_vm6, %v3137_v28, %v3138_v22  ;;  %v3146_v60 = vsel %vm4875_vm6, %v3144_v47, %v3145_v48  ;;  %v1511_v5 = vor.u32 %v1510_v58, %v1507_v57  ;;  %v4320_v28 = vld [vmem:[%s4720_s19 + $0x34] sm:$0xf] }
  0xcf   : > { %2347 = vrot.lane.b32.xlu0 %v4281_v51, %s4673_s25  ;;  %v5266_v51 = vrot.slane %v1514_v34, 5  ;;  %v2582_v35 = vshll.u32 %v4320_v28, 16 }
  0xd0   : > { %v1068_v63 = vpop.permute.xlu1 %1067  ;;  %v1512_v15 = vrot.slane %v1511_v5, 4 }
  0xd1   : > { %1161 = vst.msk [vmem:[#allocation2 + $0xc] sm:$0xf] %vm1157_vm8, %v1068_v63  ;;  %v1066_v3 = vpop.permute.xlu0 %1065  ;;  %v1502_v63 = vrot.slane %v1500_v50, 5  ;;  %v5320_v50 = vrot.slane %v2582_v35, 5  ;;  %v4185_v35 = vld [vmem:[%s4720_s19 + $0x4c] sm:$0xf] }
  0xd2   : > { %1160 = vst.msk [vmem:[#allocation2 + $0x8] sm:$0xf] %vm1157_vm8, %v1066_v3  ;;  %2353 = vrot.lane.b32.xlu1 %v4284_v55, %s4673_s25  ;;  %v1487_v55 = vor.u32 %v1486_v39, %v1483_v38  ;;  %v3143_v3 = vsel %vm4875_vm6, %v4410_v54, %v3142_v29  ;;  %v1517_v25 = vsel %vm4731_vm2, %v1512_v15, %v5266_v51  ;;  %v4322_v38 = vld [vmem:[%s4720_s19 + $0x3c] sm:$0xf]  ;;  %v4321_v54 = vld [vmem:[%s4720_s19 + $0x38] sm:$0x1] }
  0xd3   : > { %2351 = vrot.lane.b32.xlu0 %v4283_v0, %s4673_s25  ;;  %v1521_v0 = vor.u32 %v1520_v52, %v5266_v51  ;;  %v1503_v8 = vsel %vm4731_vm2, %v1498_v61, %v1502_v63  ;;  %v2597_v47 = vshrl.u32 %v4322_v38, 16  ;;  %v2600_v48 = vshll.u32 %v4322_v38, 16  ;;  %v4286_v63 = vld [vmem:[%s4720_s19 + $0x34] sm:$0xf]  ;;  %v4287_v15 = vld [vmem:[%s4720_s19 + $0x3c] sm:$0xf] }
  0xd4   : > { %v1072_v16 = vpop.permute.xlu1 %1071  ;;  %v1488_v4 = vrot.slane %v1487_v55, 4  ;;  %v2592_v1 = vshll.u32 %v4321_v54, 16 }
  0xd5   : > { %1163 = vst.msk [vmem:[#allocation2 + $0x14] sm:$0xf] %vm1157_vm8, %v1072_v16  ;;  %v1070_v21 = vpop.permute.xlu0 %1069  ;;  %v1522_v9 = vrot.slane %v1521_v0, 4  ;;  %v4225_v16 = vld [vmem:[%s4720_s19 + $0x2c] sm:$0x1]  ;;  %v2602_v61 = vrot.slane %v2600_v48, 5 }
  0xd6   : > { %1162 = vst.msk [vmem:[#allocation2 + $0x10] sm:$0xf] %vm1157_vm8, %v1070_v21  ;;  %2910 = vrot.lane.b32.xlu1 %v2547_v11, %s4674_s30  ;;  %v2057_v11 = vrot.slane %v4224_v6, 5  ;;  %v1493_v14 = vsel %vm4731_vm2, %v1488_v4, %v5245_v30  ;;  %v2060_v22 = vrot.slane %v4225_v16, 5  ;;  %v4226_v30 = vld [vmem:[%s4720_s19 + $0x30] sm:$0xe] }
  0xd7   : > { %2908 = vrot.lane.b32.xlu0 %v2537_v17, %s4674_s30  ;;  %v1527_v20 = vsel %vm4731_vm2, %v1522_v9, %v1526_v10  ;;  %v4268_v41 = vrot.slane %v4226_v30, 9  ;;  %v4285_v4 = vld [vmem:[%s4720_s19 + $0x30] sm:$0xf]  ;;  %v4368_v10 = vld [vmem:[%s4720_s19 + $0x34] sm:$0xf]  ;;  %v1566_v48 = vshrl.u32 %v4185_v35, 16 }
  0xd8   : > { %v1076_v36 = vpop.permute.xlu1 %1075  ;;  %v2059_v21 = vrot.slane %v2057_v11, 4 }
  0xd9   : > { %1165 = vst.msk [vmem:[#allocation2 + $0x1c] sm:$0xf] %vm1157_vm8, %v1076_v36  ;;  %v1074_v42 = vpop.permute.xlu0 %1073  ;;  %v2586_v36 = vshrl.u32 %v4320_v28, 16  ;;  %v5354_v28 = vld [vmem:[%s4720_s19 + $0x40] sm:$0xf] }
  0xda   : > { %1164 = vst.msk [vmem:[#allocation2 + $0x18] sm:$0xf] %vm1157_vm8, %v1074_v42  ;;  %2914 = vrot.lane.b32.xlu1 %v2571_v26, %s4674_s30  ;;  %v4267_v26 = vrot.slane %v4223_v18, 9  ;;  %v2061_v34 = vsel %vm4875_vm6, %v2059_v21, %v2060_v22 }
  0xdb   : > { %2912 = vrot.lane.b32.xlu0 %v2561_v31, %s4674_s30  ;;  %v4319_v31 = vld [vmem:[%s4720_s19 + $0x30] sm:$0xf]  ;;  %v2588_v51 = vrot.slane %v2586_v36, 4 }
  0xdc   : > { %v1080_v53 = vpop.permute.xlu1 %1079  ;;  %v2058_v40 = vsel %vm4875_vm6, %v4267_v26, %v2057_v11  ;;  %v2573_v42 = vshrl.u32 %v4319_v31, 16  ;;  %v2576_v44 = vshll.u32 %v4319_v31, 16  ;;  %v4288_v11 = vld [vmem:[%s4720_s19 + $0x40] sm:$0xf]  ;;  %v4367_v26 = vld [vmem:[%s4720_s19 + $0x30] sm:$0xe] }
  0xdd   : > { %1167 = vst.msk [vmem:[#allocation2 + $0x24] sm:$0xf] %vm1157_vm8, %v1080_v53  ;;  %v1078_v59 = vpop.permute.xlu0 %1077  ;;  %v2065_v53 = vsel %vm4875_vm6, %v4268_v41, %v2064_v19  ;;  %v2589_v0 = vor.u32 %v2588_v51, %v5320_v50  ;;  %v3149_v19 = vrot.slane %v4368_v10, 5 }
  0xde   : > { %1166 = vst.msk [vmem:[#allocation2 + $0x20] sm:$0xf] %vm1157_vm8, %v1078_v59  ;;  %3247 = vrot.lane.b32.xlu1 %v3139_v45, %s4675_s6  ;;  %v2606_v45 = vshll.u32 %v4323_v37, 16  ;;  %v2575_v55 = vrot.slane %v2573_v42, 4  ;;  %v2578_v56 = vrot.slane %v2576_v44, 5  ;;  %v4411_v42 = vrot.slane %v4367_v26, 9 }
  0xdf   : > { %3245 = vrot.lane.b32.xlu0 %v3136_v46, %s4675_s6  ;;  %v2610_v46 = vshrl.u32 %v4323_v37, 16  ;;  %v2590_v12 = vrot.slane %v2589_v0, 4  ;;  %v3151_v37 = vrot.slane %v3149_v19, 4  ;;  %v3156_v44 = vrot.slane %v5354_v28, 5 }
  0xe0   : > { %v1084_v2 = vpop.permute.xlu1 %1083  ;;  %v5328_v58 = vrot.slane %v2606_v45, 5  ;;  %v2579_v5 = vor.u32 %v2578_v56, %v2575_v55  ;;  %v4370_v56 = vld [vmem:[%s4720_s19 + $0x3c] sm:$0xe] }
  0xe1   : > { %1169 = vst.msk [vmem:[#allocation2 + $0x2c] sm:$0xf] %vm1157_vm8, %v1084_v2  ;;  %v1082_v7 = vpop.permute.xlu0 %1081  ;;  %v2612_v59 = vrot.slane %v2610_v46, 4  ;;  %v4324_v2 = vld [vmem:[%s4720_s19 + $0x44] sm:$0x1] }
  0xe2   : > { %1168 = vst.msk [vmem:[#allocation2 + $0x28] sm:$0xf] %vm1157_vm8, %v1082_v7  ;;  %3251 = vrot.lane.b32.xlu1 %v3146_v60, %s4675_s6  ;;  %v2599_v60 = vrot.slane %v2597_v47, 4  ;;  %v2580_v16 = vrot.slane %v2579_v5, 4  ;;  %v1562_v47 = vshll.u32 %v4185_v35, 16 }
  0xe3   : > { %3249 = vrot.lane.b32.xlu0 %v3143_v3, %s4675_s6  ;;  %v2613_v7 = vor.u32 %v2612_v59, %v5328_v58  ;;  %v3158_v59 = vrot.slane %v3156_v44, 4  ;;  %v4186_v5 = vld [vmem:[%s4720_s19 + $0x50] sm:$0x1] }
  0xe4   : > { %v1088_v13 = vpop.permute.xlu1 %1087  ;;  %v2603_v9 = vor.u32 %v2602_v61, %v2599_v60  ;;  %v2585_v32 = vsel %vm4731_vm2, %v2580_v16, %v5320_v50  ;;  %v4183_v50 = vld [vmem:[%s4720_s19 + $0x44] sm:$0x1]  ;;  %v1564_v0 = vrot.slane %v1562_v47, 5 }
  0xe5   : > { %1171 = vst.msk [vmem:[#allocation2 + $0x34] sm:$0xf] %vm1157_vm8, %v1088_v13  ;;  %v1086_v17 = vpop.permute.xlu0 %1085  ;;  %v2594_v13 = vrot.slane %v2592_v1, 5  ;;  %v2614_v21 = vrot.slane %v2613_v7, 4  ;;  %v1568_v1 = vrot.slane %v1566_v48, 4 }
  0xe6   : > { %1170 = vst.msk [vmem:[#allocation2 + $0x30] sm:$0xf] %vm1157_vm8, %v1086_v17  ;;  %1826 = vrot.lane.b32.xlu1 %v1503_v8, %s4671_s23  ;;  %v2616_v8 = vshll.u32 %v4324_v2, 16  ;;  %v4182_v17 = vld [vmem:[%s4720_s19 + $0x40] sm:$0xf]  ;;  %v2604_v23 = vrot.slane %v2603_v9, 4 }
  0xe7   : > { %1824 = vrot.lane.b32.xlu0 %v1493_v14, %s4671_s23  ;;  %v1542_v30 = vshrl.u32 %v4182_v17, 16 }
  0xe8   : > { %v1092_v24 = vpop.permute.xlu1 %1091  ;;  %v2618_v22 = vrot.slane %v2616_v8, 5  ;;  %v2609_v41 = vsel %vm4731_vm2, %v2604_v23, %v5328_v58  ;;  %v3150_v58 = vsel %vm4875_vm6, %v4411_v42, %v3149_v19  ;;  %v4232_v42 = vld [vmem:[%s4720_s19 + $0x48] sm:$0xe] }
  0xe9   : > { %1173 = vst.msk [vmem:[#allocation2 + $0x3c] sm:$0xf] %vm1157_vm8, %v1092_v24  ;;  %v1090_v29 = vpop.permute.xlu0 %1089  ;;  %v4369_v24 = vld [vmem:[%s4720_s19 + $0x38] sm:$0x1]  ;;  %v1544_v46 = vrot.slane %v1542_v30, 4 }
  0xea   : > { %1172 = vst.msk [vmem:[#allocation2 + $0x38] sm:$0xf] %vm1157_vm8, %v1090_v29  ;;  %1830 = vrot.lane.b32.xlu1 %v1527_v20, %s4671_s23  ;;  %v4181_v20 = vld [vmem:[%s4720_s19 + $0x3c] sm:$0xf]  ;;  %v1538_v29 = vshll.u32 %v4182_v17, 16  ;;  %v3152_v38 = vrot.slane %v4369_v24, 5 }
  0xeb   : > { %1828 = vrot.lane.b32.xlu0 %v1517_v25, %s4671_s23  ;;  %v2595_v25 = vsel %vm4731_vm2, %v2590_v12, %v2594_v13  ;;  %v1529_v33 = vshrl.u32 %v4181_v20, 16  ;;  %v1569_v12 = vor.u32 %v1568_v1, %v1564_v0  ;;  %v1572_v13 = vshll.u32 %v4186_v5, 16  ;;  %v4233_v24 = vld [vmem:[%s4720_s19 + $0x4c] sm:$0xf] }
  0xec   : > { %v1096_v39 = vpop.permute.xlu1 %1095  ;;  %v5372_v45 = vrot.slane %v1538_v29, 5  ;;  %v4231_v29 = vld [vmem:[%s4720_s19 + $0x44] sm:$0x1] }
  0xed   : > { %1175 = vst.msk [vmem:[#allocation2 + $0x44] sm:$0xf] %vm1157_vm8, %v1096_v39  ;;  %v1094_v43 = vpop.permute.xlu0 %1093  ;;  %v4184_v39 = vld [vmem:[%s4720_s19 + $0x48] sm:$0xf]  ;;  %v1531_v51 = vrot.slane %v1529_v33, 4  ;;  %v2074_v35 = vrot.slane %v4231_v29, 5 }
  0xee   : > { %1174 = vst.msk [vmem:[#allocation2 + $0x40] sm:$0xf] %vm1157_vm8, %v1094_v43  ;;  %2163 = vrot.lane.b32.xlu1 %v2061_v34, %s4672_s24  ;;  %v1532_v34 = vshll.u32 %v4181_v20, 16  ;;  %v4372_v43 = vld [vmem:[%s4720_s19 + $0x44] sm:$0x1]  ;;  %v1556_v54 = vshll.u32 %v4184_v39, 16  ;;  %v1545_v61 = vor.u32 %v1544_v46, %v5372_v45 }
  0xef   : > { %2161 = vrot.lane.b32.xlu0 %v2058_v40, %s4672_s24  ;;  %v2619_v40 = vsel %vm4731_vm2, %v2614_v21, %v2618_v22  ;;  %v3159_v60 = vrot.slane %v4372_v43, 5  ;;  %v1570_v21 = vrot.slane %v1569_v12, 4  ;;  %v1574_v22 = vrot.slane %v1572_v13, 5 }
  0xf0   : > { %v1100_v52 = vpop.permute.xlu1 %1099  ;;  %v1558_v7 = vrot.slane %v1556_v54, 5  ;;  %v1546_v10 = vrot.slane %v1545_v61, 4 }
  0xf1   : > { %1177 = vst.msk [vmem:[#allocation2 + $0x4c] sm:$0xf] %vm1157_vm8, %v1100_v52  ;;  %v1098_v57 = vpop.permute.xlu0 %1097  ;;  %v1534_v52 = vrot.slane %v1532_v34, 5  ;;  %v3160_v9 = vsel %vm4875_vm6, %v3158_v59, %v3159_v60  ;;  %v1575_v33 = vsel %vm4731_vm2, %v1570_v21, %v1574_v22  ;;  %v4374_v22 = vld [vmem:[%s4720_s19 + $0x4c] sm:$0xf] }
  0xf2   : > { %1176 = vst.msk [vmem:[#allocation2 + $0x48] sm:$0xf] %vm1157_vm8, %v1098_v57  ;;  %2167 = vrot.lane.b32.xlu1 %v2068_v49, %s4672_s24  ;;  %v3153_v57 = vsel %vm4875_vm6, %v3151_v37, %v3152_v38 }
  0xf3   : > { %2165 = vrot.lane.b32.xlu0 %v2065_v53, %s4672_s24  ;;  %v1553_v53 = vshrl.u32 %v4184_v39, 16 }
  0xf4   : > { %v1104_v3 = vpop.permute.xlu1 %1103 }
  0xf5   : > { %1179 = vst.msk [vmem:[#allocation2 + $0x54] sm:$0xf] %vm1157_vm8, %v1104_v3  ;;  %v1102_v6 = vpop.permute.xlu0 %1101  ;;  %v4412_v3 = vrot.slane %v4370_v56, 9 }
  0xf6   : > { %1178 = vst.msk [vmem:[#allocation2 + $0x50] sm:$0xf] %vm1157_vm8, %v1102_v6  ;;  %2357 = vrot.lane.b32.xlu1 %v4286_v63, %s4673_s25  ;;  %v1548_v63 = vshll.u32 %v4183_v50, 16  ;;  %v1555_v6 = vrot.slane %v1553_v53, 4  ;;  %v4328_v50 = vld [vmem:[%s4720_s19 + $0x54] sm:$0xf] }
  0xf7   : > { %2355 = vrot.lane.b32.xlu0 %v4285_v4, %s4673_s25  ;;  %v1535_v4 = vor.u32 %v1534_v52, %v1531_v51  ;;  %v4270_v53 = vrot.slane %v4232_v42, 9  ;;  %v2645_v59 = vshrl.u32 %v4328_v50, 16  ;;  %v2648_v60 = vshll.u32 %v4328_v50, 16 }
  0xf8   : > { %v1108_v14 = vpop.permute.xlu1 %1107  ;;  %v1559_v17 = vor.u32 %v1558_v7, %v1555_v6 }
  0xf9   : > { %1181 = vst.msk [vmem:[#allocation2 + $0x5c] sm:$0xf] %vm1157_vm8, %v1108_v14  ;;  %v1106_v18 = vpop.permute.xlu0 %1105  ;;  %v1536_v16 = vrot.slane %v1535_v4, 4 }
  0xfa   : > { %1180 = vst.msk [vmem:[#allocation2 + $0x58] sm:$0xf] %vm1157_vm8, %v1106_v18  ;;  %2361 = vrot.lane.b32.xlu1 %v4288_v11, %s4673_s25  ;;  %v1550_v11 = vrot.slane %v1548_v63, 5  ;;  %v4230_v18 = vld [vmem:[%s4720_s19 + $0x40] sm:$0xf]  ;;  %v1560_v28 = vrot.slane %v1559_v17, 4 }
  0xfb   : > { %2359 = vrot.lane.b32.xlu0 %v4287_v15, %s4673_s25  ;;  %v3157_v15 = vsel %vm4875_vm6, %v4412_v3, %v3156_v44  ;;  %v2071_v23 = vrot.slane %v4230_v18, 5  ;;  %v1541_v26 = vsel %vm4731_vm2, %v1536_v16, %v5372_v45  ;;  %v4325_v44 = vld [vmem:[%s4720_s19 + $0x48] sm:$0xf]  ;;  %v4327_v3 = vld [vmem:[%s4720_s19 + $0x50] sm:$0x1] }
  0xfc   : > { %v1112_v31 = vpop.permute.xlu1 %1111  ;;  %v1551_v20 = vsel %vm4731_vm2, %v1546_v10, %v1550_v11  ;;  %v1565_v38 = vsel %vm4731_vm2, %v1560_v28, %v1564_v0  ;;  %v2621_v54 = vshrl.u32 %v4325_v44, 16  ;;  %v2650_v10 = vrot.slane %v2648_v60, 5  ;;  %v4290_v11 = vld [vmem:[%s4720_s19 + $0x4c] sm:$0xf]  ;;  %v4289_v16 = vld [vmem:[%s4720_s19 + $0x48] sm:$0xf] }
  0xfd   : > { %1183 = vst.msk [vmem:[#allocation2 + $0x64] sm:$0xf] %vm1157_vm8, %v1112_v31  ;;  %v1110_v36 = vpop.permute.xlu0 %1109  ;;  %v4229_v31 = vld [vmem:[%s4720_s19 + $0x3c] sm:$0xe]  ;;  %v2073_v34 = vrot.slane %v2071_v23, 4  ;;  %v2640_v13 = vshll.u32 %v4327_v3, 16 }
  0xfe   : > { %1182 = vst.msk [vmem:[#allocation2 + $0x60] sm:$0xf] %vm1157_vm8, %v1110_v36  ;;  %2918 = vrot.lane.b32.xlu1 %v2595_v25, %s4674_s30  ;;  %v4234_v36 = vld [vmem:[%s4720_s19 + $0x50] sm:$0x1]  ;;  %v4269_v39 = vrot.slane %v4229_v31, 9  ;;  %v2623_v4 = vrot.slane %v2621_v54, 4 }
  0xff   : > { %2916 = vrot.lane.b32.xlu0 %v2585_v32, %s4674_s30  ;;  %v2078_v32 = vrot.slane %v4233_v24, 5  ;;  %v2081_v45 = vrot.slane %v4234_v36, 5  ;;  %v2075_v46 = vsel %vm4875_vm6, %v2073_v34, %v2074_v35  ;;  %v4291_v28 = vld [vmem:[%s4720_s19 + $0x54] sm:$0xf] }
 0x100   : > { %v1116_v49 = vpop.permute.xlu1 %1115  ;;  %v2072_v52 = vsel %vm4875_vm6, %v4269_v39, %v2071_v23  ;;  %v4292_v23 = vld [vmem:[%s4720_s19 + $0x58] sm:$0xf]  ;;  %v4373_v39 = vld [vmem:[%s4720_s19 + $0x48] sm:$0xe] }
 0x101   : > { %1185 = vst.msk [vmem:[#allocation2 + $0x6c] sm:$0xf] %vm1157_vm8, %v1116_v49  ;;  %v1114_v55 = vpop.permute.xlu0 %1113  ;;  %v2080_v43 = vrot.slane %v2078_v32, 4  ;;  %v4329_v49 = vld [vmem:[%s4720_s19 + $0x58] sm:$0xf]  ;;  %v4413_v54 = vrot.slane %v4373_v39, 9 }
 0x102   : > { %1184 = vst.msk [vmem:[#allocation2 + $0x68] sm:$0xf] %vm1157_vm8, %v1114_v55  ;;  %2922 = vrot.lane.b32.xlu1 %v2619_v40, %s4674_s30  ;;  %v4326_v40 = vld [vmem:[%s4720_s19 + $0x4c] sm:$0xf]  ;;  %v2624_v55 = vshll.u32 %v4325_v44, 16 }
 0x103   : > { %2920 = vrot.lane.b32.xlu0 %v2609_v41, %s4674_s30  ;;  %v2630_v47 = vshll.u32 %v4326_v40, 16  ;;  %v2634_v48 = vshrl.u32 %v4326_v40, 16  ;;  %v2082_v61 = vsel %vm4875_vm6, %v2080_v43, %v2081_v45  ;;  %v5469_v40 = vld [vmem:[%s4720_s19 + $0x58] sm:$0xf] }
 0x104   : > { %v1120_v2 = vpop.permute.xlu1 %1119  ;;  %v2626_v5 = vrot.slane %v2624_v55, 5  ;;  %v3170_v55 = vrot.slane %v5469_v40, 5 }
 0x105   : > { %1187 = vst.msk [vmem:[#allocation2 + $0x74] sm:$0xf] %vm1157_vm8, %v1120_v2  ;;  %v1118_v8 = vpop.permute.xlu0 %1117  ;;  %v5435_v63 = vrot.slane %v2630_v47, 5  ;;  %v2636_v0 = vrot.slane %v2634_v48, 4  ;;  %v2079_v2 = vsel %vm4875_vm6, %v4270_v53, %v2078_v32  ;;  %v3163_v32 = vrot.slane %v4374_v22, 5 }
 0x106   : > { %1186 = vst.msk [vmem:[#allocation2 + $0x70] sm:$0xf] %vm1157_vm8, %v1118_v8  ;;  %3255 = vrot.lane.b32.xlu1 %v3153_v57, %s4675_s6  ;;  %v2654_v57 = vshll.u32 %v4329_v49, 16  ;;  %v2627_v17 = vor.u32 %v2626_v5, %v2623_v4  ;;  %v4191_v47 = vld [vmem:[%s4720_s19 + $0x64] sm:$0xf] }
 0x107   : > { %3253 = vrot.lane.b32.xlu0 %v3150_v58, %s4675_s6  ;;  %v2658_v58 = vshrl.u32 %v4329_v49, 16  ;;  %v2637_v12 = vor.u32 %v2636_v0, %v5435_v63  ;;  %v3165_v49 = vrot.slane %v3163_v32, 4  ;;  %v1614_v60 = vshrl.u32 %v4191_v47, 16  ;;  %v4376_v5 = vld [vmem:[%s4720_s19 + $0x54] sm:$0xe] }
 0x108   : > { %v1124_v14 = vpop.permute.xlu1 %1123  ;;  %v5443_v7 = vrot.slane %v2654_v57, 5  ;;  %v2628_v29 = vrot.slane %v2627_v17, 4  ;;  %v4192_v17 = vld [vmem:[%s4720_s19 + $0x68] sm:$0x1] }
 0x109   : > { %1189 = vst.msk [vmem:[#allocation2 + $0x7c] sm:$0xf] %vm1157_vm8, %v1124_v14  ;;  %v1122_v19 = vpop.permute.xlu0 %1121  ;;  %v2660_v8 = vrot.slane %v2658_v58, 4  ;;  %v4330_v14 = vld [vmem:[%s4720_s19 + $0x5c] sm:$0x1]  ;;  %v2638_v24 = vrot.slane %v2637_v12, 4 }
 0x10a   : > { %1188 = vst.msk [vmem:[#allocation2 + $0x78] sm:$0xf] %vm1157_vm8, %v1122_v19  ;;  %3259 = vrot.lane.b32.xlu1 %v3160_v9, %s4675_s6  ;;  %v2647_v9 = vrot.slane %v2645_v59, 4  ;;  %v2633_v43 = vsel %vm4731_vm2, %v2628_v29, %v5435_v63  ;;  %v1610_v59 = vshll.u32 %v4191_v47, 16  ;;  %v4189_v63 = vld [vmem:[%s4720_s19 + $0x5c] sm:$0x1] }
 0x10b   : > { %3257 = vrot.lane.b32.xlu0 %v3157_v15, %s4675_s6  ;;  %v2661_v19 = vor.u32 %v2660_v8, %v5443_v7  ;;  %v3172_v8 = vrot.slane %v3170_v55, 4 }
 0x10c   : > { %v1258_v25 = vpop.permute.xlu1 %1257  ;;  %v2651_v21 = vor.u32 %v2650_v10, %v2647_v9  ;;  %v5500_v12 = vrot.slane %v1610_v59, 5 }
 0x10d   : > { %1353 = vst.msk [vmem:[#allocation2 + $0x4] sm:$0xf] %vm1351_vm10, %v1258_v25  ;;  %v1256_v30 = vpop.permute.xlu0 %1255  ;;  %v2642_v25 = vrot.slane %v2640_v13, 5  ;;  %v2662_v34 = vrot.slane %v2661_v19, 4  ;;  %v1616_v13 = vrot.slane %v1614_v60, 4 }
 0x10e   : > { %1352 = vst.msk [vmem:[#allocation2] sm:$0xf] %vm1351_vm10, %v1256_v30  ;;  %1834 = vrot.lane.b32.xlu1 %v1551_v20, %s4671_s23  ;;  %v2664_v20 = vshll.u32 %v4330_v14, 16  ;;  %v4188_v30 = vld [vmem:[%s4720_s19 + $0x58] sm:$0xf]  ;;  %v2652_v36 = vrot.slane %v2651_v21, 4 }
 0x10f   : > { %1832 = vrot.lane.b32.xlu0 %v1541_v26, %s4671_s23  ;;  %v1590_v42 = vshrl.u32 %v4188_v30, 16 }
 0x110   : > { %v1262_v37 = vpop.permute.xlu1 %1261  ;;  %v2666_v35 = vrot.slane %v2664_v20, 5  ;;  %v2657_v53 = vsel %vm4731_vm2, %v2652_v36, %v5443_v7  ;;  %v3164_v7 = vsel %vm4875_vm6, %v4413_v54, %v3163_v32 }
 0x111   : > { %1355 = vst.msk [vmem:[#allocation2 + $0xc] sm:$0xf] %vm1351_vm10, %v1262_v37  ;;  %v1260_v41 = vpop.permute.xlu0 %1259  ;;  %v4375_v37 = vld [vmem:[%s4720_s19 + $0x50] sm:$0x1]  ;;  %v1592_v58 = vrot.slane %v1590_v42, 4 }
 0x112   : > { %1354 = vst.msk [vmem:[#allocation2 + $0x8] sm:$0xf] %vm1351_vm10, %v1260_v41  ;;  %1838 = vrot.lane.b32.xlu1 %v1575_v33, %s4671_s23  ;;  %v4187_v33 = vld [vmem:[%s4720_s19 + $0x54] sm:$0xf]  ;;  %v1586_v41 = vshll.u32 %v4188_v30, 16  ;;  %v3166_v50 = vrot.slane %v4375_v37, 5 }
 0x113   : > { %1836 = vrot.lane.b32.xlu0 %v1565_v38, %s4671_s23  ;;  %v2643_v38 = vsel %vm4731_vm2, %v2638_v24, %v2642_v25  ;;  %v1577_v45 = vshrl.u32 %v4187_v33, 16  ;;  %v1617_v24 = vor.u32 %v1616_v13, %v5500_v12  ;;  %v1620_v25 = vshll.u32 %v4192_v17, 16  ;;  %v4239_v37 = vld [vmem:[%s4720_s19 + $0x64] sm:$0xf]  ;;  %v4333_v13 = vld [vmem:[%s4720_s19 + $0x68] sm:$0x1] }
 0x114   : > { %v1266_v51 = vpop.permute.xlu1 %1265  ;;  %v5487_v57 = vrot.slane %v1586_v41, 5  ;;  %v4237_v41 = vld [vmem:[%s4720_s19 + $0x5c] sm:$0x1] }
 0x115   : > { %1357 = vst.msk [vmem:[#allocation2 + $0x14] sm:$0xf] %vm1351_vm10, %v1266_v51  ;;  %v1264_v56 = vpop.permute.xlu0 %1263  ;;  %v4190_v51 = vld [vmem:[%s4720_s19 + $0x60] sm:$0xf]  ;;  %v1579_v0 = vrot.slane %v1577_v45, 4  ;;  %v2088_v47 = vrot.slane %v4237_v41, 5 }
 0x116   : > { %1356 = vst.msk [vmem:[#allocation2 + $0x10] sm:$0xf] %vm1351_vm10, %v1264_v56  ;;  %2171 = vrot.lane.b32.xlu1 %v2075_v46, %s4672_s24  ;;  %v1580_v46 = vshll.u32 %v4187_v33, 16  ;;  %v4378_v56 = vld [vmem:[%s4720_s19 + $0x5c] sm:$0x1]  ;;  %v1604_v3 = vshll.u32 %v4190_v51, 16  ;;  %v1593_v10 = vor.u32 %v1592_v58, %v5487_v57 }
 0x117   : > { %2169 = vrot.lane.b32.xlu0 %v2072_v52, %s4672_s24  ;;  %v2667_v52 = vsel %vm4731_vm2, %v2662_v34, %v2666_v35  ;;  %v3173_v9 = vrot.slane %v4378_v56, 5  ;;  %v1618_v34 = vrot.slane %v1617_v24, 4  ;;  %v1622_v35 = vrot.slane %v1620_v25, 5  ;;  %v4293_v25 = vld [vmem:[%s4720_s19 + $0x60] sm:$0xf] }
 0x118   : > { %v1270_v1 = vpop.permute.xlu1 %1269  ;;  %v1606_v19 = vrot.slane %v1604_v3, 5  ;;  %v1594_v22 = vrot.slane %v1593_v10, 4  ;;  %v4335_v3 = vld [vmem:[%s4720_s19 + $0x70] sm:$0xf] }
 0x119   : > { %1359 = vst.msk [vmem:[#allocation2 + $0x1c] sm:$0xf] %vm1351_vm10, %v1270_v1  ;;  %v1268_v6 = vpop.permute.xlu0 %1267  ;;  %v1582_v1 = vrot.slane %v1580_v46, 5  ;;  %v3174_v21 = vsel %vm4875_vm6, %v3172_v8, %v3173_v9  ;;  %v1623_v45 = vsel %vm4731_vm2, %v1618_v34, %v1622_v35  ;;  %v2702_v10 = vshll.u32 %v4335_v3, 16 }
 0x11a   : > { %1358 = vst.msk [vmem:[#allocation2 + $0x18] sm:$0xf] %vm1351_vm10, %v1268_v6  ;;  %2175 = vrot.lane.b32.xlu1 %v2082_v61, %s4672_s24  ;;  %v3167_v6 = vsel %vm4875_vm6, %v3165_v49, %v3166_v50  ;;  %v4238_v49 = vld [vmem:[%s4720_s19 + $0x60] sm:$0xe] }
 0x11b   : > { %2173 = vrot.lane.b32.xlu0 %v2079_v2, %s4672_s24  ;;  %v1601_v2 = vshrl.u32 %v4190_v51, 16  ;;  %v4272_v58 = vrot.slane %v4238_v49, 9  ;;  %v4383_v49 = vld [vmem:[%s4720_s19 + $0x70] sm:$0xf] }
 0x11c   : > { %v1274_v15 = vpop.permute.xlu1 %1273 }
 0x11d   : > { %1361 = vst.msk [vmem:[#allocation2 + $0x24] sm:$0xf] %vm1351_vm10, %v1274_v15  ;;  %v1272_v18 = vpop.permute.xlu0 %1271  ;;  %v4414_v15 = vrot.slane %v4376_v5, 9  ;;  %v4334_v5 = vld [vmem:[%s4720_s19 + $0x6c] sm:$0xf] }
 0x11e   : > { %1360 = vst.msk [vmem:[#allocation2 + $0x20] sm:$0xf] %vm1351_vm10, %v1272_v18  ;;  %2365 = vrot.lane.b32.xlu1 %v4290_v11, %s4673_s25  ;;  %v1596_v11 = vshll.u32 %v4189_v63, 16  ;;  %v1603_v18 = vrot.slane %v1601_v2, 4  ;;  %v2696_v17 = vshll.u32 %v4334_v5, 16 }
 0x11f   : > { %2363 = vrot.lane.b32.xlu0 %v4289_v16, %s4673_s25  ;;  %v1583_v16 = vor.u32 %v1582_v1, %v1579_v0 }
 0x120   : > { %v1278_v26 = vpop.permute.xlu1 %1277  ;;  %v1607_v30 = vor.u32 %v1606_v19, %v1603_v18  ;;  %v4294_v19 = vld [vmem:[%s4720_s19 + $0x64] sm:$0xf] }
 0x121   : > { %1363 = vst.msk [vmem:[#allocation2 + $0x2c] sm:$0xf] %vm1351_vm10, %v1278_v26  ;;  %v1276_v31 = vpop.permute.xlu0 %1275  ;;  %v1584_v29 = vrot.slane %v1583_v16, 4  ;;  %v2693_v16 = vshrl.u32 %v4334_v5, 16 }
 0x122   : > { %1362 = vst.msk [vmem:[#allocation2 + $0x28] sm:$0xf] %vm1351_vm10, %v1276_v31  ;;  %2369 = vrot.lane.b32.xlu1 %v4292_v23, %s4673_s25  ;;  %v1598_v23 = vrot.slane %v1596_v11, 5  ;;  %v4236_v31 = vld [vmem:[%s4720_s19 + $0x58] sm:$0xf]  ;;  %v1608_v40 = vrot.slane %v1607_v30, 4 }
 0x123   : > { %2367 = vrot.lane.b32.xlu0 %v4291_v28, %s4673_s25  ;;  %v3171_v28 = vsel %vm4875_vm6, %v4414_v15, %v3170_v55  ;;  %v2085_v36 = vrot.slane %v4236_v31, 5  ;;  %v1589_v39 = vsel %vm4731_vm2, %v1584_v29, %v5487_v57  ;;  %v4331_v55 = vld [vmem:[%s4720_s19 + $0x60] sm:$0xf]  ;;  %v2706_v11 = vshrl.u32 %v4335_v3, 16 }
 0x124   : > { %v1282_v44 = vpop.permute.xlu1 %1281  ;;  %v1599_v33 = vsel %vm4731_vm2, %v1594_v22, %v1598_v23  ;;  %v1613_v51 = vsel %vm4731_vm2, %v1608_v40, %v5500_v12  ;;  %v2669_v1 = vshrl.u32 %v4331_v55, 16  ;;  %v2672_v2 = vshll.u32 %v4331_v55, 16 }
 0x125   : > { %1365 = vst.msk [vmem:[#allocation2 + $0x34] sm:$0xf] %vm1351_vm10, %v1282_v44  ;;  %v1280_v48 = vpop.permute.xlu0 %1279  ;;  %v4235_v44 = vld [vmem:[%s4720_s19 + $0x54] sm:$0xe]  ;;  %v2087_v46 = vrot.slane %v2085_v36, 4  ;;  %v5565_v22 = vrot.slane %v2702_v10, 5 }
 0x126   : > { %1364 = vst.msk [vmem:[#allocation2 + $0x30] sm:$0xf] %vm1351_vm10, %v1280_v48  ;;  %2926 = vrot.lane.b32.xlu1 %v2643_v38, %s4674_s30  ;;  %v4240_v48 = vld [vmem:[%s4720_s19 + $0x68] sm:$0x1]  ;;  %v2674_v15 = vrot.slane %v2672_v2, 5  ;;  %v2708_v23 = vrot.slane %v2706_v11, 4 }
 0x127   : > { %2924 = vrot.lane.b32.xlu0 %v2633_v43, %s4674_s30  ;;  %v2092_v43 = vrot.slane %v4239_v37, 5  ;;  %v2095_v57 = vrot.slane %v4240_v48, 5  ;;  %v2089_v59 = vsel %vm4875_vm6, %v2087_v46, %v2088_v47  ;;  %v2695_v29 = vrot.slane %v2693_v16, 4  ;;  %v4379_v48 = vld [vmem:[%s4720_s19 + $0x60] sm:$0xe] }
 0x128   : > { %v1286_v61 = vpop.permute.xlu1 %1285  ;;  %v2698_v30 = vrot.slane %v2696_v17, 5 }
 0x129   : > { %1367 = vst.msk [vmem:[#allocation2 + $0x3c] sm:$0xf] %vm1351_vm10, %v1286_v61  ;;  %v1284_v4 = vpop.permute.xlu0 %1283  ;;  %v2094_v56 = vrot.slane %v2092_v43, 4 }
 0x12a   : > { %1366 = vst.msk [vmem:[#allocation2 + $0x38] sm:$0xf] %vm1351_vm10, %v1284_v4  ;;  %2930 = vrot.lane.b32.xlu1 %v2667_v52, %s4674_s30  ;;  %v4271_v52 = vrot.slane %v4235_v44, 9  ;;  %v2699_v41 = vor.u32 %v2698_v30, %v2695_v29 }
 0x12b   : > { %2928 = vrot.lane.b32.xlu0 %v2657_v53, %s4674_s30  ;;  %v4332_v53 = vld [vmem:[%s4720_s19 + $0x64] sm:$0xf] }
 0x12c   : > { %v1290_v14 = vpop.permute.xlu1 %1289  ;;  %v2678_v60 = vshll.u32 %v4332_v53, 16  ;;  %v2682_v61 = vshrl.u32 %v4332_v53, 16  ;;  %v2086_v0 = vsel %vm4875_vm6, %v4271_v52, %v2085_v36  ;;  %v2709_v36 = vor.u32 %v2708_v23, %v5565_v22  ;;  %v4194_v53 = vld [vmem:[%s4720_s19 + $0x70] sm:$0xf] }
 0x12d   : > { %1369 = vst.msk [vmem:[#allocation2 + $0x44] sm:$0xf] %vm1351_vm10, %v1290_v14  ;;  %v1288_v20 = vpop.permute.xlu0 %1287  ;;  %v2671_v14 = vrot.slane %v2669_v1, 4  ;;  %v2700_v52 = vrot.slane %v2699_v41, 4  ;;  %v1638_v1 = vshrl.u32 %v4194_v53, 16 }
 0x12e   : > { %1368 = vst.msk [vmem:[#allocation2 + $0x40] sm:$0xf] %vm1351_vm10, %v1288_v20  ;;  %3263 = vrot.lane.b32.xlu1 %v3167_v6, %s4675_s6  ;;  %v2096_v6 = vsel %vm4875_vm6, %v2094_v56, %v2095_v57  ;;  %v5556_v8 = vrot.slane %v2678_v60, 5  ;;  %v2684_v9 = vrot.slane %v2682_v61, 4  ;;  %v2710_v46 = vrot.slane %v2709_v36, 4 }
 0x12f   : > { %3261 = vrot.lane.b32.xlu0 %v3164_v7, %s4675_s6  ;;  %v2093_v7 = vsel %vm4875_vm6, %v4272_v58, %v2092_v43  ;;  %v4381_v43 = vld [vmem:[%s4720_s19 + $0x68] sm:$0x1]  ;;  %v4193_v57 = vld [vmem:[%s4720_s19 + $0x6c] sm:$0xf]  ;;  %v4415_v58 = vrot.slane %v4379_v48, 9  ;;  %v2705_v3 = vsel %vm4731_vm2, %v2700_v52, %v5565_v22 }
 0x130   : > { %v1819_v26 = vpop.permute.xlu1 %1818  ;;  %v2685_v20 = vor.u32 %v2684_v9, %v5556_v8  ;;  %v3180_v56 = vrot.slane %v4381_v43, 5  ;;  %v4384_v61 = vld [vmem:[%s4720_s19 + $0x74] sm:$0x1]  ;;  %v1628_v5 = vshll.u32 %v4193_v57, 16  ;;  %v4196_v9 = vld [vmem:[%s4720_s19 + $0x78] sm:$0xf] }
 0x131   : > { %1914 = vst.msk [vmem:[#allocation2 + $0x4] sm:$0xf] %vm1912_vm11, %v1819_v26  ;;  %v1817_v32 = vpop.permute.xlu0 %1816  ;;  %v2675_v26 = vor.u32 %v2674_v15, %v2671_v14  ;;  %v1640_v15 = vrot.slane %v1638_v1, 4  ;;  %v1649_v22 = vshrl.u32 %v4196_v9, 16  ;;  %v1652_v23 = vshll.u32 %v4196_v9, 16 }
 0x132   : > { %1913 = vst.msk [vmem:[#allocation2] sm:$0xf] %vm1912_vm11, %v1817_v32  ;;  %3267 = vrot.lane.b32.xlu1 %v3174_v21, %s4675_s6  ;;  %v2688_v21 = vshll.u32 %v4333_v13, 16  ;;  %v4380_v32 = vld [vmem:[%s4720_s19 + $0x64] sm:$0xf]  ;;  %v2686_v34 = vrot.slane %v2685_v20, 4 }
 0x133   : > { %3265 = vrot.lane.b32.xlu0 %v3171_v28, %s4675_s6  ;;  %v4336_v28 = vld [vmem:[%s4720_s19 + $0x74] sm:$0x1]  ;;  %v2676_v40 = vrot.slane %v2675_v26, 4  ;;  %v3177_v44 = vrot.slane %v4380_v32, 5  ;;  %v1654_v36 = vrot.slane %v1652_v23, 5 }
 0x134   : > { %v1823_v38 = vpop.permute.xlu1 %1822  ;;  %v2690_v35 = vrot.slane %v2688_v21, 5  ;;  %v2712_v37 = vshll.u32 %v4336_v28, 16  ;;  %v1630_v21 = vrot.slane %v1628_v5, 5  ;;  %v4242_v48 = vld [vmem:[%s4720_s19 + $0x70] sm:$0xf] }
 0x135   : > { %1916 = vst.msk [vmem:[#allocation2 + $0xc] sm:$0xf] %vm1912_vm11, %v1823_v38  ;;  %v1821_v42 = vpop.permute.xlu0 %1820  ;;  %v3179_v55 = vrot.slane %v3177_v44, 4  ;;  %v3178_v10 = vsel %vm4875_vm6, %v4415_v58, %v3177_v44  ;;  %v4340_v23 = vld [vmem:[%s4720_s19 + $0x84] sm:$0xf] }
 0x136   : > { %1915 = vst.msk [vmem:[#allocation2 + $0x8] sm:$0xf] %vm1912_vm11, %v1821_v42  ;;  %1842 = vrot.lane.b32.xlu1 %v1599_v33, %s4671_s23  ;;  %v4296_v33 = vld [vmem:[%s4720_s19 + $0x70] sm:$0xf]  ;;  %v2714_v47 = vrot.slane %v2712_v37, 5 }
 0x137   : > { %1840 = vrot.lane.b32.xlu0 %v1589_v39, %s4671_s23  ;;  %v4295_v39 = vld [vmem:[%s4720_s19 + $0x6c] sm:$0xf] }
 0x138   : > { %v2156_v50 = vpop.permute.xlu1 %2155  ;;  %v2715_v60 = vsel %vm4731_vm2, %v2710_v46, %v2714_v47 }
 0x139   : > { %2251 = vst.msk [vmem:[#allocation2 + $0x4] sm:$0xf] %vm2249_vm12, %v2156_v50  ;;  %v2154_v54 = vpop.permute.xlu0 %2153 }
 0x13a   : > { %2250 = vst.msk [vmem:[#allocation2] sm:$0xf] %vm2249_vm12, %v2154_v54  ;;  %1846 = vrot.lane.b32.xlu1 %v1623_v45, %s4671_s23  ;;  %v2691_v45 = vsel %vm4731_vm2, %v2686_v34, %v2690_v35  ;;  %v4198_v34 = vld [vmem:[%s4720_s19 + $0x80] sm:$0x1]  ;;  %v1651_v35 = vrot.slane %v1649_v22, 4 }
 0x13b   : > { %1844 = vrot.lane.b32.xlu0 %v1613_v51, %s4671_s23  ;;  %v2681_v51 = vsel %vm4731_vm2, %v2676_v40, %v5556_v8  ;;  %v3181_v8 = vsel %vm4875_vm6, %v3179_v55, %v3180_v56  ;;  %v4155_v40 = vld [vmem:[%s4720_s19 + $0x78] sm:$0xf]  ;;  %v1668_v43 = vshll.u32 %v4198_v34, 16  ;;  %v4245_v55 = vld [vmem:[%s4720_s19 + $0x7c] sm:$0xf] }
 0x13c   : > { %v2160_v63 = vpop.permute.xlu1 %2159  ;;  %v1655_v47 = vor.u32 %v1654_v36, %v1651_v35  ;;  %v2741_v35 = vshrl.u32 %v4340_v23, 16  ;;  %v2744_v36 = vshll.u32 %v4340_v23, 16 }
 0x13d   : > { %2253 = vst.msk [vmem:[#allocation2 + $0xc] sm:$0xf] %vm2249_vm12, %v2160_v63  ;;  %v2158_v4 = vpop.permute.xlu0 %2157  ;;  %v4382_v63 = vld [vmem:[%s4720_s19 + $0x6c] sm:$0xe] }
 0x13e   : > { %2252 = vst.msk [vmem:[#allocation2 + $0x8] sm:$0xf] %vm2249_vm12, %v2158_v4  ;;  %2179 = vrot.lane.b32.xlu1 %v2089_v59, %s4672_s24  ;;  %v3184_v59 = vrot.slane %v4383_v49, 5  ;;  %v1625_v4 = vshrl.u32 %v4193_v57, 16  ;;  %v4416_v13 = vrot.slane %v4382_v63, 9  ;;  %v1656_v58 = vrot.slane %v1655_v47, 4 }
 0x13f   : > { %2177 = vrot.lane.b32.xlu0 %v2086_v0, %s4672_s24  ;;  %v1634_v0 = vshll.u32 %v4194_v53, 16  ;;  %v1670_v53 = vrot.slane %v1668_v43, 5  ;;  %v2106_v63 = vrot.slane %v4245_v55, 5  ;;  %v4297_v43 = vld [vmem:[%s4720_s19 + $0x78] sm:$0xf]  ;;  %v2743_v47 = vrot.slane %v2741_v35, 4 }
 0x140   : > { %v2350_v12 = vpop.permute.xlu1 %2349  ;;  %v3186_v11 = vrot.slane %v3184_v59, 4  ;;  %v1627_v20 = vrot.slane %v1625_v4, 4  ;;  %v3185_v32 = vsel %vm4875_vm6, %v4416_v13, %v3184_v59  ;;  %v4243_v59 = vld [vmem:[%s4720_s19 + $0x74] sm:$0x1]  ;;  %v4244_v4 = vld [vmem:[%s4720_s19 + $0x78] sm:$0xe] }
 0x141   : > { %2445 = vst.msk [vmem:[#allocation2 + $0x4] sm:$0xf] %vm2443_vm13, %v2350_v12  ;;  %v2348_v18 = vpop.permute.xlu0 %2347  ;;  %v3187_v12 = vrot.slane %v4384_v61, 5  ;;  %v5612_v14 = vrot.slane %v1634_v0, 5  ;;  %v4241_v61 = vld [vmem:[%s4720_s19 + $0x6c] sm:$0xe] }
 0x142   : > { %2444 = vst.msk [vmem:[#allocation2] sm:$0xf] %vm2443_vm13, %v2348_v18  ;;  %2183 = vrot.lane.b32.xlu1 %v2096_v6, %s4672_s24  ;;  %v4197_v6 = vld [vmem:[%s4720_s19 + $0x7c] sm:$0xf]  ;;  %v4274_v13 = vrot.slane %v4244_v4, 9 }
 0x143   : > { %2181 = vrot.lane.b32.xlu0 %v2093_v7, %s4672_s24  ;;  %v1658_v16 = vshll.u32 %v4197_v6, 16  ;;  %v1662_v17 = vshrl.u32 %v4197_v6, 16  ;;  %v1641_v26 = vor.u32 %v1640_v15, %v5612_v14  ;;  %v4202_v35 = vld [vmem:[%s4720_s19 + $0x90] sm:$0xf] }
 0x144   : > { %v2354_v24 = vpop.permute.xlu1 %2353 }
 0x145   : > { %2447 = vst.msk [vmem:[#allocation2 + $0xc] sm:$0xf] %vm2443_vm13, %v2354_v24  ;;  %v2352_v31 = vpop.permute.xlu0 %2351  ;;  %v5622_v29 = vrot.slane %v1658_v16, 5  ;;  %v1664_v30 = vrot.slane %v1662_v17, 4  ;;  %v1642_v41 = vrot.slane %v1641_v26, 4 }
 0x146   : > { %2446 = vst.msk [vmem:[#allocation2 + $0x8] sm:$0xf] %vm2443_vm13, %v2352_v31  ;;  %2373 = vrot.lane.b32.xlu1 %v4294_v19, %s4673_s25  ;;  %v4195_v19 = vld [vmem:[%s4720_s19 + $0x74] sm:$0x1] }
 0x147   : > { %2371 = vrot.lane.b32.xlu0 %v4293_v25, %s4673_s25  ;;  %v3188_v25 = vsel %vm4875_vm6, %v3186_v11, %v3187_v12  ;;  %v1644_v28 = vshll.u32 %v4195_v19, 16  ;;  %v1665_v44 = vor.u32 %v1664_v30, %v5622_v29  ;;  %v1661_v6 = vsel %vm4731_vm2, %v1656_v58, %v5622_v29 }
 0x148   : > { %v2911_v38 = vpop.permute.xlu1 %2910  ;;  %v2108_v11 = vrot.slane %v2106_v63, 4 }
 0x149   : > { %3006 = vst.msk [vmem:[#allocation2 + $0x4] sm:$0xf] %vm3004_vm14, %v2911_v38  ;;  %v2909_v42 = vpop.permute.xlu0 %2908  ;;  %v1666_v52 = vrot.slane %v1665_v44, 4 }
 0x14a   : > { %3005 = vst.msk [vmem:[#allocation2] sm:$0xf] %vm3004_vm14, %v2909_v42  ;;  %2377 = vrot.lane.b32.xlu1 %v4296_v33, %s4673_s25  ;;  %v1631_v33 = vor.u32 %v1630_v21, %v1627_v20  ;;  %v1646_v42 = vrot.slane %v1644_v28, 5  ;;  %v4341_v21 = vld [vmem:[%s4720_s19 + $0x88] sm:$0xf] }
 0x14b   : > { %2375 = vrot.lane.b32.xlu0 %v4295_v39, %s4673_s25  ;;  %v4156_v39 = vld [vmem:[%s4720_s19 + $0x7c] sm:$0xf]  ;;  %v1671_v0 = vsel %vm4731_vm2, %v1666_v52, %v1670_v53  ;;  %v2750_v29 = vshll.u32 %v4341_v21, 16  ;;  %v2754_v30 = vshrl.u32 %v4341_v21, 16 }
 0x14c   : > { %v2915_v50 = vpop.permute.xlu1 %2914  ;;  %v1632_v46 = vrot.slane %v1631_v33, 4 }
 0x14d   : > { %3008 = vst.msk [vmem:[#allocation2 + $0xc] sm:$0xf] %vm3004_vm14, %v2915_v50  ;;  %v2913_v54 = vpop.permute.xlu0 %2912 }
 0x14e   : > { %3007 = vst.msk [vmem:[#allocation2 + $0x8] sm:$0xf] %vm3004_vm14, %v2913_v54  ;;  %2934 = vrot.lane.b32.xlu1 %v2691_v45, %s4674_s30  ;;  %v2099_v54 = vrot.slane %v4242_v48, 5  ;;  %v1637_v57 = vsel %vm4731_vm2, %v1632_v46, %v5612_v14  ;;  %v4342_v46 = vld [vmem:[%s4720_s19 + $0x8c] sm:$0x1]  ;;  %v2746_v48 = vrot.slane %v2744_v36, 5 }
 0x14f   : > { %2932 = vrot.lane.b32.xlu0 %v2681_v51, %s4674_s30  ;;  %v1647_v51 = vsel %vm4731_vm2, %v1642_v41, %v1646_v42  ;;  %v2752_v41 = vrot.slane %v2750_v29, 5  ;;  %v2756_v42 = vrot.slane %v2754_v30, 4 }
 0x150   : > { %v3248_v2 = vpop.permute.xlu1 %3247  ;;  %v2101_v1 = vrot.slane %v2099_v54, 4  ;;  %v2747_v58 = vor.u32 %v2746_v48, %v2743_v47  ;;  %v1700_v47 = vshll.u32 %v4202_v35, 16 }
 0x151   : > { %3343 = vst.msk [vmem:[#allocation2 + $0x4] sm:$0xf] %vm3341_vm15, %v3248_v2  ;;  %v3246_v7 = vpop.permute.xlu0 %3245  ;;  %v2102_v2 = vrot.slane %v4243_v59, 5  ;;  %v2757_v53 = vor.u32 %v2756_v42, %v2752_v41  ;;  %v4386_v59 = vld [vmem:[%s4720_s19 + $0x7c] sm:$0xf] }
 0x152   : > { %3342 = vst.msk [vmem:[#allocation2] sm:$0xf] %vm3341_vm15, %v3246_v7  ;;  %2938 = vrot.lane.b32.xlu1 %v2715_v60, %s4674_s30  ;;  %v4273_v7 = vrot.slane %v4241_v61, 9 }
 0x153   : > { %2936 = vrot.lane.b32.xlu0 %v2705_v3, %s4674_s30  ;;  %v4246_v3 = vld [vmem:[%s4720_s19 + $0x80] sm:$0x1]  ;;  %v2103_v14 = vsel %vm4875_vm6, %v2101_v1, %v2102_v2  ;;  %v3191_v1 = vrot.slane %v4386_v59, 5  ;;  %v4389_v2 = vld [vmem:[%s4720_s19 + $0x88] sm:$0xf] }
 0x154   : > { %v3252_v18 = vpop.permute.xlu1 %3251  ;;  %v2109_v12 = vrot.slane %v4246_v3, 5 }
 0x155   : > { %3345 = vst.msk [vmem:[#allocation2 + $0xc] sm:$0xf] %vm3341_vm15, %v3252_v18  ;;  %v3250_v24 = vpop.permute.xlu0 %3249  ;;  %v2100_v18 = vsel %vm4875_vm6, %v4273_v7, %v2099_v54  ;;  %v2760_v54 = vshll.u32 %v4342_v46, 16  ;;  %v1697_v46 = vshrl.u32 %v4202_v35, 16 }
 0x156   : > { %3344 = vst.msk [vmem:[#allocation2 + $0x8] sm:$0xf] %vm3341_vm15, %v3250_v24  ;;  %3271 = vrot.lane.b32.xlu1 %v3181_v8, %s4675_s6  ;;  %v4338_v8 = vld [vmem:[%s4720_s19 + $0x7c] sm:$0xf]  ;;  %v2110_v24 = vsel %vm4875_vm6, %v2108_v11, %v2109_v12  ;;  %v3193_v11 = vrot.slane %v3191_v1, 4 }
 0x157   : > { %3269 = vrot.lane.b32.xlu0 %v3178_v10, %s4675_s6  ;;  %v4337_v10 = vld [vmem:[%s4720_s19 + $0x78] sm:$0xf]  ;;  %v2726_v15 = vshll.u32 %v4338_v8, 16  ;;  %v2730_v16 = vshrl.u32 %v4338_v8, 16  ;;  %v1699_v59 = vrot.slane %v1697_v46, 4 }
 0x158   : > { %v1827_v31 = vpop.permute.xlu1 %1826  ;;  %v2717_v19 = vshrl.u32 %v4337_v10, 16  ;;  %v2720_v20 = vshll.u32 %v4337_v10, 16  ;;  %v4385_v8 = vld [vmem:[%s4720_s19 + $0x78] sm:$0xe]  ;;  %v4346_v46 = vld [vmem:[%s4720_s19 + $0x9c] sm:$0xf] }
 0x159   : > { %1918 = vst.msk [vmem:[#allocation2 + $0x14] sm:$0xf] %vm1912_vm11, %v1827_v31  ;;  %v1825_v37 = vpop.permute.xlu0 %1824  ;;  %v4628_v38 = vld [vmem:[#allocation2] sm:$0xff]   ;;  %v2728_v26 = vrot.slane %v2726_v15, 5  ;;  %v2732_v28 = vrot.slane %v2730_v16, 4 }
 0x15a   : > { %1917 = vst.msk [vmem:[#allocation2 + $0x10] sm:$0xf] %vm1912_vm11, %v1825_v37  ;;  %3275 = vrot.lane.b32.xlu1 %v3188_v25, %s4675_s6  ;;  %4552 = vmatprep.mubr.msk.bf16.mxu0 %vm3506_vm0, %v4628_v38  ;;  %v2107_v25 = vsel %vm4875_vm6, %v4274_v13, %v2106_v63  ;;  %v2719_v33 = vrot.slane %v2717_v19, 4  ;;  %v2722_v34 = vrot.slane %v2720_v20, 5  ;;  %v4298_v38 = vld [vmem:[%s4720_s19 + $0x7c] sm:$0xf] }
 0x15b   : > { %3273 = vrot.lane.b32.xlu0 %v3185_v32, %s4675_s6  ;;  %v4339_v32 = vld [vmem:[%s4720_s19 + $0x80] sm:$0x1]  ;;  %v2758_v63 = vrot.slane %v2757_v53, 4  ;;  %v4390_v13 = vld [vmem:[%s4720_s19 + $0x8c] sm:$0x1] }
 0x15c   : > { %v1831_v45 = vpop.permute.xlu1 %1830  ;;  %v4199_v20 = vld [vmem:[%s4720_s19 + $0x84] sm:$0xf] }
 0x15d   : > { %1920 = vst.msk [vmem:[#allocation2 + $0x1c] sm:$0xf] %vm1912_vm11, %v1831_v45  ;;  %v1829_v49 = vpop.permute.xlu0 %1828  ;;  %v4629_v50 = vld [vmem:[#allocation2 + $0x8] sm:$0xff]   ;;  %v2723_v45 = vor.u32 %v2722_v34, %v2719_v33  ;;  %v1673_v30 = vshrl.u32 %v4199_v20, 16 }
 0x15e   : > { %1919 = vst.msk [vmem:[#allocation2 + $0x18] sm:$0xf] %vm1912_vm11, %v1829_v49  ;;  %1293 = vrot.lane.b32.xlu1 %v4156_v39, %s4670_s22  ;;  %4553 = vmatmul.mubr.msk.bf16.vlgmr.msra.gmra.mxu0 %vm3506_vm0, %v4629_v50  ;;  %v2733_v39 = vor.u32 %v2732_v28, %v2728_v26  ;;  %v4300_v50 = vld [vmem:[%s4720_s19 + $0x88] sm:$0xf] }
 0x15f   : > { %1291 = vrot.lane.b32.xlu0 %v4155_v40, %s4670_s22  ;;  %v2736_v40 = vshll.u32 %v4339_v32, 16  ;;  %v4203_v32 = vld [vmem:[%s4720_s19 + $0x94] sm:$0xf] }
 0x160   : > { %v2164_v56 = vpop.permute.xlu1 %2163  ;;  %v1710_v42 = vshrl.u32 %v4203_v32, 16 }
 0x161   : > { %2255 = vst.msk [vmem:[#allocation2 + $0x14] sm:$0xf] %vm2249_vm12, %v2164_v56  ;;  %v2162_v60 = vpop.permute.xlu0 %2161  ;;  %v2738_v52 = vrot.slane %v2736_v40, 5  ;;  %v4299_v56 = vld [vmem:[%s4720_s19 + $0x84] sm:$0xf] }
 0x162   : > { %2254 = vst.msk [vmem:[#allocation2 + $0x10] sm:$0xf] %vm2249_vm12, %v2162_v60  ;;  %1850 = vrot.lane.b32.xlu1 %v1647_v51, %s4671_s23  ;;  %v2734_v51 = vrot.slane %v2733_v39, 4 }
 0x163   : > { %1848 = vrot.lane.b32.xlu0 %v1637_v57, %s4671_s23  ;;  %v2724_v57 = vrot.slane %v2723_v45, 4 }
 0x164   : > { %v2168_v5 = vpop.permute.xlu1 %2167  ;;  %v2739_v61 = vsel %vm4731_vm2, %v2734_v51, %v2738_v52 }
 0x165   : > { %2257 = vst.msk [vmem:[#allocation2 + $0x1c] sm:$0xf] %vm2249_vm12, %v2168_v5  ;;  %v2166_v9 = vpop.permute.xlu0 %2165  ;;  %v2729_v4 = vsel %vm4731_vm2, %v2724_v57, %v2728_v26  ;;  %v2748_v5 = vrot.slane %v2747_v58, 4  ;;  %v4204_v58 = vld [vmem:[%s4720_s19 + $0x98] sm:$0x1] }
 0x166   : > { %2256 = vst.msk [vmem:[#allocation2 + $0x18] sm:$0xf] %vm2249_vm12, %v2166_v9  ;;  %1854 = vrot.lane.b32.xlu1 %v1671_v0, %s4671_s23  ;;  %v2762_v0 = vrot.slane %v2760_v54, 5  ;;  %v3198_v9 = vrot.slane %v4389_v2, 5  ;;  %v1712_v54 = vrot.slane %v1710_v42, 4 }
 0x167   : > { %1852 = vrot.lane.b32.xlu0 %v1661_v6, %s4671_s23  ;;  %v4387_v6 = vld [vmem:[%s4720_s19 + $0x80] sm:$0x1]  ;;  %v2753_v16 = vsel %vm4731_vm2, %v2748_v5, %v2752_v41  ;;  %v1706_v41 = vshll.u32 %v4203_v32, 16  ;;  %v4159_v5 = vld [vmem:[%s4720_s19 + $0x90] sm:$0xf] }
 0x168   : > { %v2358_v17 = vpop.permute.xlu1 %2357  ;;  %v2763_v10 = vsel %vm4731_vm2, %v2758_v63, %v2762_v0  ;;  %v3194_v12 = vrot.slane %v4387_v6, 5  ;;  %v3200_v21 = vrot.slane %v3198_v9, 4  ;;  %v4160_v63 = vld [vmem:[%s4720_s19 + $0x94] sm:$0xf] }
 0x169   : > { %2449 = vst.msk [vmem:[#allocation2 + $0x14] sm:$0xf] %vm2443_vm13, %v2358_v17  ;;  %v2356_v22 = vpop.permute.xlu0 %2355  ;;  %v4417_v17 = vrot.slane %v4385_v8, 9  ;;  %v1708_v53 = vrot.slane %v1706_v41, 5  ;;  %v4248_v8 = vld [vmem:[%s4720_s19 + $0x88] sm:$0xf] }
 0x16a   : > { %2448 = vst.msk [vmem:[#allocation2 + $0x10] sm:$0xf] %vm2443_vm13, %v2356_v22  ;;  %2187 = vrot.lane.b32.xlu1 %v2103_v14, %s4672_s24  ;;  %v4388_v14 = vld [vmem:[%s4720_s19 + $0x84] sm:$0xe]  ;;  %v3201_v22 = vrot.slane %v4390_v13, 5  ;;  %v2113_v13 = vrot.slane %v4248_v8, 5 }
 0x16b   : > { %2185 = vrot.lane.b32.xlu0 %v2100_v18, %s4672_s24  ;;  %v4200_v18 = vld [vmem:[%s4720_s19 + $0x88] sm:$0xf]  ;;  %v4418_v23 = vrot.slane %v4388_v14, 9  ;;  %v3192_v29 = vsel %vm4875_vm6, %v4417_v17, %v3191_v1  ;;  %v1713_v2 = vor.u32 %v1712_v54, %v1708_v53  ;;  %v4251_v14 = vld [vmem:[%s4720_s19 + $0x94] sm:$0xf] }
 0x16c   : > { %v2362_v31 = vpop.permute.xlu1 %2361  ;;  %v1686_v26 = vshrl.u32 %v4200_v18, 16  ;;  %v3202_v36 = vsel %vm4875_vm6, %v3200_v21, %v3201_v22  ;;  %v2120_v21 = vrot.slane %v4251_v14, 5  ;;  %v4345_v54 = vld [vmem:[%s4720_s19 + $0x98] sm:$0x1] }
 0x16d   : > { %2451 = vst.msk [vmem:[#allocation2 + $0x1c] sm:$0xf] %vm2443_vm13, %v2362_v31  ;;  %v2360_v37 = vpop.permute.xlu0 %2359  ;;  %v1676_v31 = vshll.u32 %v4199_v20, 16  ;;  %v4247_v20 = vld [vmem:[%s4720_s19 + $0x84] sm:$0xe] }
 0x16e   : > { %2450 = vst.msk [vmem:[#allocation2 + $0x18] sm:$0xf] %vm2443_vm13, %v2360_v37  ;;  %2191 = vrot.lane.b32.xlu1 %v2110_v24, %s4672_s24  ;;  %v3195_v24 = vsel %vm4875_vm6, %v3193_v11, %v3194_v12  ;;  %v3199_v37 = vsel %vm4875_vm6, %v4418_v23, %v3198_v9  ;;  %v1688_v40 = vrot.slane %v1686_v26, 4  ;;  %v1714_v11 = vrot.slane %v1713_v2, 4  ;;  %v4250_v26 = vld [vmem:[%s4720_s19 + $0x90] sm:$0xe] }
 0x16f   : > { %2189 = vrot.lane.b32.xlu0 %v2107_v25, %s4672_s24  ;;  %v1682_v25 = vshll.u32 %v4200_v18, 16  ;;  %v1678_v45 = vrot.slane %v1676_v31, 5  ;;  %v4249_v18 = vld [vmem:[%s4720_s19 + $0x8c] sm:$0x1]  ;;  %v2115_v23 = vrot.slane %v2113_v13, 4 }
 0x170   : > { %v2919_v44 = vpop.permute.xlu1 %2918  ;;  %v4344_v31 = vld [vmem:[%s4720_s19 + $0x94] sm:$0xf] }
 0x171   : > { %3010 = vst.msk [vmem:[#allocation2 + $0x14] sm:$0xf] %vm3004_vm14, %v2919_v44  ;;  %v2917_v49 = vpop.permute.xlu0 %2916  ;;  %v1684_v39 = vrot.slane %v1682_v25, 5  ;;  %v4252_v25 = vld [vmem:[%s4720_s19 + $0x98] sm:$0x1] }
 0x172   : > { %3009 = vst.msk [vmem:[#allocation2 + $0x10] sm:$0xf] %vm3004_vm14, %v2917_v49  ;;  %2381 = vrot.lane.b32.xlu1 %v4298_v38, %s4673_s25  ;;  %v4201_v38 = vld [vmem:[%s4720_s19 + $0x8c] sm:$0x1]  ;;  %v2123_v35 = vrot.slane %v4252_v25, 5 }
 0x173   : > { %2379 = vrot.lane.b32.xlu0 %v4297_v43, %s4673_s25  ;;  %v1675_v43 = vrot.slane %v1673_v30, 4  ;;  %v1689_v51 = vor.u32 %v1688_v40, %v1684_v39  ;;  %v1692_v52 = vshll.u32 %v4201_v38, 16  ;;  %v4275_v30 = vrot.slane %v4247_v20, 9 }
 0x174   : > { %v2923_v55 = vpop.permute.xlu1 %2922  ;;  %v2774_v38 = vshll.u32 %v4344_v31, 16 }
 0x175   : > { %3012 = vst.msk [vmem:[#allocation2 + $0x1c] sm:$0xf] %vm3004_vm14, %v2923_v55  ;;  %v2921_v60 = vpop.permute.xlu0 %2920  ;;  %v1679_v57 = vor.u32 %v1678_v45, %v1675_v43  ;;  %v1690_v0 = vrot.slane %v1689_v51, 4  ;;  %v1694_v1 = vrot.slane %v1692_v52, 5  ;;  %v2114_v41 = vsel %vm4875_vm6, %v4275_v30, %v2113_v13  ;;  %v4347_v43 = vld [vmem:[%s4720_s19 + $0xa0] sm:$0xf] }
 0x176   : > { %3011 = vst.msk [vmem:[#allocation2 + $0x18] sm:$0xf] %vm3004_vm14, %v2921_v60  ;;  %2385 = vrot.lane.b32.xlu1 %v4300_v50, %s4673_s25  ;;  %v4158_v50 = vld [vmem:[%s4720_s19 + $0x88] sm:$0xf]  ;;  %v1702_v60 = vrot.slane %v1700_v47, 5  ;;  %v2798_v51 = vshll.u32 %v4347_v43, 16 }
 0x177   : > { %2383 = vrot.lane.b32.xlu0 %v4299_v56, %s4673_s25  ;;  %v4157_v56 = vld [vmem:[%s4720_s19 + $0x84] sm:$0xf]  ;;  %v1680_v6 = vrot.slane %v1679_v57, 4  ;;  %v2802_v52 = vshrl.u32 %v4347_v43, 16  ;;  %v2789_v57 = vshrl.u32 %v4346_v46, 16 }
 0x178   : > { %v3256_v3 = vpop.permute.xlu1 %3255 }
 0x179   : > { %3347 = vst.msk [vmem:[#allocation2 + $0x14] sm:$0xf] %vm3341_vm15, %v3256_v3  ;;  %v3254_v7 = vpop.permute.xlu0 %3253  ;;  %v1716_v3 = vshll.u32 %v4204_v58, 16  ;;  %v2792_v58 = vshll.u32 %v4346_v46, 16 }
 0x17a   : > { %3346 = vst.msk [vmem:[#allocation2 + $0x10] sm:$0xf] %vm3341_vm15, %v3254_v7  ;;  %2942 = vrot.lane.b32.xlu1 %v2739_v61, %s4674_s30  ;;  %v1703_v7 = vor.u32 %v1702_v60, %v1699_v59  ;;  %v4302_v60 = vld [vmem:[%s4720_s19 + $0x94] sm:$0xf] }
 0x17b   : > { %2940 = vrot.lane.b32.xlu0 %v2729_v4, %s4674_s30  ;;  %v1718_v12 = vrot.slane %v1716_v3, 5  ;;  %v4301_v3 = vld [vmem:[%s4720_s19 + $0x90] sm:$0xf] }
 0x17c   : > { %v3260_v15 = vpop.permute.xlu1 %3259  ;;  %v1704_v17 = vrot.slane %v1703_v7, 4  ;;  %v2794_v7 = vrot.slane %v2792_v58, 5  ;;  %v4208_v58 = vld [vmem:[%s4720_s19 + $0xa8] sm:$0xf] }
 0x17d   : > { %3349 = vst.msk [vmem:[#allocation2 + $0x1c] sm:$0xf] %vm3341_vm15, %v3260_v15  ;;  %v3258_v19 = vpop.permute.xlu0 %3257  ;;  %v1719_v22 = vsel %vm4731_vm2, %v1714_v11, %v1718_v12 }
 0x17e   : > { %3348 = vst.msk [vmem:[#allocation2 + $0x18] sm:$0xf] %vm3341_vm15, %v3258_v19  ;;  %2946 = vrot.lane.b32.xlu1 %v2763_v10, %s4674_s30  ;;  %v1695_v10 = vsel %vm4731_vm2, %v1690_v0, %v1694_v1  ;;  %v5800_v0 = vrot.slane %v2798_v51, 5  ;;  %v2804_v1 = vrot.slane %v2802_v52, 4 }
 0x17f   : > { %2944 = vrot.lane.b32.xlu0 %v2753_v16, %s4674_s30  ;;  %v1685_v16 = vsel %vm4731_vm2, %v1680_v6, %v1684_v39  ;;  %v2778_v39 = vshrl.u32 %v4344_v31, 16  ;;  %v2791_v6 = vrot.slane %v2789_v57, 4 }
 0x180   : > { %v1835_v28 = vpop.permute.xlu1 %1834  ;;  %v2805_v12 = vor.u32 %v2804_v1, %v5800_v0 }
 0x181   : > { %1922 = vst.msk [vmem:[#allocation2 + $0x24] sm:$0xf] %vm1912_vm11, %v1835_v28  ;;  %v1833_v33 = vpop.permute.xlu0 %1832  ;;  %v4630_v34 = vld [vmem:[#allocation2 + $0x10] sm:$0xff]  }
 0x182   : > { %1921 = vst.msk [vmem:[#allocation2 + $0x20] sm:$0xf] %vm1912_vm11, %v1833_v33  ;;  %3279 = vrot.lane.b32.xlu1 %v3195_v24, %s4675_s6  ;;  %4556 = vmatprep.mubr.msk.bf16.mxu0 %vm3506_vm0, %v4630_v34  ;;  %v2116_v24 = vrot.slane %v4249_v18, 5  ;;  %v4343_v33 = vld [vmem:[%s4720_s19 + $0x90] sm:$0xf]  ;;  %v2122_v34 = vrot.slane %v2120_v21, 4 }
 0x183   : > { %3277 = vrot.lane.b32.xlu0 %v3192_v29, %s4675_s6  ;;  %v1709_v29 = vsel %vm4731_vm2, %v1704_v17, %v1708_v53  ;;  %v2765_v42 = vshrl.u32 %v4343_v33, 16  ;;  %v2795_v17 = vor.u32 %v2794_v7, %v2791_v6  ;;  %v4392_v18 = vld [vmem:[%s4720_s19 + $0x94] sm:$0xf]  ;;  %v1745_v6 = vshrl.u32 %v4208_v58, 16 }
 0x184   : > { %v1839_v44 = vpop.permute.xlu1 %1838  ;;  %v2124_v47 = vsel %vm4875_vm6, %v2122_v34, %v2123_v35  ;;  %v1748_v7 = vshll.u32 %v4208_v58, 16 }
 0x185   : > { %1924 = vst.msk [vmem:[#allocation2 + $0x2c] sm:$0xf] %vm1912_vm11, %v1839_v44  ;;  %v1837_v48 = vpop.permute.xlu0 %1836  ;;  %v4631_v49 = vld [vmem:[#allocation2 + $0x18] sm:$0xff]   ;;  %v2768_v44 = vshll.u32 %v4343_v33, 16 }
 0x186   : > { %1923 = vst.msk [vmem:[#allocation2 + $0x28] sm:$0xf] %vm1912_vm11, %v1837_v48  ;;  %3283 = vrot.lane.b32.xlu1 %v3202_v36, %s4675_s6  ;;  %4557 = vmatmul.mubr.msk.bf16.gmra.mxu0 %vm3506_vm0, %v4631_v49  ;;  %v4276_v36 = vrot.slane %v4250_v26, 9  ;;  %v2776_v49 = vrot.slane %v2774_v38, 5  ;;  %v4394_v38 = vld [vmem:[%s4720_s19 + $0x9c] sm:$0xe] }
 0x187   : > { %3281 = vrot.lane.b32.xlu0 %v3199_v37, %s4675_s6  ;;  %v2117_v37 = vsel %vm4875_vm6, %v2115_v23, %v2116_v24  ;;  %v3205_v23 = vrot.slane %v4392_v18, 5  ;;  %v4395_v24 = vld [vmem:[%s4720_s19 + $0xa0] sm:$0xf]  ;;  %v1747_v18 = vrot.slane %v1745_v6, 4 }
 0x188   : > { %v2172_v55 = vpop.permute.xlu1 %2171  ;;  %v2121_v48 = vsel %vm4875_vm6, %v4276_v36, %v2120_v21  ;;  %v2806_v21 = vrot.slane %v2805_v12, 4  ;;  %v3212_v33 = vrot.slane %v4395_v24, 5 }
 0x189   : > { %2259 = vst.msk [vmem:[#allocation2 + $0x24] sm:$0xf] %vm2249_vm12, %v2172_v55  ;;  %v2170_v61 = vpop.permute.xlu0 %2169  ;;  %v2767_v55 = vrot.slane %v2765_v42, 4  ;;  %v3207_v35 = vrot.slane %v3205_v23, 4  ;;  %v4206_v42 = vld [vmem:[%s4720_s19 + $0xa0] sm:$0xf] }
 0x18a   : > { %2258 = vst.msk [vmem:[#allocation2 + $0x20] sm:$0xf] %vm2249_vm12, %v2170_v61  ;;  %1297 = vrot.lane.b32.xlu1 %v4158_v50, %s4670_s22  ;;  %v2780_v50 = vrot.slane %v2778_v39, 4  ;;  %v3214_v46 = vrot.slane %v3212_v33, 4  ;;  %v1734_v51 = vshrl.u32 %v4206_v42, 16 }
 0x18b   : > { %1295 = vrot.lane.b32.xlu0 %v4157_v56, %s4670_s22  ;;  %v2770_v56 = vrot.slane %v2768_v44, 5 }
 0x18c   : > { %v2176_v4 = vpop.permute.xlu1 %2175  ;;  %v2781_v61 = vor.u32 %v2780_v50, %v2776_v49  ;;  %v1730_v50 = vshll.u32 %v4206_v42, 16 }
 0x18d   : > { %2261 = vst.msk [vmem:[#allocation2 + $0x2c] sm:$0xf] %vm2249_vm12, %v2176_v4  ;;  %v2174_v9 = vpop.permute.xlu0 %2173  ;;  %v2771_v4 = vor.u32 %v2770_v56, %v2767_v55  ;;  %v4209_v56 = vld [vmem:[%s4720_s19 + $0xac] sm:$0xf] }
 0x18e   : > { %2260 = vst.msk [vmem:[#allocation2 + $0x28] sm:$0xf] %vm2249_vm12, %v2174_v9  ;;  %1301 = vrot.lane.b32.xlu1 %v4160_v63, %s4670_s22  ;;  %v2784_v63 = vshll.u32 %v4345_v54, 16  ;;  %v4304_v9 = vld [vmem:[%s4720_s19 + $0xa0] sm:$0xf]  ;;  %v1758_v1 = vshrl.u32 %v4209_v56, 16 }
 0x18f   : > { %1299 = vrot.lane.b32.xlu0 %v4159_v5, %s4670_s22  ;;  %v4348_v5 = vld [vmem:[%s4720_s19 + $0xa4] sm:$0x1] }
 0x190   : > { %v2366_v15 = vpop.permute.xlu1 %2365  ;;  %v2786_v11 = vrot.slane %v2784_v63, 5  ;;  %v2808_v13 = vshll.u32 %v4348_v5, 16  ;;  %v1736_v63 = vrot.slane %v1734_v51, 4 }
 0x191   : > { %2453 = vst.msk [vmem:[#allocation2 + $0x24] sm:$0xf] %vm2443_vm13, %v2366_v15  ;;  %v2364_v19 = vpop.permute.xlu0 %2363  ;;  %v4303_v15 = vld [vmem:[%s4720_s19 + $0x9c] sm:$0xf] }
 0x192   : > { %2452 = vst.msk [vmem:[#allocation2 + $0x20] sm:$0xf] %vm2443_vm13, %v2364_v19  ;;  %1858 = vrot.lane.b32.xlu1 %v1695_v10, %s4671_s23  ;;  %v2782_v10 = vrot.slane %v2781_v61, 4  ;;  %v1732_v61 = vrot.slane %v1730_v50, 5 }
 0x193   : > { %1856 = vrot.lane.b32.xlu0 %v1685_v16, %s4671_s23  ;;  %v2772_v16 = vrot.slane %v2771_v4, 4 }
 0x194   : > { %v2370_v28 = vpop.permute.xlu1 %2369  ;;  %v2787_v20 = vsel %vm4731_vm2, %v2782_v10, %v2786_v11  ;;  %v1737_v10 = vor.u32 %v1736_v63, %v1732_v61 }
 0x195   : > { %2455 = vst.msk [vmem:[#allocation2 + $0x2c] sm:$0xf] %vm2443_vm13, %v2370_v28  ;;  %v2368_v32 = vpop.permute.xlu0 %2367  ;;  %v2777_v26 = vsel %vm4731_vm2, %v2772_v16, %v2776_v49  ;;  %v2796_v28 = vrot.slane %v2795_v17, 4  ;;  %v4210_v17 = vld [vmem:[%s4720_s19 + $0xb0] sm:$0x1] }
 0x196   : > { %2454 = vst.msk [vmem:[#allocation2 + $0x28] sm:$0xf] %vm2443_vm13, %v2368_v32  ;;  %1862 = vrot.lane.b32.xlu1 %v1719_v22, %s4671_s23  ;;  %v2810_v22 = vrot.slane %v2808_v13, 5  ;;  %v4391_v32 = vld [vmem:[%s4720_s19 + $0x90] sm:$0xe]  ;;  %v1760_v13 = vrot.slane %v1758_v1, 4 }
 0x197   : > { %1860 = vrot.lane.b32.xlu0 %v1709_v29, %s4671_s23  ;;  %v4393_v29 = vld [vmem:[%s4720_s19 + $0x98] sm:$0x1] }
 0x198   : > { %v2927_v40 = vpop.permute.xlu1 %2926  ;;  %v2811_v34 = vsel %vm4731_vm2, %v2806_v21, %v2810_v22  ;;  %v3208_v36 = vrot.slane %v4393_v29, 5  ;;  %v4164_v21 = vld [vmem:[%s4720_s19 + $0xac] sm:$0xf]  ;;  %v1738_v22 = vrot.slane %v1737_v10, 4 }
 0x199   : > { %3014 = vst.msk [vmem:[#allocation2 + $0x24] sm:$0xf] %vm3004_vm14, %v2927_v40  ;;  %v2925_v45 = vpop.permute.xlu0 %2924  ;;  %v2801_v40 = vsel %vm4731_vm2, %v2796_v28, %v5800_v0  ;;  %v1754_v0 = vshll.u32 %v4209_v56, 16  ;;  %v4163_v28 = vld [vmem:[%s4720_s19 + $0xa8] sm:$0xf] }
 0x19a   : > { %3013 = vst.msk [vmem:[#allocation2 + $0x20] sm:$0xf] %vm3004_vm14, %v2925_v45  ;;  %2195 = vrot.lane.b32.xlu1 %v2117_v37, %s4672_s24  ;;  %v4396_v37 = vld [vmem:[%s4720_s19 + $0xa4] sm:$0x1]  ;;  %v4205_v45 = vld [vmem:[%s4720_s19 + $0x9c] sm:$0xf]  ;;  %v3209_v49 = vsel %vm4875_vm6, %v3207_v35, %v3208_v36 }
 0x19b   : > { %2193 = vrot.lane.b32.xlu0 %v2114_v41, %s4672_s24  ;;  %v4419_v41 = vrot.slane %v4391_v32, 9  ;;  %v1721_v54 = vshrl.u32 %v4205_v45, 16  ;;  %v1724_v55 = vshll.u32 %v4205_v45, 16  ;;  %v1756_v12 = vrot.slane %v1754_v0, 5 }
 0x19c   : > { %v2931_v53 = vpop.permute.xlu1 %2930 }
 0x19d   : > { %3016 = vst.msk [vmem:[#allocation2 + $0x2c] sm:$0xf] %vm3004_vm14, %v2931_v53  ;;  %v2929_v59 = vpop.permute.xlu0 %2928  ;;  %v3206_v53 = vsel %vm4875_vm6, %v4419_v41, %v3205_v23  ;;  %v1723_v4 = vrot.slane %v1721_v54, 4  ;;  %v1726_v5 = vrot.slane %v1724_v55, 5  ;;  %v1761_v24 = vor.u32 %v1760_v13, %v1756_v12  ;;  %v4255_v41 = vld [vmem:[%s4720_s19 + $0xa4] sm:$0x1] }
 0x19e   : > { %3015 = vst.msk [vmem:[#allocation2 + $0x28] sm:$0xf] %vm3004_vm14, %v2929_v59  ;;  %2199 = vrot.lane.b32.xlu1 %v2124_v47, %s4672_s24  ;;  %v3215_v47 = vrot.slane %v4396_v37, 5  ;;  %v4257_v37 = vld [vmem:[%s4720_s19 + $0xac] sm:$0xf] }
 0x19f   : > { %2197 = vrot.lane.b32.xlu0 %v2121_v48, %s4672_s24  ;;  %v4420_v48 = vrot.slane %v4394_v38, 9  ;;  %v1727_v16 = vor.u32 %v1726_v5, %v1723_v4  ;;  %v4349_v55 = vld [vmem:[%s4720_s19 + $0xa8] sm:$0xf]  ;;  %v4352_v5 = vld [vmem:[%s4720_s19 + $0xb4] sm:$0xf] }
 0x1a0   : > { %v3264_v2 = vpop.permute.xlu1 %3263  ;;  %v3216_v59 = vsel %vm4875_vm6, %v3214_v46, %v3215_v47  ;;  %v2130_v47 = vrot.slane %v4255_v41, 5  ;;  %v2813_v1 = vshrl.u32 %v4349_v55, 16  ;;  %v4351_v13 = vld [vmem:[%s4720_s19 + $0xb0] sm:$0x1] }
 0x1a1   : > { %3351 = vst.msk [vmem:[#allocation2 + $0x24] sm:$0xf] %vm3341_vm15, %v3264_v2  ;;  %v3262_v8 = vpop.permute.xlu0 %3261  ;;  %v1728_v29 = vrot.slane %v1727_v16, 4  ;;  %v2837_v16 = vshrl.u32 %v4352_v5, 16 }
 0x1a2   : > { %3350 = vst.msk [vmem:[#allocation2 + $0x20] sm:$0xf] %vm3341_vm15, %v3262_v8  ;;  %2389 = vrot.lane.b32.xlu1 %v4302_v60, %s4673_s25  ;;  %v3213_v60 = vsel %vm4875_vm6, %v4420_v48, %v3212_v33  ;;  %v4258_v48 = vld [vmem:[%s4720_s19 + $0xb0] sm:$0x1] }
 0x1a3   : > { %2387 = vrot.lane.b32.xlu0 %v4301_v3, %s4673_s25  ;;  %v4207_v3 = vld [vmem:[%s4720_s19 + $0xa4] sm:$0x1] }
 0x1a4   : > { %v3268_v14 = vpop.permute.xlu1 %3267  ;;  %v1740_v11 = vshll.u32 %v4207_v3, 16  ;;  %v4353_v3 = vld [vmem:[%s4720_s19 + $0xb8] sm:$0xf] }
 0x1a5   : > { %3353 = vst.msk [vmem:[#allocation2 + $0x2c] sm:$0xf] %vm3341_vm15, %v3268_v14  ;;  %v3266_v19 = vpop.permute.xlu0 %3265  ;;  %v2846_v10 = vshll.u32 %v4353_v3, 16 }
 0x1a6   : > { %3352 = vst.msk [vmem:[#allocation2 + $0x28] sm:$0xf] %vm3341_vm15, %v3266_v19  ;;  %2393 = vrot.lane.b32.xlu1 %v4304_v9, %s4673_s25  ;;  %v4162_v9 = vld [vmem:[%s4720_s19 + $0xa0] sm:$0xf]  ;;  %v1750_v19 = vrot.slane %v1748_v7, 5  ;;  %v1742_v23 = vrot.slane %v1740_v11, 5 }
 0x1a7   : > { %2391 = vrot.lane.b32.xlu0 %v4303_v15, %s4673_s25  ;;  %v4161_v15 = vld [vmem:[%s4720_s19 + $0x9c] sm:$0xf]  ;;  %v2850_v11 = vshrl.u32 %v4353_v3, 16 }
 0x1a8   : > { %v1843_v25 = vpop.permute.xlu1 %1842  ;;  %v1743_v33 = vsel %vm4731_vm2, %v1738_v22, %v1742_v23  ;;  %v2832_v22 = vshll.u32 %v4351_v13, 16  ;;  %v5922_v23 = vrot.slane %v2846_v10, 5 }
 0x1a9   : > { %1926 = vst.msk [vmem:[#allocation2 + $0x34] sm:$0xf] %vm1912_vm11, %v1843_v25  ;;  %v1841_v30 = vpop.permute.xlu0 %1840  ;;  %v4632_v31 = vld [vmem:[#allocation2 + $0x20] sm:$0xff]   ;;  %v1764_v25 = vshll.u32 %v4210_v17, 16  ;;  %v2840_v17 = vshll.u32 %v4352_v5, 16 }
 0x1aa   : > { %1925 = vst.msk [vmem:[#allocation2 + $0x30] sm:$0xf] %vm1912_vm11, %v1841_v30  ;;  %2950 = vrot.lane.b32.xlu1 %v2787_v20, %s4674_s30  ;;  %4560 = vmatprep.mubr.msk.bf16.mxu0 %vm3506_vm0, %v4632_v31  ;;  %v1751_v30 = vor.u32 %v1750_v19, %v1747_v18  ;;  %v4254_v31 = vld [vmem:[%s4720_s19 + $0xa0] sm:$0xf]  ;;  %v4306_v19 = vld [vmem:[%s4720_s19 + $0xac] sm:$0xf] }
 0x1ab   : > { %2948 = vrot.lane.b32.xlu0 %v2777_v26, %s4674_s30  ;;  %v1766_v35 = vrot.slane %v1764_v25, 5  ;;  %v2127_v36 = vrot.slane %v4254_v31, 5 }
 0x1ac   : > { %v1847_v39 = vpop.permute.xlu1 %1846 }
 0x1ad   : > { %1928 = vst.msk [vmem:[#allocation2 + $0x3c] sm:$0xf] %vm1912_vm11, %v1847_v39  ;;  %v1845_v44 = vpop.permute.xlu0 %1844  ;;  %v4633_v43 = vld [vmem:[#allocation2 + $0x28] sm:$0xff]   ;;  %v1733_v39 = vsel %vm4731_vm2, %v1728_v29, %v1732_v61  ;;  %v2129_v46 = vrot.slane %v2127_v36, 4  ;;  %v2839_v29 = vrot.slane %v2837_v16, 4 }
 0x1ae   : > { %1927 = vst.msk [vmem:[#allocation2 + $0x38] sm:$0xf] %vm1912_vm11, %v1845_v44  ;;  %2954 = vrot.lane.b32.xlu1 %v2811_v34, %s4674_s30  ;;  %4561 = vmatmul.mubr.msk.bf16.gmra.mxu0 %vm3506_vm0, %v4633_v43  ;;  %v1762_v34 = vrot.slane %v1761_v24, 4  ;;  %v4253_v44 = vld [vmem:[%s4720_s19 + $0x9c] sm:$0xe]  ;;  %v2134_v43 = vrot.slane %v4257_v37, 5 }
 0x1af   : > { %2952 = vrot.lane.b32.xlu0 %v2801_v40, %s4674_s30  ;;  %v1752_v40 = vrot.slane %v1751_v30, 4  ;;  %v2852_v24 = vrot.slane %v2850_v11, 4  ;;  %v2842_v30 = vrot.slane %v2840_v17, 5  ;;  %v4214_v17 = vld [vmem:[%s4720_s19 + $0xc0] sm:$0xf] }
 0x1b0   : > { %v2180_v52 = vpop.permute.xlu1 %2179  ;;  %v1767_v45 = vsel %vm4731_vm2, %v1762_v34, %v1766_v35  ;;  %v2136_v56 = vrot.slane %v2134_v43, 4  ;;  %v4307_v34 = vld [vmem:[%s4720_s19 + $0xb4] sm:$0xf] }
 0x1b1   : > { %2263 = vst.msk [vmem:[#allocation2 + $0x34] sm:$0xf] %vm2249_vm12, %v2180_v52  ;;  %v2178_v57 = vpop.permute.xlu0 %2177  ;;  %v1757_v51 = vsel %vm4731_vm2, %v1752_v40, %v1756_v12  ;;  %v4277_v52 = vrot.slane %v4253_v44, 9  ;;  %v2853_v37 = vor.u32 %v2852_v24, %v5922_v23  ;;  %v2843_v41 = vor.u32 %v2842_v30, %v2839_v29 }
 0x1b2   : > { %2262 = vst.msk [vmem:[#allocation2 + $0x30] sm:$0xf] %vm2249_vm12, %v2178_v57  ;;  %3287 = vrot.lane.b32.xlu1 %v3209_v49, %s4675_s6  ;;  %v4256_v49 = vld [vmem:[%s4720_s19 + $0xa8] sm:$0xe]  ;;  %v2137_v57 = vrot.slane %v4258_v48, 5  ;;  %v1793_v29 = vshrl.u32 %v4214_v17, 16 }
 0x1b3   : > { %3285 = vrot.lane.b32.xlu0 %v3206_v53, %s4675_s6  ;;  %v4350_v53 = vld [vmem:[%s4720_s19 + $0xac] sm:$0xf]  ;;  %v4278_v58 = vrot.slane %v4256_v49, 9  ;;  %v2128_v0 = vsel %vm4875_vm6, %v4277_v52, %v2127_v36  ;;  %v2834_v36 = vrot.slane %v2832_v22, 5  ;;  %v4401_v49 = vld [vmem:[%s4720_s19 + $0xb8] sm:$0xf] }
 0x1b4   : > { %v2184_v2 = vpop.permute.xlu1 %2183  ;;  %v2826_v61 = vshrl.u32 %v4350_v53, 16  ;;  %v2138_v6 = vsel %vm4875_vm6, %v2136_v56, %v2137_v57  ;;  %v2844_v52 = vrot.slane %v2843_v41, 4  ;;  %v3226_v56 = vrot.slane %v4401_v49, 5 }
 0x1b5   : > { %2265 = vst.msk [vmem:[#allocation2 + $0x3c] sm:$0xf] %vm2249_vm12, %v2184_v2  ;;  %v2182_v8 = vpop.permute.xlu0 %2181  ;;  %v2816_v2 = vshll.u32 %v4349_v55, 16  ;;  %v2135_v7 = vsel %vm4875_vm6, %v4278_v58, %v2134_v43  ;;  %v4397_v55 = vld [vmem:[%s4720_s19 + $0xa8] sm:$0xe]  ;;  %v1796_v30 = vshll.u32 %v4214_v17, 16 }
 0x1b6   : > { %2264 = vst.msk [vmem:[#allocation2 + $0x38] sm:$0xf] %vm2249_vm12, %v2182_v8  ;;  %3291 = vrot.lane.b32.xlu1 %v3216_v59, %s4675_s6  ;;  %v2131_v59 = vsel %vm4875_vm6, %v2129_v46, %v2130_v47  ;;  %v2854_v46 = vrot.slane %v2853_v37, 4  ;;  %v3228_v5 = vrot.slane %v3226_v56, 4  ;;  %v1795_v41 = vrot.slane %v1793_v29, 4 }
 0x1b7   : > { %3289 = vrot.lane.b32.xlu0 %v3213_v60, %s4675_s6  ;;  %v2822_v60 = vshll.u32 %v4350_v53, 16  ;;  %v4399_v53 = vld [vmem:[%s4720_s19 + $0xb0] sm:$0x1] }
 0x1b8   : > { %v2374_v14 = vpop.permute.xlu1 %2373 }
 0x1b9   : > { %2457 = vst.msk [vmem:[#allocation2 + $0x34] sm:$0xf] %vm2443_vm13, %v2374_v14  ;;  %v2372_v20 = vpop.permute.xlu0 %2371  ;;  %v5912_v8 = vrot.slane %v2822_v60, 5  ;;  %v2815_v14 = vrot.slane %v2813_v1, 4  ;;  %v4402_v60 = vld [vmem:[%s4720_s19 + $0xbc] sm:$0x1] }
 0x1ba   : > { %2456 = vst.msk [vmem:[#allocation2 + $0x30] sm:$0xf] %vm2443_vm13, %v2372_v20  ;;  %1305 = vrot.lane.b32.xlu1 %v4162_v9, %s4670_s22  ;;  %v2828_v9 = vrot.slane %v2826_v61, 4  ;;  %v4305_v20 = vld [vmem:[%s4720_s19 + $0xa8] sm:$0xf]  ;;  %v4421_v1 = vrot.slane %v4397_v55, 9 }
 0x1bb   : > { %1303 = vrot.lane.b32.xlu0 %v4161_v15, %s4670_s22  ;;  %v2818_v15 = vrot.slane %v2816_v2, 5  ;;  %v4400_v61 = vld [vmem:[%s4720_s19 + $0xb4] sm:$0xe]  ;;  %v4212_v2 = vld [vmem:[%s4720_s19 + $0xb8] sm:$0xf] }
 0x1bc   : > { %v2378_v26 = vpop.permute.xlu1 %2377  ;;  %v1782_v10 = vshrl.u32 %v4212_v2, 16 }
 0x1bd   : > { %2459 = vst.msk [vmem:[#allocation2 + $0x3c] sm:$0xf] %vm2443_vm13, %v2378_v26  ;;  %v2376_v32 = vpop.permute.xlu0 %2375  ;;  %v2819_v26 = vor.u32 %v2818_v15, %v2815_v14  ;;  %v4215_v15 = vld [vmem:[%s4720_s19 + $0xc4] sm:$0xf] }
 0x1be   : > { %2458 = vst.msk [vmem:[#allocation2 + $0x38] sm:$0xf] %vm2443_vm13, %v2376_v32  ;;  %1309 = vrot.lane.b32.xlu1 %v4164_v21, %s4670_s22  ;;  %v2829_v21 = vor.u32 %v2828_v9, %v5912_v8  ;;  %v1778_v9 = vshll.u32 %v4212_v2, 16  ;;  %v1802_v22 = vshll.u32 %v4215_v15, 16  ;;  %v4259_v2 = vld [vmem:[%s4720_s19 + $0xb4] sm:$0xe] }
 0x1bf   : > { %1307 = vrot.lane.b32.xlu0 %v4163_v28, %s4670_s22  ;;  %v4354_v28 = vld [vmem:[%s4720_s19 + $0xbc] sm:$0x1]  ;;  %v2820_v40 = vrot.slane %v2819_v26, 4 }
 0x1c0   : > { %v2935_v38 = vpop.permute.xlu1 %2934  ;;  %v2830_v35 = vrot.slane %v2829_v21, 4  ;;  %v1784_v21 = vrot.slane %v1782_v10, 4 }
 0x1c1   : > { %3018 = vst.msk [vmem:[#allocation2 + $0x34] sm:$0xf] %vm3004_vm14, %v2935_v38  ;;  %v2933_v42 = vpop.permute.xlu0 %2932  ;;  %v2856_v38 = vshll.u32 %v4354_v28, 16 }
 0x1c2   : > { %3017 = vst.msk [vmem:[#allocation2 + $0x30] sm:$0xf] %vm3004_vm14, %v2933_v42  ;;  %1866 = vrot.lane.b32.xlu1 %v1743_v33, %s4671_s23  ;;  %v4308_v33 = vld [vmem:[%s4720_s19 + $0xb8] sm:$0xf]  ;;  %v4398_v42 = vld [vmem:[%s4720_s19 + $0xac] sm:$0xf] }
 0x1c3   : > { %1864 = vrot.lane.b32.xlu0 %v1733_v39, %s4671_s23  ;;  %v2858_v47 = vrot.slane %v2856_v38, 5  ;;  %v3219_v48 = vrot.slane %v4398_v42, 5  ;;  %v4165_v38 = vld [vmem:[%s4720_s19 + $0xb4] sm:$0xf]  ;;  %v1798_v42 = vrot.slane %v1796_v30, 5 }
 0x1c4   : > { %v2939_v50 = vpop.permute.xlu1 %2938 }
 0x1c5   : > { %3020 = vst.msk [vmem:[#allocation2 + $0x3c] sm:$0xf] %vm3004_vm14, %v2939_v50  ;;  %v2937_v54 = vpop.permute.xlu0 %2936  ;;  %v2859_v57 = vsel %vm4731_vm2, %v2854_v46, %v2858_v47  ;;  %v3221_v58 = vrot.slane %v3219_v48, 4 }
 0x1c6   : > { %3019 = vst.msk [vmem:[#allocation2 + $0x38] sm:$0xf] %vm3004_vm14, %v2937_v54  ;;  %1870 = vrot.lane.b32.xlu1 %v1767_v45, %s4671_s23  ;;  %v2835_v45 = vsel %vm4731_vm2, %v2830_v35, %v2834_v36  ;;  %v1804_v35 = vrot.slane %v1802_v22, 5 }
 0x1c7   : > { %1868 = vrot.lane.b32.xlu0 %v1757_v51, %s4671_s23  ;;  %v2825_v51 = vsel %vm4731_vm2, %v2820_v40, %v5912_v8  ;;  %v4216_v40 = vld [vmem:[%s4720_s19 + $0xc8] sm:$0x1] }
 0x1c8   : > { %v3272_v63 = vpop.permute.xlu1 %3271 }
 0x1c9   : > { %3355 = vst.msk [vmem:[#allocation2 + $0x34] sm:$0xf] %vm3341_vm15, %v3272_v63  ;;  %v3270_v4 = vpop.permute.xlu0 %3269 }
 0x1ca   : > { %3354 = vst.msk [vmem:[#allocation2 + $0x30] sm:$0xf] %vm3341_vm15, %v3270_v4  ;;  %2203 = vrot.lane.b32.xlu1 %v2131_v59, %s4672_s24  ;;  %v3222_v59 = vrot.slane %v4399_v53, 5  ;;  %v4211_v4 = vld [vmem:[%s4720_s19 + $0xb4] sm:$0xf] }
 0x1cb   : > { %2201 = vrot.lane.b32.xlu0 %v2128_v0, %s4672_s24  ;;  %v2849_v0 = vsel %vm4731_vm2, %v2844_v52, %v5922_v23  ;;  %v1769_v13 = vshrl.u32 %v4211_v4, 16  ;;  %v1772_v14 = vshll.u32 %v4211_v4, 16  ;;  %v1806_v23 = vshrl.u32 %v4215_v15, 16  ;;  %v4260_v53 = vld [vmem:[%s4720_s19 + $0xb8] sm:$0xf] }
 0x1cc   : > { %v3276_v12 = vpop.permute.xlu1 %3275  ;;  %v3223_v8 = vsel %vm4875_vm6, %v3221_v58, %v3222_v59  ;;  %v1799_v52 = vor.u32 %v1798_v42, %v1795_v41  ;;  %v2141_v58 = vrot.slane %v4260_v53, 5  ;;  %v4263_v59 = vld [vmem:[%s4720_s19 + $0xc4] sm:$0xf] }
 0x1cd   : > { %3357 = vst.msk [vmem:[#allocation2 + $0x3c] sm:$0xf] %vm3341_vm15, %v3276_v12  ;;  %v3274_v18 = vpop.permute.xlu0 %3273  ;;  %v3220_v12 = vsel %vm4875_vm6, %v4421_v1, %v3219_v48  ;;  %v1771_v26 = vrot.slane %v1769_v13, 4  ;;  %v1774_v28 = vrot.slane %v1772_v14, 5  ;;  %v1808_v36 = vrot.slane %v1806_v23, 4 }
 0x1ce   : > { %3356 = vst.msk [vmem:[#allocation2 + $0x38] sm:$0xf] %vm3341_vm15, %v3274_v18  ;;  %2207 = vrot.lane.b32.xlu1 %v2138_v6, %s4672_s24  ;;  %v3229_v6 = vrot.slane %v4402_v60, 5  ;;  %v1812_v48 = vshll.u32 %v4216_v40, 16  ;;  %v4355_v14 = vld [vmem:[%s4720_s19 + $0xc0] sm:$0xf] }
 0x1cf   : > { %2205 = vrot.lane.b32.xlu0 %v2135_v7, %s4672_s24  ;;  %v4422_v7 = vrot.slane %v4400_v61, 9  ;;  %v1809_v47 = vor.u32 %v1808_v36, %v1804_v35  ;;  %v2861_v23 = vshrl.u32 %v4355_v14, 16 }
 0x1d0   : > { %v1294_v25 = vpop.permute.xlu1 %1293  ;;  %v3230_v18 = vsel %vm4875_vm6, %v3228_v5, %v3229_v6  ;;  %v2143_v5 = vrot.slane %v2141_v58, 4 }
 0x1d1   : > { %1371 = vst.msk [vmem:[#allocation2 + $0x4c] sm:$0xf] %vm1351_vm10, %v1294_v25  ;;  %v1292_v31 = vpop.permute.xlu0 %1291  ;;  %v4634_v32 = vld [vmem:[#allocation2 + $0x30] sm:$0xff]   ;;  %v4213_v25 = vld [vmem:[%s4720_s19 + $0xbc] sm:$0x1] }
 0x1d2   : > { %1370 = vst.msk [vmem:[#allocation2 + $0x48] sm:$0xf] %vm1351_vm10, %v1292_v31  ;;  %2397 = vrot.lane.b32.xlu1 %v4306_v19, %s4673_s25  ;;  %4564 = vmatprep.mubr.msk.bf16.mxu0 %vm3506_vm0, %v4634_v32  ;;  %v3227_v19 = vsel %vm4875_vm6, %v4422_v7, %v3226_v56  ;;  %v4166_v32 = vld [vmem:[%s4720_s19 + $0xb8] sm:$0xf]  ;;  %v1810_v56 = vrot.slane %v1809_v47, 4 }
 0x1d3   : > { %2395 = vrot.lane.b32.xlu0 %v4305_v20, %s4673_s25  ;;  %v1780_v20 = vrot.slane %v1778_v9, 5  ;;  %v4264_v7 = vld [vmem:[%s4720_s19 + $0xc8] sm:$0x1] }
 0x1d4   : > { %v1851_v39 = vpop.permute.xlu1 %1850 }
 0x1d5   : > { %1930 = vst.msk [vmem:[#allocation2 + $0x44] sm:$0xf] %vm1912_vm11, %v1851_v39  ;;  %v1849_v44 = vpop.permute.xlu0 %1848  ;;  %v4635_v43 = vld [vmem:[#allocation2 + $0x38] sm:$0xff]   ;;  %v1775_v39 = vor.u32 %v1774_v28, %v1771_v26  ;;  %v4358_v28 = vld [vmem:[%s4720_s19 + $0xcc] sm:$0xf] }
 0x1d6   : > { %1929 = vst.msk [vmem:[#allocation2 + $0x40] sm:$0xf] %vm1912_vm11, %v1849_v44  ;;  %2401 = vrot.lane.b32.xlu1 %v4308_v33, %s4673_s25  ;;  %4565 = vmatmul.mubr.msk.bf16.gmra.mxu0 %vm3506_vm0, %v4635_v43  ;;  %v1785_v33 = vor.u32 %v1784_v21, %v1780_v20  ;;  %v4168_v43 = vld [vmem:[%s4720_s19 + $0xc4] sm:$0xf]  ;;  %v2888_v40 = vshll.u32 %v4358_v28, 16 }
 0x1d7   : > { %2399 = vrot.lane.b32.xlu0 %v4307_v34, %s4673_s25  ;;  %v1788_v34 = vshll.u32 %v4213_v25, 16  ;;  %v4359_v25 = vld [vmem:[%s4720_s19 + $0xd0] sm:$0xf] }
 0x1d8   : > { %v1855_v50 = vpop.permute.xlu1 %1854  ;;  %v2890_v53 = vrot.slane %v2888_v40, 5 }
 0x1d9   : > { %1932 = vst.msk [vmem:[#allocation2 + $0x4c] sm:$0xf] %vm1912_vm11, %v1855_v50  ;;  %v1853_v54 = vpop.permute.xlu0 %1852  ;;  %v1790_v46 = vrot.slane %v1788_v34, 5  ;;  %v4167_v50 = vld [vmem:[%s4720_s19 + $0xc0] sm:$0xf]  ;;  %v2894_v34 = vshll.u32 %v4359_v25, 16 }
 0x1da   : > { %1931 = vst.msk [vmem:[#allocation2 + $0x48] sm:$0xf] %vm1912_vm11, %v1853_v54  ;;  %2958 = vrot.lane.b32.xlu1 %v2835_v45, %s4674_s30  ;;  %v1786_v45 = vrot.slane %v1785_v33, 4 }
 0x1db   : > { %2956 = vrot.lane.b32.xlu0 %v2825_v51, %s4674_s30  ;;  %v1776_v51 = vrot.slane %v1775_v39, 4  ;;  %v2885_v39 = vshrl.u32 %v4358_v28, 16  ;;  %v2896_v47 = vrot.slane %v2894_v34, 5 }
 0x1dc   : > { %v2188_v63 = vpop.permute.xlu1 %2187  ;;  %v1791_v55 = vsel %vm4731_vm2, %v1786_v45, %v1790_v46 }
 0x1dd   : > { %2267 = vst.msk [vmem:[#allocation2 + $0x44] sm:$0xf] %vm2249_vm12, %v2188_v63  ;;  %v2186_v3 = vpop.permute.xlu0 %2185  ;;  %v1781_v61 = vsel %vm4731_vm2, %v1776_v51, %v1780_v20  ;;  %v1800_v63 = vrot.slane %v1799_v52, 4  ;;  %v4360_v51 = vld [vmem:[%s4720_s19 + $0xd4] sm:$0x1]  ;;  %v2887_v52 = vrot.slane %v2885_v39, 4 }
 0x1de   : > { %2266 = vst.msk [vmem:[#allocation2 + $0x40] sm:$0xf] %vm2249_vm12, %v2186_v3  ;;  %2962 = vrot.lane.b32.xlu1 %v2859_v57, %s4674_s30  ;;  %v1814_v57 = vrot.slane %v1812_v48, 5  ;;  %v2148_v3 = vrot.slane %v4263_v59, 5 }
 0x1df   : > { %2960 = vrot.lane.b32.xlu0 %v2849_v0, %s4674_s30  ;;  %v4261_v0 = vld [vmem:[%s4720_s19 + $0xbc] sm:$0x1]  ;;  %v1805_v10 = vsel %vm4731_vm2, %v1800_v63, %v1804_v35  ;;  %v2898_v35 = vshrl.u32 %v4359_v25, 16  ;;  %v4311_v63 = vld [vmem:[%s4720_s19 + $0xcc] sm:$0xf] }
 0x1e0   : > { %v2192_v11 = vpop.permute.xlu1 %2191  ;;  %v1815_v4 = vsel %vm4731_vm2, %v1810_v56, %v1814_v57  ;;  %v2144_v6 = vrot.slane %v4261_v0, 5  ;;  %v2150_v15 = vrot.slane %v2148_v3, 4  ;;  %v4312_v56 = vld [vmem:[%s4720_s19 + $0xd0] sm:$0xf] }
 0x1e1   : > { %2269 = vst.msk [vmem:[#allocation2 + $0x4c] sm:$0xf] %vm2249_vm12, %v2192_v11  ;;  %v2190_v16 = vpop.permute.xlu0 %2189  ;;  %v4279_v11 = vrot.slane %v4259_v2, 9  ;;  %v2900_v48 = vrot.slane %v2898_v35, 4  ;;  %v4404_v2 = vld [vmem:[%s4720_s19 + $0xc4] sm:$0xf] }
 0x1e2   : > { %2268 = vst.msk [vmem:[#allocation2 + $0x48] sm:$0xf] %vm2249_vm12, %v2190_v16  ;;  %3295 = vrot.lane.b32.xlu1 %v3223_v8, %s4675_s6  ;;  %v4262_v8 = vld [vmem:[%s4720_s19 + $0xc0] sm:$0xe]  ;;  %v2151_v16 = vrot.slane %v4264_v7, 5  ;;  %v3233_v7 = vrot.slane %v4404_v2, 5 }
 0x1e3   : > { %3293 = vrot.lane.b32.xlu0 %v3220_v12, %s4675_s6  ;;  %v4356_v12 = vld [vmem:[%s4720_s19 + $0xc4] sm:$0xf]  ;;  %v4280_v17 = vrot.slane %v4262_v8, 9  ;;  %v2142_v22 = vsel %vm4875_vm6, %v4279_v11, %v2141_v58  ;;  %v2901_v59 = vor.u32 %v2900_v48, %v2896_v47  ;;  %v4405_v11 = vld [vmem:[%s4720_s19 + $0xc8] sm:$0x1] }
 0x1e4   : > { %v2382_v24 = vpop.permute.xlu1 %2381  ;;  %v2874_v20 = vshrl.u32 %v4356_v12, 16  ;;  %v2152_v29 = vsel %vm4875_vm6, %v2150_v15, %v2151_v16  ;;  %v3235_v16 = vrot.slane %v3233_v7, 4 }
 0x1e5   : > { %2461 = vst.msk [vmem:[#allocation2 + $0x44] sm:$0xf] %vm2443_vm13, %v2382_v24  ;;  %v2380_v31 = vpop.permute.xlu0 %2379  ;;  %v2864_v24 = vshll.u32 %v4355_v14, 16  ;;  %v2149_v30 = vsel %vm4875_vm6, %v4280_v17, %v2148_v3  ;;  %v4403_v14 = vld [vmem:[%s4720_s19 + $0xc0] sm:$0xe]  ;;  %v3236_v17 = vrot.slane %v4405_v11, 5 }
 0x1e6   : > { %2460 = vst.msk [vmem:[#allocation2 + $0x40] sm:$0xf] %vm2443_vm13, %v2380_v31  ;;  %3299 = vrot.lane.b32.xlu1 %v3230_v18, %s4675_s6  ;;  %v2145_v18 = vsel %vm4875_vm6, %v2143_v5, %v2144_v6  ;;  %v4357_v31 = vld [vmem:[%s4720_s19 + $0xc8] sm:$0x1]  ;;  %v2876_v33 = vrot.slane %v2874_v20, 4  ;;  %v2902_v5 = vrot.slane %v2901_v59, 4 }
 0x1e7   : > { %3297 = vrot.lane.b32.xlu0 %v3227_v19, %s4675_s6  ;;  %v2870_v19 = vshll.u32 %v4356_v12, 16  ;;  %v2880_v46 = vshll.u32 %v4357_v31, 16  ;;  %v4407_v12 = vld [vmem:[%s4720_s19 + $0xd0] sm:$0xf]  ;;  %v3237_v25 = vsel %vm4875_vm6, %v3235_v16, %v3236_v17 }
 0x1e8   : > { %v2386_v37 = vpop.permute.xlu1 %2385 }
 0x1e9   : > { %2463 = vst.msk [vmem:[#allocation2 + $0x4c] sm:$0xf] %vm2443_vm13, %v2386_v37  ;;  %v2384_v44 = vpop.permute.xlu0 %2383  ;;  %v2863_v37 = vrot.slane %v2861_v23, 4  ;;  %v2882_v58 = vrot.slane %v2880_v46, 5 }
 0x1ea   : > { %2462 = vst.msk [vmem:[#allocation2 + $0x48] sm:$0xf] %vm2443_vm13, %v2384_v44  ;;  %1313 = vrot.lane.b32.xlu1 %v4166_v32, %s4670_s22  ;;  %v6035_v32 = vrot.slane %v2870_v19, 5  ;;  %v4310_v44 = vld [vmem:[%s4720_s19 + $0xc4] sm:$0xf] }
 0x1eb   : > { %1311 = vrot.lane.b32.xlu0 %v4165_v38, %s4670_s22  ;;  %v2866_v38 = vrot.slane %v2864_v24, 5  ;;  %v4406_v24 = vld [vmem:[%s4720_s19 + $0xcc] sm:$0xe] }
 0x1ec   : > { %v2943_v49 = vpop.permute.xlu1 %2942  ;;  %v2877_v45 = vor.u32 %v2876_v33, %v6035_v32 }
 0x1ed   : > { %3022 = vst.msk [vmem:[#allocation2 + $0x44] sm:$0xf] %vm3004_vm14, %v2943_v49  ;;  %v2941_v54 = vpop.permute.xlu0 %2940 }
 0x1ee   : > { %3021 = vst.msk [vmem:[#allocation2 + $0x40] sm:$0xf] %vm3004_vm14, %v2941_v54  ;;  %1317 = vrot.lane.b32.xlu1 %v4168_v43, %s4670_s22  ;;  %v4309_v43 = vld [vmem:[%s4720_s19 + $0xc0] sm:$0xf]  ;;  %v2878_v57 = vrot.slane %v2877_v45, 4 }
 0x1ef   : > { %1315 = vrot.lane.b32.xlu0 %v4167_v50, %s4670_s22  ;;  %v2867_v50 = vor.u32 %v2866_v38, %v2863_v37 }
 0x1f0   : > { %v2947_v60 = vpop.permute.xlu1 %2946 }
 0x1f1   : > { %3024 = vst.msk [vmem:[#allocation2 + $0x4c] sm:$0xf] %vm3004_vm14, %v2947_v60  ;;  %v2945_v1 = vpop.permute.xlu0 %2944  ;;  %v2904_v60 = vshll.u32 %v4360_v51, 16  ;;  %v2868_v0 = vrot.slane %v2867_v50, 4 }
 0x1f2   : > { %3023 = vst.msk [vmem:[#allocation2 + $0x48] sm:$0xf] %vm3004_vm14, %v2945_v1  ;;  %1874 = vrot.lane.b32.xlu1 %v1791_v55, %s4671_s23  ;;  %v2891_v1 = vor.u32 %v2890_v53, %v2887_v52 }
 0x1f3   : > { %1872 = vrot.lane.b32.xlu0 %v1781_v61, %s4671_s23  ;;  %v2906_v6 = vrot.slane %v2904_v60, 5 }
 0x1f4   : > { %v3280_v9 = vpop.permute.xlu1 %3279 }
 0x1f5   : > { %3359 = vst.msk [vmem:[#allocation2 + $0x44] sm:$0xf] %vm3341_vm15, %v3280_v9  ;;  %v3278_v13 = vpop.permute.xlu0 %3277  ;;  %v2873_v9 = vsel %vm4731_vm2, %v2868_v0, %v6035_v32  ;;  %v2907_v15 = vsel %vm4731_vm2, %v2902_v5, %v2906_v6 }
 0x1f6   : > { %3358 = vst.msk [vmem:[#allocation2 + $0x40] sm:$0xf] %vm3341_vm15, %v3278_v13  ;;  %1878 = vrot.lane.b32.xlu1 %v1815_v4, %s4671_s23  ;;  %v2883_v4 = vsel %vm4731_vm2, %v2878_v57, %v2882_v58 }
 0x1f7   : > { %1876 = vrot.lane.b32.xlu0 %v1805_v10, %s4671_s23  ;;  %v2892_v10 = vrot.slane %v2891_v1, 4 }
 0x1f8   : > { %v3284_v21 = vpop.permute.xlu1 %3283 }
 0x1f9   : > { %3361 = vst.msk [vmem:[#allocation2 + $0x4c] sm:$0xf] %vm3341_vm15, %v3284_v21  ;;  %v3282_v26 = vpop.permute.xlu0 %3281  ;;  %v2897_v20 = vsel %vm4731_vm2, %v2892_v10, %v2896_v47  ;;  %v4423_v21 = vrot.slane %v4403_v14, 9  ;;  %vm3826_vm2 = vcmask 1040384  }
 0x1fa   : > { %3360 = vst.msk [vmem:[#allocation2 + $0x48] sm:$0xf] %vm3341_vm15, %v3282_v26  ;;  %2211 = vrot.lane.b32.xlu1 %v2145_v18, %s4672_s24  ;;  %v3240_v18 = vrot.slane %v4407_v12, 5 }
 0x1fb   : > { %2209 = vrot.lane.b32.xlu0 %v2142_v22, %s4672_s24  ;;  %v4408_v22 = vld [vmem:[%s4720_s19 + $0xd4] sm:$0x1]  ;;  %v3234_v27 = vsel %vm4875_vm6, %v4423_v21, %v3233_v7 }
 0x1fc   : > { %v1298_v36 = vpop.permute.xlu1 %1297  ;;  %v3242_v26 = vrot.slane %v3240_v18, 4  ;;  %v3243_v28 = vrot.slane %v4408_v22, 5 }
 0x1fd   : > { %1373 = vst.msk [vmem:[#allocation2 + $0x54] sm:$0xf] %vm1351_vm10, %v1298_v36  ;;  %v1296_v41 = vpop.permute.xlu0 %1295  ;;  %v4636_v42 = vld [vmem:[#allocation2 + $0x40] sm:$0xff]  }
 0x1fe   : > { %1372 = vst.msk [vmem:[#allocation2 + $0x50] sm:$0xf] %vm1351_vm10, %v1296_v41  ;;  %2215 = vrot.lane.b32.xlu1 %v2152_v29, %s4672_s24  ;;  %4568 = vmatprep.mubr.msk.bf16.mxu1 %vm3506_vm0, %v4636_v42  ;;  %v3244_v32 = vsel %vm4875_vm6, %v3242_v26, %v3243_v28 }
 0x1ff   : > { %2213 = vrot.lane.b32.xlu0 %v2149_v30, %s4672_s24  ;;  %v4424_v30 = vrot.slane %v4406_v24, 9 }
 0x200   : > { %v1302_v49 = vpop.permute.xlu1 %1301 }
 0x201   : > { %1375 = vst.msk [vmem:[#allocation2 + $0x5c] sm:$0xf] %vm1351_vm10, %v1302_v49  ;;  %v1300_v54 = vpop.permute.xlu0 %1299  ;;  %v4637_v55 = vld [vmem:[#allocation2 + $0x48] sm:$0xff]   ;;  %v3241_v34 = vsel %vm4875_vm6, %v4424_v30, %v3240_v18 }
 0x202   : > { %1374 = vst.msk [vmem:[#allocation2 + $0x58] sm:$0xf] %vm1351_vm10, %v1300_v54  ;;  %2405 = vrot.lane.b32.xlu1 %v4310_v44, %s4673_s25  ;;  %4569 = vmatmul.mubr.msk.bf16.vlgmr.msra.gmra.mxu1 %vm3506_vm0, %v4637_v55 }
 0x203   : > { %2403 = vrot.lane.b32.xlu0 %v4309_v43, %s4673_s25 }
 0x204   : > { %v1859_v61 = vpop.permute.xlu1 %1858 }
 0x205   : > { %1934 = vst.msk [vmem:[#allocation2 + $0x54] sm:$0xf] %vm1912_vm11, %v1859_v61  ;;  %v1857_v3 = vpop.permute.xlu0 %1856 }
 0x206   : > { %1933 = vst.msk [vmem:[#allocation2 + $0x50] sm:$0xf] %vm1912_vm11, %v1857_v3  ;;  %2409 = vrot.lane.b32.xlu1 %v4312_v56, %s4673_s25 }
 0x207   : > { %2407 = vrot.lane.b32.xlu0 %v4311_v63, %s4673_s25 }
 0x208   : > { %v1863_v8 = vpop.permute.xlu1 %1862 }
 0x209   : > { %1936 = vst.msk [vmem:[#allocation2 + $0x5c] sm:$0xf] %vm1912_vm11, %v1863_v8  ;;  %v1861_v13 = vpop.permute.xlu0 %1860 }
 0x20a   : > { %1935 = vst.msk [vmem:[#allocation2 + $0x58] sm:$0xf] %vm1912_vm11, %v1861_v13  ;;  %2966 = vrot.lane.b32.xlu1 %v2883_v4, %s4674_s30 }
 0x20b   : > { %2964 = vrot.lane.b32.xlu0 %v2873_v9, %s4674_s30 }
 0x20c   : > { %v2196_v19 = vpop.permute.xlu1 %2195 }
 0x20d   : > { %2271 = vst.msk [vmem:[#allocation2 + $0x54] sm:$0xf] %vm2249_vm12, %v2196_v19  ;;  %v2194_v23 = vpop.permute.xlu0 %2193 }
 0x20e   : > { %2270 = vst.msk [vmem:[#allocation2 + $0x50] sm:$0xf] %vm2249_vm12, %v2194_v23  ;;  %2970 = vrot.lane.b32.xlu1 %v2907_v15, %s4674_s30 }
 0x20f   : > { %2968 = vrot.lane.b32.xlu0 %v2897_v20, %s4674_s30 }
 0x210   : > { %v2200_v29 = vpop.permute.xlu1 %2199 }
 0x211   : > { %2273 = vst.msk [vmem:[#allocation2 + $0x5c] sm:$0xf] %vm2249_vm12, %v2200_v29  ;;  %v2198_v31 = vpop.permute.xlu0 %2197 }
 0x212   : > { %2272 = vst.msk [vmem:[#allocation2 + $0x58] sm:$0xf] %vm2249_vm12, %v2198_v31  ;;  %3303 = vrot.lane.b32.xlu1 %v3237_v25, %s4675_s6 }
 0x213   : > { %3301 = vrot.lane.b32.xlu0 %v3234_v27, %s4675_s6 }
 0x214   : > { %v2390_v33 = vpop.permute.xlu1 %2389 }
 0x215   : > { %2465 = vst.msk [vmem:[#allocation2 + $0x54] sm:$0xf] %vm2443_vm13, %v2390_v33  ;;  %v2388_v35 = vpop.permute.xlu0 %2387 }
 0x216   : > { %2464 = vst.msk [vmem:[#allocation2 + $0x50] sm:$0xf] %vm2443_vm13, %v2388_v35  ;;  %3307 = vrot.lane.b32.xlu1 %v3244_v32, %s4675_s6 }
 0x217   : > { %3305 = vrot.lane.b32.xlu0 %v3241_v34, %s4675_s6 }
 0x218   : > { %v2394_v36 = vpop.permute.xlu1 %2393 }
 0x219   : > { %2467 = vst.msk [vmem:[#allocation2 + $0x5c] sm:$0xf] %vm2443_vm13, %v2394_v36  ;;  %v2392_v37 = vpop.permute.xlu0 %2391 }
 0x21a   : > { %2466 = vst.msk [vmem:[#allocation2 + $0x58] sm:$0xf] %vm2443_vm13, %v2392_v37 }
 0x21c   : > { %v2951_v38 = vpop.permute.xlu1 %2950 }
 0x21d   : > { %3026 = vst.msk [vmem:[#allocation2 + $0x54] sm:$0xf] %vm3004_vm14, %v2951_v38  ;;  %v2949_v62 = vpop.permute.xlu0 %2948 }
 0x21e   : > { %3025 = vst.msk [vmem:[#allocation2 + $0x50] sm:$0xf] %vm3004_vm14, %v2949_v62  ;;  %v4554_v39 = vpop.f32.mrf.mxu0 }
 0x21f   : > { %v4497_v40 = vpack.c.bf16 %v4554_v39, %v4554_v39  ;;  %v3759_v54 = vmul.f32 %v4554_v39, %v4554_v39 }
 0x220   : > { %v2955_v41 = vpop.permute.xlu1 %2954  ;;  %v3593_v44 = vpop.f32.mrf.mxu0 }
 0x221   : > { %3028 = vst.msk [vmem:[#allocation2 + $0x5c] sm:$0xf] %vm3004_vm14, %v2955_v41  ;;  %v2953_v42 = vpop.permute.xlu0 %2952  ;;  %v4495_v43 = vpack.c.bf16 %v3593_v44, %v3593_v44  ;;  %v3757_v50 = vmul.f32 %v3593_v44, %v3593_v44 }
 0x222   : > { %3960 = vst.msk [vmem:[%s6104_s10 + $0x8] sm:$0xf] %vm3957_vm1, %v4497_v40  ;;  %v4555_v45 = vpop.f32.mrf.mxu0 }
 0x223   : > { %3027 = vst.msk [vmem:[#allocation2 + $0x58] sm:$0xf] %vm3004_vm14, %v2953_v42  ;;  %v4498_v46 = vpack.c.bf16 %v4555_v45, %v4555_v45  ;;  %v3760_v59 = vmul.f32 %v4555_v45, %v4555_v45 }
 0x224   : > { %3958 = vst.msk [vmem:[%s6104_s10] sm:$0xf] %vm3957_vm1, %v4495_v43  ;;  %v3288_v47 = vpop.permute.xlu1 %3287  ;;  %v3596_v49 = vpop.f32.mrf.mxu0 }
 0x225   : > { %3363 = vst.msk [vmem:[#allocation2 + $0x54] sm:$0xf] %vm3341_vm15, %v3288_v47  ;;  %v3286_v48 = vpop.permute.xlu0 %3285  ;;  %v3720_v51 = vadd.f32 %v3596_v49, %v3593_v44  ;;  %v3758_v52 = vmul.f32 %v3596_v49, %v3596_v49  ;;  %v4496_v53 = vpack.c.bf16 %v3596_v49, %v3596_v49 }
 0x226   : > { %3961 = vst.msk [vmem:[%s6104_s10 + $0xc] sm:$0xf] %vm3957_vm1, %v4498_v46 }
 0x227   : > { %3362 = vst.msk [vmem:[#allocation2 + $0x50] sm:$0xf] %vm3341_vm15, %v3286_v48  ;;  %v3721_v55 = vadd.f32 %v4554_v39, %v3720_v51  ;;  %v3789_v56 = vadd.f32 %v3758_v52, %v3757_v50 }
 0x228   : > { %3959 = vst.msk [vmem:[%s6104_s10 + $0x4] sm:$0xf] %vm3957_vm1, %v4496_v53  ;;  %v3292_v57 = vpop.permute.xlu1 %3291 }
 0x229   : > { %3365 = vst.msk [vmem:[#allocation2 + $0x5c] sm:$0xf] %vm3341_vm15, %v3292_v57  ;;  %v3290_v58 = vpop.permute.xlu0 %3289  ;;  %v3790_v60 = vadd.f32 %v3789_v56, %v3759_v54  ;;  %v3722_v61 = vadd.f32 %v4555_v45, %v3721_v55 }
 0x22a   : > { %3364 = vst.msk [vmem:[#allocation2 + $0x58] sm:$0xf] %vm3341_vm15, %v3290_v58 }
 0x22b   : > { %v3791_v0 = vadd.f32 %v3790_v60, %v3760_v59 }
 0x22c   : > { %v1306_v63 = vpop.permute.xlu1 %1305 }
 0x22d   : > { %1377 = vst.msk [vmem:[#allocation2 + $0x64] sm:$0xf] %vm1351_vm10, %v1306_v63  ;;  %v1304_v1 = vpop.permute.xlu0 %1303 }
 0x22e   : > { %v4638_v2 = vld [vmem:[#allocation2 + $0x50] sm:$0xff]   ;;  %1376 = vst.msk [vmem:[#allocation2 + $0x60] sm:$0xf] %vm1351_vm10, %v1304_v1 }
 0x22f   : > { %4572 = vmatprep.mubr.msk.bf16.mxu1 %vm3506_vm0, %v4638_v2 }
 0x230   : > { %v1310_v3 = vpop.permute.xlu1 %1309 }
 0x231   : > { %1379 = vst.msk [vmem:[#allocation2 + $0x6c] sm:$0xf] %vm1351_vm10, %v1310_v3  ;;  %v1308_v4 = vpop.permute.xlu0 %1307  ;;  %v4639_v5 = vld [vmem:[#allocation2 + $0x58] sm:$0xff]  }
 0x232   : > { %1378 = vst.msk [vmem:[#allocation2 + $0x68] sm:$0xf] %vm1351_vm10, %v1308_v4  ;;  %4573 = vmatmul.mubr.msk.bf16.gmra.mxu1 %vm3506_vm0, %v4639_v5 }
 0x234   : > { %v1867_v6 = vpop.permute.xlu1 %1866 }
 0x235   : > { %1938 = vst.msk [vmem:[#allocation2 + $0x64] sm:$0xf] %vm1912_vm11, %v1867_v6  ;;  %v1865_v7 = vpop.permute.xlu0 %1864 }
 0x236   : > { %1937 = vst.msk [vmem:[#allocation2 + $0x60] sm:$0xf] %vm1912_vm11, %v1865_v7 }
 0x238   : > { %v1871_v8 = vpop.permute.xlu1 %1870 }
 0x239   : > { %1940 = vst.msk [vmem:[#allocation2 + $0x6c] sm:$0xf] %vm1912_vm11, %v1871_v8  ;;  %v1869_v9 = vpop.permute.xlu0 %1868 }
 0x23a   : > { %1939 = vst.msk [vmem:[#allocation2 + $0x68] sm:$0xf] %vm1912_vm11, %v1869_v9 }
 0x23c   : > { %v2204_v10 = vpop.permute.xlu1 %2203 }
 0x23d   : > { %2275 = vst.msk [vmem:[#allocation2 + $0x64] sm:$0xf] %vm2249_vm12, %v2204_v10  ;;  %v2202_v11 = vpop.permute.xlu0 %2201 }
 0x23e   : > { %2274 = vst.msk [vmem:[#allocation2 + $0x60] sm:$0xf] %vm2249_vm12, %v2202_v11 }
 0x240   : > { %v2208_v12 = vpop.permute.xlu1 %2207 }
 0x241   : > { %2277 = vst.msk [vmem:[#allocation2 + $0x6c] sm:$0xf] %vm2249_vm12, %v2208_v12  ;;  %v2206_v13 = vpop.permute.xlu0 %2205 }
 0x242   : > { %2276 = vst.msk [vmem:[#allocation2 + $0x68] sm:$0xf] %vm2249_vm12, %v2206_v13 }
 0x244   : > { %v2398_v14 = vpop.permute.xlu1 %2397 }
 0x245   : > { %2469 = vst.msk [vmem:[#allocation2 + $0x64] sm:$0xf] %vm2443_vm13, %v2398_v14  ;;  %v2396_v15 = vpop.permute.xlu0 %2395 }
 0x246   : > { %2468 = vst.msk [vmem:[#allocation2 + $0x60] sm:$0xf] %vm2443_vm13, %v2396_v15  ;;  %v4558_v16 = vpop.f32.mrf.mxu0 }
 0x247   : > { %v4501_v17 = vpack.c.bf16 %v4558_v16, %v4558_v16  ;;  %v3763_v33 = vmul.f32 %v4558_v16, %v4558_v16 }
 0x248   : > { %v2402_v18 = vpop.permute.xlu1 %2401  ;;  %v3609_v20 = vpop.f32.mrf.mxu0 }
 0x249   : > { %2471 = vst.msk [vmem:[#allocation2 + $0x6c] sm:$0xf] %vm2443_vm13, %v2402_v18  ;;  %v2400_v19 = vpop.permute.xlu0 %2399  ;;  %v3723_v21 = vadd.f32 %v3722_v61, %v3609_v20  ;;  %v3761_v22 = vmul.f32 %v3609_v20, %v3609_v20  ;;  %v4499_v23 = vpack.c.bf16 %v3609_v20, %v3609_v20 }
 0x24a   : > { %3964 = vst.msk [vmem:[%s6104_s10 + $0x18] sm:$0xf] %vm3957_vm1, %v4501_v17  ;;  %v4559_v24 = vpop.f32.mrf.mxu0 }
 0x24b   : > { %2470 = vst.msk [vmem:[#allocation2 + $0x68] sm:$0xf] %vm2443_vm13, %v2400_v19  ;;  %v3792_v25 = vadd.f32 %v3791_v0, %v3761_v22  ;;  %v4502_v26 = vpack.c.bf16 %v4559_v24, %v4559_v24  ;;  %v3764_v38 = vmul.f32 %v4559_v24, %v4559_v24 }
 0x24c   : > { %3962 = vst.msk [vmem:[%s6104_s10 + $0x10] sm:$0xf] %vm3957_vm1, %v4499_v23  ;;  %v2959_v28 = vpop.permute.xlu1 %2958  ;;  %v3612_v27 = vpop.f32.mrf.mxu0 }
 0x24d   : > { %3030 = vst.msk [vmem:[#allocation2 + $0x64] sm:$0xf] %vm3004_vm14, %v2959_v28  ;;  %v2957_v29 = vpop.permute.xlu0 %2956  ;;  %v3724_v30 = vadd.f32 %v3723_v21, %v3612_v27  ;;  %v3762_v31 = vmul.f32 %v3612_v27, %v3612_v27  ;;  %v4500_v32 = vpack.c.bf16 %v3612_v27, %v3612_v27 }
 0x24e   : > { %3965 = vst.msk [vmem:[%s6104_s10 + $0x1c] sm:$0xf] %vm3957_vm1, %v4502_v26 }
 0x24f   : > { %3029 = vst.msk [vmem:[#allocation2 + $0x60] sm:$0xf] %vm3004_vm14, %v2957_v29  ;;  %v3725_v34 = vadd.f32 %v4558_v16, %v3724_v30  ;;  %v3793_v35 = vadd.f32 %v3792_v25, %v3762_v31 }
 0x250   : > { %3963 = vst.msk [vmem:[%s6104_s10 + $0x14] sm:$0xf] %vm3957_vm1, %v4500_v32  ;;  %v2963_v36 = vpop.permute.xlu1 %2962 }
 0x251   : > { %3032 = vst.msk [vmem:[#allocation2 + $0x6c] sm:$0xf] %vm3004_vm14, %v2963_v36  ;;  %v2961_v37 = vpop.permute.xlu0 %2960  ;;  %v3794_v62 = vadd.f32 %v3793_v35, %v3763_v33  ;;  %v3726_v39 = vadd.f32 %v4559_v24, %v3725_v34 }
 0x252   : > { %3031 = vst.msk [vmem:[#allocation2 + $0x68] sm:$0xf] %vm3004_vm14, %v2961_v37 }
 0x253   : > { %v3795_v41 = vadd.f32 %v3794_v62, %v3764_v38 }
 0x254   : > { %v3296_v40 = vpop.permute.xlu1 %3295 }
 0x255   : > { %3367 = vst.msk [vmem:[#allocation2 + $0x64] sm:$0xf] %vm3341_vm15, %v3296_v40  ;;  %v3294_v42 = vpop.permute.xlu0 %3293 }
 0x256   : > { %3366 = vst.msk [vmem:[#allocation2 + $0x60] sm:$0xf] %vm3341_vm15, %v3294_v42 }
 0x258   : > { %v3300_v44 = vpop.permute.xlu1 %3299 }
 0x259   : > { %3369 = vst.msk [vmem:[#allocation2 + $0x6c] sm:$0xf] %vm3341_vm15, %v3300_v44  ;;  %v3298_v43 = vpop.permute.xlu0 %3297 }
 0x25a   : > { %3368 = vst.msk [vmem:[#allocation2 + $0x68] sm:$0xf] %vm3341_vm15, %v3298_v43 }
 0x25c   : > { %v1314_v45 = vpop.permute.xlu1 %1313 }
 0x25d   : > { %1381 = vst.msk [vmem:[#allocation2 + $0x74] sm:$0xf] %vm1351_vm10, %v1314_v45  ;;  %v1312_v46 = vpop.permute.xlu0 %1311  ;;  %v4640_v47 = vld [vmem:[#allocation2 + $0x60] sm:$0xff]  }
 0x25e   : > { %1380 = vst.msk [vmem:[#allocation2 + $0x70] sm:$0xf] %vm1351_vm10, %v1312_v46  ;;  %4576 = vmatprep.mubr.msk.bf16.mxu1 %vm3506_vm0, %v4640_v47 }
 0x260   : > { %v1318_v48 = vpop.permute.xlu1 %1317 }
 0x261   : > { %1383 = vst.msk [vmem:[#allocation2 + $0x7c] sm:$0xf] %vm1351_vm10, %v1318_v48  ;;  %v1316_v49 = vpop.permute.xlu0 %1315  ;;  %v4641_v50 = vld [vmem:[#allocation2 + $0x68] sm:$0xff]  }
 0x262   : > { %1382 = vst.msk [vmem:[#allocation2 + $0x78] sm:$0xf] %vm1351_vm10, %v1316_v49  ;;  %4577 = vmatmul.mubr.msk.bf16.gmra.mxu1 %vm3506_vm0, %v4641_v50 }
 0x264   : > { %v1875_v51 = vpop.permute.xlu1 %1874 }
 0x265   : > { %1942 = vst.msk [vmem:[#allocation2 + $0x74] sm:$0xf] %vm1912_vm11, %v1875_v51  ;;  %v1873_v52 = vpop.permute.xlu0 %1872 }
 0x266   : > { %1941 = vst.msk [vmem:[#allocation2 + $0x70] sm:$0xf] %vm1912_vm11, %v1873_v52 }
 0x268   : > { %v1879_v53 = vpop.permute.xlu1 %1878 }
 0x269   : > { %1944 = vst.msk [vmem:[#allocation2 + $0x7c] sm:$0xf] %vm1912_vm11, %v1879_v53  ;;  %v1877_v54 = vpop.permute.xlu0 %1876 }
 0x26a   : > { %1943 = vst.msk [vmem:[#allocation2 + $0x78] sm:$0xf] %vm1912_vm11, %v1877_v54 }
 0x26c   : > { %v2212_v55 = vpop.permute.xlu1 %2211 }
 0x26d   : > { %2279 = vst.msk [vmem:[#allocation2 + $0x74] sm:$0xf] %vm2249_vm12, %v2212_v55  ;;  %v2210_v56 = vpop.permute.xlu0 %2209 }
 0x26e   : > { %2278 = vst.msk [vmem:[#allocation2 + $0x70] sm:$0xf] %vm2249_vm12, %v2210_v56  ;;  %v4562_v57 = vpop.f32.mrf.mxu0 }
 0x26f   : > { %v4505_v58 = vpack.c.bf16 %v4562_v57, %v4562_v57  ;;  %v3767_v11 = vmul.f32 %v4562_v57, %v4562_v57 }
 0x270   : > { %v2216_v59 = vpop.permute.xlu1 %2215  ;;  %v3625_v61 = vpop.f32.mrf.mxu0 }
 0x271   : > { %2281 = vst.msk [vmem:[#allocation2 + $0x7c] sm:$0xf] %vm2249_vm12, %v2216_v59  ;;  %v2214_v60 = vpop.permute.xlu0 %2213  ;;  %v3727_v63 = vadd.f32 %v3726_v39, %v3625_v61  ;;  %v3765_v0 = vmul.f32 %v3625_v61, %v3625_v61  ;;  %v4503_v1 = vpack.c.bf16 %v3625_v61, %v3625_v61 }
 0x272   : > { %3968 = vst.msk [vmem:[%s6104_s10 + $0x28] sm:$0xf] %vm3957_vm1, %v4505_v58  ;;  %v4563_v2 = vpop.f32.mrf.mxu0 }
 0x273   : > { %2280 = vst.msk [vmem:[#allocation2 + $0x78] sm:$0xf] %vm2249_vm12, %v2214_v60  ;;  %v3796_v3 = vadd.f32 %v3795_v41, %v3765_v0  ;;  %v4506_v4 = vpack.c.bf16 %v4563_v2, %v4563_v2  ;;  %v3768_v16 = vmul.f32 %v4563_v2, %v4563_v2 }
 0x274   : > { %3966 = vst.msk [vmem:[%s6104_s10 + $0x20] sm:$0xf] %vm3957_vm1, %v4503_v1  ;;  %v2406_v5 = vpop.permute.xlu1 %2405  ;;  %v3628_v7 = vpop.f32.mrf.mxu0 }
 0x275   : > { %2473 = vst.msk [vmem:[#allocation2 + $0x74] sm:$0xf] %vm2443_vm13, %v2406_v5  ;;  %v2404_v6 = vpop.permute.xlu0 %2403  ;;  %v3728_v8 = vadd.f32 %v3727_v63, %v3628_v7  ;;  %v3766_v9 = vmul.f32 %v3628_v7, %v3628_v7  ;;  %v4504_v10 = vpack.c.bf16 %v3628_v7, %v3628_v7 }
 0x276   : > { %3969 = vst.msk [vmem:[%s6104_s10 + $0x2c] sm:$0xf] %vm3957_vm1, %v4506_v4 }
 0x277   : > { %2472 = vst.msk [vmem:[#allocation2 + $0x70] sm:$0xf] %vm2443_vm13, %v2404_v6  ;;  %v3729_v12 = vadd.f32 %v4562_v57, %v3728_v8  ;;  %v3797_v13 = vadd.f32 %v3796_v3, %v3766_v9 }
 0x278   : > { %3967 = vst.msk [vmem:[%s6104_s10 + $0x24] sm:$0xf] %vm3957_vm1, %v4504_v10  ;;  %v2410_v14 = vpop.permute.xlu1 %2409 }
 0x279   : > { %2475 = vst.msk [vmem:[#allocation2 + $0x7c] sm:$0xf] %vm2443_vm13, %v2410_v14  ;;  %v2408_v15 = vpop.permute.xlu0 %2407  ;;  %v3798_v17 = vadd.f32 %v3797_v13, %v3767_v11  ;;  %v3730_v18 = vadd.f32 %v4563_v2, %v3729_v12 }
 0x27a   : > { %2474 = vst.msk [vmem:[#allocation2 + $0x78] sm:$0xf] %vm2443_vm13, %v2408_v15 }
 0x27b   : > { %v3799_v20 = vadd.f32 %v3798_v17, %v3768_v16 }
 0x27c   : > { %v2967_v19 = vpop.permute.xlu1 %2966 }
 0x27d   : > { %3034 = vst.msk [vmem:[#allocation2 + $0x74] sm:$0xf] %vm3004_vm14, %v2967_v19  ;;  %v2965_v21 = vpop.permute.xlu0 %2964 }
 0x27e   : > { %3033 = vst.msk [vmem:[#allocation2 + $0x70] sm:$0xf] %vm3004_vm14, %v2965_v21 }
 0x280   : > { %v2971_v22 = vpop.permute.xlu1 %2970 }
 0x281   : > { %3036 = vst.msk [vmem:[#allocation2 + $0x7c] sm:$0xf] %vm3004_vm14, %v2971_v22  ;;  %v2969_v23 = vpop.permute.xlu0 %2968 }
 0x282   : > { %3035 = vst.msk [vmem:[#allocation2 + $0x78] sm:$0xf] %vm3004_vm14, %v2969_v23 }
 0x284   : > { %v3304_v24 = vpop.permute.xlu1 %3303 }
 0x285   : > { %3371 = vst.msk [vmem:[#allocation2 + $0x74] sm:$0xf] %vm3341_vm15, %v3304_v24  ;;  %v3302_v25 = vpop.permute.xlu0 %3301 }
 0x286   : > { %3370 = vst.msk [vmem:[#allocation2 + $0x70] sm:$0xf] %vm3341_vm15, %v3302_v25 }
 0x288   : > { %v3308_v26 = vpop.permute.xlu1 %3307 }
 0x289   : > { %3373 = vst.msk [vmem:[#allocation2 + $0x7c] sm:$0xf] %vm3341_vm15, %v3308_v26  ;;  %v3306_v28 = vpop.permute.xlu0 %3305 }
 0x28a   : > { %3372 = vst.msk [vmem:[#allocation2 + $0x78] sm:$0xf] %vm3341_vm15, %v3306_v28 }
 0x28d   : > { %v4642_v29 = vld [vmem:[#allocation2 + $0x70] sm:$0xff]  }
 0x28e   : > { %4580 = vmatprep.mubr.msk.bf16.mxu1 %vm3506_vm0, %v4642_v29 }
 0x291   : > { %v4643_v27 = vld [vmem:[#allocation2 + $0x78] sm:$0xff]  }
 0x292   : > { %4581 = vmatmul.mubr.msk.bf16.gmra.mxu1 %vm3506_vm0, %v4643_v27 }
 0x296   : > { %v4566_v30 = vpop.f32.mrf.mxu0 }
 0x297   : > { %v4509_v31 = vpack.c.bf16 %v4566_v30, %v4566_v30  ;;  %v3771_v42 = vmul.f32 %v4566_v30, %v4566_v30 }
 0x298   : > { %v3641_v32 = vpop.f32.mrf.mxu0 }
 0x299   : > { %3972 = vst.msk [vmem:[%s6104_s10 + $0x38] sm:$0xf] %vm3957_vm1, %v4509_v31  ;;  %v3731_v33 = vadd.f32 %v3730_v18, %v3641_v32  ;;  %v3769_v34 = vmul.f32 %v3641_v32, %v3641_v32  ;;  %v4507_v35 = vpack.c.bf16 %v3641_v32, %v3641_v32 }
 0x29a   : > { %v4567_v36 = vpop.f32.mrf.mxu0 }
 0x29b   : > { %v3800_v37 = vadd.f32 %v3799_v20, %v3769_v34  ;;  %3970 = vst.msk [vmem:[%s6104_s10 + $0x30] sm:$0xf] %vm3957_vm1, %v4507_v35  ;;  %v4510_v38 = vpack.c.bf16 %v4567_v36, %v4567_v36  ;;  %v3772_v45 = vmul.f32 %v4567_v36, %v4567_v36 }
 0x29c   : > { %v3644_v62 = vpop.f32.mrf.mxu0 }
 0x29d   : > { %3973 = vst.msk [vmem:[%s6104_s10 + $0x3c] sm:$0xf] %vm3957_vm1, %v4510_v38  ;;  %v3732_v39 = vadd.f32 %v3731_v33, %v3644_v62  ;;  %v3770_v40 = vmul.f32 %v3644_v62, %v3644_v62  ;;  %v4508_v41 = vpack.c.bf16 %v3644_v62, %v3644_v62 }
 0x29f   : > { %v3733_v44 = vadd.f32 %v4566_v30, %v3732_v39  ;;  %v3801_v43 = vadd.f32 %v3800_v37, %v3770_v40  ;;  %3971 = vst.msk [vmem:[%s6104_s10 + $0x34] sm:$0xf] %vm3957_vm1, %v4508_v41 }
 0x2a1   : > { %v3802_v46 = vadd.f32 %v3801_v43, %v3771_v42  ;;  %v3734_v47 = vadd.f32 %v4567_v36, %v3733_v44 }
 0x2a3   : > { %v3803_v48 = vadd.f32 %v3802_v46, %v3772_v45 }
 0x2c2   : > { %v4570_v49 = vpop.f32.mrf.mxu1 }
 0x2c3   : > { %v4513_v50 = vpack.c.bf16 %v4570_v49, %v4570_v49  ;;  %v3775_v63 = vmul.f32 %v4570_v49, %v4570_v49 }
 0x2c4   : > { %v3657_v51 = vpop.f32.mrf.mxu1 }
 0x2c5   : > { %3976 = vst.msk [vmem:[%s6104_s10 + $0x48] sm:$0xf] %vm3957_vm1, %v4513_v50  ;;  %v3735_v52 = vadd.f32 %v3734_v47, %v3657_v51  ;;  %v3773_v53 = vmul.f32 %v3657_v51, %v3657_v51  ;;  %v4511_v54 = vpack.c.bf16 %v3657_v51, %v3657_v51 }
 0x2c6   : > { %v4571_v55 = vpop.f32.mrf.mxu1 }
 0x2c7   : > { %v3804_v56 = vadd.f32 %v3803_v48, %v3773_v53  ;;  %3974 = vst.msk [vmem:[%s6104_s10 + $0x40] sm:$0xf] %vm3957_vm1, %v4511_v54  ;;  %v4514_v57 = vpack.c.bf16 %v4571_v55, %v4571_v55  ;;  %v3776_v2 = vmul.f32 %v4571_v55, %v4571_v55 }
 0x2c8   : > { %v3660_v58 = vpop.f32.mrf.mxu1 }
 0x2c9   : > { %3977 = vst.msk [vmem:[%s6104_s10 + $0x4c] sm:$0xf] %vm3957_vm1, %v4514_v57  ;;  %v3736_v59 = vadd.f32 %v3735_v52, %v3660_v58  ;;  %v3774_v60 = vmul.f32 %v3660_v58, %v3660_v58  ;;  %v4512_v61 = vpack.c.bf16 %v3660_v58, %v3660_v58 }
 0x2cb   : > { %v3737_v0 = vadd.f32 %v4570_v49, %v3736_v59  ;;  %v3805_v1 = vadd.f32 %v3804_v56, %v3774_v60  ;;  %3975 = vst.msk [vmem:[%s6104_s10 + $0x44] sm:$0xf] %vm3957_vm1, %v4512_v61 }
 0x2cd   : > { %v3806_v3 = vadd.f32 %v3805_v1, %v3775_v63  ;;  %v3738_v4 = vadd.f32 %v4571_v55, %v3737_v0 }
 0x2cf   : > { %v3807_v5 = vadd.f32 %v3806_v3, %v3776_v2 }
 0x2f2   : > { %v4574_v6 = vpop.f32.mrf.mxu1 }
 0x2f3   : > { %v4517_v7 = vpack.c.bf16 %v4574_v6, %v4574_v6  ;;  %v3779_v19 = vmul.f32 %v4574_v6, %v4574_v6 }
 0x2f4   : > { %v3673_v8 = vpop.f32.mrf.mxu1 }
 0x2f5   : > { %3980 = vst.msk [vmem:[%s6104_s10 + $0x58] sm:$0xf] %vm3957_vm1, %v4517_v7  ;;  %v3739_v9 = vadd.f32 %v3738_v4, %v3673_v8  ;;  %v3777_v10 = vmul.f32 %v3673_v8, %v3673_v8  ;;  %v4515_v11 = vpack.c.bf16 %v3673_v8, %v3673_v8 }
 0x2f6   : > { %v4575_v12 = vpop.f32.mrf.mxu1 }
 0x2f7   : > { %v3808_v13 = vadd.f32 %v3807_v5, %v3777_v10  ;;  %3978 = vst.msk [vmem:[%s6104_s10 + $0x50] sm:$0xf] %vm3957_vm1, %v4515_v11  ;;  %v4518_v14 = vpack.c.bf16 %v4575_v12, %v4575_v12  ;;  %v3780_v22 = vmul.f32 %v4575_v12, %v4575_v12 }
 0x2f8   : > { %v3676_v15 = vpop.f32.mrf.mxu1 }
 0x2f9   : > { %3981 = vst.msk [vmem:[%s6104_s10 + $0x5c] sm:$0xf] %vm3957_vm1, %v4518_v14  ;;  %v3740_v16 = vadd.f32 %v3739_v9, %v3676_v15  ;;  %v3778_v17 = vmul.f32 %v3676_v15, %v3676_v15  ;;  %v4516_v18 = vpack.c.bf16 %v3676_v15, %v3676_v15 }
 0x2fb   : > { %v3741_v20 = vadd.f32 %v4574_v6, %v3740_v16  ;;  %v3809_v21 = vadd.f32 %v3808_v13, %v3778_v17  ;;  %3979 = vst.msk [vmem:[%s6104_s10 + $0x54] sm:$0xf] %vm3957_vm1, %v4516_v18 }
 0x2fd   : > { %v3810_v23 = vadd.f32 %v3809_v21, %v3779_v19  ;;  %v3742_v24 = vadd.f32 %v4575_v12, %v3741_v20 }
 0x2ff   : > { %v3811_v25 = vadd.f32 %v3810_v23, %v3780_v22 }
 0x322   : > { %v4578_v26 = vpop.f32.mrf.mxu1 }
 0x323   : > { %v4521_v28 = vpack.c.bf16 %v4578_v26, %v4578_v26  ;;  %v3783_v39 = vmul.f32 %v4578_v26, %v4578_v26 }
 0x324   : > { %v3689_v29 = vpop.f32.mrf.mxu1 }
 0x325   : > { %3984 = vst.msk [vmem:[%s6104_s10 + $0x68] sm:$0xf] %vm3957_vm1, %v4521_v28  ;;  %v4519_v27 = vpack.c.bf16 %v3689_v29, %v3689_v29  ;;  %v3781_v34 = vmul.f32 %v3689_v29, %v3689_v29  ;;  %v3743_v35 = vadd.f32 %v3742_v24, %v3689_v29 }
 0x326   : > { %v4579_v30 = vpop.f32.mrf.mxu1 }
 0x327   : > { %3982 = vst.msk [vmem:[%s6104_s10 + $0x60] sm:$0xf] %vm3957_vm1, %v4519_v27  ;;  %v4522_v31 = vpack.c.bf16 %v4579_v30, %v4579_v30  ;;  %v3812_v37 = vadd.f32 %v3811_v25, %v3781_v34  ;;  %v3784_v45 = vmul.f32 %v4579_v30, %v4579_v30 }
 0x328   : > { %v3692_v32 = vpop.f32.mrf.mxu1 }
 0x329   : > { %3985 = vst.msk [vmem:[%s6104_s10 + $0x6c] sm:$0xf] %vm3957_vm1, %v4522_v31  ;;  %v4520_v33 = vpack.c.bf16 %v3692_v32, %v3692_v32  ;;  %v3782_v36 = vmul.f32 %v3692_v32, %v3692_v32  ;;  %v3744_v38 = vadd.f32 %v3743_v35, %v3692_v32 }
 0x32b   : > { %3983 = vst.msk [vmem:[%s6104_s10 + $0x64] sm:$0xf] %vm3957_vm1, %v4520_v33  ;;  %v3813_v62 = vadd.f32 %v3812_v37, %v3782_v36  ;;  %v3745_v40 = vadd.f32 %v4578_v26, %v3744_v38 }
 0x32d   : > { %v3814_v42 = vadd.f32 %v3813_v62, %v3783_v39  ;;  %v3746_v46 = vadd.f32 %v4579_v30, %v3745_v40 }
 0x32f   : > { %v3815_v51 = vadd.f32 %v3814_v42, %v3784_v45 }
 0x352   : > { %v4582_v41 = vpop.f32.mrf.mxu1 }
 0x353   : > { %v4525_v44 = vpack.c.bf16 %v4582_v41, %v4582_v41  ;;  %v3787_v58 = vmul.f32 %v4582_v41, %v4582_v41 }
 0x354   : > { %v3705_v43 = vpop.f32.mrf.mxu1 }
 0x355   : > { %3988 = vst.msk [vmem:[%s6104_s10 + $0x78] sm:$0xf] %vm3957_vm1, %v4525_v44  ;;  %v3785_v47 = vmul.f32 %v3705_v43, %v3705_v43  ;;  %v4523_v48 = vpack.c.bf16 %v3705_v43, %v3705_v43  ;;  %v3747_v50 = vadd.f32 %v3746_v46, %v3705_v43 }
 0x356   : > { %v4583_v49 = vpop.f32.mrf.mxu1 }
 0x357   : > { %3986 = vst.msk [vmem:[%s6104_s10 + $0x70] sm:$0xf] %vm3957_vm1, %v4523_v48  ;;  %v4526_v52 = vpack.c.bf16 %v4583_v49, %v4583_v49  ;;  %v3816_v54 = vadd.f32 %v3815_v51, %v3785_v47  ;;  %v3788_v61 = vmul.f32 %v4583_v49, %v4583_v49 }
 0x358   : > { %v3708_v53 = vpop.f32.mrf.mxu1 }
 0x359   : > { %3989 = vst.msk [vmem:[%s6104_s10 + $0x7c] sm:$0xf] %vm3957_vm1, %v4526_v52  ;;  %v3748_v55 = vadd.f32 %v3747_v50, %v3708_v53  ;;  %v3786_v56 = vmul.f32 %v3708_v53, %v3708_v53  ;;  %v4524_v57 = vpack.c.bf16 %v3708_v53, %v3708_v53 }
 0x35b   : > { %v3749_v59 = vadd.f32 %v4582_v41, %v3748_v55  ;;  %v3817_v60 = vadd.f32 %v3816_v54, %v3786_v56  ;;  %3987 = vst.msk [vmem:[%s6104_s10 + $0x74] sm:$0xf] %vm3957_vm1, %v4524_v57 }
 0x35d   : > { %v3750_v63 = vadd.f32 %v4583_v49, %v3749_v59  ;;  %v3818_v0 = vadd.f32 %v3817_v60, %v3787_v58 }
 0x35f   : > { %v3751_v1 = vrot.slane %v3750_v63, 4  ;;  %v3819_v2 = vadd.f32 %v3818_v0, %v3788_v61 }
 0x361   : > { %v3752_v3 = vadd.f32 %v3751_v1, %v3750_v63  ;;  %v3820_v4 = vrot.slane %v3819_v2, 4 }
 0x363   : > { %v3753_v5 = vrot.slane %v3752_v3, 2  ;;  %v3821_v6 = vadd.f32 %v3820_v4, %v3819_v2 }
 0x365   : > { %v3754_v7 = vadd.f32 %v3753_v5, %v3752_v3  ;;  %v3822_v8 = vrot.slane %v3821_v6, 2 }
 0x367   : > { %v3755_v9 = vrot.slane %v3754_v7, 1  ;;  %v3823_v10 = vadd.f32 %v3822_v8, %v3821_v6 }
 0x369   : > { %v3824_v11 = vrot.slane %v3823_v10, 1  ;;  %v3756_v12 = vadd.f32 %v3755_v9, %v3754_v7 }
 0x36b   : > { %v3825_v13 = vadd.f32 %v3824_v11, %v3823_v10 }
 0x36d   : > { %v3827_v14 = vsel %vm3826_vm2, %v3756_v12, %v3825_v13 }
 0x36e   : > { %3828 = vst [vmem:[%s219_s18] sm:$0x3] %v3827_v14 }
 0x36f PF: > { %s14_s14 = sadd.s32 1, %s4666_s14   ;;  %s6251_s12 = smov %s4662_s13 }
 0x370   : > { %p11_p5 = scmp.ge.s32.totalorder %s14_s14, 4   ;;  %s6252_s13 = smov %s6254_s15 }
 0x372   :  { %13 = sbr.rel (!%p11_p5) target bundleno = 2 (0x2), region = 72 }

// kernel: conv_block_forward.6
= control target key start
LH: loop header
LB: loop body
LE: loop exit
PB: predicated region body
PF: predicated region fallthrough
CT: control target
= control target key end

     0   :  { %s4725_s12 = smov 0   ;;  %s4727_s13 = smov 0   ;;  %s6275_s0 = inlined_call_operand.vmem [shape: bf16[2,18,18,8], index: 0, kind: input, shape index: {}]   ;;  %s6276_s1 = inlined_call_operand.vmem [shape: bf16[72,128], index: 1, kind: input, shape index: {}]   ;;  %s6277_s2 = inlined_call_operand.vmem [shape: bf16[2,256,8], index: 2, kind: output, shape index: {0}]   ;;  %s6278_s3 = inlined_call_operand.vmem [shape: f32[2,1,2,128], index: 3, kind: output, shape index: {1}]  }
   0x1   :  { %s4729_s14 = smov 0  }
   0x2 LB: > { %s26_s15 = sadd.s32 1, %s4691_s13  ;;  %p4131_p0 = scmp.ge.s32.totalorder %s4695_s14, 1  ;;  %s4695_s14 = sphi %s4729_s14, %s14_s14   ;;  %s4691_s13 = sphi %s4727_s13, %s6284_s13   ;;  %s4687_s12 = sphi %s4725_s12, %s6283_s12  }
   0x3   : > { %p28_p1 = scmp.ge.s32.totalorder %s26_s15, 2  ;;  %p160_p2 = scmp.lt.s32.totalorder %s4695_s14, 3 }
   0x5   : > { %s6286_s15 = smov (%p28_p1, %s26_s15), 0  ;;  %p161_p3 = pnand %p4131_p0, %p160_p2 }
   0x6   : > { %p197_p4 = scmp.lt.s32.totalorder (!%p161_p3), %s4687_s12, 1  ;;  %s4697_s20 = smov (!%p161_p3), 8  }
   0x7   : > { %164 = sbr.rel (%p161_p3) target bundleno = 879 (0x36f), region = 28  ;;  %s4698_s21 = smov (!%p161_p3), 16  }
   0x8   : > { %s4699_s22 = smov (!%p161_p3), 24   ;;  %s4700_s23 = smov (!%p161_p3), 32  }
   0x9   : > { %s4701_s24 = smov (!%p161_p3), 40   ;;  %s4702_s29 = smov (!%p161_p3), 48  }
   0xa   : > { %s4703_s7 = smov (!%p161_p3), 56   ;;  %s4704_s10 = smov (!%p161_p3), 64  }
   0xc   : > { %s6288_s12 = smov (!%p197_p4, %s4687_s12), 1  ;;  %vm334_vm0 = vsmask.f32 3328  ;;  %vm335_vm1 = vsmask.f32 7440  ;;  %vm253_vm3 = vcmask 60416  }
   0xd   : > { %s4619_s16 = smul.u32 216, %s6288_s12  ;;  %vm4760_vm2 = vmor %vm334_vm0, %vm335_vm1  ;;  %vm946_vm4 = vcmask 1042432   ;;  %vm947_vm5 = vcmask 1046532   ;;  %vm817_vm7 = vcmask 126016   ;;  %vm1157_vm8 = vcmask 191616   ;;  %s4511_s11 = sshll.u32 %s6288_s12, 7 }
   0xe   : > { %vm4904_vm6 = vmor %vm946_vm4, %vm947_vm5  ;;  %vm3571_vm9 = vcmask 1043456   ;;  %vm1351_vm10 = vcmask 257216   ;;  %vm1912_vm11 = vcmask 322816   ;;  %vm2249_vm12 = vcmask 388416   ;;  %s6136_s18 = scalar_lea.vmem %s6277_s2, %s4511_s11 }
   0xf   : > { %s4749_s19 = scalar_lea.vmem %s6275_s0, %s4619_s16  ;;  %vm2443_vm13 = vcmask 454016   ;;  %vm3004_vm14 = vcmask 519616   ;;  %vm3341_vm15 = vcmask 585216   ;;  %vm3522_vm0 = vcmask 588800  }
  0x10   : > { %v289_v0 = vld [vmem:[%s4749_s19 + $0xc] sm:$0xf]  ;;  %v290_v1 = vld [vmem:[%s4749_s19 + $0x10] sm:$0xf]  ;;  %v286_v2 = vld [vmem:[%s4749_s19] sm:$0xf] }
  0x11   : > { %v362_v3 = vshrl.u32 %v289_v0, 16  ;;  %v365_v4 = vshll.u32 %v289_v0, 16  ;;  %v371_v5 = vshll.u32 %v290_v1, 16  ;;  %v375_v6 = vshrl.u32 %v290_v1, 16  ;;  %v287_v7 = vld [vmem:[%s4749_s19 + $0x4] sm:$0xf] }
  0x12   : > { %v338_v8 = vshrl.u32 %v286_v2, 16  ;;  %v341_v9 = vshll.u32 %v286_v2, 16  ;;  %v347_v10 = vshll.u32 %v287_v7, 16  ;;  %v351_v11 = vshrl.u32 %v287_v7, 16  ;;  %v291_v12 = vld [vmem:[%s4749_s19 + $0x14] sm:$0x1] }
  0x13   : > { %v364_v13 = vrot.slane %v362_v3, 4  ;;  %v367_v14 = vrot.slane %v365_v4, 5  ;;  %v373_v15 = vrot.slane %v371_v5, 5  ;;  %v377_v16 = vrot.slane %v375_v6, 4  ;;  %v288_v17 = vld [vmem:[%s4749_s19 + $0x8] sm:$0x1] }
  0x14   : > { %v340_v18 = vrot.slane %v338_v8, 4  ;;  %v343_v19 = vrot.slane %v341_v9, 5  ;;  %v349_v20 = vrot.slane %v347_v10, 5  ;;  %v353_v21 = vrot.slane %v351_v11, 4  ;;  %v293_v22 = vld [vmem:[%s4749_s19 + $0x1c] sm:$0xf] }
  0x15   : > { %v368_v23 = vor.u32 %v367_v14, %v364_v13  ;;  %v378_v24 = vor.u32 %v377_v16, %v373_v15  ;;  %v381_v25 = vshll.u32 %v291_v12, 16  ;;  %v357_v26 = vshll.u32 %v288_v17, 16  ;;  %v294_v30 = vld [vmem:[%s4749_s19 + $0x20] sm:$0x1]  ;;  %v292_v33 = vld [vmem:[%s4749_s19 + $0x18] sm:$0xf] }
  0x16   : > { %v344_v28 = vor.u32 %v343_v19, %v340_v18  ;;  %v354_v29 = vor.u32 %v353_v21, %v349_v20  ;;  %v395_v31 = vshll.u32 %v293_v22, 16  ;;  %v399_v32 = vshrl.u32 %v293_v22, 16  ;;  %v296_v42 = vld [vmem:[%s4749_s19 + $0x28] sm:$0xf]  ;;  %v297_v47 = vld [vmem:[%s4749_s19 + $0x2c] sm:$0x1] }
  0x17   : > { %v369_v34 = vrot.slane %v368_v23, 4  ;;  %v379_v35 = vrot.slane %v378_v24, 4  ;;  %v383_v36 = vrot.slane %v381_v25, 5  ;;  %v359_v37 = vrot.slane %v357_v26, 5  ;;  %v295_v48 = vld [vmem:[%s4749_s19 + $0x24] sm:$0xf] }
  0x18   : > { %v345_v38 = vrot.slane %v344_v28, 4  ;;  %v355_v39 = vrot.slane %v354_v29, 4  ;;  %v397_v40 = vrot.slane %v395_v31, 5  ;;  %v401_v41 = vrot.slane %v399_v32, 4  ;;  %v299_v53 = vld [vmem:[%s4749_s19 + $0x34] sm:$0xf] }
  0x19   : > { %v374_v43 = vsel %vm4760_vm2, %v369_v34, %v373_v15  ;;  %v384_v44 = vsel %vm4760_vm2, %v379_v35, %v383_v36  ;;  %v405_v45 = vshll.u32 %v294_v30, 16  ;;  %v386_v46 = vshrl.u32 %v292_v33, 16  ;;  %v300_v62 = vld [vmem:[%s4749_s19 + $0x38] sm:$0x1]  ;;  %v298_v3 = vld [vmem:[%s4749_s19 + $0x30] sm:$0xf] }
  0x1a   : > { %725 = vrot.lane.b32.xlu1 %v374_v43, %s4697_s20  ;;  %v350_v49 = vsel %vm4760_vm2, %v345_v38, %v349_v20  ;;  %v360_v50 = vsel %vm4760_vm2, %v355_v39, %v359_v37  ;;  %v402_v51 = vor.u32 %v401_v41, %v397_v40  ;;  %v389_v52 = vshll.u32 %v292_v33, 16  ;;  %v302_v8 = vld [vmem:[%s4749_s19 + $0x40] sm:$0xf]  ;;  %v303_v17 = vld [vmem:[%s4749_s19 + $0x44] sm:$0x1] }
  0x1b   : > { %721 = vrot.lane.b32.xlu0 %v350_v49, %s4697_s20  ;;  %v407_v54 = vrot.slane %v405_v45, 5  ;;  %v388_v55 = vrot.slane %v386_v46, 4  ;;  %v419_v56 = vshll.u32 %v296_v42, 16  ;;  %v423_v57 = vshrl.u32 %v296_v42, 16  ;;  %v301_v22 = vld [vmem:[%s4749_s19 + $0x3c] sm:$0xf] }
  0x1c   : > { %v403_v58 = vrot.slane %v402_v51, 4  ;;  %v391_v59 = vrot.slane %v389_v52, 5  ;;  %v429_v60 = vshll.u32 %v297_v47, 16  ;;  %v410_v61 = vshrl.u32 %v295_v48, 16  ;;  %v305_v28 = vld [vmem:[%s4749_s19 + $0x4c] sm:$0xf] }
  0x1d   : > { %v421_v63 = vrot.slane %v419_v56, 5  ;;  %v425_v0 = vrot.slane %v423_v57, 4  ;;  %v413_v1 = vshll.u32 %v295_v48, 16  ;;  %v443_v2 = vshll.u32 %v299_v53, 16  ;;  %v306_v37 = vld [vmem:[%s4749_s19 + $0x50] sm:$0x1] }
  0x1e   : > { %727 = vrot.lane.b32.xlu1 %v384_v44, %s4697_s20  ;;  %v408_v4 = vsel %vm4760_vm2, %v403_v58, %v407_v54  ;;  %v392_v5 = vor.u32 %v391_v59, %v388_v55  ;;  %v431_v6 = vrot.slane %v429_v60, 5  ;;  %v412_v7 = vrot.slane %v410_v61, 4  ;;  %v304_v42 = vld [vmem:[%s4749_s19 + $0x48] sm:$0xf]  ;;  %v308_v47 = vld [vmem:[%s4749_s19 + $0x58] sm:$0xf] }
  0x1f   : > { %723 = vrot.lane.b32.xlu0 %v360_v50, %s4697_s20  ;;  %v426_v9 = vor.u32 %v425_v0, %v421_v63  ;;  %v415_v10 = vrot.slane %v413_v1, 5  ;;  %v445_v11 = vrot.slane %v443_v2, 5  ;;  %v447_v12 = vshrl.u32 %v299_v53, 16  ;;  %v309_v56 = vld [vmem:[%s4749_s19 + $0x5c] sm:$0x1] }
  0x20   : > { %v393_v13 = vrot.slane %v392_v5, 4  ;;  %v453_v14 = vshll.u32 %v300_v62, 16  ;;  %v434_v15 = vshrl.u32 %v298_v3, 16  ;;  %v437_v16 = vshll.u32 %v298_v3, 16  ;;  %v307_v61 = vld [vmem:[%s4749_s19 + $0x54] sm:$0xf] }
  0x21   : > { %v427_v18 = vrot.slane %v426_v9, 4  ;;  %v416_v19 = vor.u32 %v415_v10, %v412_v7  ;;  %v449_v20 = vrot.slane %v447_v12, 4  ;;  %v467_v21 = vshll.u32 %v302_v8, 16 }
  0x22   : > { %731 = vrot.lane.b32.xlu1 %v408_v4, %s4697_s20  ;;  %v398_v23 = vsel %vm4760_vm2, %v393_v13, %v397_v40  ;;  %v455_v24 = vrot.slane %v453_v14, 5  ;;  %v436_v25 = vrot.slane %v434_v15, 4  ;;  %v439_v26 = vrot.slane %v437_v16, 5  ;;  %v312_v15 = vld [vmem:[%s4749_s19 + $0x68] sm:$0x1] }
  0x23   : > { %729 = vrot.lane.b32.xlu0 %v398_v23, %s4697_s20  ;;  %v432_v29 = vsel %vm4760_vm2, %v427_v18, %v431_v6  ;;  %v417_v30 = vrot.slane %v416_v19, 4  ;;  %v450_v31 = vor.u32 %v449_v20, %v445_v11  ;;  %v469_v32 = vrot.slane %v467_v21, 5  ;;  %v311_v6 = vld [vmem:[%s4749_s19 + $0x64] sm:$0xf]  ;;  %v310_v16 = vld [vmem:[%s4749_s19 + $0x60] sm:$0xf] }
  0x24   : > { %v440_v33 = vor.u32 %v439_v26, %v436_v25  ;;  %v471_v34 = vshrl.u32 %v302_v8, 16  ;;  %v477_v35 = vshll.u32 %v303_v17, 16  ;;  %v458_v36 = vshrl.u32 %v301_v22, 16  ;;  %v314_v25 = vld [vmem:[%s4749_s19 + $0x70] sm:$0xf] }
  0x25   : > { %v422_v38 = vsel %vm4760_vm2, %v417_v30, %v421_v63  ;;  %v451_v39 = vrot.slane %v450_v31, 4  ;;  %v461_v40 = vshll.u32 %v301_v22, 16  ;;  %v491_v41 = vshll.u32 %v305_v28, 16 }
  0x26   : > { %735 = vrot.lane.b32.xlu1 %v432_v29, %s4697_s20  ;;  %v441_v43 = vrot.slane %v440_v33, 4  ;;  %v473_v44 = vrot.slane %v471_v34, 4  ;;  %v479_v45 = vrot.slane %v477_v35, 5  ;;  %v460_v46 = vrot.slane %v458_v36, 4  ;;  %v315_v35 = vld [vmem:[%s4749_s19 + $0x74] sm:$0x1] }
  0x27   : > { %733 = vrot.lane.b32.xlu0 %v422_v38, %s4697_s20  ;;  %v456_v48 = vsel %vm4760_vm2, %v451_v39, %v455_v24  ;;  %v463_v49 = vrot.slane %v461_v40, 5  ;;  %v493_v50 = vrot.slane %v491_v41, 5  ;;  %v495_v51 = vshrl.u32 %v305_v28, 16  ;;  %v313_v36 = vld [vmem:[%s4749_s19 + $0x6c] sm:$0xf] }
  0x28   : > { %v446_v52 = vsel %vm4760_vm2, %v441_v43, %v445_v11  ;;  %v474_v53 = vor.u32 %v473_v44, %v469_v32  ;;  %v501_v54 = vshll.u32 %v306_v37, 16  ;;  %v482_v55 = vshrl.u32 %v304_v42, 16 }
  0x29   : > { %v464_v57 = vor.u32 %v463_v49, %v460_v46  ;;  %v497_v58 = vrot.slane %v495_v51, 4  ;;  %v485_v59 = vshll.u32 %v304_v42, 16  ;;  %v515_v60 = vshll.u32 %v308_v47, 16 }
  0x2a   : > { %739 = vrot.lane.b32.xlu1 %v456_v48, %s4697_s20  ;;  %v475_v62 = vrot.slane %v474_v53, 4  ;;  %v503_v63 = vrot.slane %v501_v54, 5  ;;  %v484_v0 = vrot.slane %v482_v55, 4  ;;  %v519_v1 = vshrl.u32 %v308_v47, 16  ;;  %v318_v54 = vld [vmem:[%s4749_s19 + $0x80] sm:$0x1] }
  0x2b   : > { %737 = vrot.lane.b32.xlu0 %v446_v52, %s4697_s20  ;;  %v465_v2 = vrot.slane %v464_v57, 4  ;;  %v498_v3 = vor.u32 %v497_v58, %v493_v50  ;;  %v487_v4 = vrot.slane %v485_v59, 5  ;;  %v517_v5 = vrot.slane %v515_v60, 5  ;;  %v316_v55 = vld [vmem:[%s4749_s19 + $0x78] sm:$0xf] }
  0x2c   : > { %v480_v7 = vsel %vm4760_vm2, %v475_v62, %v479_v45  ;;  %v521_v8 = vrot.slane %v519_v1, 4  ;;  %v525_v9 = vshll.u32 %v309_v56, 16  ;;  %v506_v10 = vshrl.u32 %v307_v61, 16  ;;  %v317_v45 = vld [vmem:[%s4749_s19 + $0x7c] sm:$0xf] }
  0x2d   : > { %v470_v11 = vsel %vm4760_vm2, %v465_v2, %v469_v32  ;;  %v499_v12 = vrot.slane %v498_v3, 4  ;;  %v488_v13 = vor.u32 %v487_v4, %v484_v0  ;;  %v509_v14 = vshll.u32 %v307_v61, 16  ;;  %v320_v0 = vld [vmem:[%s4749_s19 + $0x88] sm:$0xf] }
  0x2e   : > { %743 = vrot.lane.b32.xlu1 %v480_v7, %s4697_s20  ;;  %v522_v17 = vor.u32 %v521_v8, %v517_v5  ;;  %v527_v18 = vrot.slane %v525_v9, 5  ;;  %v508_v19 = vrot.slane %v506_v10, 4  ;;  %v539_v20 = vshll.u32 %v311_v6, 16  ;;  %v319_v10 = vld [vmem:[%s4749_s19 + $0x84] sm:$0xf] }
  0x2f   : > { %741 = vrot.lane.b32.xlu0 %v470_v11, %s4697_s20  ;;  %v504_v21 = vsel %vm4760_vm2, %v499_v12, %v503_v63  ;;  %v489_v22 = vrot.slane %v488_v13, 4  ;;  %v511_v23 = vrot.slane %v509_v14, 5  ;;  %v543_v24 = vshrl.u32 %v311_v6, 16 }
  0x30   : > { %v523_v26 = vrot.slane %v522_v17, 4  ;;  %v541_v28 = vrot.slane %v539_v20, 5  ;;  %v549_v29 = vshll.u32 %v312_v15, 16  ;;  %v530_v30 = vshrl.u32 %v310_v16, 16 }
  0x31   : > { %v494_v31 = vsel %vm4760_vm2, %v489_v22, %v493_v50  ;;  %v512_v32 = vor.u32 %v511_v23, %v508_v19  ;;  %v545_v33 = vrot.slane %v543_v24, 4  ;;  %v533_v34 = vshll.u32 %v310_v16, 16  ;;  %v323_v19 = vld [vmem:[%s4749_s19 + $0x94] sm:$0xf]  ;;  %v324_v24 = vld [vmem:[%s4749_s19 + $0x98] sm:$0x1] }
  0x32   : > { %747 = vrot.lane.b32.xlu1 %v504_v21, %s4697_s20  ;;  %v528_v37 = vsel %vm4760_vm2, %v523_v26, %v527_v18  ;;  %v551_v38 = vrot.slane %v549_v29, 5  ;;  %v532_v39 = vrot.slane %v530_v30, 4  ;;  %v563_v40 = vshll.u32 %v314_v25, 16  ;;  %v322_v30 = vld [vmem:[%s4749_s19 + $0x90] sm:$0xf] }
  0x33   : > { %745 = vrot.lane.b32.xlu0 %v494_v31, %s4697_s20  ;;  %v513_v41 = vrot.slane %v512_v32, 4  ;;  %v546_v42 = vor.u32 %v545_v33, %v541_v28  ;;  %v535_v43 = vrot.slane %v533_v34, 5  ;;  %v567_v44 = vshrl.u32 %v314_v25, 16 }
  0x34   : > { %v565_v46 = vrot.slane %v563_v40, 5  ;;  %v573_v47 = vshll.u32 %v315_v35, 16  ;;  %v554_v48 = vshrl.u32 %v313_v36, 16  ;;  %v557_v49 = vshll.u32 %v313_v36, 16 }
  0x35   : > { %v518_v50 = vsel %vm4760_vm2, %v513_v41, %v517_v5  ;;  %v547_v51 = vrot.slane %v546_v42, 4  ;;  %v536_v52 = vor.u32 %v535_v43, %v532_v39  ;;  %v569_v53 = vrot.slane %v567_v44, 4  ;;  %v321_v5 = vld [vmem:[%s4749_s19 + $0x8c] sm:$0x1]  ;;  %v326_v39 = vld [vmem:[%s4749_s19 + $0xa0] sm:$0xf] }
  0x36   : > { %751 = vrot.lane.b32.xlu1 %v528_v37, %s4697_s20  ;;  %v575_v56 = vrot.slane %v573_v47, 5  ;;  %v556_v57 = vrot.slane %v554_v48, 4  ;;  %v559_v58 = vrot.slane %v557_v49, 5  ;;  %v587_v59 = vshll.u32 %v317_v45, 16  ;;  %v327_v48 = vld [vmem:[%s4749_s19 + $0xa4] sm:$0x1] }
  0x37   : > { %749 = vrot.lane.b32.xlu0 %v518_v50, %s4697_s20  ;;  %v552_v60 = vsel %vm4760_vm2, %v547_v51, %v551_v38  ;;  %v537_v61 = vrot.slane %v536_v52, 4  ;;  %v570_v62 = vor.u32 %v569_v53, %v565_v46  ;;  %v591_v63 = vshrl.u32 %v317_v45, 16  ;;  %v325_v49 = vld [vmem:[%s4749_s19 + $0x9c] sm:$0xf] }
  0x38   : > { %v560_v1 = vor.u32 %v559_v58, %v556_v57  ;;  %v589_v2 = vrot.slane %v587_v59, 5  ;;  %v597_v3 = vshll.u32 %v318_v54, 16  ;;  %v578_v4 = vshrl.u32 %v316_v55, 16  ;;  %v329_v58 = vld [vmem:[%s4749_s19 + $0xac] sm:$0xf] }
  0x39   : > { %v542_v6 = vsel %vm4760_vm2, %v537_v61, %v541_v28  ;;  %v571_v7 = vrot.slane %v570_v62, 4  ;;  %v593_v8 = vrot.slane %v591_v63, 4  ;;  %v581_v9 = vshll.u32 %v316_v55, 16 }
  0x3a   : > { %755 = vrot.lane.b32.xlu1 %v552_v60, %s4697_s20  ;;  %v561_v11 = vrot.slane %v560_v1, 4  ;;  %v599_v12 = vrot.slane %v597_v3, 5  ;;  %v580_v13 = vrot.slane %v578_v4, 4  ;;  %v611_v14 = vshll.u32 %v320_v0, 16  ;;  %v330_v3 = vld [vmem:[%s4749_s19 + $0xb0] sm:$0x1] }
  0x3b   : > { %753 = vrot.lane.b32.xlu0 %v542_v6, %s4697_s20  ;;  %v576_v15 = vsel %vm4760_vm2, %v571_v7, %v575_v56  ;;  %v594_v16 = vor.u32 %v593_v8, %v589_v2  ;;  %v583_v17 = vrot.slane %v581_v9, 5  ;;  %v615_v18 = vshrl.u32 %v320_v0, 16  ;;  %v328_v4 = vld [vmem:[%s4749_s19 + $0xa8] sm:$0xf] }
  0x3c   : > { %v566_v20 = vsel %vm4760_vm2, %v561_v11, %v565_v46  ;;  %v613_v21 = vrot.slane %v611_v14, 5  ;;  %v621_v22 = vshll.u32 %v321_v5, 16  ;;  %v602_v23 = vshrl.u32 %v319_v10, 16 }
  0x3d   : > { %v595_v25 = vrot.slane %v594_v16, 4  ;;  %v584_v26 = vor.u32 %v583_v17, %v580_v13  ;;  %v617_v28 = vrot.slane %v615_v18, 4  ;;  %v605_v29 = vshll.u32 %v319_v10, 16  ;;  %v332_v13 = vld [vmem:[%s4749_s19 + $0xb8] sm:$0xf] }
  0x3e   : > { %759 = vrot.lane.b32.xlu1 %v576_v15, %s4697_s20  ;;  %v623_v31 = vrot.slane %v621_v22, 5  ;;  %v604_v32 = vrot.slane %v602_v23, 4  ;;  %v635_v33 = vshll.u32 %v323_v19, 16  ;;  %v639_v34 = vshrl.u32 %v323_v19, 16  ;;  %v333_v22 = vld [vmem:[%s4749_s19 + $0xbc] sm:$0x1] }
  0x3f   : > { %757 = vrot.lane.b32.xlu0 %v566_v20, %s4697_s20  ;;  %v600_v35 = vsel %vm4760_vm2, %v595_v25, %v599_v12  ;;  %v585_v36 = vrot.slane %v584_v26, 4  ;;  %v618_v37 = vor.u32 %v617_v28, %v613_v21  ;;  %v607_v38 = vrot.slane %v605_v29, 5  ;;  %v331_v23 = vld [vmem:[%s4749_s19 + $0xb4] sm:$0xf] }
  0x40   : > { %v637_v40 = vrot.slane %v635_v33, 5  ;;  %v641_v41 = vrot.slane %v639_v34, 4  ;;  %v645_v42 = vshll.u32 %v324_v24, 16  ;;  %v626_v43 = vshrl.u32 %v322_v30, 16 }
  0x41   : > { %v590_v44 = vsel %vm4760_vm2, %v585_v36, %v589_v2  ;;  %v619_v45 = vrot.slane %v618_v37, 4  ;;  %v608_v46 = vor.u32 %v607_v38, %v604_v32  ;;  %v629_v47 = vshll.u32 %v322_v30, 16  ;;  %v851_v37 = vld [vmem:[%s4749_s19 + $0x4] sm:$0xf] }
  0x42   : > { %763 = vrot.lane.b32.xlu1 %v600_v35, %s4697_s20  ;;  %v642_v50 = vor.u32 %v641_v41, %v637_v40  ;;  %v647_v51 = vrot.slane %v645_v42, 5  ;;  %v628_v52 = vrot.slane %v626_v43, 4  ;;  %v659_v53 = vshll.u32 %v326_v39, 16 }
  0x43   : > { %761 = vrot.lane.b32.xlu0 %v590_v44, %s4697_s20  ;;  %v624_v54 = vsel %vm4760_vm2, %v619_v45, %v623_v31  ;;  %v609_v55 = vrot.slane %v608_v46, 4  ;;  %v631_v56 = vrot.slane %v629_v47, 5  ;;  %v663_v57 = vshrl.u32 %v326_v39, 16 }
  0x44   : > { %v643_v59 = vrot.slane %v642_v50, 4  ;;  %v661_v60 = vrot.slane %v659_v53, 5  ;;  %v669_v61 = vshll.u32 %v327_v48, 16  ;;  %v650_v62 = vshrl.u32 %v325_v49, 16  ;;  %v852_v48 = vld [vmem:[%s4749_s19 + $0x8] sm:$0x1] }
  0x45   : > { %v614_v63 = vsel %vm4760_vm2, %v609_v55, %v613_v21  ;;  %v632_v0 = vor.u32 %v631_v56, %v628_v52  ;;  %v665_v1 = vrot.slane %v663_v57, 4  ;;  %v653_v2 = vshll.u32 %v325_v49, 16  ;;  %v223_v56 = vld [vmem:[%s4749_s19 + $0xc] sm:$0xf] }
  0x46   : > { %767 = vrot.lane.b32.xlu1 %v624_v54, %s4697_s20  ;;  %v648_v5 = vsel %vm4760_vm2, %v643_v59, %v647_v51  ;;  %v671_v6 = vrot.slane %v669_v61, 5  ;;  %v652_v7 = vrot.slane %v650_v62, 4  ;;  %v683_v8 = vshll.u32 %v329_v58, 16  ;;  %v854_v51 = vld [vmem:[%s4749_s19 + $0x10] sm:$0xf] }
  0x47   : > { %765 = vrot.lane.b32.xlu0 %v614_v63, %s4697_s20  ;;  %v633_v9 = vrot.slane %v632_v0, 4  ;;  %v666_v10 = vor.u32 %v665_v1, %v661_v60  ;;  %v655_v11 = vrot.slane %v653_v2, 5  ;;  %v687_v12 = vshrl.u32 %v329_v58, 16  ;;  %v850_v54 = vld [vmem:[%s4749_s19] sm:$0xe] }
  0x48   : > { %v685_v14 = vrot.slane %v683_v8, 5  ;;  %v693_v15 = vshll.u32 %v330_v3, 16  ;;  %v674_v16 = vshrl.u32 %v328_v4, 16  ;;  %v677_v17 = vshll.u32 %v328_v4, 16  ;;  %256 = vst.msk [vmem:[#allocation2 + $0x8] sm:$0xf] %vm253_vm3, %v223_v56 }
  0x49   : > { %v638_v18 = vsel %vm4760_vm2, %v633_v9, %v637_v40  ;;  %v667_v19 = vrot.slane %v666_v10, 4  ;;  %v656_v20 = vor.u32 %v655_v11, %v652_v7  ;;  %v689_v21 = vrot.slane %v687_v12, 4  ;;  %v221_v61 = vld [vmem:[%s4749_s19] sm:$0xf]  ;;  %v855_v0 = vld [vmem:[%s4749_s19 + $0x14] sm:$0x1] }
  0x4a   : > { %771 = vrot.lane.b32.xlu1 %v648_v5, %s4697_s20  ;;  %v695_v24 = vrot.slane %v693_v15, 5  ;;  %v676_v25 = vrot.slane %v674_v16, 4  ;;  %v679_v26 = vrot.slane %v677_v17, 5  ;;  %v707_v28 = vshll.u32 %v332_v13, 16  ;;  %v857_v1 = vld [vmem:[%s4749_s19 + $0x1c] sm:$0xf] }
  0x4b   : > { %769 = vrot.lane.b32.xlu0 %v638_v18, %s4697_s20  ;;  %v672_v29 = vsel %vm4760_vm2, %v667_v19, %v671_v6  ;;  %v657_v30 = vrot.slane %v656_v20, 4  ;;  %v690_v31 = vor.u32 %v689_v21, %v685_v14  ;;  %v711_v32 = vshrl.u32 %v332_v13, 16  ;;  %254 = vst.msk [vmem:[#allocation2] sm:$0xf] %vm253_vm3, %v221_v61  ;;  %v853_v3 = vld [vmem:[%s4749_s19 + $0xc] sm:$0xe] }
  0x4c   : > { %v680_v33 = vor.u32 %v679_v26, %v676_v25  ;;  %v709_v34 = vrot.slane %v707_v28, 5  ;;  %v717_v35 = vshll.u32 %v333_v22, 16  ;;  %v698_v36 = vshrl.u32 %v331_v23, 16  ;;  %v224_v4 = vld [vmem:[%s4749_s19 + $0x10] sm:$0xf] }
  0x4d   : > { %v662_v38 = vsel %vm4760_vm2, %v657_v30, %v661_v60  ;;  %v691_v39 = vrot.slane %v690_v31, 4  ;;  %v713_v40 = vrot.slane %v711_v32, 4  ;;  %v701_v41 = vshll.u32 %v331_v23, 16  ;;  %v222_v5 = vld [vmem:[%s4749_s19 + $0x4] sm:$0xf] }
  0x4e   : > { %775 = vrot.lane.b32.xlu1 %v672_v29, %s4697_s20  ;;  %v681_v42 = vrot.slane %v680_v33, 4  ;;  %v719_v43 = vrot.slane %v717_v35, 5  ;;  %v700_v44 = vrot.slane %v698_v36, 4  ;;  %v951_v49 = vrot.slane %v851_v37, 5  ;;  %257 = vst.msk [vmem:[#allocation2 + $0xc] sm:$0xf] %vm253_vm3, %v224_v4 }
  0x4f   : > { %773 = vrot.lane.b32.xlu0 %v662_v38, %s4697_s20  ;;  %v696_v45 = vsel %vm4760_vm2, %v691_v39, %v695_v24  ;;  %v714_v46 = vor.u32 %v713_v40, %v709_v34  ;;  %v703_v47 = vrot.slane %v701_v41, 5  ;;  %v954_v55 = vrot.slane %v852_v48, 5  ;;  %255 = vst.msk [vmem:[#allocation2 + $0x4] sm:$0xf] %vm253_vm3, %v222_v5  ;;  %v858_v12 = vld [vmem:[%s4749_s19 + $0x20] sm:$0x1] }
  0x50   : > { %v686_v50 = vsel %vm4760_vm2, %v681_v42, %v685_v14  ;;  %v953_v59 = vrot.slane %v951_v49, 4  ;;  %v958_v60 = vrot.slane %v854_v51, 5  ;;  %v4136_v63 = vrot.slane %v850_v54, 9  ;;  %v860_v13 = vld [vmem:[%s4749_s19 + $0x28] sm:$0xf] }
  0x51   : > { %v715_v52 = vrot.slane %v714_v46, 4  ;;  %v704_v53 = vor.u32 %v703_v47, %v700_v44  ;;  %v961_v8 = vrot.slane %v855_v0, 5  ;;  %v965_v9 = vrot.slane %v857_v1, 5  ;;  %v856_v14 = vld [vmem:[%s4749_s19 + $0x18] sm:$0xe] }
  0x52   : > { %779 = vrot.lane.b32.xlu1 %v696_v45, %s4697_s20  ;;  %v955_v6 = vsel %vm4904_vm6, %v953_v59, %v954_v55  ;;  %v960_v7 = vrot.slane %v958_v60, 4  ;;  %v952_v10 = vsel %vm4904_vm6, %v4136_v63, %v951_v49  ;;  %v4137_v11 = vrot.slane %v853_v3, 9  ;;  %v226_v15 = vld [vmem:[%s4749_s19 + $0x1c] sm:$0xf]  ;;  %v225_v16 = vld [vmem:[%s4749_s19 + $0x18] sm:$0xf] }
  0x53   : > { %777 = vrot.lane.b32.xlu0 %v686_v50, %s4697_s20  ;;  %v720_v57 = vsel %vm4760_vm2, %v715_v52, %v719_v43  ;;  %v705_v58 = vrot.slane %v704_v53, 4  ;;  %259 = vst.msk [vmem:[#allocation2 + $0x14] sm:$0xf] %vm253_vm3, %v226_v15  ;;  %v967_v18 = vrot.slane %v965_v9, 4  ;;  %v968_v19 = vrot.slane %v858_v12, 5 }
  0x54   : > { %v962_v17 = vsel %vm4904_vm6, %v960_v7, %v961_v8  ;;  %v972_v20 = vrot.slane %v860_v13, 5  ;;  %258 = vst.msk [vmem:[#allocation2 + $0x10] sm:$0xf] %vm253_vm3, %v225_v16  ;;  %v959_v21 = vsel %vm4904_vm6, %v4137_v11, %v958_v60  ;;  %v4138_v22 = vrot.slane %v856_v14, 9  ;;  %v861_v23 = vld [vmem:[%s4749_s19 + $0x2c] sm:$0x1] }
  0x55   : > { %v710_v2 = vsel %vm4760_vm2, %v705_v58, %v709_v34  ;;  %v863_v24 = vld [vmem:[%s4749_s19 + $0x34] sm:$0xf]  ;;  %v859_v25 = vld [vmem:[%s4749_s19 + $0x24] sm:$0xe]  ;;  %v228_v26 = vld [vmem:[%s4749_s19 + $0x28] sm:$0xf]  ;;  %v969_v29 = vsel %vm4904_vm6, %v967_v18, %v968_v19 }
  0x56   : > { %783 = vrot.lane.b32.xlu1 %v720_v57, %s4697_s20  ;;  %261 = vst.msk [vmem:[#allocation2 + $0x1c] sm:$0xf] %vm253_vm3, %v228_v26  ;;  %v227_v28 = vld [vmem:[%s4749_s19 + $0x24] sm:$0xf]  ;;  %v974_v30 = vrot.slane %v972_v20, 4  ;;  %v975_v31 = vrot.slane %v861_v23, 5  ;;  %v966_v34 = vsel %vm4904_vm6, %v4138_v22, %v965_v9 }
  0x57   : > { %781 = vrot.lane.b32.xlu0 %v710_v2, %s4697_s20  ;;  %v864_v32 = vld [vmem:[%s4749_s19 + $0x38] sm:$0x1]  ;;  %v979_v33 = vrot.slane %v863_v24, 5  ;;  %260 = vst.msk [vmem:[#allocation2 + $0x18] sm:$0xf] %vm253_vm3, %v227_v28  ;;  %v4139_v35 = vrot.slane %v859_v25, 9 }
  0x58   : > { %v866_v36 = vld [vmem:[%s4749_s19 + $0x40] sm:$0xf]  ;;  %v230_v37 = vld [vmem:[%s4749_s19 + $0x34] sm:$0xf]  ;;  %v862_v38 = vld [vmem:[%s4749_s19 + $0x30] sm:$0xe]  ;;  %v976_v41 = vsel %vm4904_vm6, %v974_v30, %v975_v31 }
  0x59   : > { %263 = vst.msk [vmem:[#allocation2 + $0x24] sm:$0xf] %vm253_vm3, %v230_v37  ;;  %v229_v39 = vld [vmem:[%s4749_s19 + $0x30] sm:$0xf]  ;;  %v867_v40 = vld [vmem:[%s4749_s19 + $0x44] sm:$0x1]  ;;  %v973_v46 = vsel %vm4904_vm6, %v4139_v35, %v972_v20 }
  0x5a   : > { %1063 = vrot.lane.b32.xlu1 %v955_v6, %s4698_s21  ;;  %262 = vst.msk [vmem:[#allocation2 + $0x20] sm:$0xf] %vm253_vm3, %v229_v39  ;;  %v981_v42 = vrot.slane %v979_v33, 4  ;;  %v982_v43 = vrot.slane %v864_v32, 5  ;;  %v986_v44 = vrot.slane %v866_v36, 5  ;;  %v4140_v47 = vrot.slane %v862_v38, 9 }
  0x5b   : > { %1061 = vrot.lane.b32.xlu0 %v952_v10, %s4698_s21  ;;  %v232_v45 = vld [vmem:[%s4749_s19 + $0x40] sm:$0xf]  ;;  %v869_v48 = vld [vmem:[%s4749_s19 + $0x4c] sm:$0xf]  ;;  %v231_v49 = vld [vmem:[%s4749_s19 + $0x3c] sm:$0xf] }
  0x5c   : > { %265 = vst.msk [vmem:[#allocation2 + $0x2c] sm:$0xf] %vm253_vm3, %v232_v45  ;;  %v865_v50 = vld [vmem:[%s4749_s19 + $0x3c] sm:$0xe]  ;;  %264 = vst.msk [vmem:[#allocation2 + $0x28] sm:$0xf] %vm253_vm3, %v231_v49  ;;  %v983_v53 = vsel %vm4904_vm6, %v981_v42, %v982_v43  ;;  %v980_v58 = vsel %vm4904_vm6, %v4140_v47, %v979_v33 }
  0x5d   : > { %v870_v51 = vld [vmem:[%s4749_s19 + $0x50] sm:$0x1]  ;;  %v234_v52 = vld [vmem:[%s4749_s19 + $0x4c] sm:$0xf]  ;;  %v988_v54 = vrot.slane %v986_v44, 4  ;;  %v989_v55 = vrot.slane %v867_v40, 5 }
  0x5e   : > { %1067 = vrot.lane.b32.xlu1 %v962_v17, %s4698_s21  ;;  %v993_v56 = vrot.slane %v869_v48, 5  ;;  %267 = vst.msk [vmem:[#allocation2 + $0x34] sm:$0xf] %vm253_vm3, %v234_v52  ;;  %v233_v57 = vld [vmem:[%s4749_s19 + $0x48] sm:$0xf]  ;;  %v4141_v59 = vrot.slane %v865_v50, 9 }
  0x5f   : > { %1065 = vrot.lane.b32.xlu0 %v959_v21, %s4698_s21  ;;  %v872_v60 = vld [vmem:[%s4749_s19 + $0x58] sm:$0xf]  ;;  %266 = vst.msk [vmem:[#allocation2 + $0x30] sm:$0xf] %vm253_vm3, %v233_v57  ;;  %v868_v63 = vld [vmem:[%s4749_s19 + $0x48] sm:$0xe]  ;;  %v990_v5 = vsel %vm4904_vm6, %v988_v54, %v989_v55 }
  0x60   : > { %v236_v61 = vld [vmem:[%s4749_s19 + $0x58] sm:$0xf]  ;;  %v873_v0 = vld [vmem:[%s4749_s19 + $0x5c] sm:$0x1]  ;;  %v235_v1 = vld [vmem:[%s4749_s19 + $0x54] sm:$0xf]  ;;  %v987_v10 = vsel %vm4904_vm6, %v4141_v59, %v986_v44 }
  0x61   : > { %269 = vst.msk [vmem:[#allocation2 + $0x3c] sm:$0xf] %vm253_vm3, %v236_v61  ;;  %v996_v2 = vrot.slane %v870_v51, 5  ;;  %268 = vst.msk [vmem:[#allocation2 + $0x38] sm:$0xf] %vm253_vm3, %v235_v1  ;;  %v995_v6 = vrot.slane %v993_v56, 4 }
  0x62   : > { %1071 = vrot.lane.b32.xlu1 %v969_v29, %s4698_s21  ;;  %v238_v3 = vld [vmem:[%s4749_s19 + $0x64] sm:$0xf]  ;;  %v237_v4 = vld [vmem:[%s4749_s19 + $0x60] sm:$0xf]  ;;  %v1000_v7 = vrot.slane %v872_v60, 5  ;;  %v4142_v11 = vrot.slane %v868_v63, 9 }
  0x63   : > { %1069 = vrot.lane.b32.xlu0 %v966_v34, %s4698_s21  ;;  %271 = vst.msk [vmem:[#allocation2 + $0x44] sm:$0xf] %vm253_vm3, %v238_v3  ;;  %270 = vst.msk [vmem:[#allocation2 + $0x40] sm:$0xf] %vm253_vm3, %v237_v4  ;;  %v240_v8 = vld [vmem:[%s4749_s19 + $0x70] sm:$0xf]  ;;  %v997_v19 = vsel %vm4904_vm6, %v995_v6, %v996_v2 }
  0x64   : > { %v239_v9 = vld [vmem:[%s4749_s19 + $0x6c] sm:$0xf]  ;;  %v875_v12 = vld [vmem:[%s4749_s19 + $0x64] sm:$0xf]  ;;  %273 = vst.msk [vmem:[#allocation2 + $0x4c] sm:$0xf] %vm253_vm3, %v240_v8  ;;  %v994_v24 = vsel %vm4904_vm6, %v4142_v11, %v993_v56 }
  0x65   : > { %272 = vst.msk [vmem:[#allocation2 + $0x48] sm:$0xf] %vm253_vm3, %v239_v9  ;;  %v242_v13 = vld [vmem:[%s4749_s19 + $0x7c] sm:$0xf]  ;;  %v871_v14 = vld [vmem:[%s4749_s19 + $0x54] sm:$0xe] }
  0x66   : > { %1075 = vrot.lane.b32.xlu1 %v976_v41, %s4698_s21  ;;  %275 = vst.msk [vmem:[#allocation2 + $0x54] sm:$0xf] %vm253_vm3, %v242_v13  ;;  %v241_v15 = vld [vmem:[%s4749_s19 + $0x78] sm:$0xf]  ;;  %v1003_v16 = vrot.slane %v873_v0, 5  ;;  %v1002_v20 = vrot.slane %v1000_v7, 4 }
  0x67   : > { %1073 = vrot.lane.b32.xlu0 %v973_v46, %s4698_s21  ;;  %274 = vst.msk [vmem:[#allocation2 + $0x50] sm:$0xf] %vm253_vm3, %v241_v15  ;;  %v244_v17 = vld [vmem:[%s4749_s19 + $0x88] sm:$0xf]  ;;  %v243_v18 = vld [vmem:[%s4749_s19 + $0x84] sm:$0xf] }
  0x68   : > { %v1007_v21 = vrot.slane %v875_v12, 5  ;;  %277 = vst.msk [vmem:[#allocation2 + $0x5c] sm:$0xf] %vm253_vm3, %v244_v17  ;;  %276 = vst.msk [vmem:[#allocation2 + $0x58] sm:$0xf] %vm253_vm3, %v243_v18  ;;  %v4143_v25 = vrot.slane %v871_v14, 9  ;;  %v1004_v32 = vsel %vm4904_vm6, %v1002_v20, %v1003_v16 }
  0x69   : > { %v246_v22 = vld [vmem:[%s4749_s19 + $0x94] sm:$0xf]  ;;  %v245_v23 = vld [vmem:[%s4749_s19 + $0x90] sm:$0xf]  ;;  %v876_v26 = vld [vmem:[%s4749_s19 + $0x68] sm:$0x1] }
  0x6a   : > { %1079 = vrot.lane.b32.xlu1 %v983_v53, %s4698_s21  ;;  %v878_v28 = vld [vmem:[%s4749_s19 + $0x70] sm:$0xf]  ;;  %279 = vst.msk [vmem:[#allocation2 + $0x64] sm:$0xf] %vm253_vm3, %v246_v22  ;;  %278 = vst.msk [vmem:[#allocation2 + $0x60] sm:$0xf] %vm253_vm3, %v245_v23  ;;  %v1001_v36 = vsel %vm4904_vm6, %v4143_v25, %v1000_v7 }
  0x6b   : > { %1077 = vrot.lane.b32.xlu0 %v980_v58, %s4698_s21  ;;  %v874_v29 = vld [vmem:[%s4749_s19 + $0x60] sm:$0xe]  ;;  %v247_v31 = vld [vmem:[%s4749_s19 + $0x9c] sm:$0xf]  ;;  %v1009_v33 = vrot.slane %v1007_v21, 4  ;;  %v1010_v34 = vrot.slane %v876_v26, 5 }
  0x6c   : > { %v248_v30 = vld [vmem:[%s4749_s19 + $0xa0] sm:$0xf]  ;;  %v1014_v35 = vrot.slane %v878_v28, 5  ;;  %280 = vst.msk [vmem:[#allocation2 + $0x68] sm:$0xf] %vm253_vm3, %v247_v31  ;;  %v4144_v37 = vrot.slane %v874_v29, 9 }
  0x6d   : > { %281 = vst.msk [vmem:[#allocation2 + $0x6c] sm:$0xf] %vm253_vm3, %v248_v30  ;;  %v879_v38 = vld [vmem:[%s4749_s19 + $0x74] sm:$0x1]  ;;  %v881_v39 = vld [vmem:[%s4749_s19 + $0x7c] sm:$0xf]  ;;  %v1011_v43 = vsel %vm4904_vm6, %v1009_v33, %v1010_v34 }
  0x6e   : > { %1083 = vrot.lane.b32.xlu1 %v990_v5, %s4698_s21  ;;  %v877_v40 = vld [vmem:[%s4749_s19 + $0x6c] sm:$0xe]  ;;  %v249_v42 = vld [vmem:[%s4749_s19 + $0xa8] sm:$0xf]  ;;  %v1016_v44 = vrot.slane %v1014_v35, 4  ;;  %v1017_v45 = vrot.slane %v879_v38, 5  ;;  %v1008_v48 = vsel %vm4904_vm6, %v4144_v37, %v1007_v21 }
  0x6f   : > { %1081 = vrot.lane.b32.xlu0 %v987_v10, %s4698_s21  ;;  %v250_v41 = vld [vmem:[%s4749_s19 + $0xac] sm:$0xf]  ;;  %282 = vst.msk [vmem:[#allocation2 + $0x70] sm:$0xf] %vm253_vm3, %v249_v42  ;;  %v882_v46 = vld [vmem:[%s4749_s19 + $0x80] sm:$0x1] }
  0x70   : > { %283 = vst.msk [vmem:[#allocation2 + $0x74] sm:$0xf] %vm253_vm3, %v250_v41  ;;  %v1021_v47 = vrot.slane %v881_v39, 5  ;;  %v4145_v49 = vrot.slane %v877_v40, 9  ;;  %v884_v50 = vld [vmem:[%s4749_s19 + $0x88] sm:$0xf]  ;;  %v1018_v54 = vsel %vm4904_vm6, %v1016_v44, %v1017_v45 }
  0x71   : > { %v252_v51 = vld [vmem:[%s4749_s19 + $0xb8] sm:$0xf]  ;;  %v251_v53 = vld [vmem:[%s4749_s19 + $0xb4] sm:$0xf]  ;;  %v1024_v56 = vrot.slane %v882_v46, 5  ;;  %v1028_v57 = vrot.slane %v884_v50, 5 }
  0x72   : > { %1087 = vrot.lane.b32.xlu1 %v997_v19, %s4698_s21  ;;  %v880_v52 = vld [vmem:[%s4749_s19 + $0x78] sm:$0xe]  ;;  %285 = vst.msk [vmem:[#allocation2 + $0x7c] sm:$0xf] %vm253_vm3, %v252_v51  ;;  %284 = vst.msk [vmem:[#allocation2 + $0x78] sm:$0xf] %vm253_vm3, %v251_v53  ;;  %v1015_v58 = vsel %vm4904_vm6, %v4145_v49, %v1014_v35 }
  0x73   : > { %1085 = vrot.lane.b32.xlu0 %v994_v24, %s4698_s21  ;;  %v1023_v55 = vrot.slane %v1021_v47, 4  ;;  %v4146_v59 = vrot.slane %v880_v52, 9  ;;  %v885_v60 = vld [vmem:[%s4749_s19 + $0x8c] sm:$0x1]  ;;  %v887_v61 = vld [vmem:[%s4749_s19 + $0x94] sm:$0xf] }
  0x74   : > { %v883_v63 = vld [vmem:[%s4749_s19 + $0x84] sm:$0xe]  ;;  %v1030_v1 = vrot.slane %v1028_v57, 4  ;;  %v1031_v2 = vrot.slane %v885_v60, 5  ;;  %v1035_v3 = vrot.slane %v887_v61, 5  ;;  %vm3842_vm1 = vcmask 1040384  }
  0x75   : > { %v1025_v0 = vsel %vm4904_vm6, %v1023_v55, %v1024_v56  ;;  %v1022_v4 = vsel %vm4904_vm6, %v4146_v59, %v1021_v47  ;;  %v4147_v5 = vrot.slane %v883_v63, 9  ;;  %v888_v6 = vld [vmem:[%s4749_s19 + $0x98] sm:$0x1]  ;;  %v890_v7 = vld [vmem:[%s4749_s19 + $0xa0] sm:$0xf] }
  0x76   : > { %1091 = vrot.lane.b32.xlu1 %v1004_v32, %s4698_s21  ;;  %v886_v8 = vld [vmem:[%s4749_s19 + $0x90] sm:$0xe]  ;;  %v1032_v9 = vsel %vm4904_vm6, %v1030_v1, %v1031_v2  ;;  %v1037_v10 = vrot.slane %v1035_v3, 4  ;;  %v1038_v11 = vrot.slane %v888_v6, 5  ;;  %v1042_v12 = vrot.slane %v890_v7, 5 }
  0x77   : > { %1089 = vrot.lane.b32.xlu0 %v1001_v36, %s4698_s21  ;;  %v1029_v13 = vsel %vm4904_vm6, %v4147_v5, %v1028_v57  ;;  %v4148_v14 = vrot.slane %v886_v8, 9  ;;  %v891_v15 = vld [vmem:[%s4749_s19 + $0xa4] sm:$0x1]  ;;  %v893_v16 = vld [vmem:[%s4749_s19 + $0xac] sm:$0xf] }
  0x78   : > { %v889_v17 = vld [vmem:[%s4749_s19 + $0x9c] sm:$0xe]  ;;  %v1039_v18 = vsel %vm4904_vm6, %v1037_v10, %v1038_v11  ;;  %v1044_v19 = vrot.slane %v1042_v12, 4  ;;  %v1045_v20 = vrot.slane %v891_v15, 5  ;;  %v1049_v21 = vrot.slane %v893_v16, 5 }
  0x79   : > { %v1036_v22 = vsel %vm4904_vm6, %v4148_v14, %v1035_v3  ;;  %v4149_v23 = vrot.slane %v889_v17, 9  ;;  %v894_v24 = vld [vmem:[%s4749_s19 + $0xb0] sm:$0x1]  ;;  %v896_v25 = vld [vmem:[%s4749_s19 + $0xb8] sm:$0xf] }
  0x7a   : > { %1095 = vrot.lane.b32.xlu1 %v1011_v43, %s4698_s21  ;;  %v892_v26 = vld [vmem:[%s4749_s19 + $0xa8] sm:$0xe]  ;;  %v1046_v28 = vsel %vm4904_vm6, %v1044_v19, %v1045_v20  ;;  %v1051_v29 = vrot.slane %v1049_v21, 4  ;;  %v1052_v30 = vrot.slane %v894_v24, 5  ;;  %v1056_v31 = vrot.slane %v896_v25, 5 }
  0x7b   : > { %1093 = vrot.lane.b32.xlu0 %v1008_v48, %s4698_s21  ;;  %v1043_v33 = vsel %vm4904_vm6, %v4149_v23, %v1042_v12  ;;  %v4150_v34 = vrot.slane %v892_v26, 9  ;;  %v897_v35 = vld [vmem:[%s4749_s19 + $0xbc] sm:$0x1]  ;;  %v895_v37 = vld [vmem:[%s4749_s19 + $0xb4] sm:$0xe] }
  0x7c   : > { %v1053_v38 = vsel %vm4904_vm6, %v1051_v29, %v1052_v30  ;;  %v1058_v39 = vrot.slane %v1056_v31, 4  ;;  %v1059_v40 = vrot.slane %v897_v35, 5  ;;  %v4151_v43 = vrot.slane %v895_v37, 9  ;;  %v4153_v49 = vld [vmem:[%s4749_s19 + $0x10] sm:$0xf] }
  0x7d   : > { %v1050_v42 = vsel %vm4904_vm6, %v4150_v34, %v1049_v21  ;;  %v4152_v51 = vld [vmem:[%s4749_s19 + $0xc] sm:$0xf]  ;;  %v4155_v53 = vld [vmem:[%s4749_s19 + $0x1c] sm:$0xf]  ;;  %v4154_v55 = vld [vmem:[%s4749_s19 + $0x18] sm:$0xf] }
  0x7e   : > { %1099 = vrot.lane.b32.xlu1 %v1018_v54, %s4698_s21  ;;  %v1060_v45 = vsel %vm4904_vm6, %v1058_v39, %v1059_v40  ;;  %v1057_v47 = vsel %vm4904_vm6, %v4151_v43, %v1056_v31  ;;  %v4157_v57 = vld [vmem:[%s4749_s19 + $0x28] sm:$0xf]  ;;  %v4156_v59 = vld [vmem:[%s4749_s19 + $0x24] sm:$0xf]  ;;  %v4159_v61 = vld [vmem:[%s4749_s19 + $0x34] sm:$0xf] }
  0x7f   : > { %1097 = vrot.lane.b32.xlu0 %v1015_v58, %s4698_s21  ;;  %v4161_v2 = vld [vmem:[%s4749_s19 + $0x40] sm:$0xf]  ;;  %v4185_v5 = vld [vmem:[%s4749_s19 + $0x10] sm:$0xf]  ;;  %v4184_v7 = vld [vmem:[%s4749_s19 + $0xc] sm:$0xf] }
  0x80   : > { %v4163_v8 = vld [vmem:[%s4749_s19 + $0x4c] sm:$0xf]  ;;  %v1446_v10 = vshrl.u32 %v4185_v5, 16  ;;  %v4162_v12 = vld [vmem:[%s4749_s19 + $0x48] sm:$0xf]  ;;  %v1436_v14 = vshll.u32 %v4184_v7, 16 }
  0x81   : > { %v4188_v15 = vld [vmem:[%s4749_s19 + $0x1c] sm:$0xf]  ;;  %v4187_v17 = vld [vmem:[%s4749_s19 + $0x18] sm:$0xf]  ;;  %v4164_v19 = vld [vmem:[%s4749_s19 + $0x54] sm:$0xf] }
  0x82   : > { %1103 = vrot.lane.b32.xlu1 %v1025_v0, %s4698_s21  ;;  %v4158_v0 = vld [vmem:[%s4749_s19 + $0x30] sm:$0xf]  ;;  %v1448_v21 = vrot.slane %v1446_v10, 4  ;;  %v1470_v23 = vshrl.u32 %v4188_v15, 16  ;;  %v4186_v25 = vld [vmem:[%s4749_s19 + $0x14] sm:$0x1] }
  0x83   : > { %1101 = vrot.lane.b32.xlu0 %v1022_v4, %s4698_s21  ;;  %v4160_v4 = vld [vmem:[%s4749_s19 + $0x3c] sm:$0xf]  ;;  %v1457_v29 = vshrl.u32 %v4187_v17, 16  ;;  %v1460_v30 = vshll.u32 %v4187_v17, 16  ;;  %v1452_v34 = vshll.u32 %v4186_v25, 16 }
  0x84   : > { %v4189_v40 = vld [vmem:[%s4749_s19 + $0x20] sm:$0x1] }
  0x86   : > { %1107 = vrot.lane.b32.xlu1 %v1032_v9, %s4698_s21  ;;  %v1442_v9 = vshll.u32 %v4185_v5, 16 }
  0x87   : > { %1105 = vrot.lane.b32.xlu0 %v1029_v13, %s4698_s21  ;;  %v1433_v13 = vshrl.u32 %v4184_v7, 16  ;;  %v4237_v7 = vld [vmem:[%s4749_s19 + $0x20] sm:$0x1] }
  0x88   : > { %v1444_v20 = vrot.slane %v1442_v9, 5 }
  0x89   : > { %v1435_v26 = vrot.slane %v1433_v13, 4  ;;  %v4235_v13 = vld [vmem:[%s4749_s19 + $0x18] sm:$0xe] }
  0x8a   : > { %1111 = vrot.lane.b32.xlu1 %v1039_v18, %s4698_s21  ;;  %v4165_v18 = vld [vmem:[%s4749_s19 + $0x58] sm:$0xf] }
  0x8b   : > { %1109 = vrot.lane.b32.xlu0 %v1036_v22, %s4698_s21  ;;  %v1466_v22 = vshll.u32 %v4188_v15, 16 }
  0x8c   : > { %v726_v32 = vpop.permute.xlu1 %725 }
  0x8d   : > { %820 = vst.msk [vmem:[#allocation2 + $0x8] sm:$0xf] %vm817_vm7, %v726_v32  ;;  %v722_v36 = vpop.permute.xlu0 %721  ;;  %v4167_v32 = vld [vmem:[%s4749_s19 + $0x64] sm:$0xf]  ;;  %v1468_v35 = vrot.slane %v1466_v22, 5 }
  0x8e   : > { %818 = vst.msk [vmem:[#allocation2] sm:$0xf] %vm817_vm7, %v722_v36  ;;  %1115 = vrot.lane.b32.xlu1 %v1046_v28, %s4698_s21  ;;  %v1438_v28 = vrot.slane %v1436_v14, 5  ;;  %v1472_v36 = vrot.slane %v1470_v23, 4  ;;  %v4328_v14 = vld [vmem:[%s4749_s19 + $0x18] sm:$0xf] }
  0x8f   : > { %1113 = vrot.lane.b32.xlu0 %v1043_v33, %s4698_s21  ;;  %v1449_v33 = vor.u32 %v1448_v21, %v1444_v20  ;;  %v4281_v23 = vrot.slane %v4235_v13, 9  ;;  %v2528_v25 = vshll.u32 %v4328_v14, 16 }
  0x90   : > { %v728_v41 = vpop.permute.xlu1 %727  ;;  %v1439_v39 = vor.u32 %v1438_v28, %v1435_v26  ;;  %v4331_v26 = vld [vmem:[%s4749_s19 + $0x24] sm:$0xf] }
  0x91   : > { %821 = vst.msk [vmem:[#allocation2 + $0xc] sm:$0xf] %vm817_vm7, %v728_v41  ;;  %v724_v44 = vpop.permute.xlu0 %723  ;;  %v1459_v41 = vrot.slane %v1457_v29, 4 }
  0x92   : > { %819 = vst.msk [vmem:[#allocation2 + $0x4] sm:$0xf] %vm817_vm7, %v724_v44  ;;  %1119 = vrot.lane.b32.xlu1 %v1053_v38, %s4698_s21  ;;  %v4166_v38 = vld [vmem:[%s4749_s19 + $0x60] sm:$0xf]  ;;  %v4169_v44 = vld [vmem:[%s4749_s19 + $0x70] sm:$0xf] }
  0x93   : > { %1117 = vrot.lane.b32.xlu0 %v1050_v42, %s4698_s21  ;;  %v1462_v42 = vrot.slane %v1460_v30, 5 }
  0x94   : > { %v732_v46 = vpop.permute.xlu1 %731 }
  0x95   : > { %823 = vst.msk [vmem:[#allocation2 + $0x14] sm:$0xf] %vm817_vm7, %v732_v46  ;;  %v730_v48 = vpop.permute.xlu0 %729  ;;  %v1454_v46 = vrot.slane %v1452_v34, 5 }
  0x96   : > { %822 = vst.msk [vmem:[#allocation2 + $0x10] sm:$0xf] %vm817_vm7, %v730_v48  ;;  %1123 = vrot.lane.b32.xlu1 %v1060_v45, %s4698_s21  ;;  %v1450_v45 = vrot.slane %v1449_v33, 4  ;;  %v1476_v48 = vshll.u32 %v4189_v40, 16  ;;  %v2530_v40 = vrot.slane %v2528_v25, 5 }
  0x97   : > { %1121 = vrot.lane.b32.xlu0 %v1057_v47, %s4698_s21  ;;  %v1473_v47 = vor.u32 %v1472_v36, %v1468_v35  ;;  %v2552_v36 = vshll.u32 %v4331_v26, 16 }
  0x98   : > { %v736_v50 = vpop.permute.xlu1 %735 }
  0x99   : > { %825 = vst.msk [vmem:[#allocation2 + $0x1c] sm:$0xf] %vm817_vm7, %v736_v50  ;;  %v734_v52 = vpop.permute.xlu0 %733  ;;  %v4168_v50 = vld [vmem:[%s4749_s19 + $0x6c] sm:$0xf] }
  0x9a   : > { %824 = vst.msk [vmem:[#allocation2 + $0x18] sm:$0xf] %vm817_vm7, %v734_v52  ;;  %1257 = vrot.lane.b32.xlu1 %v4153_v49, %s4699_s22  ;;  %v1463_v52 = vor.u32 %v1462_v42, %v1459_v41  ;;  %v4652_v42 = vld [vmem:[%s6276_s1 + $0x20] ss:$0 sps:$4 sm:$0xff]  }
  0x9b   : > { %1255 = vrot.lane.b32.xlu0 %v4152_v51, %s4699_s22  ;;  %v1440_v51 = vrot.slane %v1439_v39, 4  ;;  %4617 = vmatprep.subr.msk.bf16.mxu0 %vm3571_vm9, %v4652_v42 }
  0x9c   : > { %v740_v54 = vpop.permute.xlu1 %739  ;;  %4618 = vmatprep.subr.msk.bf16.mxu1 %vm3571_vm9, %v4652_v42 }
  0x9d   : > { %827 = vst.msk [vmem:[#allocation2 + $0x24] sm:$0xf] %vm817_vm7, %v740_v54  ;;  %v738_v56 = vpop.permute.xlu0 %737 }
  0x9e   : > { %826 = vst.msk [vmem:[#allocation2 + $0x20] sm:$0xf] %vm817_vm7, %v738_v56  ;;  %1261 = vrot.lane.b32.xlu1 %v4155_v53, %s4699_s22  ;;  %v4233_v53 = vld [vmem:[%s4749_s19 + $0x10] sm:$0xf]  ;;  %v1474_v56 = vrot.slane %v1473_v47, 4 }
  0x9f   : > { %1259 = vrot.lane.b32.xlu0 %v4154_v55, %s4699_s22  ;;  %v1455_v55 = vsel %vm4760_vm2, %v1450_v45, %v1454_v46 }
  0xa0   : > { %v744_v58 = vpop.permute.xlu1 %743 }
  0xa1   : > { %829 = vst.msk [vmem:[#allocation2 + $0x2c] sm:$0xf] %vm817_vm7, %v744_v58  ;;  %v742_v60 = vpop.permute.xlu0 %741  ;;  %v2043_v58 = vrot.slane %v4233_v53, 5  ;;  %v4296_v53 = vld [vmem:[%s4749_s19 + $0x18] sm:$0xf] }
  0xa2   : > { %828 = vst.msk [vmem:[#allocation2 + $0x28] sm:$0xf] %vm817_vm7, %v742_v60  ;;  %1265 = vrot.lane.b32.xlu1 %v4157_v57, %s4699_s22  ;;  %v1478_v57 = vrot.slane %v1476_v48, 5  ;;  %v4333_v48 = vld [vmem:[%s4749_s19 + $0x2c] sm:$0x1] }
  0xa3   : > { %1263 = vrot.lane.b32.xlu0 %v4156_v59, %s4699_s22  ;;  %v4236_v59 = vld [vmem:[%s4749_s19 + $0x1c] sm:$0xf]  ;;  %v2045_v5 = vrot.slane %v2043_v58, 4 }
  0xa4   : > { %v748_v63 = vpop.permute.xlu1 %747 }
  0xa5   : > { %831 = vst.msk [vmem:[#allocation2 + $0x34] sm:$0xf] %vm817_vm7, %v748_v63  ;;  %v746_v1 = vpop.permute.xlu0 %745  ;;  %v1464_v63 = vrot.slane %v1463_v52, 4 }
  0xa6   : > { %830 = vst.msk [vmem:[#allocation2 + $0x30] sm:$0xf] %vm817_vm7, %v746_v1  ;;  %1269 = vrot.lane.b32.xlu1 %v4159_v61, %s4699_s22  ;;  %v1445_v61 = vsel %vm4760_vm2, %v1440_v51, %v1444_v20  ;;  %v4332_v20 = vld [vmem:[%s4749_s19 + $0x28] sm:$0xf]  ;;  %v3573_v51 = vsel %vm3571_vm9, %v4652_v42, 0 }
  0xa7   : > { %1267 = vrot.lane.b32.xlu0 %v4158_v0, %s4699_s22  ;;  %v4234_v0 = vld [vmem:[%s4749_s19 + $0x14] sm:$0x1]  ;;  %v1469_v9 = vsel %vm4760_vm2, %v1464_v63, %v1468_v35  ;;  %v2558_v30 = vshll.u32 %v4332_v20, 16  ;;  %v2549_v35 = vshrl.u32 %v4331_v26, 16  ;;  %4566 = vmatpush3.bf16.msra.mxu0 %v3573_v51  ;;  %v4193_v26 = vld [vmem:[%s4749_s19 + $0x30] sm:$0xf] }
  0xa8   : > { %v752_v3 = vpop.permute.xlu1 %751  ;;  %4612 = vmatpush3.bf16.msra.mxu1 %v3573_v51  ;;  %v1505_v42 = vshrl.u32 %v4193_v26, 16 }
  0xa9   : > { %833 = vst.msk [vmem:[#allocation2 + $0x3c] sm:$0xf] %vm817_vm7, %v752_v3  ;;  %v750_v6 = vpop.permute.xlu0 %749  ;;  %v2050_v3 = vrot.slane %v4236_v59, 5  ;;  %v5227_v45 = vrot.slane %v2558_v30, 5  ;;  %v2568_v59 = vshll.u32 %v4333_v48, 16 }
  0xaa   : > { %832 = vst.msk [vmem:[#allocation2 + $0x38] sm:$0xf] %vm817_vm7, %v750_v6  ;;  %1273 = vrot.lane.b32.xlu1 %v4161_v2, %s4699_s22  ;;  %v4232_v2 = vld [vmem:[%s4749_s19 + $0xc] sm:$0xe]  ;;  %v2046_v6 = vrot.slane %v4234_v0, 5 }
  0xab   : > { %1271 = vrot.lane.b32.xlu0 %v4160_v4, %s4699_s22  ;;  %v1479_v4 = vsel %vm4760_vm2, %v1474_v56, %v1478_v57  ;;  %v4280_v10 = vrot.slane %v4232_v2, 9  ;;  %v2052_v15 = vrot.slane %v2050_v3, 4  ;;  %v4653_v56 = vld [vmem:[%s6276_s1 + $0x18] sm:$0xff]   ;;  %v4299_v57 = vld [vmem:[%s4749_s19 + $0x28] sm:$0xf] }
  0xac   : > { %v756_v11 = vpop.permute.xlu1 %755  ;;  %v2047_v17 = vsel %vm4904_vm6, %v2045_v5, %v2046_v6  ;;  %v5243_v0 = vld [vmem:[%s4749_s19 + $0x1c] sm:$0xf]  ;;  %4567 = vmatprep.subr.bf16.mxu0 %v4653_v56  ;;  %4608 = vmatprep.subr.bf16.mxu1 %v4653_v56  ;;  %v4378_v6 = vld [vmem:[%s4749_s19 + $0x20] sm:$0x1] }
  0xad   : > { %835 = vst.msk [vmem:[#allocation2 + $0x44] sm:$0xf] %vm817_vm7, %v756_v11  ;;  %v754_v16 = vpop.permute.xlu0 %753  ;;  %v4329_v11 = vld [vmem:[%s4749_s19 + $0x1c] sm:$0xf]  ;;  %v2044_v22 = vsel %vm4904_vm6, %v4280_v10, %v2043_v58  ;;  %4568 = vmatpush3.bf16.msra.mxu0 %v4653_v56  ;;  %4613 = vmatpush3.bf16.msra.mxu1 %v4653_v56  ;;  %v2570_v10 = vrot.slane %v2568_v59, 5  ;;  %v1507_v59 = vrot.slane %v1505_v42, 4 }
  0xae   : > { %834 = vst.msk [vmem:[#allocation2 + $0x40] sm:$0xf] %vm817_vm7, %v754_v16  ;;  %1277 = vrot.lane.b32.xlu1 %v4163_v8, %s4699_s22  ;;  %v2053_v16 = vrot.slane %v4237_v7, 5  ;;  %v4190_v7 = vld [vmem:[%s4749_s19 + $0x24] sm:$0xf] }
  0xaf   : > { %1275 = vrot.lane.b32.xlu0 %v4162_v12, %s4699_s22 }
  0xb0   : > { %v760_v24 = vpop.permute.xlu1 %759  ;;  %v2054_v29 = vsel %vm4904_vm6, %v2052_v15, %v2053_v16  ;;  %v5261_v16 = vld [vmem:[%s4749_s19 + $0x28] sm:$0xf] }
  0xb1   : > { %837 = vst.msk [vmem:[#allocation2 + $0x4c] sm:$0xf] %vm817_vm7, %v760_v24  ;;  %v758_v31 = vpop.permute.xlu0 %757  ;;  %v2525_v24 = vshrl.u32 %v4328_v14, 16 }
  0xb2   : > { %836 = vst.msk [vmem:[#allocation2 + $0x48] sm:$0xf] %vm817_vm7, %v758_v31  ;;  %1281 = vrot.lane.b32.xlu1 %v4165_v18, %s4699_s22  ;;  %v2534_v18 = vshll.u32 %v4329_v11, 16  ;;  %v2562_v31 = vshrl.u32 %v4332_v20, 16  ;;  %v1481_v20 = vshrl.u32 %v4190_v7, 16 }
  0xb3   : > { %1279 = vrot.lane.b32.xlu0 %v4164_v19, %s4699_s22  ;;  %v2538_v19 = vshrl.u32 %v4329_v11, 16  ;;  %v2527_v39 = vrot.slane %v2525_v24, 4  ;;  %v3135_v11 = vrot.slane %v5243_v0, 5  ;;  %v3138_v24 = vrot.slane %v4378_v6, 5 }
  0xb4   : > { %v764_v37 = vpop.permute.xlu1 %763  ;;  %v5216_v33 = vrot.slane %v2534_v18, 5  ;;  %v2564_v46 = vrot.slane %v2562_v31, 4  ;;  %v3142_v31 = vrot.slane %v5261_v16, 5 }
  0xb5   : > { %839 = vst.msk [vmem:[#allocation2 + $0x54] sm:$0xf] %vm817_vm7, %v764_v37  ;;  %v762_v43 = vpop.permute.xlu0 %761  ;;  %v2540_v34 = vrot.slane %v2538_v19, 4  ;;  %v3137_v30 = vrot.slane %v3135_v11, 4 }
  0xb6   : > { %838 = vst.msk [vmem:[#allocation2 + $0x50] sm:$0xf] %vm817_vm7, %v762_v43  ;;  %1285 = vrot.lane.b32.xlu1 %v4167_v32, %s4699_s22  ;;  %v4330_v32 = vld [vmem:[%s4749_s19 + $0x20] sm:$0x1]  ;;  %v4297_v43 = vld [vmem:[%s4749_s19 + $0x1c] sm:$0xf]  ;;  %v2565_v58 = vor.u32 %v2564_v46, %v5227_v45 }
  0xb7   : > { %1283 = vrot.lane.b32.xlu0 %v4166_v38, %s4699_s22  ;;  %v2051_v38 = vsel %vm4904_vm6, %v4281_v23, %v2050_v3  ;;  %v2541_v47 = vor.u32 %v2540_v34, %v5216_v33  ;;  %v4298_v3 = vld [vmem:[%s4749_s19 + $0x24] sm:$0xf]  ;;  %v4381_v34 = vld [vmem:[%s4749_s19 + $0x2c] sm:$0x1] }
  0xb8   : > { %v768_v49 = vpop.permute.xlu1 %767  ;;  %v4379_v46 = vld [vmem:[%s4749_s19 + $0x24] sm:$0xe] }
  0xb9   : > { %841 = vst.msk [vmem:[#allocation2 + $0x5c] sm:$0xf] %vm817_vm7, %v768_v49  ;;  %v766_v54 = vpop.permute.xlu0 %765  ;;  %v2551_v49 = vrot.slane %v2549_v35, 4  ;;  %v4425_v56 = vrot.slane %v4379_v46, 9 }
  0xba   : > { %840 = vst.msk [vmem:[#allocation2 + $0x58] sm:$0xf] %vm817_vm7, %v766_v54  ;;  %1289 = vrot.lane.b32.xlu1 %v4169_v44, %s4699_s22  ;;  %v2544_v44 = vshll.u32 %v4330_v32, 16  ;;  %v2531_v54 = vor.u32 %v2530_v40, %v2527_v39  ;;  %v4192_v39 = vld [vmem:[%s4749_s19 + $0x2c] sm:$0x1]  ;;  %v1483_v40 = vrot.slane %v1481_v20, 4 }
  0xbb   : > { %1287 = vrot.lane.b32.xlu0 %v4168_v50, %s4699_s22  ;;  %v2554_v50 = vrot.slane %v2552_v36, 5  ;;  %v4238_v20 = vld [vmem:[%s4749_s19 + $0x24] sm:$0xe] }
  0xbc   : > { %v772_v60 = vpop.permute.xlu1 %771 }
  0xbd   : > { %843 = vst.msk [vmem:[#allocation2 + $0x64] sm:$0xf] %vm817_vm7, %v772_v60  ;;  %v770_v1 = vpop.permute.xlu0 %769  ;;  %v2542_v60 = vrot.slane %v2541_v47, 4  ;;  %v2555_v63 = vor.u32 %v2554_v50, %v2551_v49  ;;  %v3139_v47 = vsel %vm4904_vm6, %v3137_v30, %v3138_v24  ;;  %v3144_v49 = vrot.slane %v3142_v31, 4  ;;  %v4335_v30 = vld [vmem:[%s4749_s19 + $0x34] sm:$0xf] }
  0xbe   : > { %842 = vst.msk [vmem:[#allocation2 + $0x60] sm:$0xf] %vm817_vm7, %v770_v1  ;;  %1818 = vrot.lane.b32.xlu1 %v1455_v55, %s4700_s23  ;;  %v4191_v1 = vld [vmem:[%s4749_s19 + $0x28] sm:$0xf]  ;;  %v3145_v50 = vrot.slane %v4381_v34, 5 }
  0xbf   : > { %1816 = vrot.lane.b32.xlu0 %v1445_v61, %s4700_s23  ;;  %v2546_v61 = vrot.slane %v2544_v44, 5  ;;  %v1490_v13 = vshll.u32 %v4191_v1, 16  ;;  %v2556_v15 = vrot.slane %v2555_v63, 4 }
  0xc0   : > { %v776_v8 = vpop.permute.xlu1 %775  ;;  %v3146_v63 = vsel %vm4904_vm6, %v3144_v49, %v3145_v50 }
  0xc1   : > { %845 = vst.msk [vmem:[#allocation2 + $0x6c] sm:$0xf] %vm817_vm7, %v776_v8  ;;  %v774_v12 = vpop.permute.xlu0 %773  ;;  %v4654_v8 = vld [vmem:[%s6276_s1 + $0x10] sm:$0xff]   ;;  %v2547_v14 = vsel %vm4760_vm2, %v2542_v60, %v2546_v61  ;;  %v5277_v32 = vrot.slane %v1490_v13, 5 }
  0xc2   : > { %844 = vst.msk [vmem:[#allocation2 + $0x68] sm:$0xf] %vm817_vm7, %v774_v12  ;;  %1822 = vrot.lane.b32.xlu1 %v1479_v4, %s4700_s23  ;;  %v2532_v4 = vrot.slane %v2531_v54, 4  ;;  %v4376_v12 = vld [vmem:[%s4749_s19 + $0x18] sm:$0xe]  ;;  %4569 = vmatprep.subr.bf16.mxu0 %v4654_v8 }
  0xc3   : > { %1820 = vrot.lane.b32.xlu0 %v1469_v9, %s4700_s23  ;;  %v2566_v9 = vrot.slane %v2565_v58, 4  ;;  %4570 = vmatpush3.bf16.msra.mxu0 %v4654_v8  ;;  %v4424_v25 = vrot.slane %v4376_v12, 9  ;;  %v4195_v58 = vld [vmem:[%s4749_s19 + $0x38] sm:$0x1] }
  0xc4   : > { %v780_v21 = vpop.permute.xlu1 %779  ;;  %v2537_v19 = vsel %vm4760_vm2, %v2532_v4, %v5216_v33  ;;  %4609 = vmatprep.subr.bf16.mxu1 %v4654_v8  ;;  %v2561_v33 = vsel %vm4760_vm2, %v2556_v15, %v5227_v45  ;;  %v4656_v45 = vld [vmem:[%s6276_s1] sm:$0xff]  }
  0xc5   : > { %847 = vst.msk [vmem:[#allocation2 + $0x74] sm:$0xf] %vm817_vm7, %v780_v21  ;;  %v778_v28 = vpop.permute.xlu0 %777  ;;  %v1484_v21 = vshll.u32 %v4190_v7, 16  ;;  %4614 = vmatpush3.bf16.msra.mxu1 %v4654_v8  ;;  %v3136_v48 = vsel %vm4904_vm6, %v4424_v25, %v3135_v11  ;;  %v4239_v8 = vld [vmem:[%s4749_s19 + $0x28] sm:$0xf] }
  0xc6   : > { %846 = vst.msk [vmem:[#allocation2 + $0x70] sm:$0xf] %vm817_vm7, %v778_v28  ;;  %2155 = vrot.lane.b32.xlu1 %v2047_v17, %s4701_s24  ;;  %v1494_v17 = vshrl.u32 %v4191_v1, 16  ;;  %v4655_v28 = vld [vmem:[%s6276_s1 + $0x8] sm:$0xff]   ;;  %v2057_v13 = vrot.slane %v4239_v8, 5 }
  0xc7   : > { %2153 = vrot.lane.b32.xlu0 %v2044_v22, %s4701_s24  ;;  %v4194_v22 = vld [vmem:[%s4749_s19 + $0x34] sm:$0xf]  ;;  %4571 = vmatprep.subr.bf16.mxu0 %v4655_v28  ;;  %v4243_v25 = vld [vmem:[%s4749_s19 + $0x38] sm:$0x1] }
  0xc8   : > { %v784_v37 = vpop.permute.xlu1 %783  ;;  %v1496_v35 = vrot.slane %v1494_v17, 4  ;;  %v1514_v36 = vshll.u32 %v4194_v22, 16  ;;  %4572 = vmatpush3.bf16.msra.mxu0 %v4655_v28  ;;  %4610 = vmatprep.subr.bf16.mxu1 %v4655_v28 }
  0xc9   : > { %849 = vst.msk [vmem:[#allocation2 + $0x7c] sm:$0xf] %vm817_vm7, %v784_v37  ;;  %v782_v41 = vpop.permute.xlu0 %781  ;;  %v1518_v37 = vshrl.u32 %v4194_v22, 16  ;;  %4615 = vmatpush3.bf16.msra.mxu1 %v4655_v28  ;;  %4573 = vmatprep.subr.bf16.mxu0 %v4656_v45 }
  0xca   : > { %848 = vst.msk [vmem:[#allocation2 + $0x78] sm:$0xf] %vm817_vm7, %v782_v41  ;;  %2159 = vrot.lane.b32.xlu1 %v2054_v29, %s4701_s24  ;;  %v2571_v29 = vsel %vm4760_vm2, %v2566_v9, %v2570_v10  ;;  %v1486_v41 = vrot.slane %v1484_v21, 5  ;;  %v1497_v51 = vor.u32 %v1496_v35, %v5277_v32  ;;  %4611 = vmatprep.subr.bf16.mxu1 %v4656_v45  ;;  %v2067_v35 = vrot.slane %v4243_v25, 5 }
  0xcb   : > { %2157 = vrot.lane.b32.xlu0 %v2051_v38, %s4701_s24  ;;  %v1520_v54 = vrot.slane %v1518_v37, 4  ;;  %v2582_v37 = vshll.u32 %v4335_v30, 16 }
  0xcc   : > { %v1064_v52 = vpop.permute.xlu1 %1063  ;;  %4574 = vmatpush3.bf16.msra.mxu0 %v4656_v45  ;;  %v1498_v0 = vrot.slane %v1497_v51, 4 }
  0xcd   : > { %1159 = vst.msk [vmem:[#allocation2 + $0x4] sm:$0xf] %vm1157_vm8, %v1064_v52  ;;  %v1062_v55 = vpop.permute.xlu0 %1061  ;;  %v1500_v52 = vshll.u32 %v4192_v39, 16  ;;  %4616 = vmatpush3.bf16.msra.mxu1 %v4656_v45  ;;  %v4338_v39 = vld [vmem:[%s4749_s19 + $0x40] sm:$0xf] }
  0xce   : > { %1158 = vst.msk [vmem:[#allocation2] sm:$0xf] %vm1157_vm8, %v1062_v55  ;;  %2349 = vrot.lane.b32.xlu1 %v4297_v43, %s4702_s29  ;;  %v1508_v43 = vshll.u32 %v4193_v26, 16 }
  0xcf   : > { %2347 = vrot.lane.b32.xlu0 %v4296_v53, %s4702_s29  ;;  %v5298_v53 = vrot.slane %v1514_v36, 5  ;;  %v1502_v1 = vrot.slane %v1500_v52, 5  ;;  %v5352_v52 = vrot.slane %v2582_v37, 5  ;;  %v4200_v37 = vld [vmem:[%s4749_s19 + $0x4c] sm:$0xf] }
  0xd0   : > { %v1068_v2 = vpop.permute.xlu1 %1067  ;;  %v1510_v60 = vrot.slane %v1508_v43, 5 }
  0xd1   : > { %1161 = vst.msk [vmem:[#allocation2 + $0xc] sm:$0xf] %vm1157_vm8, %v1068_v2  ;;  %v1066_v5 = vpop.permute.xlu0 %1065  ;;  %v1521_v2 = vor.u32 %v1520_v54, %v5298_v53  ;;  %v1503_v10 = vsel %vm4760_vm2, %v1498_v0, %v1502_v1  ;;  %v4301_v1 = vld [vmem:[%s4749_s19 + $0x34] sm:$0xf] }
  0xd2   : > { %1160 = vst.msk [vmem:[#allocation2 + $0x8] sm:$0xf] %vm1157_vm8, %v1066_v5  ;;  %2353 = vrot.lane.b32.xlu1 %v4299_v57, %s4702_s29  ;;  %v1487_v57 = vor.u32 %v1486_v41, %v1483_v40  ;;  %v3143_v5 = vsel %vm4904_vm6, %v4425_v56, %v3142_v31  ;;  %v1511_v7 = vor.u32 %v1510_v60, %v1507_v59  ;;  %v4337_v40 = vld [vmem:[%s4749_s19 + $0x3c] sm:$0xf]  ;;  %v4336_v56 = vld [vmem:[%s4749_s19 + $0x38] sm:$0x1] }
  0xd3   : > { %2351 = vrot.lane.b32.xlu0 %v4298_v3, %s4702_s29  ;;  %v1524_v3 = vshll.u32 %v4195_v58, 16  ;;  %v1522_v11 = vrot.slane %v1521_v2, 4  ;;  %v2597_v49 = vshrl.u32 %v4337_v40, 16  ;;  %v2600_v50 = vshll.u32 %v4337_v40, 16 }
  0xd4   : > { %v1072_v18 = vpop.permute.xlu1 %1071  ;;  %v1488_v6 = vrot.slane %v1487_v57, 4  ;;  %v1512_v17 = vrot.slane %v1511_v7, 4 }
  0xd5   : > { %1163 = vst.msk [vmem:[#allocation2 + $0x14] sm:$0xf] %vm1157_vm8, %v1072_v18  ;;  %v1070_v23 = vpop.permute.xlu0 %1069  ;;  %v1526_v12 = vrot.slane %v1524_v3, 5  ;;  %v4240_v18 = vld [vmem:[%s4749_s19 + $0x2c] sm:$0x1]  ;;  %v2602_v0 = vrot.slane %v2600_v50, 5 }
  0xd6   : > { %1162 = vst.msk [vmem:[#allocation2 + $0x10] sm:$0xf] %vm1157_vm8, %v1070_v23  ;;  %2910 = vrot.lane.b32.xlu1 %v2547_v14, %s4703_s7  ;;  %v4242_v14 = vld [vmem:[%s4749_s19 + $0x34] sm:$0xf]  ;;  %v1493_v16 = vsel %vm4760_vm2, %v1488_v6, %v5277_v32  ;;  %v2059_v23 = vrot.slane %v2057_v13, 4  ;;  %v2060_v24 = vrot.slane %v4240_v18, 5  ;;  %v1517_v28 = vsel %vm4760_vm2, %v1512_v17, %v5298_v53 }
  0xd7   : > { %2908 = vrot.lane.b32.xlu0 %v2537_v19, %s4703_s7  ;;  %v2064_v21 = vrot.slane %v4242_v14, 5  ;;  %v1527_v22 = vsel %vm4760_vm2, %v1522_v11, %v1526_v12  ;;  %v4241_v32 = vld [vmem:[%s4749_s19 + $0x30] sm:$0xe]  ;;  %v2592_v3 = vshll.u32 %v4336_v56, 16  ;;  %v4383_v12 = vld [vmem:[%s4749_s19 + $0x34] sm:$0xf] }
  0xd8   : > { %v1076_v38 = vpop.permute.xlu1 %1075  ;;  %v2061_v36 = vsel %vm4904_vm6, %v2059_v23, %v2060_v24  ;;  %v4283_v43 = vrot.slane %v4241_v32, 9  ;;  %v4300_v6 = vld [vmem:[%s4749_s19 + $0x30] sm:$0xf]  ;;  %v4302_v17 = vld [vmem:[%s4749_s19 + $0x3c] sm:$0xf]  ;;  %v1566_v50 = vshrl.u32 %v4200_v37, 16 }
  0xd9   : > { %1165 = vst.msk [vmem:[#allocation2 + $0x1c] sm:$0xf] %vm1157_vm8, %v1076_v38  ;;  %v1074_v44 = vpop.permute.xlu0 %1073  ;;  %v2066_v34 = vrot.slane %v2064_v21, 4  ;;  %v2586_v38 = vshrl.u32 %v4335_v30, 16  ;;  %v5386_v30 = vld [vmem:[%s4749_s19 + $0x40] sm:$0xf] }
  0xda   : > { %1164 = vst.msk [vmem:[#allocation2 + $0x18] sm:$0xf] %vm1157_vm8, %v1074_v44  ;;  %2914 = vrot.lane.b32.xlu1 %v2571_v29, %s4703_s7  ;;  %v4282_v29 = vrot.slane %v4238_v20, 9 }
  0xdb   : > { %2912 = vrot.lane.b32.xlu0 %v2561_v33, %s4703_s7  ;;  %v4334_v33 = vld [vmem:[%s4749_s19 + $0x30] sm:$0xf]  ;;  %v2068_v51 = vsel %vm4904_vm6, %v2066_v34, %v2067_v35  ;;  %v2588_v53 = vrot.slane %v2586_v38, 4 }
  0xdc   : > { %v1080_v55 = vpop.permute.xlu1 %1079  ;;  %v2058_v42 = vsel %vm4904_vm6, %v4282_v29, %v2057_v13  ;;  %v2573_v44 = vshrl.u32 %v4334_v33, 16  ;;  %v2576_v46 = vshll.u32 %v4334_v33, 16  ;;  %v4303_v13 = vld [vmem:[%s4749_s19 + $0x40] sm:$0xf]  ;;  %v4382_v29 = vld [vmem:[%s4749_s19 + $0x30] sm:$0xe] }
  0xdd   : > { %1167 = vst.msk [vmem:[#allocation2 + $0x24] sm:$0xf] %vm1157_vm8, %v1080_v55  ;;  %v1078_v61 = vpop.permute.xlu0 %1077  ;;  %v2065_v55 = vsel %vm4904_vm6, %v4283_v43, %v2064_v21  ;;  %v2589_v2 = vor.u32 %v2588_v53, %v5352_v52  ;;  %v3149_v21 = vrot.slane %v4383_v12, 5 }
  0xde   : > { %1166 = vst.msk [vmem:[#allocation2 + $0x20] sm:$0xf] %vm1157_vm8, %v1078_v61  ;;  %3247 = vrot.lane.b32.xlu1 %v3139_v47, %s4704_s10  ;;  %v2606_v47 = vshll.u32 %v4338_v39, 16  ;;  %v2575_v57 = vrot.slane %v2573_v44, 4  ;;  %v2578_v58 = vrot.slane %v2576_v46, 5  ;;  %v4426_v44 = vrot.slane %v4382_v29, 9 }
  0xdf   : > { %3245 = vrot.lane.b32.xlu0 %v3136_v48, %s4704_s10  ;;  %v2610_v48 = vshrl.u32 %v4338_v39, 16  ;;  %v2590_v14 = vrot.slane %v2589_v2, 4  ;;  %v3151_v39 = vrot.slane %v3149_v21, 4  ;;  %v3156_v46 = vrot.slane %v5386_v30, 5 }
  0xe0   : > { %v1084_v4 = vpop.permute.xlu1 %1083  ;;  %v5360_v60 = vrot.slane %v2606_v47, 5  ;;  %v2579_v7 = vor.u32 %v2578_v58, %v2575_v57  ;;  %v4385_v58 = vld [vmem:[%s4749_s19 + $0x3c] sm:$0xe] }
  0xe1   : > { %1169 = vst.msk [vmem:[#allocation2 + $0x2c] sm:$0xf] %vm1157_vm8, %v1084_v4  ;;  %v1082_v9 = vpop.permute.xlu0 %1081  ;;  %v2612_v61 = vrot.slane %v2610_v48, 4  ;;  %v4339_v4 = vld [vmem:[%s4749_s19 + $0x44] sm:$0x1] }
  0xe2   : > { %1168 = vst.msk [vmem:[#allocation2 + $0x28] sm:$0xf] %vm1157_vm8, %v1082_v9  ;;  %3251 = vrot.lane.b32.xlu1 %v3146_v63, %s4704_s10  ;;  %v2599_v63 = vrot.slane %v2597_v49, 4  ;;  %v2580_v18 = vrot.slane %v2579_v7, 4  ;;  %v1562_v49 = vshll.u32 %v4200_v37, 16 }
  0xe3   : > { %3249 = vrot.lane.b32.xlu0 %v3143_v5, %s4704_s10  ;;  %v2613_v9 = vor.u32 %v2612_v61, %v5360_v60  ;;  %v3158_v61 = vrot.slane %v3156_v46, 4  ;;  %v4201_v7 = vld [vmem:[%s4749_s19 + $0x50] sm:$0x1] }
  0xe4   : > { %v1088_v15 = vpop.permute.xlu1 %1087  ;;  %v2603_v11 = vor.u32 %v2602_v0, %v2599_v63  ;;  %v2585_v34 = vsel %vm4760_vm2, %v2580_v18, %v5352_v52  ;;  %v4198_v52 = vld [vmem:[%s4749_s19 + $0x44] sm:$0x1]  ;;  %v1564_v2 = vrot.slane %v1562_v49, 5 }
  0xe5   : > { %1171 = vst.msk [vmem:[#allocation2 + $0x34] sm:$0xf] %vm1157_vm8, %v1088_v15  ;;  %v1086_v19 = vpop.permute.xlu0 %1085  ;;  %v2594_v15 = vrot.slane %v2592_v3, 5  ;;  %v2614_v23 = vrot.slane %v2613_v9, 4  ;;  %v1568_v3 = vrot.slane %v1566_v50, 4 }
  0xe6   : > { %1170 = vst.msk [vmem:[#allocation2 + $0x30] sm:$0xf] %vm1157_vm8, %v1086_v19  ;;  %1826 = vrot.lane.b32.xlu1 %v1503_v10, %s4700_s23  ;;  %v2616_v10 = vshll.u32 %v4339_v4, 16  ;;  %v4197_v19 = vld [vmem:[%s4749_s19 + $0x40] sm:$0xf]  ;;  %v2604_v25 = vrot.slane %v2603_v11, 4 }
  0xe7   : > { %1824 = vrot.lane.b32.xlu0 %v1493_v16, %s4700_s23  ;;  %v1542_v32 = vshrl.u32 %v4197_v19, 16 }
  0xe8   : > { %v1092_v26 = vpop.permute.xlu1 %1091  ;;  %v2618_v24 = vrot.slane %v2616_v10, 5  ;;  %v2609_v43 = vsel %vm4760_vm2, %v2604_v25, %v5360_v60  ;;  %v3150_v60 = vsel %vm4904_vm6, %v4426_v44, %v3149_v21  ;;  %v4247_v44 = vld [vmem:[%s4749_s19 + $0x48] sm:$0xe] }
  0xe9   : > { %1173 = vst.msk [vmem:[#allocation2 + $0x3c] sm:$0xf] %vm1157_vm8, %v1092_v26  ;;  %v1090_v31 = vpop.permute.xlu0 %1089  ;;  %v4384_v26 = vld [vmem:[%s4749_s19 + $0x38] sm:$0x1]  ;;  %v1544_v48 = vrot.slane %v1542_v32, 4 }
  0xea   : > { %1172 = vst.msk [vmem:[#allocation2 + $0x38] sm:$0xf] %vm1157_vm8, %v1090_v31  ;;  %1830 = vrot.lane.b32.xlu1 %v1527_v22, %s4700_s23  ;;  %v4196_v22 = vld [vmem:[%s4749_s19 + $0x3c] sm:$0xf]  ;;  %v1538_v31 = vshll.u32 %v4197_v19, 16  ;;  %v3152_v40 = vrot.slane %v4384_v26, 5 }
  0xeb   : > { %1828 = vrot.lane.b32.xlu0 %v1517_v28, %s4700_s23  ;;  %v2595_v28 = vsel %vm4760_vm2, %v2590_v14, %v2594_v15  ;;  %v1529_v35 = vshrl.u32 %v4196_v22, 16  ;;  %v1569_v14 = vor.u32 %v1568_v3, %v1564_v2  ;;  %v1572_v15 = vshll.u32 %v4201_v7, 16  ;;  %v4248_v26 = vld [vmem:[%s4749_s19 + $0x4c] sm:$0xf] }
  0xec   : > { %v1096_v41 = vpop.permute.xlu1 %1095  ;;  %v5404_v47 = vrot.slane %v1538_v31, 5  ;;  %v4246_v31 = vld [vmem:[%s4749_s19 + $0x44] sm:$0x1] }
  0xed   : > { %1175 = vst.msk [vmem:[#allocation2 + $0x44] sm:$0xf] %vm1157_vm8, %v1096_v41  ;;  %v1094_v45 = vpop.permute.xlu0 %1093  ;;  %v4199_v41 = vld [vmem:[%s4749_s19 + $0x48] sm:$0xf]  ;;  %v1531_v53 = vrot.slane %v1529_v35, 4  ;;  %v2074_v37 = vrot.slane %v4246_v31, 5 }
  0xee   : > { %1174 = vst.msk [vmem:[#allocation2 + $0x40] sm:$0xf] %vm1157_vm8, %v1094_v45  ;;  %2163 = vrot.lane.b32.xlu1 %v2061_v36, %s4701_s24  ;;  %v1532_v36 = vshll.u32 %v4196_v22, 16  ;;  %v4387_v45 = vld [vmem:[%s4749_s19 + $0x44] sm:$0x1]  ;;  %v1556_v56 = vshll.u32 %v4199_v41, 16  ;;  %v1545_v0 = vor.u32 %v1544_v48, %v5404_v47 }
  0xef   : > { %2161 = vrot.lane.b32.xlu0 %v2058_v42, %s4701_s24  ;;  %v2619_v42 = vsel %vm4760_vm2, %v2614_v23, %v2618_v24  ;;  %v3159_v63 = vrot.slane %v4387_v45, 5  ;;  %v1570_v23 = vrot.slane %v1569_v14, 4  ;;  %v1574_v24 = vrot.slane %v1572_v15, 5 }
  0xf0   : > { %v1100_v54 = vpop.permute.xlu1 %1099  ;;  %v1558_v9 = vrot.slane %v1556_v56, 5  ;;  %v1546_v12 = vrot.slane %v1545_v0, 4 }
  0xf1   : > { %1177 = vst.msk [vmem:[#allocation2 + $0x4c] sm:$0xf] %vm1157_vm8, %v1100_v54  ;;  %v1098_v59 = vpop.permute.xlu0 %1097  ;;  %v1534_v54 = vrot.slane %v1532_v36, 5  ;;  %v3160_v11 = vsel %vm4904_vm6, %v3158_v61, %v3159_v63  ;;  %v1575_v35 = vsel %vm4760_vm2, %v1570_v23, %v1574_v24  ;;  %v4389_v24 = vld [vmem:[%s4749_s19 + $0x4c] sm:$0xf] }
  0xf2   : > { %1176 = vst.msk [vmem:[#allocation2 + $0x48] sm:$0xf] %vm1157_vm8, %v1098_v59  ;;  %2167 = vrot.lane.b32.xlu1 %v2068_v51, %s4701_s24  ;;  %v3153_v59 = vsel %vm4904_vm6, %v3151_v39, %v3152_v40 }
  0xf3   : > { %2165 = vrot.lane.b32.xlu0 %v2065_v55, %s4701_s24  ;;  %v1553_v55 = vshrl.u32 %v4199_v41, 16 }
  0xf4   : > { %v1104_v5 = vpop.permute.xlu1 %1103 }
  0xf5   : > { %1179 = vst.msk [vmem:[#allocation2 + $0x54] sm:$0xf] %vm1157_vm8, %v1104_v5  ;;  %v1102_v8 = vpop.permute.xlu0 %1101  ;;  %v4427_v5 = vrot.slane %v4385_v58, 9 }
  0xf6   : > { %1178 = vst.msk [vmem:[#allocation2 + $0x50] sm:$0xf] %vm1157_vm8, %v1102_v8  ;;  %2357 = vrot.lane.b32.xlu1 %v4301_v1, %s4702_s29  ;;  %v1548_v1 = vshll.u32 %v4198_v52, 16  ;;  %v1555_v8 = vrot.slane %v1553_v55, 4  ;;  %v4343_v52 = vld [vmem:[%s4749_s19 + $0x54] sm:$0xf] }
  0xf7   : > { %2355 = vrot.lane.b32.xlu0 %v4300_v6, %s4702_s29  ;;  %v1535_v6 = vor.u32 %v1534_v54, %v1531_v53  ;;  %v4285_v55 = vrot.slane %v4247_v44, 9  ;;  %v2645_v61 = vshrl.u32 %v4343_v52, 16  ;;  %v2648_v63 = vshll.u32 %v4343_v52, 16 }
  0xf8   : > { %v1108_v16 = vpop.permute.xlu1 %1107  ;;  %v1559_v19 = vor.u32 %v1558_v9, %v1555_v8 }
  0xf9   : > { %1181 = vst.msk [vmem:[#allocation2 + $0x5c] sm:$0xf] %vm1157_vm8, %v1108_v16  ;;  %v1106_v20 = vpop.permute.xlu0 %1105  ;;  %v1536_v18 = vrot.slane %v1535_v6, 4 }
  0xfa   : > { %1180 = vst.msk [vmem:[#allocation2 + $0x58] sm:$0xf] %vm1157_vm8, %v1106_v20  ;;  %2361 = vrot.lane.b32.xlu1 %v4303_v13, %s4702_s29  ;;  %v1550_v13 = vrot.slane %v1548_v1, 5  ;;  %v4245_v20 = vld [vmem:[%s4749_s19 + $0x40] sm:$0xf]  ;;  %v1560_v30 = vrot.slane %v1559_v19, 4 }
  0xfb   : > { %2359 = vrot.lane.b32.xlu0 %v4302_v17, %s4702_s29  ;;  %v3157_v17 = vsel %vm4904_vm6, %v4427_v5, %v3156_v46  ;;  %v2071_v25 = vrot.slane %v4245_v20, 5  ;;  %v1541_v29 = vsel %vm4760_vm2, %v1536_v18, %v5404_v47  ;;  %v4340_v46 = vld [vmem:[%s4749_s19 + $0x48] sm:$0xf]  ;;  %v4342_v5 = vld [vmem:[%s4749_s19 + $0x50] sm:$0x1] }
  0xfc   : > { %v1112_v33 = vpop.permute.xlu1 %1111  ;;  %v1551_v22 = vsel %vm4760_vm2, %v1546_v12, %v1550_v13  ;;  %v1565_v40 = vsel %vm4760_vm2, %v1560_v30, %v1564_v2  ;;  %v2621_v56 = vshrl.u32 %v4340_v46, 16  ;;  %v2650_v12 = vrot.slane %v2648_v63, 5  ;;  %v4305_v13 = vld [vmem:[%s4749_s19 + $0x4c] sm:$0xf]  ;;  %v4304_v18 = vld [vmem:[%s4749_s19 + $0x48] sm:$0xf] }
  0xfd   : > { %1183 = vst.msk [vmem:[#allocation2 + $0x64] sm:$0xf] %vm1157_vm8, %v1112_v33  ;;  %v1110_v38 = vpop.permute.xlu0 %1109  ;;  %v4244_v33 = vld [vmem:[%s4749_s19 + $0x3c] sm:$0xe]  ;;  %v2073_v36 = vrot.slane %v2071_v25, 4  ;;  %v2640_v15 = vshll.u32 %v4342_v5, 16 }
  0xfe   : > { %1182 = vst.msk [vmem:[#allocation2 + $0x60] sm:$0xf] %vm1157_vm8, %v1110_v38  ;;  %2918 = vrot.lane.b32.xlu1 %v2595_v28, %s4703_s7  ;;  %v4249_v38 = vld [vmem:[%s4749_s19 + $0x50] sm:$0x1]  ;;  %v4284_v41 = vrot.slane %v4244_v33, 9  ;;  %v2623_v6 = vrot.slane %v2621_v56, 4 }
  0xff   : > { %2916 = vrot.lane.b32.xlu0 %v2585_v34, %s4703_s7  ;;  %v2078_v34 = vrot.slane %v4248_v26, 5  ;;  %v2081_v47 = vrot.slane %v4249_v38, 5  ;;  %v2075_v48 = vsel %vm4904_vm6, %v2073_v36, %v2074_v37  ;;  %v4306_v30 = vld [vmem:[%s4749_s19 + $0x54] sm:$0xf] }
 0x100   : > { %v1116_v51 = vpop.permute.xlu1 %1115  ;;  %v2072_v54 = vsel %vm4904_vm6, %v4284_v41, %v2071_v25  ;;  %v4307_v25 = vld [vmem:[%s4749_s19 + $0x58] sm:$0xf]  ;;  %v4388_v41 = vld [vmem:[%s4749_s19 + $0x48] sm:$0xe] }
 0x101   : > { %1185 = vst.msk [vmem:[#allocation2 + $0x6c] sm:$0xf] %vm1157_vm8, %v1116_v51  ;;  %v1114_v57 = vpop.permute.xlu0 %1113  ;;  %v2080_v45 = vrot.slane %v2078_v34, 4  ;;  %v4344_v51 = vld [vmem:[%s4749_s19 + $0x58] sm:$0xf]  ;;  %v4428_v56 = vrot.slane %v4388_v41, 9 }
 0x102   : > { %1184 = vst.msk [vmem:[#allocation2 + $0x68] sm:$0xf] %vm1157_vm8, %v1114_v57  ;;  %2922 = vrot.lane.b32.xlu1 %v2619_v42, %s4703_s7  ;;  %v4341_v42 = vld [vmem:[%s4749_s19 + $0x4c] sm:$0xf]  ;;  %v2624_v57 = vshll.u32 %v4340_v46, 16 }
 0x103   : > { %2920 = vrot.lane.b32.xlu0 %v2609_v43, %s4703_s7  ;;  %v2630_v49 = vshll.u32 %v4341_v42, 16  ;;  %v2634_v50 = vshrl.u32 %v4341_v42, 16  ;;  %v2082_v0 = vsel %vm4904_vm6, %v2080_v45, %v2081_v47  ;;  %v5501_v42 = vld [vmem:[%s4749_s19 + $0x58] sm:$0xf] }
 0x104   : > { %v1120_v4 = vpop.permute.xlu1 %1119  ;;  %v2626_v7 = vrot.slane %v2624_v57, 5  ;;  %v3170_v57 = vrot.slane %v5501_v42, 5 }
 0x105   : > { %1187 = vst.msk [vmem:[#allocation2 + $0x74] sm:$0xf] %vm1157_vm8, %v1120_v4  ;;  %v1118_v10 = vpop.permute.xlu0 %1117  ;;  %v5467_v1 = vrot.slane %v2630_v49, 5  ;;  %v2636_v2 = vrot.slane %v2634_v50, 4  ;;  %v2079_v4 = vsel %vm4904_vm6, %v4285_v55, %v2078_v34  ;;  %v3163_v34 = vrot.slane %v4389_v24, 5 }
 0x106   : > { %1186 = vst.msk [vmem:[#allocation2 + $0x70] sm:$0xf] %vm1157_vm8, %v1118_v10  ;;  %3255 = vrot.lane.b32.xlu1 %v3153_v59, %s4704_s10  ;;  %v2654_v59 = vshll.u32 %v4344_v51, 16  ;;  %v2627_v19 = vor.u32 %v2626_v7, %v2623_v6  ;;  %v4206_v49 = vld [vmem:[%s4749_s19 + $0x64] sm:$0xf] }
 0x107   : > { %3253 = vrot.lane.b32.xlu0 %v3150_v60, %s4704_s10  ;;  %v2658_v60 = vshrl.u32 %v4344_v51, 16  ;;  %v2637_v14 = vor.u32 %v2636_v2, %v5467_v1  ;;  %v3165_v51 = vrot.slane %v3163_v34, 4  ;;  %v1614_v63 = vshrl.u32 %v4206_v49, 16  ;;  %v4391_v7 = vld [vmem:[%s4749_s19 + $0x54] sm:$0xe] }
 0x108   : > { %v1124_v16 = vpop.permute.xlu1 %1123  ;;  %v5475_v9 = vrot.slane %v2654_v59, 5  ;;  %v2628_v31 = vrot.slane %v2627_v19, 4  ;;  %v4207_v19 = vld [vmem:[%s4749_s19 + $0x68] sm:$0x1] }
 0x109   : > { %1189 = vst.msk [vmem:[#allocation2 + $0x7c] sm:$0xf] %vm1157_vm8, %v1124_v16  ;;  %v1122_v21 = vpop.permute.xlu0 %1121  ;;  %v2660_v10 = vrot.slane %v2658_v60, 4  ;;  %v4345_v16 = vld [vmem:[%s4749_s19 + $0x5c] sm:$0x1]  ;;  %v2638_v26 = vrot.slane %v2637_v14, 4 }
 0x10a   : > { %1188 = vst.msk [vmem:[#allocation2 + $0x78] sm:$0xf] %vm1157_vm8, %v1122_v21  ;;  %3259 = vrot.lane.b32.xlu1 %v3160_v11, %s4704_s10  ;;  %v2647_v11 = vrot.slane %v2645_v61, 4  ;;  %v2633_v45 = vsel %vm4760_vm2, %v2628_v31, %v5467_v1  ;;  %v1610_v61 = vshll.u32 %v4206_v49, 16  ;;  %v4204_v1 = vld [vmem:[%s4749_s19 + $0x5c] sm:$0x1] }
 0x10b   : > { %3257 = vrot.lane.b32.xlu0 %v3157_v17, %s4704_s10  ;;  %v2661_v21 = vor.u32 %v2660_v10, %v5475_v9  ;;  %v3172_v10 = vrot.slane %v3170_v57, 4 }
 0x10c   : > { %v1258_v28 = vpop.permute.xlu1 %1257  ;;  %v2651_v23 = vor.u32 %v2650_v12, %v2647_v11  ;;  %v5532_v14 = vrot.slane %v1610_v61, 5 }
 0x10d   : > { %1353 = vst.msk [vmem:[#allocation2 + $0x4] sm:$0xf] %vm1351_vm10, %v1258_v28  ;;  %v1256_v32 = vpop.permute.xlu0 %1255  ;;  %v2642_v28 = vrot.slane %v2640_v15, 5  ;;  %v2662_v36 = vrot.slane %v2661_v21, 4  ;;  %v1616_v15 = vrot.slane %v1614_v63, 4 }
 0x10e   : > { %1352 = vst.msk [vmem:[#allocation2] sm:$0xf] %vm1351_vm10, %v1256_v32  ;;  %1834 = vrot.lane.b32.xlu1 %v1551_v22, %s4700_s23  ;;  %v2664_v22 = vshll.u32 %v4345_v16, 16  ;;  %v4203_v32 = vld [vmem:[%s4749_s19 + $0x58] sm:$0xf]  ;;  %v2652_v38 = vrot.slane %v2651_v23, 4 }
 0x10f   : > { %1832 = vrot.lane.b32.xlu0 %v1541_v29, %s4700_s23  ;;  %v1590_v44 = vshrl.u32 %v4203_v32, 16 }
 0x110   : > { %v1262_v39 = vpop.permute.xlu1 %1261  ;;  %v2666_v37 = vrot.slane %v2664_v22, 5  ;;  %v2657_v55 = vsel %vm4760_vm2, %v2652_v38, %v5475_v9  ;;  %v3164_v9 = vsel %vm4904_vm6, %v4428_v56, %v3163_v34 }
 0x111   : > { %1355 = vst.msk [vmem:[#allocation2 + $0xc] sm:$0xf] %vm1351_vm10, %v1262_v39  ;;  %v1260_v43 = vpop.permute.xlu0 %1259  ;;  %v4390_v39 = vld [vmem:[%s4749_s19 + $0x50] sm:$0x1]  ;;  %v1592_v60 = vrot.slane %v1590_v44, 4 }
 0x112   : > { %1354 = vst.msk [vmem:[#allocation2 + $0x8] sm:$0xf] %vm1351_vm10, %v1260_v43  ;;  %1838 = vrot.lane.b32.xlu1 %v1575_v35, %s4700_s23  ;;  %v4202_v35 = vld [vmem:[%s4749_s19 + $0x54] sm:$0xf]  ;;  %v1586_v43 = vshll.u32 %v4203_v32, 16  ;;  %v3166_v52 = vrot.slane %v4390_v39, 5 }
 0x113   : > { %1836 = vrot.lane.b32.xlu0 %v1565_v40, %s4700_s23  ;;  %v2643_v40 = vsel %vm4760_vm2, %v2638_v26, %v2642_v28  ;;  %v1577_v47 = vshrl.u32 %v4202_v35, 16  ;;  %v1617_v26 = vor.u32 %v1616_v15, %v5532_v14  ;;  %v1620_v28 = vshll.u32 %v4207_v19, 16  ;;  %v4254_v39 = vld [vmem:[%s4749_s19 + $0x64] sm:$0xf]  ;;  %v4348_v15 = vld [vmem:[%s4749_s19 + $0x68] sm:$0x1] }
 0x114   : > { %v1266_v53 = vpop.permute.xlu1 %1265  ;;  %v5519_v59 = vrot.slane %v1586_v43, 5  ;;  %v4252_v43 = vld [vmem:[%s4749_s19 + $0x5c] sm:$0x1] }
 0x115   : > { %1357 = vst.msk [vmem:[#allocation2 + $0x14] sm:$0xf] %vm1351_vm10, %v1266_v53  ;;  %v1264_v58 = vpop.permute.xlu0 %1263  ;;  %v4205_v53 = vld [vmem:[%s4749_s19 + $0x60] sm:$0xf]  ;;  %v1579_v2 = vrot.slane %v1577_v47, 4  ;;  %v2088_v49 = vrot.slane %v4252_v43, 5 }
 0x116   : > { %1356 = vst.msk [vmem:[#allocation2 + $0x10] sm:$0xf] %vm1351_vm10, %v1264_v58  ;;  %2171 = vrot.lane.b32.xlu1 %v2075_v48, %s4701_s24  ;;  %v1580_v48 = vshll.u32 %v4202_v35, 16  ;;  %v4393_v58 = vld [vmem:[%s4749_s19 + $0x5c] sm:$0x1]  ;;  %v1604_v5 = vshll.u32 %v4205_v53, 16  ;;  %v1593_v12 = vor.u32 %v1592_v60, %v5519_v59 }
 0x117   : > { %2169 = vrot.lane.b32.xlu0 %v2072_v54, %s4701_s24  ;;  %v2667_v54 = vsel %vm4760_vm2, %v2662_v36, %v2666_v37  ;;  %v3173_v11 = vrot.slane %v4393_v58, 5  ;;  %v1618_v36 = vrot.slane %v1617_v26, 4  ;;  %v1622_v37 = vrot.slane %v1620_v28, 5  ;;  %v4308_v28 = vld [vmem:[%s4749_s19 + $0x60] sm:$0xf] }
 0x118   : > { %v1270_v3 = vpop.permute.xlu1 %1269  ;;  %v1606_v21 = vrot.slane %v1604_v5, 5  ;;  %v1594_v24 = vrot.slane %v1593_v12, 4  ;;  %v4350_v5 = vld [vmem:[%s4749_s19 + $0x70] sm:$0xf] }
 0x119   : > { %1359 = vst.msk [vmem:[#allocation2 + $0x1c] sm:$0xf] %vm1351_vm10, %v1270_v3  ;;  %v1268_v8 = vpop.permute.xlu0 %1267  ;;  %v1582_v3 = vrot.slane %v1580_v48, 5  ;;  %v3174_v23 = vsel %vm4904_vm6, %v3172_v10, %v3173_v11  ;;  %v1623_v47 = vsel %vm4760_vm2, %v1618_v36, %v1622_v37  ;;  %v2702_v12 = vshll.u32 %v4350_v5, 16 }
 0x11a   : > { %1358 = vst.msk [vmem:[#allocation2 + $0x18] sm:$0xf] %vm1351_vm10, %v1268_v8  ;;  %2175 = vrot.lane.b32.xlu1 %v2082_v0, %s4701_s24  ;;  %v3167_v8 = vsel %vm4904_vm6, %v3165_v51, %v3166_v52  ;;  %v4253_v51 = vld [vmem:[%s4749_s19 + $0x60] sm:$0xe] }
 0x11b   : > { %2173 = vrot.lane.b32.xlu0 %v2079_v4, %s4701_s24  ;;  %v1601_v4 = vshrl.u32 %v4205_v53, 16  ;;  %v4287_v60 = vrot.slane %v4253_v51, 9  ;;  %v4398_v51 = vld [vmem:[%s4749_s19 + $0x70] sm:$0xf] }
 0x11c   : > { %v1274_v17 = vpop.permute.xlu1 %1273 }
 0x11d   : > { %1361 = vst.msk [vmem:[#allocation2 + $0x24] sm:$0xf] %vm1351_vm10, %v1274_v17  ;;  %v1272_v20 = vpop.permute.xlu0 %1271  ;;  %v4429_v17 = vrot.slane %v4391_v7, 9  ;;  %v4349_v7 = vld [vmem:[%s4749_s19 + $0x6c] sm:$0xf] }
 0x11e   : > { %1360 = vst.msk [vmem:[#allocation2 + $0x20] sm:$0xf] %vm1351_vm10, %v1272_v20  ;;  %2365 = vrot.lane.b32.xlu1 %v4305_v13, %s4702_s29  ;;  %v1596_v13 = vshll.u32 %v4204_v1, 16  ;;  %v1603_v20 = vrot.slane %v1601_v4, 4  ;;  %v2696_v19 = vshll.u32 %v4349_v7, 16 }
 0x11f   : > { %2363 = vrot.lane.b32.xlu0 %v4304_v18, %s4702_s29  ;;  %v1583_v18 = vor.u32 %v1582_v3, %v1579_v2 }
 0x120   : > { %v1278_v29 = vpop.permute.xlu1 %1277  ;;  %v1607_v32 = vor.u32 %v1606_v21, %v1603_v20  ;;  %v4309_v21 = vld [vmem:[%s4749_s19 + $0x64] sm:$0xf] }
 0x121   : > { %1363 = vst.msk [vmem:[#allocation2 + $0x2c] sm:$0xf] %vm1351_vm10, %v1278_v29  ;;  %v1276_v33 = vpop.permute.xlu0 %1275  ;;  %v1584_v31 = vrot.slane %v1583_v18, 4  ;;  %v2693_v18 = vshrl.u32 %v4349_v7, 16 }
 0x122   : > { %1362 = vst.msk [vmem:[#allocation2 + $0x28] sm:$0xf] %vm1351_vm10, %v1276_v33  ;;  %2369 = vrot.lane.b32.xlu1 %v4307_v25, %s4702_s29  ;;  %v1598_v25 = vrot.slane %v1596_v13, 5  ;;  %v4251_v33 = vld [vmem:[%s4749_s19 + $0x58] sm:$0xf]  ;;  %v1608_v42 = vrot.slane %v1607_v32, 4 }
 0x123   : > { %2367 = vrot.lane.b32.xlu0 %v4306_v30, %s4702_s29  ;;  %v3171_v30 = vsel %vm4904_vm6, %v4429_v17, %v3170_v57  ;;  %v2085_v38 = vrot.slane %v4251_v33, 5  ;;  %v1589_v41 = vsel %vm4760_vm2, %v1584_v31, %v5519_v59  ;;  %v4346_v57 = vld [vmem:[%s4749_s19 + $0x60] sm:$0xf]  ;;  %v2706_v13 = vshrl.u32 %v4350_v5, 16 }
 0x124   : > { %v1282_v46 = vpop.permute.xlu1 %1281  ;;  %v1599_v35 = vsel %vm4760_vm2, %v1594_v24, %v1598_v25  ;;  %v1613_v53 = vsel %vm4760_vm2, %v1608_v42, %v5532_v14  ;;  %v2669_v3 = vshrl.u32 %v4346_v57, 16  ;;  %v2672_v4 = vshll.u32 %v4346_v57, 16 }
 0x125   : > { %1365 = vst.msk [vmem:[#allocation2 + $0x34] sm:$0xf] %vm1351_vm10, %v1282_v46  ;;  %v1280_v50 = vpop.permute.xlu0 %1279  ;;  %v4250_v46 = vld [vmem:[%s4749_s19 + $0x54] sm:$0xe]  ;;  %v2087_v48 = vrot.slane %v2085_v38, 4  ;;  %v5597_v24 = vrot.slane %v2702_v12, 5 }
 0x126   : > { %1364 = vst.msk [vmem:[#allocation2 + $0x30] sm:$0xf] %vm1351_vm10, %v1280_v50  ;;  %2926 = vrot.lane.b32.xlu1 %v2643_v40, %s4703_s7  ;;  %v4255_v50 = vld [vmem:[%s4749_s19 + $0x68] sm:$0x1]  ;;  %v2674_v17 = vrot.slane %v2672_v4, 5  ;;  %v2708_v25 = vrot.slane %v2706_v13, 4 }
 0x127   : > { %2924 = vrot.lane.b32.xlu0 %v2633_v45, %s4703_s7  ;;  %v2092_v45 = vrot.slane %v4254_v39, 5  ;;  %v2095_v59 = vrot.slane %v4255_v50, 5  ;;  %v2089_v61 = vsel %vm4904_vm6, %v2087_v48, %v2088_v49  ;;  %v2695_v31 = vrot.slane %v2693_v18, 4  ;;  %v4394_v50 = vld [vmem:[%s4749_s19 + $0x60] sm:$0xe] }
 0x128   : > { %v1286_v0 = vpop.permute.xlu1 %1285  ;;  %v2698_v32 = vrot.slane %v2696_v19, 5 }
 0x129   : > { %1367 = vst.msk [vmem:[#allocation2 + $0x3c] sm:$0xf] %vm1351_vm10, %v1286_v0  ;;  %v1284_v6 = vpop.permute.xlu0 %1283  ;;  %v2094_v58 = vrot.slane %v2092_v45, 4 }
 0x12a   : > { %1366 = vst.msk [vmem:[#allocation2 + $0x38] sm:$0xf] %vm1351_vm10, %v1284_v6  ;;  %2930 = vrot.lane.b32.xlu1 %v2667_v54, %s4703_s7  ;;  %v4286_v54 = vrot.slane %v4250_v46, 9  ;;  %v2699_v43 = vor.u32 %v2698_v32, %v2695_v31 }
 0x12b   : > { %2928 = vrot.lane.b32.xlu0 %v2657_v55, %s4703_s7  ;;  %v4347_v55 = vld [vmem:[%s4749_s19 + $0x64] sm:$0xf] }
 0x12c   : > { %v1290_v16 = vpop.permute.xlu1 %1289  ;;  %v2678_v63 = vshll.u32 %v4347_v55, 16  ;;  %v2682_v0 = vshrl.u32 %v4347_v55, 16  ;;  %v2086_v2 = vsel %vm4904_vm6, %v4286_v54, %v2085_v38  ;;  %v2709_v38 = vor.u32 %v2708_v25, %v5597_v24  ;;  %v4209_v55 = vld [vmem:[%s4749_s19 + $0x70] sm:$0xf] }
 0x12d   : > { %1369 = vst.msk [vmem:[#allocation2 + $0x44] sm:$0xf] %vm1351_vm10, %v1290_v16  ;;  %v1288_v22 = vpop.permute.xlu0 %1287  ;;  %v2671_v16 = vrot.slane %v2669_v3, 4  ;;  %v2700_v54 = vrot.slane %v2699_v43, 4  ;;  %v1638_v3 = vshrl.u32 %v4209_v55, 16 }
 0x12e   : > { %1368 = vst.msk [vmem:[#allocation2 + $0x40] sm:$0xf] %vm1351_vm10, %v1288_v22  ;;  %3263 = vrot.lane.b32.xlu1 %v3167_v8, %s4704_s10  ;;  %v2096_v8 = vsel %vm4904_vm6, %v2094_v58, %v2095_v59  ;;  %v5588_v10 = vrot.slane %v2678_v63, 5  ;;  %v2684_v11 = vrot.slane %v2682_v0, 4  ;;  %v2710_v48 = vrot.slane %v2709_v38, 4 }
 0x12f   : > { %3261 = vrot.lane.b32.xlu0 %v3164_v9, %s4704_s10  ;;  %v2093_v9 = vsel %vm4904_vm6, %v4287_v60, %v2092_v45  ;;  %v4396_v45 = vld [vmem:[%s4749_s19 + $0x68] sm:$0x1]  ;;  %v4208_v59 = vld [vmem:[%s4749_s19 + $0x6c] sm:$0xf]  ;;  %v4430_v60 = vrot.slane %v4394_v50, 9  ;;  %v2705_v5 = vsel %vm4760_vm2, %v2700_v54, %v5597_v24 }
 0x130   : > { %v1819_v29 = vpop.permute.xlu1 %1818  ;;  %v2685_v22 = vor.u32 %v2684_v11, %v5588_v10  ;;  %v3180_v58 = vrot.slane %v4396_v45, 5  ;;  %v4399_v0 = vld [vmem:[%s4749_s19 + $0x74] sm:$0x1]  ;;  %v1628_v7 = vshll.u32 %v4208_v59, 16  ;;  %v4211_v11 = vld [vmem:[%s4749_s19 + $0x78] sm:$0xf] }
 0x131   : > { %1914 = vst.msk [vmem:[#allocation2 + $0x4] sm:$0xf] %vm1912_vm11, %v1819_v29  ;;  %v1817_v34 = vpop.permute.xlu0 %1816  ;;  %v2675_v29 = vor.u32 %v2674_v17, %v2671_v16  ;;  %v1640_v17 = vrot.slane %v1638_v3, 4  ;;  %v1649_v24 = vshrl.u32 %v4211_v11, 16  ;;  %v1652_v25 = vshll.u32 %v4211_v11, 16 }
 0x132   : > { %1913 = vst.msk [vmem:[#allocation2] sm:$0xf] %vm1912_vm11, %v1817_v34  ;;  %3267 = vrot.lane.b32.xlu1 %v3174_v23, %s4704_s10  ;;  %v2688_v23 = vshll.u32 %v4348_v15, 16  ;;  %v4395_v34 = vld [vmem:[%s4749_s19 + $0x64] sm:$0xf]  ;;  %v2686_v36 = vrot.slane %v2685_v22, 4 }
 0x133   : > { %3265 = vrot.lane.b32.xlu0 %v3171_v30, %s4704_s10  ;;  %v4351_v30 = vld [vmem:[%s4749_s19 + $0x74] sm:$0x1]  ;;  %v2676_v42 = vrot.slane %v2675_v29, 4  ;;  %v3177_v46 = vrot.slane %v4395_v34, 5  ;;  %v1654_v38 = vrot.slane %v1652_v25, 5 }
 0x134   : > { %v1823_v40 = vpop.permute.xlu1 %1822  ;;  %v2690_v37 = vrot.slane %v2688_v23, 5  ;;  %v2712_v39 = vshll.u32 %v4351_v30, 16  ;;  %v1630_v23 = vrot.slane %v1628_v7, 5  ;;  %v4257_v50 = vld [vmem:[%s4749_s19 + $0x70] sm:$0xf] }
 0x135   : > { %1916 = vst.msk [vmem:[#allocation2 + $0xc] sm:$0xf] %vm1912_vm11, %v1823_v40  ;;  %v1821_v44 = vpop.permute.xlu0 %1820  ;;  %v3179_v57 = vrot.slane %v3177_v46, 4  ;;  %v3178_v12 = vsel %vm4904_vm6, %v4430_v60, %v3177_v46  ;;  %v4355_v25 = vld [vmem:[%s4749_s19 + $0x84] sm:$0xf] }
 0x136   : > { %1915 = vst.msk [vmem:[#allocation2 + $0x8] sm:$0xf] %vm1912_vm11, %v1821_v44  ;;  %1842 = vrot.lane.b32.xlu1 %v1599_v35, %s4700_s23  ;;  %v4311_v35 = vld [vmem:[%s4749_s19 + $0x70] sm:$0xf]  ;;  %v2714_v49 = vrot.slane %v2712_v39, 5 }
 0x137   : > { %1840 = vrot.lane.b32.xlu0 %v1589_v41, %s4700_s23  ;;  %v4310_v41 = vld [vmem:[%s4749_s19 + $0x6c] sm:$0xf] }
 0x138   : > { %v2156_v52 = vpop.permute.xlu1 %2155  ;;  %v2715_v63 = vsel %vm4760_vm2, %v2710_v48, %v2714_v49 }
 0x139   : > { %2251 = vst.msk [vmem:[#allocation2 + $0x4] sm:$0xf] %vm2249_vm12, %v2156_v52  ;;  %v2154_v56 = vpop.permute.xlu0 %2153 }
 0x13a   : > { %2250 = vst.msk [vmem:[#allocation2] sm:$0xf] %vm2249_vm12, %v2154_v56  ;;  %1846 = vrot.lane.b32.xlu1 %v1623_v47, %s4700_s23  ;;  %v2691_v47 = vsel %vm4760_vm2, %v2686_v36, %v2690_v37  ;;  %v4213_v36 = vld [vmem:[%s4749_s19 + $0x80] sm:$0x1]  ;;  %v1651_v37 = vrot.slane %v1649_v24, 4 }
 0x13b   : > { %1844 = vrot.lane.b32.xlu0 %v1613_v53, %s4700_s23  ;;  %v2681_v53 = vsel %vm4760_vm2, %v2676_v42, %v5588_v10  ;;  %v3181_v10 = vsel %vm4904_vm6, %v3179_v57, %v3180_v58  ;;  %v4170_v42 = vld [vmem:[%s4749_s19 + $0x78] sm:$0xf]  ;;  %v1668_v45 = vshll.u32 %v4213_v36, 16  ;;  %v4260_v57 = vld [vmem:[%s4749_s19 + $0x7c] sm:$0xf] }
 0x13c   : > { %v2160_v1 = vpop.permute.xlu1 %2159  ;;  %v1655_v49 = vor.u32 %v1654_v38, %v1651_v37  ;;  %v2741_v37 = vshrl.u32 %v4355_v25, 16  ;;  %v2744_v38 = vshll.u32 %v4355_v25, 16 }
 0x13d   : > { %2253 = vst.msk [vmem:[#allocation2 + $0xc] sm:$0xf] %vm2249_vm12, %v2160_v1  ;;  %v2158_v6 = vpop.permute.xlu0 %2157  ;;  %v4397_v1 = vld [vmem:[%s4749_s19 + $0x6c] sm:$0xe] }
 0x13e   : > { %2252 = vst.msk [vmem:[#allocation2 + $0x8] sm:$0xf] %vm2249_vm12, %v2158_v6  ;;  %2179 = vrot.lane.b32.xlu1 %v2089_v61, %s4701_s24  ;;  %v3184_v61 = vrot.slane %v4398_v51, 5  ;;  %v1625_v6 = vshrl.u32 %v4208_v59, 16  ;;  %v4431_v15 = vrot.slane %v4397_v1, 9  ;;  %v1656_v60 = vrot.slane %v1655_v49, 4 }
 0x13f   : > { %2177 = vrot.lane.b32.xlu0 %v2086_v2, %s4701_s24  ;;  %v1634_v2 = vshll.u32 %v4209_v55, 16  ;;  %v1670_v55 = vrot.slane %v1668_v45, 5  ;;  %v2106_v1 = vrot.slane %v4260_v57, 5  ;;  %v4312_v45 = vld [vmem:[%s4749_s19 + $0x78] sm:$0xf]  ;;  %v2743_v49 = vrot.slane %v2741_v37, 4 }
 0x140   : > { %v2350_v14 = vpop.permute.xlu1 %2349  ;;  %v3186_v13 = vrot.slane %v3184_v61, 4  ;;  %v1627_v22 = vrot.slane %v1625_v6, 4  ;;  %v3185_v34 = vsel %vm4904_vm6, %v4431_v15, %v3184_v61  ;;  %v4258_v61 = vld [vmem:[%s4749_s19 + $0x74] sm:$0x1]  ;;  %v4259_v6 = vld [vmem:[%s4749_s19 + $0x78] sm:$0xe] }
 0x141   : > { %2445 = vst.msk [vmem:[#allocation2 + $0x4] sm:$0xf] %vm2443_vm13, %v2350_v14  ;;  %v2348_v20 = vpop.permute.xlu0 %2347  ;;  %v3187_v14 = vrot.slane %v4399_v0, 5  ;;  %v5644_v16 = vrot.slane %v1634_v2, 5  ;;  %v4256_v0 = vld [vmem:[%s4749_s19 + $0x6c] sm:$0xe] }
 0x142   : > { %2444 = vst.msk [vmem:[#allocation2] sm:$0xf] %vm2443_vm13, %v2348_v20  ;;  %2183 = vrot.lane.b32.xlu1 %v2096_v8, %s4701_s24  ;;  %v4212_v8 = vld [vmem:[%s4749_s19 + $0x7c] sm:$0xf]  ;;  %v4289_v15 = vrot.slane %v4259_v6, 9 }
 0x143   : > { %2181 = vrot.lane.b32.xlu0 %v2093_v9, %s4701_s24  ;;  %v1658_v18 = vshll.u32 %v4212_v8, 16  ;;  %v1662_v19 = vshrl.u32 %v4212_v8, 16  ;;  %v1641_v29 = vor.u32 %v1640_v17, %v5644_v16  ;;  %v4217_v37 = vld [vmem:[%s4749_s19 + $0x90] sm:$0xf] }
 0x144   : > { %v2354_v26 = vpop.permute.xlu1 %2353 }
 0x145   : > { %2447 = vst.msk [vmem:[#allocation2 + $0xc] sm:$0xf] %vm2443_vm13, %v2354_v26  ;;  %v2352_v33 = vpop.permute.xlu0 %2351  ;;  %v5654_v31 = vrot.slane %v1658_v18, 5  ;;  %v1664_v32 = vrot.slane %v1662_v19, 4  ;;  %v1642_v43 = vrot.slane %v1641_v29, 4 }
 0x146   : > { %2446 = vst.msk [vmem:[#allocation2 + $0x8] sm:$0xf] %vm2443_vm13, %v2352_v33  ;;  %2373 = vrot.lane.b32.xlu1 %v4309_v21, %s4702_s29  ;;  %v4210_v21 = vld [vmem:[%s4749_s19 + $0x74] sm:$0x1] }
 0x147   : > { %2371 = vrot.lane.b32.xlu0 %v4308_v28, %s4702_s29  ;;  %v3188_v28 = vsel %vm4904_vm6, %v3186_v13, %v3187_v14  ;;  %v1644_v30 = vshll.u32 %v4210_v21, 16  ;;  %v1665_v46 = vor.u32 %v1664_v32, %v5654_v31  ;;  %v1661_v8 = vsel %vm4760_vm2, %v1656_v60, %v5654_v31 }
 0x148   : > { %v2911_v40 = vpop.permute.xlu1 %2910  ;;  %v2108_v13 = vrot.slane %v2106_v1, 4 }
 0x149   : > { %3006 = vst.msk [vmem:[#allocation2 + $0x4] sm:$0xf] %vm3004_vm14, %v2911_v40  ;;  %v2909_v44 = vpop.permute.xlu0 %2908  ;;  %v1666_v54 = vrot.slane %v1665_v46, 4 }
 0x14a   : > { %3005 = vst.msk [vmem:[#allocation2] sm:$0xf] %vm3004_vm14, %v2909_v44  ;;  %2377 = vrot.lane.b32.xlu1 %v4311_v35, %s4702_s29  ;;  %v1631_v35 = vor.u32 %v1630_v23, %v1627_v22  ;;  %v1646_v44 = vrot.slane %v1644_v30, 5  ;;  %v4356_v23 = vld [vmem:[%s4749_s19 + $0x88] sm:$0xf] }
 0x14b   : > { %2375 = vrot.lane.b32.xlu0 %v4310_v41, %s4702_s29  ;;  %v4171_v41 = vld [vmem:[%s4749_s19 + $0x7c] sm:$0xf]  ;;  %v1671_v2 = vsel %vm4760_vm2, %v1666_v54, %v1670_v55  ;;  %v2750_v31 = vshll.u32 %v4356_v23, 16  ;;  %v2754_v32 = vshrl.u32 %v4356_v23, 16 }
 0x14c   : > { %v2915_v52 = vpop.permute.xlu1 %2914  ;;  %v1632_v48 = vrot.slane %v1631_v35, 4 }
 0x14d   : > { %3008 = vst.msk [vmem:[#allocation2 + $0xc] sm:$0xf] %vm3004_vm14, %v2915_v52  ;;  %v2913_v56 = vpop.permute.xlu0 %2912 }
 0x14e   : > { %3007 = vst.msk [vmem:[#allocation2 + $0x8] sm:$0xf] %vm3004_vm14, %v2913_v56  ;;  %2934 = vrot.lane.b32.xlu1 %v2691_v47, %s4703_s7  ;;  %v2099_v56 = vrot.slane %v4257_v50, 5  ;;  %v1637_v59 = vsel %vm4760_vm2, %v1632_v48, %v5644_v16  ;;  %v4357_v48 = vld [vmem:[%s4749_s19 + $0x8c] sm:$0x1]  ;;  %v2746_v50 = vrot.slane %v2744_v38, 5 }
 0x14f   : > { %2932 = vrot.lane.b32.xlu0 %v2681_v53, %s4703_s7  ;;  %v1647_v53 = vsel %vm4760_vm2, %v1642_v43, %v1646_v44  ;;  %v2752_v43 = vrot.slane %v2750_v31, 5  ;;  %v2756_v44 = vrot.slane %v2754_v32, 4 }
 0x150   : > { %v3248_v4 = vpop.permute.xlu1 %3247  ;;  %v2101_v3 = vrot.slane %v2099_v56, 4  ;;  %v2747_v60 = vor.u32 %v2746_v50, %v2743_v49  ;;  %v1700_v49 = vshll.u32 %v4217_v37, 16 }
 0x151   : > { %3343 = vst.msk [vmem:[#allocation2 + $0x4] sm:$0xf] %vm3341_vm15, %v3248_v4  ;;  %v3246_v9 = vpop.permute.xlu0 %3245  ;;  %v2102_v4 = vrot.slane %v4258_v61, 5  ;;  %v2757_v55 = vor.u32 %v2756_v44, %v2752_v43  ;;  %v4401_v61 = vld [vmem:[%s4749_s19 + $0x7c] sm:$0xf] }
 0x152   : > { %3342 = vst.msk [vmem:[#allocation2] sm:$0xf] %vm3341_vm15, %v3246_v9  ;;  %2938 = vrot.lane.b32.xlu1 %v2715_v63, %s4703_s7  ;;  %v4288_v9 = vrot.slane %v4256_v0, 9 }
 0x153   : > { %2936 = vrot.lane.b32.xlu0 %v2705_v5, %s4703_s7  ;;  %v4261_v5 = vld [vmem:[%s4749_s19 + $0x80] sm:$0x1]  ;;  %v2103_v16 = vsel %vm4904_vm6, %v2101_v3, %v2102_v4  ;;  %v3191_v3 = vrot.slane %v4401_v61, 5  ;;  %v4404_v4 = vld [vmem:[%s4749_s19 + $0x88] sm:$0xf] }
 0x154   : > { %v3252_v20 = vpop.permute.xlu1 %3251  ;;  %v2109_v14 = vrot.slane %v4261_v5, 5 }
 0x155   : > { %3345 = vst.msk [vmem:[#allocation2 + $0xc] sm:$0xf] %vm3341_vm15, %v3252_v20  ;;  %v3250_v26 = vpop.permute.xlu0 %3249  ;;  %v2100_v20 = vsel %vm4904_vm6, %v4288_v9, %v2099_v56  ;;  %v2760_v56 = vshll.u32 %v4357_v48, 16  ;;  %v1697_v48 = vshrl.u32 %v4217_v37, 16 }
 0x156   : > { %3344 = vst.msk [vmem:[#allocation2 + $0x8] sm:$0xf] %vm3341_vm15, %v3250_v26  ;;  %3271 = vrot.lane.b32.xlu1 %v3181_v10, %s4704_s10  ;;  %v4353_v10 = vld [vmem:[%s4749_s19 + $0x7c] sm:$0xf]  ;;  %v2110_v26 = vsel %vm4904_vm6, %v2108_v13, %v2109_v14  ;;  %v3193_v13 = vrot.slane %v3191_v3, 4 }
 0x157   : > { %3269 = vrot.lane.b32.xlu0 %v3178_v12, %s4704_s10  ;;  %v4352_v12 = vld [vmem:[%s4749_s19 + $0x78] sm:$0xf]  ;;  %v2726_v17 = vshll.u32 %v4353_v10, 16  ;;  %v2730_v18 = vshrl.u32 %v4353_v10, 16  ;;  %v1699_v61 = vrot.slane %v1697_v48, 4 }
 0x158   : > { %v1827_v33 = vpop.permute.xlu1 %1826  ;;  %v2717_v21 = vshrl.u32 %v4352_v12, 16  ;;  %v2720_v22 = vshll.u32 %v4352_v12, 16  ;;  %v4400_v10 = vld [vmem:[%s4749_s19 + $0x78] sm:$0xe]  ;;  %v4361_v48 = vld [vmem:[%s4749_s19 + $0x9c] sm:$0xf] }
 0x159   : > { %1918 = vst.msk [vmem:[#allocation2 + $0x14] sm:$0xf] %vm1912_vm11, %v1827_v33  ;;  %v1825_v39 = vpop.permute.xlu0 %1824  ;;  %v4657_v40 = vld [vmem:[#allocation2] sm:$0xff]   ;;  %v2728_v29 = vrot.slane %v2726_v17, 5  ;;  %v2732_v30 = vrot.slane %v2730_v18, 4 }
 0x15a   : > { %1917 = vst.msk [vmem:[#allocation2 + $0x10] sm:$0xf] %vm1912_vm11, %v1825_v39  ;;  %3275 = vrot.lane.b32.xlu1 %v3188_v28, %s4704_s10  ;;  %4575 = vmatprep.mubr.msk.bf16.mxu0 %vm3522_vm0, %v4657_v40  ;;  %v2107_v28 = vsel %vm4904_vm6, %v4289_v15, %v2106_v1  ;;  %v2719_v35 = vrot.slane %v2717_v21, 4  ;;  %v2722_v36 = vrot.slane %v2720_v22, 5  ;;  %v4313_v40 = vld [vmem:[%s4749_s19 + $0x7c] sm:$0xf] }
 0x15b   : > { %3273 = vrot.lane.b32.xlu0 %v3185_v34, %s4704_s10  ;;  %v4354_v34 = vld [vmem:[%s4749_s19 + $0x80] sm:$0x1]  ;;  %v2758_v1 = vrot.slane %v2757_v55, 4  ;;  %v4405_v15 = vld [vmem:[%s4749_s19 + $0x8c] sm:$0x1] }
 0x15c   : > { %v1831_v47 = vpop.permute.xlu1 %1830  ;;  %v4214_v22 = vld [vmem:[%s4749_s19 + $0x84] sm:$0xf] }
 0x15d   : > { %1920 = vst.msk [vmem:[#allocation2 + $0x1c] sm:$0xf] %vm1912_vm11, %v1831_v47  ;;  %v1829_v51 = vpop.permute.xlu0 %1828  ;;  %v4658_v52 = vld [vmem:[#allocation2 + $0x8] sm:$0xff]   ;;  %v2723_v47 = vor.u32 %v2722_v36, %v2719_v35  ;;  %v1673_v32 = vshrl.u32 %v4214_v22, 16 }
 0x15e   : > { %1919 = vst.msk [vmem:[#allocation2 + $0x18] sm:$0xf] %vm1912_vm11, %v1829_v51  ;;  %1293 = vrot.lane.b32.xlu1 %v4171_v41, %s4699_s22  ;;  %4576 = vmatmul.mubr.msk.bf16.vlgmr.msra.gmra.mxu0 %vm3522_vm0, %v4658_v52  ;;  %v2733_v41 = vor.u32 %v2732_v30, %v2728_v29  ;;  %v4315_v52 = vld [vmem:[%s4749_s19 + $0x88] sm:$0xf] }
 0x15f   : > { %1291 = vrot.lane.b32.xlu0 %v4170_v42, %s4699_s22  ;;  %v2736_v42 = vshll.u32 %v4354_v34, 16  ;;  %v4218_v34 = vld [vmem:[%s4749_s19 + $0x94] sm:$0xf] }
 0x160   : > { %v2164_v58 = vpop.permute.xlu1 %2163  ;;  %v1710_v44 = vshrl.u32 %v4218_v34, 16 }
 0x161   : > { %2255 = vst.msk [vmem:[#allocation2 + $0x14] sm:$0xf] %vm2249_vm12, %v2164_v58  ;;  %v2162_v63 = vpop.permute.xlu0 %2161  ;;  %v2738_v54 = vrot.slane %v2736_v42, 5  ;;  %v4314_v58 = vld [vmem:[%s4749_s19 + $0x84] sm:$0xf] }
 0x162   : > { %2254 = vst.msk [vmem:[#allocation2 + $0x10] sm:$0xf] %vm2249_vm12, %v2162_v63  ;;  %1850 = vrot.lane.b32.xlu1 %v1647_v53, %s4700_s23  ;;  %v2734_v53 = vrot.slane %v2733_v41, 4 }
 0x163   : > { %1848 = vrot.lane.b32.xlu0 %v1637_v59, %s4700_s23  ;;  %v2724_v59 = vrot.slane %v2723_v47, 4 }
 0x164   : > { %v2168_v7 = vpop.permute.xlu1 %2167  ;;  %v2739_v0 = vsel %vm4760_vm2, %v2734_v53, %v2738_v54 }
 0x165   : > { %2257 = vst.msk [vmem:[#allocation2 + $0x1c] sm:$0xf] %vm2249_vm12, %v2168_v7  ;;  %v2166_v11 = vpop.permute.xlu0 %2165  ;;  %v2729_v6 = vsel %vm4760_vm2, %v2724_v59, %v2728_v29  ;;  %v2748_v7 = vrot.slane %v2747_v60, 4  ;;  %v4219_v60 = vld [vmem:[%s4749_s19 + $0x98] sm:$0x1] }
 0x166   : > { %2256 = vst.msk [vmem:[#allocation2 + $0x18] sm:$0xf] %vm2249_vm12, %v2166_v11  ;;  %1854 = vrot.lane.b32.xlu1 %v1671_v2, %s4700_s23  ;;  %v2762_v2 = vrot.slane %v2760_v56, 5  ;;  %v3198_v11 = vrot.slane %v4404_v4, 5  ;;  %v1712_v56 = vrot.slane %v1710_v44, 4 }
 0x167   : > { %1852 = vrot.lane.b32.xlu0 %v1661_v8, %s4700_s23  ;;  %v4402_v8 = vld [vmem:[%s4749_s19 + $0x80] sm:$0x1]  ;;  %v2753_v18 = vsel %vm4760_vm2, %v2748_v7, %v2752_v43  ;;  %v1706_v43 = vshll.u32 %v4218_v34, 16  ;;  %v4174_v7 = vld [vmem:[%s4749_s19 + $0x90] sm:$0xf] }
 0x168   : > { %v2358_v19 = vpop.permute.xlu1 %2357  ;;  %v2763_v12 = vsel %vm4760_vm2, %v2758_v1, %v2762_v2  ;;  %v3194_v14 = vrot.slane %v4402_v8, 5  ;;  %v3200_v23 = vrot.slane %v3198_v11, 4  ;;  %v4175_v1 = vld [vmem:[%s4749_s19 + $0x94] sm:$0xf] }
 0x169   : > { %2449 = vst.msk [vmem:[#allocation2 + $0x14] sm:$0xf] %vm2443_vm13, %v2358_v19  ;;  %v2356_v24 = vpop.permute.xlu0 %2355  ;;  %v4432_v19 = vrot.slane %v4400_v10, 9  ;;  %v1708_v55 = vrot.slane %v1706_v43, 5  ;;  %v4263_v10 = vld [vmem:[%s4749_s19 + $0x88] sm:$0xf] }
 0x16a   : > { %2448 = vst.msk [vmem:[#allocation2 + $0x10] sm:$0xf] %vm2443_vm13, %v2356_v24  ;;  %2187 = vrot.lane.b32.xlu1 %v2103_v16, %s4701_s24  ;;  %v4403_v16 = vld [vmem:[%s4749_s19 + $0x84] sm:$0xe]  ;;  %v3201_v24 = vrot.slane %v4405_v15, 5  ;;  %v2113_v15 = vrot.slane %v4263_v10, 5 }
 0x16b   : > { %2185 = vrot.lane.b32.xlu0 %v2100_v20, %s4701_s24  ;;  %v4215_v20 = vld [vmem:[%s4749_s19 + $0x88] sm:$0xf]  ;;  %v4433_v25 = vrot.slane %v4403_v16, 9  ;;  %v3192_v31 = vsel %vm4904_vm6, %v4432_v19, %v3191_v3  ;;  %v1713_v4 = vor.u32 %v1712_v56, %v1708_v55  ;;  %v4266_v16 = vld [vmem:[%s4749_s19 + $0x94] sm:$0xf] }
 0x16c   : > { %v2362_v33 = vpop.permute.xlu1 %2361  ;;  %v1686_v29 = vshrl.u32 %v4215_v20, 16  ;;  %v3202_v38 = vsel %vm4904_vm6, %v3200_v23, %v3201_v24  ;;  %v2120_v23 = vrot.slane %v4266_v16, 5  ;;  %v4360_v56 = vld [vmem:[%s4749_s19 + $0x98] sm:$0x1] }
 0x16d   : > { %2451 = vst.msk [vmem:[#allocation2 + $0x1c] sm:$0xf] %vm2443_vm13, %v2362_v33  ;;  %v2360_v39 = vpop.permute.xlu0 %2359  ;;  %v1676_v33 = vshll.u32 %v4214_v22, 16  ;;  %v4262_v22 = vld [vmem:[%s4749_s19 + $0x84] sm:$0xe] }
 0x16e   : > { %2450 = vst.msk [vmem:[#allocation2 + $0x18] sm:$0xf] %vm2443_vm13, %v2360_v39  ;;  %2191 = vrot.lane.b32.xlu1 %v2110_v26, %s4701_s24  ;;  %v3195_v26 = vsel %vm4904_vm6, %v3193_v13, %v3194_v14  ;;  %v3199_v39 = vsel %vm4904_vm6, %v4433_v25, %v3198_v11  ;;  %v1688_v42 = vrot.slane %v1686_v29, 4  ;;  %v1714_v13 = vrot.slane %v1713_v4, 4  ;;  %v4265_v29 = vld [vmem:[%s4749_s19 + $0x90] sm:$0xe] }
 0x16f   : > { %2189 = vrot.lane.b32.xlu0 %v2107_v28, %s4701_s24  ;;  %v1682_v28 = vshll.u32 %v4215_v20, 16  ;;  %v1678_v47 = vrot.slane %v1676_v33, 5  ;;  %v4264_v20 = vld [vmem:[%s4749_s19 + $0x8c] sm:$0x1]  ;;  %v2115_v25 = vrot.slane %v2113_v15, 4 }
 0x170   : > { %v2919_v46 = vpop.permute.xlu1 %2918  ;;  %v4359_v33 = vld [vmem:[%s4749_s19 + $0x94] sm:$0xf] }
 0x171   : > { %3010 = vst.msk [vmem:[#allocation2 + $0x14] sm:$0xf] %vm3004_vm14, %v2919_v46  ;;  %v2917_v51 = vpop.permute.xlu0 %2916  ;;  %v1684_v41 = vrot.slane %v1682_v28, 5  ;;  %v4267_v28 = vld [vmem:[%s4749_s19 + $0x98] sm:$0x1] }
 0x172   : > { %3009 = vst.msk [vmem:[#allocation2 + $0x10] sm:$0xf] %vm3004_vm14, %v2917_v51  ;;  %2381 = vrot.lane.b32.xlu1 %v4313_v40, %s4702_s29  ;;  %v4216_v40 = vld [vmem:[%s4749_s19 + $0x8c] sm:$0x1]  ;;  %v2123_v37 = vrot.slane %v4267_v28, 5 }
 0x173   : > { %2379 = vrot.lane.b32.xlu0 %v4312_v45, %s4702_s29  ;;  %v1675_v45 = vrot.slane %v1673_v32, 4  ;;  %v1689_v53 = vor.u32 %v1688_v42, %v1684_v41  ;;  %v1692_v54 = vshll.u32 %v4216_v40, 16  ;;  %v4290_v32 = vrot.slane %v4262_v22, 9 }
 0x174   : > { %v2923_v57 = vpop.permute.xlu1 %2922  ;;  %v2774_v40 = vshll.u32 %v4359_v33, 16 }
 0x175   : > { %3012 = vst.msk [vmem:[#allocation2 + $0x1c] sm:$0xf] %vm3004_vm14, %v2923_v57  ;;  %v2921_v63 = vpop.permute.xlu0 %2920  ;;  %v1679_v59 = vor.u32 %v1678_v47, %v1675_v45  ;;  %v1690_v2 = vrot.slane %v1689_v53, 4  ;;  %v1694_v3 = vrot.slane %v1692_v54, 5  ;;  %v2114_v43 = vsel %vm4904_vm6, %v4290_v32, %v2113_v15  ;;  %v4362_v45 = vld [vmem:[%s4749_s19 + $0xa0] sm:$0xf] }
 0x176   : > { %3011 = vst.msk [vmem:[#allocation2 + $0x18] sm:$0xf] %vm3004_vm14, %v2921_v63  ;;  %2385 = vrot.lane.b32.xlu1 %v4315_v52, %s4702_s29  ;;  %v4173_v52 = vld [vmem:[%s4749_s19 + $0x88] sm:$0xf]  ;;  %v1702_v63 = vrot.slane %v1700_v49, 5  ;;  %v2798_v53 = vshll.u32 %v4362_v45, 16 }
 0x177   : > { %2383 = vrot.lane.b32.xlu0 %v4314_v58, %s4702_s29  ;;  %v4172_v58 = vld [vmem:[%s4749_s19 + $0x84] sm:$0xf]  ;;  %v1680_v8 = vrot.slane %v1679_v59, 4  ;;  %v2802_v54 = vshrl.u32 %v4362_v45, 16  ;;  %v2789_v59 = vshrl.u32 %v4361_v48, 16 }
 0x178   : > { %v3256_v5 = vpop.permute.xlu1 %3255 }
 0x179   : > { %3347 = vst.msk [vmem:[#allocation2 + $0x14] sm:$0xf] %vm3341_vm15, %v3256_v5  ;;  %v3254_v9 = vpop.permute.xlu0 %3253  ;;  %v1716_v5 = vshll.u32 %v4219_v60, 16  ;;  %v2792_v60 = vshll.u32 %v4361_v48, 16 }
 0x17a   : > { %3346 = vst.msk [vmem:[#allocation2 + $0x10] sm:$0xf] %vm3341_vm15, %v3254_v9  ;;  %2942 = vrot.lane.b32.xlu1 %v2739_v0, %s4703_s7  ;;  %v1703_v9 = vor.u32 %v1702_v63, %v1699_v61  ;;  %v4317_v63 = vld [vmem:[%s4749_s19 + $0x94] sm:$0xf] }
 0x17b   : > { %2940 = vrot.lane.b32.xlu0 %v2729_v6, %s4703_s7  ;;  %v1718_v14 = vrot.slane %v1716_v5, 5  ;;  %v4316_v5 = vld [vmem:[%s4749_s19 + $0x90] sm:$0xf] }
 0x17c   : > { %v3260_v17 = vpop.permute.xlu1 %3259  ;;  %v1704_v19 = vrot.slane %v1703_v9, 4  ;;  %v2794_v9 = vrot.slane %v2792_v60, 5  ;;  %v4223_v60 = vld [vmem:[%s4749_s19 + $0xa8] sm:$0xf] }
 0x17d   : > { %3349 = vst.msk [vmem:[#allocation2 + $0x1c] sm:$0xf] %vm3341_vm15, %v3260_v17  ;;  %v3258_v21 = vpop.permute.xlu0 %3257  ;;  %v1719_v24 = vsel %vm4760_vm2, %v1714_v13, %v1718_v14 }
 0x17e   : > { %3348 = vst.msk [vmem:[#allocation2 + $0x18] sm:$0xf] %vm3341_vm15, %v3258_v21  ;;  %2946 = vrot.lane.b32.xlu1 %v2763_v12, %s4703_s7  ;;  %v1695_v12 = vsel %vm4760_vm2, %v1690_v2, %v1694_v3  ;;  %v5832_v2 = vrot.slane %v2798_v53, 5  ;;  %v2804_v3 = vrot.slane %v2802_v54, 4 }
 0x17f   : > { %2944 = vrot.lane.b32.xlu0 %v2753_v18, %s4703_s7  ;;  %v1685_v18 = vsel %vm4760_vm2, %v1680_v8, %v1684_v41  ;;  %v2778_v41 = vshrl.u32 %v4359_v33, 16  ;;  %v2791_v8 = vrot.slane %v2789_v59, 4 }
 0x180   : > { %v1835_v30 = vpop.permute.xlu1 %1834  ;;  %v2805_v14 = vor.u32 %v2804_v3, %v5832_v2 }
 0x181   : > { %1922 = vst.msk [vmem:[#allocation2 + $0x24] sm:$0xf] %vm1912_vm11, %v1835_v30  ;;  %v1833_v35 = vpop.permute.xlu0 %1832  ;;  %v4659_v36 = vld [vmem:[#allocation2 + $0x10] sm:$0xff]  }
 0x182   : > { %1921 = vst.msk [vmem:[#allocation2 + $0x20] sm:$0xf] %vm1912_vm11, %v1833_v35  ;;  %3279 = vrot.lane.b32.xlu1 %v3195_v26, %s4704_s10  ;;  %4579 = vmatprep.mubr.msk.bf16.mxu0 %vm3522_vm0, %v4659_v36  ;;  %v2116_v26 = vrot.slane %v4264_v20, 5  ;;  %v4358_v35 = vld [vmem:[%s4749_s19 + $0x90] sm:$0xf]  ;;  %v2122_v36 = vrot.slane %v2120_v23, 4 }
 0x183   : > { %3277 = vrot.lane.b32.xlu0 %v3192_v31, %s4704_s10  ;;  %v1709_v31 = vsel %vm4760_vm2, %v1704_v19, %v1708_v55  ;;  %v2765_v44 = vshrl.u32 %v4358_v35, 16  ;;  %v2795_v19 = vor.u32 %v2794_v9, %v2791_v8  ;;  %v4407_v20 = vld [vmem:[%s4749_s19 + $0x94] sm:$0xf]  ;;  %v1745_v8 = vshrl.u32 %v4223_v60, 16 }
 0x184   : > { %v1839_v46 = vpop.permute.xlu1 %1838  ;;  %v2124_v49 = vsel %vm4904_vm6, %v2122_v36, %v2123_v37  ;;  %v1748_v9 = vshll.u32 %v4223_v60, 16 }
 0x185   : > { %1924 = vst.msk [vmem:[#allocation2 + $0x2c] sm:$0xf] %vm1912_vm11, %v1839_v46  ;;  %v1837_v50 = vpop.permute.xlu0 %1836  ;;  %v4660_v51 = vld [vmem:[#allocation2 + $0x18] sm:$0xff]   ;;  %v2768_v46 = vshll.u32 %v4358_v35, 16 }
 0x186   : > { %1923 = vst.msk [vmem:[#allocation2 + $0x28] sm:$0xf] %vm1912_vm11, %v1837_v50  ;;  %3283 = vrot.lane.b32.xlu1 %v3202_v38, %s4704_s10  ;;  %4580 = vmatmul.mubr.msk.bf16.gmra.mxu0 %vm3522_vm0, %v4660_v51  ;;  %v4291_v38 = vrot.slane %v4265_v29, 9  ;;  %v2776_v51 = vrot.slane %v2774_v40, 5  ;;  %v4409_v40 = vld [vmem:[%s4749_s19 + $0x9c] sm:$0xe] }
 0x187   : > { %3281 = vrot.lane.b32.xlu0 %v3199_v39, %s4704_s10  ;;  %v2117_v39 = vsel %vm4904_vm6, %v2115_v25, %v2116_v26  ;;  %v3205_v25 = vrot.slane %v4407_v20, 5  ;;  %v4410_v26 = vld [vmem:[%s4749_s19 + $0xa0] sm:$0xf]  ;;  %v1747_v20 = vrot.slane %v1745_v8, 4 }
 0x188   : > { %v2172_v57 = vpop.permute.xlu1 %2171  ;;  %v2121_v50 = vsel %vm4904_vm6, %v4291_v38, %v2120_v23  ;;  %v2806_v23 = vrot.slane %v2805_v14, 4  ;;  %v3212_v35 = vrot.slane %v4410_v26, 5 }
 0x189   : > { %2259 = vst.msk [vmem:[#allocation2 + $0x24] sm:$0xf] %vm2249_vm12, %v2172_v57  ;;  %v2170_v0 = vpop.permute.xlu0 %2169  ;;  %v2767_v57 = vrot.slane %v2765_v44, 4  ;;  %v3207_v37 = vrot.slane %v3205_v25, 4  ;;  %v4221_v44 = vld [vmem:[%s4749_s19 + $0xa0] sm:$0xf] }
 0x18a   : > { %2258 = vst.msk [vmem:[#allocation2 + $0x20] sm:$0xf] %vm2249_vm12, %v2170_v0  ;;  %1297 = vrot.lane.b32.xlu1 %v4173_v52, %s4699_s22  ;;  %v2780_v52 = vrot.slane %v2778_v41, 4  ;;  %v3214_v48 = vrot.slane %v3212_v35, 4  ;;  %v1734_v53 = vshrl.u32 %v4221_v44, 16 }
 0x18b   : > { %1295 = vrot.lane.b32.xlu0 %v4172_v58, %s4699_s22  ;;  %v2770_v58 = vrot.slane %v2768_v46, 5 }
 0x18c   : > { %v2176_v6 = vpop.permute.xlu1 %2175  ;;  %v2781_v0 = vor.u32 %v2780_v52, %v2776_v51  ;;  %v1730_v52 = vshll.u32 %v4221_v44, 16 }
 0x18d   : > { %2261 = vst.msk [vmem:[#allocation2 + $0x2c] sm:$0xf] %vm2249_vm12, %v2176_v6  ;;  %v2174_v11 = vpop.permute.xlu0 %2173  ;;  %v2771_v6 = vor.u32 %v2770_v58, %v2767_v57  ;;  %v4224_v58 = vld [vmem:[%s4749_s19 + $0xac] sm:$0xf] }
 0x18e   : > { %2260 = vst.msk [vmem:[#allocation2 + $0x28] sm:$0xf] %vm2249_vm12, %v2174_v11  ;;  %1301 = vrot.lane.b32.xlu1 %v4175_v1, %s4699_s22  ;;  %v2784_v1 = vshll.u32 %v4360_v56, 16  ;;  %v4319_v11 = vld [vmem:[%s4749_s19 + $0xa0] sm:$0xf]  ;;  %v1758_v3 = vshrl.u32 %v4224_v58, 16 }
 0x18f   : > { %1299 = vrot.lane.b32.xlu0 %v4174_v7, %s4699_s22  ;;  %v4363_v7 = vld [vmem:[%s4749_s19 + $0xa4] sm:$0x1] }
 0x190   : > { %v2366_v17 = vpop.permute.xlu1 %2365  ;;  %v2786_v13 = vrot.slane %v2784_v1, 5  ;;  %v2808_v15 = vshll.u32 %v4363_v7, 16  ;;  %v1736_v1 = vrot.slane %v1734_v53, 4 }
 0x191   : > { %2453 = vst.msk [vmem:[#allocation2 + $0x24] sm:$0xf] %vm2443_vm13, %v2366_v17  ;;  %v2364_v21 = vpop.permute.xlu0 %2363  ;;  %v4318_v17 = vld [vmem:[%s4749_s19 + $0x9c] sm:$0xf] }
 0x192   : > { %2452 = vst.msk [vmem:[#allocation2 + $0x20] sm:$0xf] %vm2443_vm13, %v2364_v21  ;;  %1858 = vrot.lane.b32.xlu1 %v1695_v12, %s4700_s23  ;;  %v2782_v12 = vrot.slane %v2781_v0, 4  ;;  %v1732_v0 = vrot.slane %v1730_v52, 5 }
 0x193   : > { %1856 = vrot.lane.b32.xlu0 %v1685_v18, %s4700_s23  ;;  %v2772_v18 = vrot.slane %v2771_v6, 4 }
 0x194   : > { %v2370_v30 = vpop.permute.xlu1 %2369  ;;  %v2787_v22 = vsel %vm4760_vm2, %v2782_v12, %v2786_v13  ;;  %v1737_v12 = vor.u32 %v1736_v1, %v1732_v0 }
 0x195   : > { %2455 = vst.msk [vmem:[#allocation2 + $0x2c] sm:$0xf] %vm2443_vm13, %v2370_v30  ;;  %v2368_v34 = vpop.permute.xlu0 %2367  ;;  %v2777_v29 = vsel %vm4760_vm2, %v2772_v18, %v2776_v51  ;;  %v2796_v30 = vrot.slane %v2795_v19, 4  ;;  %v4225_v19 = vld [vmem:[%s4749_s19 + $0xb0] sm:$0x1] }
 0x196   : > { %2454 = vst.msk [vmem:[#allocation2 + $0x28] sm:$0xf] %vm2443_vm13, %v2368_v34  ;;  %1862 = vrot.lane.b32.xlu1 %v1719_v24, %s4700_s23  ;;  %v2810_v24 = vrot.slane %v2808_v15, 5  ;;  %v4406_v34 = vld [vmem:[%s4749_s19 + $0x90] sm:$0xe]  ;;  %v1760_v15 = vrot.slane %v1758_v3, 4 }
 0x197   : > { %1860 = vrot.lane.b32.xlu0 %v1709_v31, %s4700_s23  ;;  %v4408_v31 = vld [vmem:[%s4749_s19 + $0x98] sm:$0x1] }
 0x198   : > { %v2927_v42 = vpop.permute.xlu1 %2926  ;;  %v2811_v36 = vsel %vm4760_vm2, %v2806_v23, %v2810_v24  ;;  %v3208_v38 = vrot.slane %v4408_v31, 5  ;;  %v4179_v23 = vld [vmem:[%s4749_s19 + $0xac] sm:$0xf]  ;;  %v1738_v24 = vrot.slane %v1737_v12, 4 }
 0x199   : > { %3014 = vst.msk [vmem:[#allocation2 + $0x24] sm:$0xf] %vm3004_vm14, %v2927_v42  ;;  %v2925_v47 = vpop.permute.xlu0 %2924  ;;  %v2801_v42 = vsel %vm4760_vm2, %v2796_v30, %v5832_v2  ;;  %v1754_v2 = vshll.u32 %v4224_v58, 16  ;;  %v4178_v30 = vld [vmem:[%s4749_s19 + $0xa8] sm:$0xf] }
 0x19a   : > { %3013 = vst.msk [vmem:[#allocation2 + $0x20] sm:$0xf] %vm3004_vm14, %v2925_v47  ;;  %2195 = vrot.lane.b32.xlu1 %v2117_v39, %s4701_s24  ;;  %v4411_v39 = vld [vmem:[%s4749_s19 + $0xa4] sm:$0x1]  ;;  %v4220_v47 = vld [vmem:[%s4749_s19 + $0x9c] sm:$0xf]  ;;  %v3209_v51 = vsel %vm4904_vm6, %v3207_v37, %v3208_v38 }
 0x19b   : > { %2193 = vrot.lane.b32.xlu0 %v2114_v43, %s4701_s24  ;;  %v4434_v43 = vrot.slane %v4406_v34, 9  ;;  %v1721_v56 = vshrl.u32 %v4220_v47, 16  ;;  %v1724_v57 = vshll.u32 %v4220_v47, 16  ;;  %v1756_v14 = vrot.slane %v1754_v2, 5 }
 0x19c   : > { %v2931_v55 = vpop.permute.xlu1 %2930 }
 0x19d   : > { %3016 = vst.msk [vmem:[#allocation2 + $0x2c] sm:$0xf] %vm3004_vm14, %v2931_v55  ;;  %v2929_v61 = vpop.permute.xlu0 %2928  ;;  %v3206_v55 = vsel %vm4904_vm6, %v4434_v43, %v3205_v25  ;;  %v1723_v6 = vrot.slane %v1721_v56, 4  ;;  %v1726_v7 = vrot.slane %v1724_v57, 5  ;;  %v1761_v26 = vor.u32 %v1760_v15, %v1756_v14  ;;  %v4270_v43 = vld [vmem:[%s4749_s19 + $0xa4] sm:$0x1] }
 0x19e   : > { %3015 = vst.msk [vmem:[#allocation2 + $0x28] sm:$0xf] %vm3004_vm14, %v2929_v61  ;;  %2199 = vrot.lane.b32.xlu1 %v2124_v49, %s4701_s24  ;;  %v3215_v49 = vrot.slane %v4411_v39, 5  ;;  %v4272_v39 = vld [vmem:[%s4749_s19 + $0xac] sm:$0xf] }
 0x19f   : > { %2197 = vrot.lane.b32.xlu0 %v2121_v50, %s4701_s24  ;;  %v4435_v50 = vrot.slane %v4409_v40, 9  ;;  %v1727_v18 = vor.u32 %v1726_v7, %v1723_v6  ;;  %v4364_v57 = vld [vmem:[%s4749_s19 + $0xa8] sm:$0xf]  ;;  %v4367_v7 = vld [vmem:[%s4749_s19 + $0xb4] sm:$0xf] }
 0x1a0   : > { %v3264_v4 = vpop.permute.xlu1 %3263  ;;  %v3216_v61 = vsel %vm4904_vm6, %v3214_v48, %v3215_v49  ;;  %v2130_v49 = vrot.slane %v4270_v43, 5  ;;  %v2813_v3 = vshrl.u32 %v4364_v57, 16  ;;  %v4366_v15 = vld [vmem:[%s4749_s19 + $0xb0] sm:$0x1] }
 0x1a1   : > { %3351 = vst.msk [vmem:[#allocation2 + $0x24] sm:$0xf] %vm3341_vm15, %v3264_v4  ;;  %v3262_v10 = vpop.permute.xlu0 %3261  ;;  %v1728_v31 = vrot.slane %v1727_v18, 4  ;;  %v2837_v18 = vshrl.u32 %v4367_v7, 16 }
 0x1a2   : > { %3350 = vst.msk [vmem:[#allocation2 + $0x20] sm:$0xf] %vm3341_vm15, %v3262_v10  ;;  %2389 = vrot.lane.b32.xlu1 %v4317_v63, %s4702_s29  ;;  %v3213_v63 = vsel %vm4904_vm6, %v4435_v50, %v3212_v35  ;;  %v4273_v50 = vld [vmem:[%s4749_s19 + $0xb0] sm:$0x1] }
 0x1a3   : > { %2387 = vrot.lane.b32.xlu0 %v4316_v5, %s4702_s29  ;;  %v4222_v5 = vld [vmem:[%s4749_s19 + $0xa4] sm:$0x1] }
 0x1a4   : > { %v3268_v16 = vpop.permute.xlu1 %3267  ;;  %v1740_v13 = vshll.u32 %v4222_v5, 16  ;;  %v4368_v5 = vld [vmem:[%s4749_s19 + $0xb8] sm:$0xf] }
 0x1a5   : > { %3353 = vst.msk [vmem:[#allocation2 + $0x2c] sm:$0xf] %vm3341_vm15, %v3268_v16  ;;  %v3266_v21 = vpop.permute.xlu0 %3265  ;;  %v2846_v12 = vshll.u32 %v4368_v5, 16 }
 0x1a6   : > { %3352 = vst.msk [vmem:[#allocation2 + $0x28] sm:$0xf] %vm3341_vm15, %v3266_v21  ;;  %2393 = vrot.lane.b32.xlu1 %v4319_v11, %s4702_s29  ;;  %v4177_v11 = vld [vmem:[%s4749_s19 + $0xa0] sm:$0xf]  ;;  %v1750_v21 = vrot.slane %v1748_v9, 5  ;;  %v1742_v25 = vrot.slane %v1740_v13, 5 }
 0x1a7   : > { %2391 = vrot.lane.b32.xlu0 %v4318_v17, %s4702_s29  ;;  %v4176_v17 = vld [vmem:[%s4749_s19 + $0x9c] sm:$0xf]  ;;  %v2850_v13 = vshrl.u32 %v4368_v5, 16 }
 0x1a8   : > { %v1843_v28 = vpop.permute.xlu1 %1842  ;;  %v1743_v35 = vsel %vm4760_vm2, %v1738_v24, %v1742_v25  ;;  %v2832_v24 = vshll.u32 %v4366_v15, 16  ;;  %v5954_v25 = vrot.slane %v2846_v12, 5 }
 0x1a9   : > { %1926 = vst.msk [vmem:[#allocation2 + $0x34] sm:$0xf] %vm1912_vm11, %v1843_v28  ;;  %v1841_v32 = vpop.permute.xlu0 %1840  ;;  %v4661_v33 = vld [vmem:[#allocation2 + $0x20] sm:$0xff]   ;;  %v1764_v28 = vshll.u32 %v4225_v19, 16  ;;  %v2840_v19 = vshll.u32 %v4367_v7, 16 }
 0x1aa   : > { %1925 = vst.msk [vmem:[#allocation2 + $0x30] sm:$0xf] %vm1912_vm11, %v1841_v32  ;;  %2950 = vrot.lane.b32.xlu1 %v2787_v22, %s4703_s7  ;;  %4583 = vmatprep.mubr.msk.bf16.mxu0 %vm3522_vm0, %v4661_v33  ;;  %v1751_v32 = vor.u32 %v1750_v21, %v1747_v20  ;;  %v4269_v33 = vld [vmem:[%s4749_s19 + $0xa0] sm:$0xf]  ;;  %v4321_v21 = vld [vmem:[%s4749_s19 + $0xac] sm:$0xf] }
 0x1ab   : > { %2948 = vrot.lane.b32.xlu0 %v2777_v29, %s4703_s7  ;;  %v1766_v37 = vrot.slane %v1764_v28, 5  ;;  %v2127_v38 = vrot.slane %v4269_v33, 5 }
 0x1ac   : > { %v1847_v41 = vpop.permute.xlu1 %1846 }
 0x1ad   : > { %1928 = vst.msk [vmem:[#allocation2 + $0x3c] sm:$0xf] %vm1912_vm11, %v1847_v41  ;;  %v1845_v46 = vpop.permute.xlu0 %1844  ;;  %v4662_v45 = vld [vmem:[#allocation2 + $0x28] sm:$0xff]   ;;  %v1733_v41 = vsel %vm4760_vm2, %v1728_v31, %v1732_v0  ;;  %v2129_v48 = vrot.slane %v2127_v38, 4  ;;  %v2839_v31 = vrot.slane %v2837_v18, 4 }
 0x1ae   : > { %1927 = vst.msk [vmem:[#allocation2 + $0x38] sm:$0xf] %vm1912_vm11, %v1845_v46  ;;  %2954 = vrot.lane.b32.xlu1 %v2811_v36, %s4703_s7  ;;  %4584 = vmatmul.mubr.msk.bf16.gmra.mxu0 %vm3522_vm0, %v4662_v45  ;;  %v1762_v36 = vrot.slane %v1761_v26, 4  ;;  %v4268_v46 = vld [vmem:[%s4749_s19 + $0x9c] sm:$0xe]  ;;  %v2134_v45 = vrot.slane %v4272_v39, 5 }
 0x1af   : > { %2952 = vrot.lane.b32.xlu0 %v2801_v42, %s4703_s7  ;;  %v1752_v42 = vrot.slane %v1751_v32, 4  ;;  %v2852_v26 = vrot.slane %v2850_v13, 4  ;;  %v2842_v32 = vrot.slane %v2840_v19, 5  ;;  %v4229_v19 = vld [vmem:[%s4749_s19 + $0xc0] sm:$0xf] }
 0x1b0   : > { %v2180_v54 = vpop.permute.xlu1 %2179  ;;  %v1767_v47 = vsel %vm4760_vm2, %v1762_v36, %v1766_v37  ;;  %v2136_v58 = vrot.slane %v2134_v45, 4  ;;  %v4322_v36 = vld [vmem:[%s4749_s19 + $0xb4] sm:$0xf] }
 0x1b1   : > { %2263 = vst.msk [vmem:[#allocation2 + $0x34] sm:$0xf] %vm2249_vm12, %v2180_v54  ;;  %v2178_v59 = vpop.permute.xlu0 %2177  ;;  %v1757_v53 = vsel %vm4760_vm2, %v1752_v42, %v1756_v14  ;;  %v4292_v54 = vrot.slane %v4268_v46, 9  ;;  %v2853_v39 = vor.u32 %v2852_v26, %v5954_v25  ;;  %v2843_v43 = vor.u32 %v2842_v32, %v2839_v31 }
 0x1b2   : > { %2262 = vst.msk [vmem:[#allocation2 + $0x30] sm:$0xf] %vm2249_vm12, %v2178_v59  ;;  %3287 = vrot.lane.b32.xlu1 %v3209_v51, %s4704_s10  ;;  %v4271_v51 = vld [vmem:[%s4749_s19 + $0xa8] sm:$0xe]  ;;  %v2137_v59 = vrot.slane %v4273_v50, 5  ;;  %v1793_v31 = vshrl.u32 %v4229_v19, 16 }
 0x1b3   : > { %3285 = vrot.lane.b32.xlu0 %v3206_v55, %s4704_s10  ;;  %v4365_v55 = vld [vmem:[%s4749_s19 + $0xac] sm:$0xf]  ;;  %v4293_v60 = vrot.slane %v4271_v51, 9  ;;  %v2128_v2 = vsel %vm4904_vm6, %v4292_v54, %v2127_v38  ;;  %v2834_v38 = vrot.slane %v2832_v24, 5  ;;  %v4416_v51 = vld [vmem:[%s4749_s19 + $0xb8] sm:$0xf] }
 0x1b4   : > { %v2184_v4 = vpop.permute.xlu1 %2183  ;;  %v2826_v0 = vshrl.u32 %v4365_v55, 16  ;;  %v2138_v8 = vsel %vm4904_vm6, %v2136_v58, %v2137_v59  ;;  %v2844_v54 = vrot.slane %v2843_v43, 4  ;;  %v3226_v58 = vrot.slane %v4416_v51, 5 }
 0x1b5   : > { %2265 = vst.msk [vmem:[#allocation2 + $0x3c] sm:$0xf] %vm2249_vm12, %v2184_v4  ;;  %v2182_v10 = vpop.permute.xlu0 %2181  ;;  %v2816_v4 = vshll.u32 %v4364_v57, 16  ;;  %v2135_v9 = vsel %vm4904_vm6, %v4293_v60, %v2134_v45  ;;  %v4412_v57 = vld [vmem:[%s4749_s19 + $0xa8] sm:$0xe]  ;;  %v1796_v32 = vshll.u32 %v4229_v19, 16 }
 0x1b6   : > { %2264 = vst.msk [vmem:[#allocation2 + $0x38] sm:$0xf] %vm2249_vm12, %v2182_v10  ;;  %3291 = vrot.lane.b32.xlu1 %v3216_v61, %s4704_s10  ;;  %v2131_v61 = vsel %vm4904_vm6, %v2129_v48, %v2130_v49  ;;  %v2854_v48 = vrot.slane %v2853_v39, 4  ;;  %v3228_v7 = vrot.slane %v3226_v58, 4  ;;  %v1795_v43 = vrot.slane %v1793_v31, 4 }
 0x1b7   : > { %3289 = vrot.lane.b32.xlu0 %v3213_v63, %s4704_s10  ;;  %v2822_v63 = vshll.u32 %v4365_v55, 16  ;;  %v4414_v55 = vld [vmem:[%s4749_s19 + $0xb0] sm:$0x1] }
 0x1b8   : > { %v2374_v16 = vpop.permute.xlu1 %2373 }
 0x1b9   : > { %2457 = vst.msk [vmem:[#allocation2 + $0x34] sm:$0xf] %vm2443_vm13, %v2374_v16  ;;  %v2372_v22 = vpop.permute.xlu0 %2371  ;;  %v5944_v10 = vrot.slane %v2822_v63, 5  ;;  %v2815_v16 = vrot.slane %v2813_v3, 4  ;;  %v4417_v63 = vld [vmem:[%s4749_s19 + $0xbc] sm:$0x1] }
 0x1ba   : > { %2456 = vst.msk [vmem:[#allocation2 + $0x30] sm:$0xf] %vm2443_vm13, %v2372_v22  ;;  %1305 = vrot.lane.b32.xlu1 %v4177_v11, %s4699_s22  ;;  %v2828_v11 = vrot.slane %v2826_v0, 4  ;;  %v4320_v22 = vld [vmem:[%s4749_s19 + $0xa8] sm:$0xf]  ;;  %v4436_v3 = vrot.slane %v4412_v57, 9 }
 0x1bb   : > { %1303 = vrot.lane.b32.xlu0 %v4176_v17, %s4699_s22  ;;  %v2818_v17 = vrot.slane %v2816_v4, 5  ;;  %v4415_v0 = vld [vmem:[%s4749_s19 + $0xb4] sm:$0xe]  ;;  %v4227_v4 = vld [vmem:[%s4749_s19 + $0xb8] sm:$0xf] }
 0x1bc   : > { %v2378_v29 = vpop.permute.xlu1 %2377  ;;  %v1782_v12 = vshrl.u32 %v4227_v4, 16 }
 0x1bd   : > { %2459 = vst.msk [vmem:[#allocation2 + $0x3c] sm:$0xf] %vm2443_vm13, %v2378_v29  ;;  %v2376_v34 = vpop.permute.xlu0 %2375  ;;  %v2819_v29 = vor.u32 %v2818_v17, %v2815_v16  ;;  %v4230_v17 = vld [vmem:[%s4749_s19 + $0xc4] sm:$0xf] }
 0x1be   : > { %2458 = vst.msk [vmem:[#allocation2 + $0x38] sm:$0xf] %vm2443_vm13, %v2376_v34  ;;  %1309 = vrot.lane.b32.xlu1 %v4179_v23, %s4699_s22  ;;  %v2829_v23 = vor.u32 %v2828_v11, %v5944_v10  ;;  %v1778_v11 = vshll.u32 %v4227_v4, 16  ;;  %v1802_v24 = vshll.u32 %v4230_v17, 16  ;;  %v4274_v4 = vld [vmem:[%s4749_s19 + $0xb4] sm:$0xe] }
 0x1bf   : > { %1307 = vrot.lane.b32.xlu0 %v4178_v30, %s4699_s22  ;;  %v4369_v30 = vld [vmem:[%s4749_s19 + $0xbc] sm:$0x1]  ;;  %v2820_v42 = vrot.slane %v2819_v29, 4 }
 0x1c0   : > { %v2935_v40 = vpop.permute.xlu1 %2934  ;;  %v2830_v37 = vrot.slane %v2829_v23, 4  ;;  %v1784_v23 = vrot.slane %v1782_v12, 4 }
 0x1c1   : > { %3018 = vst.msk [vmem:[#allocation2 + $0x34] sm:$0xf] %vm3004_vm14, %v2935_v40  ;;  %v2933_v44 = vpop.permute.xlu0 %2932  ;;  %v2856_v40 = vshll.u32 %v4369_v30, 16 }
 0x1c2   : > { %3017 = vst.msk [vmem:[#allocation2 + $0x30] sm:$0xf] %vm3004_vm14, %v2933_v44  ;;  %1866 = vrot.lane.b32.xlu1 %v1743_v35, %s4700_s23  ;;  %v4323_v35 = vld [vmem:[%s4749_s19 + $0xb8] sm:$0xf]  ;;  %v4413_v44 = vld [vmem:[%s4749_s19 + $0xac] sm:$0xf] }
 0x1c3   : > { %1864 = vrot.lane.b32.xlu0 %v1733_v41, %s4700_s23  ;;  %v2858_v49 = vrot.slane %v2856_v40, 5  ;;  %v3219_v50 = vrot.slane %v4413_v44, 5  ;;  %v4180_v40 = vld [vmem:[%s4749_s19 + $0xb4] sm:$0xf]  ;;  %v1798_v44 = vrot.slane %v1796_v32, 5 }
 0x1c4   : > { %v2939_v52 = vpop.permute.xlu1 %2938 }
 0x1c5   : > { %3020 = vst.msk [vmem:[#allocation2 + $0x3c] sm:$0xf] %vm3004_vm14, %v2939_v52  ;;  %v2937_v56 = vpop.permute.xlu0 %2936  ;;  %v2859_v59 = vsel %vm4760_vm2, %v2854_v48, %v2858_v49  ;;  %v3221_v60 = vrot.slane %v3219_v50, 4 }
 0x1c6   : > { %3019 = vst.msk [vmem:[#allocation2 + $0x38] sm:$0xf] %vm3004_vm14, %v2937_v56  ;;  %1870 = vrot.lane.b32.xlu1 %v1767_v47, %s4700_s23  ;;  %v2835_v47 = vsel %vm4760_vm2, %v2830_v37, %v2834_v38  ;;  %v1804_v37 = vrot.slane %v1802_v24, 5 }
 0x1c7   : > { %1868 = vrot.lane.b32.xlu0 %v1757_v53, %s4700_s23  ;;  %v2825_v53 = vsel %vm4760_vm2, %v2820_v42, %v5944_v10  ;;  %v4231_v42 = vld [vmem:[%s4749_s19 + $0xc8] sm:$0x1] }
 0x1c8   : > { %v3272_v1 = vpop.permute.xlu1 %3271 }
 0x1c9   : > { %3355 = vst.msk [vmem:[#allocation2 + $0x34] sm:$0xf] %vm3341_vm15, %v3272_v1  ;;  %v3270_v6 = vpop.permute.xlu0 %3269 }
 0x1ca   : > { %3354 = vst.msk [vmem:[#allocation2 + $0x30] sm:$0xf] %vm3341_vm15, %v3270_v6  ;;  %2203 = vrot.lane.b32.xlu1 %v2131_v61, %s4701_s24  ;;  %v3222_v61 = vrot.slane %v4414_v55, 5  ;;  %v4226_v6 = vld [vmem:[%s4749_s19 + $0xb4] sm:$0xf] }
 0x1cb   : > { %2201 = vrot.lane.b32.xlu0 %v2128_v2, %s4701_s24  ;;  %v2849_v2 = vsel %vm4760_vm2, %v2844_v54, %v5954_v25  ;;  %v1769_v15 = vshrl.u32 %v4226_v6, 16  ;;  %v1772_v16 = vshll.u32 %v4226_v6, 16  ;;  %v1806_v25 = vshrl.u32 %v4230_v17, 16  ;;  %v4275_v55 = vld [vmem:[%s4749_s19 + $0xb8] sm:$0xf] }
 0x1cc   : > { %v3276_v14 = vpop.permute.xlu1 %3275  ;;  %v3223_v10 = vsel %vm4904_vm6, %v3221_v60, %v3222_v61  ;;  %v1799_v54 = vor.u32 %v1798_v44, %v1795_v43  ;;  %v2141_v60 = vrot.slane %v4275_v55, 5  ;;  %v4278_v61 = vld [vmem:[%s4749_s19 + $0xc4] sm:$0xf] }
 0x1cd   : > { %3357 = vst.msk [vmem:[#allocation2 + $0x3c] sm:$0xf] %vm3341_vm15, %v3276_v14  ;;  %v3274_v20 = vpop.permute.xlu0 %3273  ;;  %v3220_v14 = vsel %vm4904_vm6, %v4436_v3, %v3219_v50  ;;  %v1771_v29 = vrot.slane %v1769_v15, 4  ;;  %v1774_v30 = vrot.slane %v1772_v16, 5  ;;  %v1808_v38 = vrot.slane %v1806_v25, 4 }
 0x1ce   : > { %3356 = vst.msk [vmem:[#allocation2 + $0x38] sm:$0xf] %vm3341_vm15, %v3274_v20  ;;  %2207 = vrot.lane.b32.xlu1 %v2138_v8, %s4701_s24  ;;  %v3229_v8 = vrot.slane %v4417_v63, 5  ;;  %v1812_v50 = vshll.u32 %v4231_v42, 16  ;;  %v4370_v16 = vld [vmem:[%s4749_s19 + $0xc0] sm:$0xf] }
 0x1cf   : > { %2205 = vrot.lane.b32.xlu0 %v2135_v9, %s4701_s24  ;;  %v4437_v9 = vrot.slane %v4415_v0, 9  ;;  %v1809_v49 = vor.u32 %v1808_v38, %v1804_v37  ;;  %v2861_v25 = vshrl.u32 %v4370_v16, 16 }
 0x1d0   : > { %v1294_v28 = vpop.permute.xlu1 %1293  ;;  %v3230_v20 = vsel %vm4904_vm6, %v3228_v7, %v3229_v8  ;;  %v2143_v7 = vrot.slane %v2141_v60, 4 }
 0x1d1   : > { %1371 = vst.msk [vmem:[#allocation2 + $0x4c] sm:$0xf] %vm1351_vm10, %v1294_v28  ;;  %v1292_v33 = vpop.permute.xlu0 %1291  ;;  %v4663_v34 = vld [vmem:[#allocation2 + $0x30] sm:$0xff]   ;;  %v4228_v28 = vld [vmem:[%s4749_s19 + $0xbc] sm:$0x1] }
 0x1d2   : > { %1370 = vst.msk [vmem:[#allocation2 + $0x48] sm:$0xf] %vm1351_vm10, %v1292_v33  ;;  %2397 = vrot.lane.b32.xlu1 %v4321_v21, %s4702_s29  ;;  %4587 = vmatprep.mubr.msk.bf16.mxu0 %vm3522_vm0, %v4663_v34  ;;  %v3227_v21 = vsel %vm4904_vm6, %v4437_v9, %v3226_v58  ;;  %v4181_v34 = vld [vmem:[%s4749_s19 + $0xb8] sm:$0xf]  ;;  %v1810_v58 = vrot.slane %v1809_v49, 4 }
 0x1d3   : > { %2395 = vrot.lane.b32.xlu0 %v4320_v22, %s4702_s29  ;;  %v1780_v22 = vrot.slane %v1778_v11, 5  ;;  %v4279_v9 = vld [vmem:[%s4749_s19 + $0xc8] sm:$0x1] }
 0x1d4   : > { %v1851_v41 = vpop.permute.xlu1 %1850 }
 0x1d5   : > { %1930 = vst.msk [vmem:[#allocation2 + $0x44] sm:$0xf] %vm1912_vm11, %v1851_v41  ;;  %v1849_v46 = vpop.permute.xlu0 %1848  ;;  %v4664_v45 = vld [vmem:[#allocation2 + $0x38] sm:$0xff]   ;;  %v1775_v41 = vor.u32 %v1774_v30, %v1771_v29  ;;  %v4373_v30 = vld [vmem:[%s4749_s19 + $0xcc] sm:$0xf] }
 0x1d6   : > { %1929 = vst.msk [vmem:[#allocation2 + $0x40] sm:$0xf] %vm1912_vm11, %v1849_v46  ;;  %2401 = vrot.lane.b32.xlu1 %v4323_v35, %s4702_s29  ;;  %4588 = vmatmul.mubr.msk.bf16.gmra.mxu0 %vm3522_vm0, %v4664_v45  ;;  %v1785_v35 = vor.u32 %v1784_v23, %v1780_v22  ;;  %v4183_v45 = vld [vmem:[%s4749_s19 + $0xc4] sm:$0xf]  ;;  %v2888_v42 = vshll.u32 %v4373_v30, 16 }
 0x1d7   : > { %2399 = vrot.lane.b32.xlu0 %v4322_v36, %s4702_s29  ;;  %v1788_v36 = vshll.u32 %v4228_v28, 16  ;;  %v4374_v28 = vld [vmem:[%s4749_s19 + $0xd0] sm:$0xf] }
 0x1d8   : > { %v1855_v52 = vpop.permute.xlu1 %1854  ;;  %v2890_v55 = vrot.slane %v2888_v42, 5 }
 0x1d9   : > { %1932 = vst.msk [vmem:[#allocation2 + $0x4c] sm:$0xf] %vm1912_vm11, %v1855_v52  ;;  %v1853_v56 = vpop.permute.xlu0 %1852  ;;  %v1790_v48 = vrot.slane %v1788_v36, 5  ;;  %v4182_v52 = vld [vmem:[%s4749_s19 + $0xc0] sm:$0xf]  ;;  %v2894_v36 = vshll.u32 %v4374_v28, 16 }
 0x1da   : > { %1931 = vst.msk [vmem:[#allocation2 + $0x48] sm:$0xf] %vm1912_vm11, %v1853_v56  ;;  %2958 = vrot.lane.b32.xlu1 %v2835_v47, %s4703_s7  ;;  %v1786_v47 = vrot.slane %v1785_v35, 4 }
 0x1db   : > { %2956 = vrot.lane.b32.xlu0 %v2825_v53, %s4703_s7  ;;  %v1776_v53 = vrot.slane %v1775_v41, 4  ;;  %v2885_v41 = vshrl.u32 %v4373_v30, 16  ;;  %v2896_v49 = vrot.slane %v2894_v36, 5 }
 0x1dc   : > { %v2188_v1 = vpop.permute.xlu1 %2187  ;;  %v1791_v57 = vsel %vm4760_vm2, %v1786_v47, %v1790_v48 }
 0x1dd   : > { %2267 = vst.msk [vmem:[#allocation2 + $0x44] sm:$0xf] %vm2249_vm12, %v2188_v1  ;;  %v2186_v5 = vpop.permute.xlu0 %2185  ;;  %v1781_v0 = vsel %vm4760_vm2, %v1776_v53, %v1780_v22  ;;  %v1800_v1 = vrot.slane %v1799_v54, 4  ;;  %v4375_v53 = vld [vmem:[%s4749_s19 + $0xd4] sm:$0x1]  ;;  %v2887_v54 = vrot.slane %v2885_v41, 4 }
 0x1de   : > { %2266 = vst.msk [vmem:[#allocation2 + $0x40] sm:$0xf] %vm2249_vm12, %v2186_v5  ;;  %2962 = vrot.lane.b32.xlu1 %v2859_v59, %s4703_s7  ;;  %v1814_v59 = vrot.slane %v1812_v50, 5  ;;  %v2148_v5 = vrot.slane %v4278_v61, 5 }
 0x1df   : > { %2960 = vrot.lane.b32.xlu0 %v2849_v2, %s4703_s7  ;;  %v4276_v2 = vld [vmem:[%s4749_s19 + $0xbc] sm:$0x1]  ;;  %v1805_v12 = vsel %vm4760_vm2, %v1800_v1, %v1804_v37  ;;  %v2898_v37 = vshrl.u32 %v4374_v28, 16  ;;  %v4326_v1 = vld [vmem:[%s4749_s19 + $0xcc] sm:$0xf] }
 0x1e0   : > { %v2192_v13 = vpop.permute.xlu1 %2191  ;;  %v1815_v6 = vsel %vm4760_vm2, %v1810_v58, %v1814_v59  ;;  %v2144_v8 = vrot.slane %v4276_v2, 5  ;;  %v2150_v17 = vrot.slane %v2148_v5, 4  ;;  %v4327_v58 = vld [vmem:[%s4749_s19 + $0xd0] sm:$0xf] }
 0x1e1   : > { %2269 = vst.msk [vmem:[#allocation2 + $0x4c] sm:$0xf] %vm2249_vm12, %v2192_v13  ;;  %v2190_v18 = vpop.permute.xlu0 %2189  ;;  %v4294_v13 = vrot.slane %v4274_v4, 9  ;;  %v2900_v50 = vrot.slane %v2898_v37, 4  ;;  %v4419_v4 = vld [vmem:[%s4749_s19 + $0xc4] sm:$0xf] }
 0x1e2   : > { %2268 = vst.msk [vmem:[#allocation2 + $0x48] sm:$0xf] %vm2249_vm12, %v2190_v18  ;;  %3295 = vrot.lane.b32.xlu1 %v3223_v10, %s4704_s10  ;;  %v4277_v10 = vld [vmem:[%s4749_s19 + $0xc0] sm:$0xe]  ;;  %v2151_v18 = vrot.slane %v4279_v9, 5  ;;  %v3233_v9 = vrot.slane %v4419_v4, 5 }
 0x1e3   : > { %3293 = vrot.lane.b32.xlu0 %v3220_v14, %s4704_s10  ;;  %v4371_v14 = vld [vmem:[%s4749_s19 + $0xc4] sm:$0xf]  ;;  %v4295_v19 = vrot.slane %v4277_v10, 9  ;;  %v2142_v24 = vsel %vm4904_vm6, %v4294_v13, %v2141_v60  ;;  %v2901_v61 = vor.u32 %v2900_v50, %v2896_v49  ;;  %v4420_v13 = vld [vmem:[%s4749_s19 + $0xc8] sm:$0x1] }
 0x1e4   : > { %v2382_v26 = vpop.permute.xlu1 %2381  ;;  %v2874_v22 = vshrl.u32 %v4371_v14, 16  ;;  %v2152_v31 = vsel %vm4904_vm6, %v2150_v17, %v2151_v18  ;;  %v3235_v18 = vrot.slane %v3233_v9, 4 }
 0x1e5   : > { %2461 = vst.msk [vmem:[#allocation2 + $0x44] sm:$0xf] %vm2443_vm13, %v2382_v26  ;;  %v2380_v33 = vpop.permute.xlu0 %2379  ;;  %v2864_v26 = vshll.u32 %v4370_v16, 16  ;;  %v2149_v32 = vsel %vm4904_vm6, %v4295_v19, %v2148_v5  ;;  %v4418_v16 = vld [vmem:[%s4749_s19 + $0xc0] sm:$0xe]  ;;  %v3236_v19 = vrot.slane %v4420_v13, 5 }
 0x1e6   : > { %2460 = vst.msk [vmem:[#allocation2 + $0x40] sm:$0xf] %vm2443_vm13, %v2380_v33  ;;  %3299 = vrot.lane.b32.xlu1 %v3230_v20, %s4704_s10  ;;  %v2145_v20 = vsel %vm4904_vm6, %v2143_v7, %v2144_v8  ;;  %v4372_v33 = vld [vmem:[%s4749_s19 + $0xc8] sm:$0x1]  ;;  %v2876_v35 = vrot.slane %v2874_v22, 4  ;;  %v2902_v7 = vrot.slane %v2901_v61, 4 }
 0x1e7   : > { %3297 = vrot.lane.b32.xlu0 %v3227_v21, %s4704_s10  ;;  %v2870_v21 = vshll.u32 %v4371_v14, 16  ;;  %v2880_v48 = vshll.u32 %v4372_v33, 16  ;;  %v4422_v14 = vld [vmem:[%s4749_s19 + $0xd0] sm:$0xf]  ;;  %v3237_v28 = vsel %vm4904_vm6, %v3235_v18, %v3236_v19 }
 0x1e8   : > { %v2386_v39 = vpop.permute.xlu1 %2385 }
 0x1e9   : > { %2463 = vst.msk [vmem:[#allocation2 + $0x4c] sm:$0xf] %vm2443_vm13, %v2386_v39  ;;  %v2384_v46 = vpop.permute.xlu0 %2383  ;;  %v2863_v39 = vrot.slane %v2861_v25, 4  ;;  %v2882_v60 = vrot.slane %v2880_v48, 5 }
 0x1ea   : > { %2462 = vst.msk [vmem:[#allocation2 + $0x48] sm:$0xf] %vm2443_vm13, %v2384_v46  ;;  %1313 = vrot.lane.b32.xlu1 %v4181_v34, %s4699_s22  ;;  %v6067_v34 = vrot.slane %v2870_v21, 5  ;;  %v4325_v46 = vld [vmem:[%s4749_s19 + $0xc4] sm:$0xf] }
 0x1eb   : > { %1311 = vrot.lane.b32.xlu0 %v4180_v40, %s4699_s22  ;;  %v2866_v40 = vrot.slane %v2864_v26, 5  ;;  %v4421_v26 = vld [vmem:[%s4749_s19 + $0xcc] sm:$0xe] }
 0x1ec   : > { %v2943_v51 = vpop.permute.xlu1 %2942  ;;  %v2877_v47 = vor.u32 %v2876_v35, %v6067_v34 }
 0x1ed   : > { %3022 = vst.msk [vmem:[#allocation2 + $0x44] sm:$0xf] %vm3004_vm14, %v2943_v51  ;;  %v2941_v56 = vpop.permute.xlu0 %2940 }
 0x1ee   : > { %3021 = vst.msk [vmem:[#allocation2 + $0x40] sm:$0xf] %vm3004_vm14, %v2941_v56  ;;  %1317 = vrot.lane.b32.xlu1 %v4183_v45, %s4699_s22  ;;  %v4324_v45 = vld [vmem:[%s4749_s19 + $0xc0] sm:$0xf]  ;;  %v2878_v59 = vrot.slane %v2877_v47, 4 }
 0x1ef   : > { %1315 = vrot.lane.b32.xlu0 %v4182_v52, %s4699_s22  ;;  %v2867_v52 = vor.u32 %v2866_v40, %v2863_v39 }
 0x1f0   : > { %v2947_v63 = vpop.permute.xlu1 %2946 }
 0x1f1   : > { %3024 = vst.msk [vmem:[#allocation2 + $0x4c] sm:$0xf] %vm3004_vm14, %v2947_v63  ;;  %v2945_v3 = vpop.permute.xlu0 %2944  ;;  %v2904_v63 = vshll.u32 %v4375_v53, 16  ;;  %v2868_v2 = vrot.slane %v2867_v52, 4 }
 0x1f2   : > { %3023 = vst.msk [vmem:[#allocation2 + $0x48] sm:$0xf] %vm3004_vm14, %v2945_v3  ;;  %1874 = vrot.lane.b32.xlu1 %v1791_v57, %s4700_s23  ;;  %v2891_v3 = vor.u32 %v2890_v55, %v2887_v54 }
 0x1f3   : > { %1872 = vrot.lane.b32.xlu0 %v1781_v0, %s4700_s23  ;;  %v2906_v8 = vrot.slane %v2904_v63, 5 }
 0x1f4   : > { %v3280_v11 = vpop.permute.xlu1 %3279 }
 0x1f5   : > { %3359 = vst.msk [vmem:[#allocation2 + $0x44] sm:$0xf] %vm3341_vm15, %v3280_v11  ;;  %v3278_v15 = vpop.permute.xlu0 %3277  ;;  %v2873_v11 = vsel %vm4760_vm2, %v2868_v2, %v6067_v34  ;;  %v2907_v17 = vsel %vm4760_vm2, %v2902_v7, %v2906_v8 }
 0x1f6   : > { %3358 = vst.msk [vmem:[#allocation2 + $0x40] sm:$0xf] %vm3341_vm15, %v3278_v15  ;;  %1878 = vrot.lane.b32.xlu1 %v1815_v6, %s4700_s23  ;;  %v2883_v6 = vsel %vm4760_vm2, %v2878_v59, %v2882_v60 }
 0x1f7   : > { %1876 = vrot.lane.b32.xlu0 %v1805_v12, %s4700_s23  ;;  %v2892_v12 = vrot.slane %v2891_v3, 4 }
 0x1f8   : > { %v3284_v23 = vpop.permute.xlu1 %3283 }
 0x1f9   : > { %3361 = vst.msk [vmem:[#allocation2 + $0x4c] sm:$0xf] %vm3341_vm15, %v3284_v23  ;;  %v3282_v29 = vpop.permute.xlu0 %3281  ;;  %v2897_v22 = vsel %vm4760_vm2, %v2892_v12, %v2896_v49  ;;  %v4438_v23 = vrot.slane %v4418_v16, 9 }
 0x1fa   : > { %3360 = vst.msk [vmem:[#allocation2 + $0x48] sm:$0xf] %vm3341_vm15, %v3282_v29  ;;  %2211 = vrot.lane.b32.xlu1 %v2145_v20, %s4701_s24  ;;  %v3240_v20 = vrot.slane %v4422_v14, 5 }
 0x1fb   : > { %2209 = vrot.lane.b32.xlu0 %v2142_v24, %s4701_s24  ;;  %v4423_v24 = vld [vmem:[%s4749_s19 + $0xd4] sm:$0x1]  ;;  %v3234_v27 = vsel %vm4904_vm6, %v4438_v23, %v3233_v9  ;;  %s4135_s19 = sshll.u32 %s6288_s12, 1 }
 0x1fc   : > { %v1298_v38 = vpop.permute.xlu1 %1297  ;;  %v3242_v29 = vrot.slane %v3240_v20, 4  ;;  %v3243_v30 = vrot.slane %v4423_v24, 5  ;;  %s219_s22 = scalar_lea.vmem %s6278_s3, %s4135_s19 }
 0x1fd   : > { %1373 = vst.msk [vmem:[#allocation2 + $0x54] sm:$0xf] %vm1351_vm10, %v1298_v38  ;;  %v1296_v43 = vpop.permute.xlu0 %1295  ;;  %v4665_v44 = vld [vmem:[#allocation2 + $0x40] sm:$0xff]  }
 0x1fe   : > { %1372 = vst.msk [vmem:[#allocation2 + $0x50] sm:$0xf] %vm1351_vm10, %v1296_v43  ;;  %2215 = vrot.lane.b32.xlu1 %v2152_v31, %s4701_s24  ;;  %4591 = vmatprep.mubr.msk.bf16.mxu1 %vm3522_vm0, %v4665_v44  ;;  %v3244_v34 = vsel %vm4904_vm6, %v3242_v29, %v3243_v30 }
 0x1ff   : > { %2213 = vrot.lane.b32.xlu0 %v2149_v32, %s4701_s24  ;;  %v4439_v32 = vrot.slane %v4421_v26, 9 }
 0x200   : > { %v1302_v51 = vpop.permute.xlu1 %1301 }
 0x201   : > { %1375 = vst.msk [vmem:[#allocation2 + $0x5c] sm:$0xf] %vm1351_vm10, %v1302_v51  ;;  %v1300_v56 = vpop.permute.xlu0 %1299  ;;  %v4666_v57 = vld [vmem:[#allocation2 + $0x48] sm:$0xff]   ;;  %v3241_v36 = vsel %vm4904_vm6, %v4439_v32, %v3240_v20 }
 0x202   : > { %1374 = vst.msk [vmem:[#allocation2 + $0x58] sm:$0xf] %vm1351_vm10, %v1300_v56  ;;  %2405 = vrot.lane.b32.xlu1 %v4325_v46, %s4702_s29  ;;  %4592 = vmatmul.mubr.msk.bf16.vlgmr.msra.gmra.mxu1 %vm3522_vm0, %v4666_v57 }
 0x203   : > { %2403 = vrot.lane.b32.xlu0 %v4324_v45, %s4702_s29 }
 0x204   : > { %v1859_v0 = vpop.permute.xlu1 %1858 }
 0x205   : > { %1934 = vst.msk [vmem:[#allocation2 + $0x54] sm:$0xf] %vm1912_vm11, %v1859_v0  ;;  %v1857_v5 = vpop.permute.xlu0 %1856 }
 0x206   : > { %1933 = vst.msk [vmem:[#allocation2 + $0x50] sm:$0xf] %vm1912_vm11, %v1857_v5  ;;  %2409 = vrot.lane.b32.xlu1 %v4327_v58, %s4702_s29 }
 0x207   : > { %2407 = vrot.lane.b32.xlu0 %v4326_v1, %s4702_s29 }
 0x208   : > { %v1863_v10 = vpop.permute.xlu1 %1862 }
 0x209   : > { %1936 = vst.msk [vmem:[#allocation2 + $0x5c] sm:$0xf] %vm1912_vm11, %v1863_v10  ;;  %v1861_v15 = vpop.permute.xlu0 %1860 }
 0x20a   : > { %1935 = vst.msk [vmem:[#allocation2 + $0x58] sm:$0xf] %vm1912_vm11, %v1861_v15  ;;  %2966 = vrot.lane.b32.xlu1 %v2883_v6, %s4703_s7 }
 0x20b   : > { %2964 = vrot.lane.b32.xlu0 %v2873_v11, %s4703_s7 }
 0x20c   : > { %v2196_v21 = vpop.permute.xlu1 %2195 }
 0x20d   : > { %2271 = vst.msk [vmem:[#allocation2 + $0x54] sm:$0xf] %vm2249_vm12, %v2196_v21  ;;  %v2194_v25 = vpop.permute.xlu0 %2193 }
 0x20e   : > { %2270 = vst.msk [vmem:[#allocation2 + $0x50] sm:$0xf] %vm2249_vm12, %v2194_v25  ;;  %2970 = vrot.lane.b32.xlu1 %v2907_v17, %s4703_s7 }
 0x20f   : > { %2968 = vrot.lane.b32.xlu0 %v2897_v22, %s4703_s7 }
 0x210   : > { %v2200_v31 = vpop.permute.xlu1 %2199 }
 0x211   : > { %2273 = vst.msk [vmem:[#allocation2 + $0x5c] sm:$0xf] %vm2249_vm12, %v2200_v31  ;;  %v2198_v33 = vpop.permute.xlu0 %2197 }
 0x212   : > { %2272 = vst.msk [vmem:[#allocation2 + $0x58] sm:$0xf] %vm2249_vm12, %v2198_v33  ;;  %3303 = vrot.lane.b32.xlu1 %v3237_v28, %s4704_s10 }
 0x213   : > { %3301 = vrot.lane.b32.xlu0 %v3234_v27, %s4704_s10 }
 0x214   : > { %v2390_v35 = vpop.permute.xlu1 %2389 }
 0x215   : > { %2465 = vst.msk [vmem:[#allocation2 + $0x54] sm:$0xf] %vm2443_vm13, %v2390_v35  ;;  %v2388_v37 = vpop.permute.xlu0 %2387 }
 0x216   : > { %2464 = vst.msk [vmem:[#allocation2 + $0x50] sm:$0xf] %vm2443_vm13, %v2388_v37  ;;  %3307 = vrot.lane.b32.xlu1 %v3244_v34, %s4704_s10 }
 0x217   : > { %3305 = vrot.lane.b32.xlu0 %v3241_v36, %s4704_s10 }
 0x218   : > { %v2394_v38 = vpop.permute.xlu1 %2393 }
 0x219   : > { %2467 = vst.msk [vmem:[#allocation2 + $0x5c] sm:$0xf] %vm2443_vm13, %v2394_v38  ;;  %v2392_v39 = vpop.permute.xlu0 %2391 }
 0x21a   : > { %2466 = vst.msk [vmem:[#allocation2 + $0x58] sm:$0xf] %vm2443_vm13, %v2392_v39 }
 0x21c   : > { %v2951_v40 = vpop.permute.xlu1 %2950 }
 0x21d   : > { %3026 = vst.msk [vmem:[#allocation2 + $0x54] sm:$0xf] %vm3004_vm14, %v2951_v40  ;;  %v2949_v62 = vpop.permute.xlu0 %2948 }
 0x21e   : > { %3025 = vst.msk [vmem:[#allocation2 + $0x50] sm:$0xf] %vm3004_vm14, %v2949_v62  ;;  %v4577_v41 = vpop.f32.mrf.mxu0 }
 0x21f   : > { %v4514_v42 = vpack.c.bf16 %v4577_v41, %v4577_v41  ;;  %v3775_v56 = vmul.f32 %v4577_v41, %v4577_v41 }
 0x220   : > { %v2955_v43 = vpop.permute.xlu1 %2954  ;;  %v3609_v46 = vpop.f32.mrf.mxu0 }
 0x221   : > { %3028 = vst.msk [vmem:[#allocation2 + $0x5c] sm:$0xf] %vm3004_vm14, %v2955_v43  ;;  %v2953_v44 = vpop.permute.xlu0 %2952  ;;  %v4512_v45 = vpack.c.bf16 %v3609_v46, %v3609_v46  ;;  %v3773_v52 = vmul.f32 %v3609_v46, %v3609_v46 }
 0x222   : > { %3975 = vst.msk [vmem:[%s6136_s18 + $0x8] sm:$0xf] %vm253_vm3, %v4514_v42  ;;  %v4578_v47 = vpop.f32.mrf.mxu0 }
 0x223   : > { %3027 = vst.msk [vmem:[#allocation2 + $0x58] sm:$0xf] %vm3004_vm14, %v2953_v44  ;;  %v4515_v48 = vpack.c.bf16 %v4578_v47, %v4578_v47  ;;  %v3776_v61 = vmul.f32 %v4578_v47, %v4578_v47 }
 0x224   : > { %3973 = vst.msk [vmem:[%s6136_s18] sm:$0xf] %vm253_vm3, %v4512_v45  ;;  %v3288_v49 = vpop.permute.xlu1 %3287  ;;  %v3612_v51 = vpop.f32.mrf.mxu0 }
 0x225   : > { %3363 = vst.msk [vmem:[#allocation2 + $0x54] sm:$0xf] %vm3341_vm15, %v3288_v49  ;;  %v3286_v50 = vpop.permute.xlu0 %3285  ;;  %v3736_v53 = vadd.f32 %v3612_v51, %v3609_v46  ;;  %v3774_v54 = vmul.f32 %v3612_v51, %v3612_v51  ;;  %v4513_v55 = vpack.c.bf16 %v3612_v51, %v3612_v51 }
 0x226   : > { %3976 = vst.msk [vmem:[%s6136_s18 + $0xc] sm:$0xf] %vm253_vm3, %v4515_v48 }
 0x227   : > { %3362 = vst.msk [vmem:[#allocation2 + $0x50] sm:$0xf] %vm3341_vm15, %v3286_v50  ;;  %v3737_v57 = vadd.f32 %v4577_v41, %v3736_v53  ;;  %v3805_v58 = vadd.f32 %v3774_v54, %v3773_v52 }
 0x228   : > { %3974 = vst.msk [vmem:[%s6136_s18 + $0x4] sm:$0xf] %vm253_vm3, %v4513_v55  ;;  %v3292_v59 = vpop.permute.xlu1 %3291 }
 0x229   : > { %3365 = vst.msk [vmem:[#allocation2 + $0x5c] sm:$0xf] %vm3341_vm15, %v3292_v59  ;;  %v3290_v60 = vpop.permute.xlu0 %3289  ;;  %v3806_v63 = vadd.f32 %v3805_v58, %v3775_v56  ;;  %v3738_v0 = vadd.f32 %v4578_v47, %v3737_v57 }
 0x22a   : > { %3364 = vst.msk [vmem:[#allocation2 + $0x58] sm:$0xf] %vm3341_vm15, %v3290_v60 }
 0x22b   : > { %v3807_v2 = vadd.f32 %v3806_v63, %v3776_v61 }
 0x22c   : > { %v1306_v1 = vpop.permute.xlu1 %1305 }
 0x22d   : > { %1377 = vst.msk [vmem:[#allocation2 + $0x64] sm:$0xf] %vm1351_vm10, %v1306_v1  ;;  %v1304_v3 = vpop.permute.xlu0 %1303 }
 0x22e   : > { %v4667_v4 = vld [vmem:[#allocation2 + $0x50] sm:$0xff]   ;;  %1376 = vst.msk [vmem:[#allocation2 + $0x60] sm:$0xf] %vm1351_vm10, %v1304_v3 }
 0x22f   : > { %4595 = vmatprep.mubr.msk.bf16.mxu1 %vm3522_vm0, %v4667_v4 }
 0x230   : > { %v1310_v5 = vpop.permute.xlu1 %1309 }
 0x231   : > { %1379 = vst.msk [vmem:[#allocation2 + $0x6c] sm:$0xf] %vm1351_vm10, %v1310_v5  ;;  %v1308_v6 = vpop.permute.xlu0 %1307  ;;  %v4668_v7 = vld [vmem:[#allocation2 + $0x58] sm:$0xff]  }
 0x232   : > { %1378 = vst.msk [vmem:[#allocation2 + $0x68] sm:$0xf] %vm1351_vm10, %v1308_v6  ;;  %4596 = vmatmul.mubr.msk.bf16.gmra.mxu1 %vm3522_vm0, %v4668_v7 }
 0x234   : > { %v1867_v8 = vpop.permute.xlu1 %1866 }
 0x235   : > { %1938 = vst.msk [vmem:[#allocation2 + $0x64] sm:$0xf] %vm1912_vm11, %v1867_v8  ;;  %v1865_v9 = vpop.permute.xlu0 %1864 }
 0x236   : > { %1937 = vst.msk [vmem:[#allocation2 + $0x60] sm:$0xf] %vm1912_vm11, %v1865_v9 }
 0x238   : > { %v1871_v10 = vpop.permute.xlu1 %1870 }
 0x239   : > { %1940 = vst.msk [vmem:[#allocation2 + $0x6c] sm:$0xf] %vm1912_vm11, %v1871_v10  ;;  %v1869_v11 = vpop.permute.xlu0 %1868 }
 0x23a   : > { %1939 = vst.msk [vmem:[#allocation2 + $0x68] sm:$0xf] %vm1912_vm11, %v1869_v11 }
 0x23c   : > { %v2204_v12 = vpop.permute.xlu1 %2203 }
 0x23d   : > { %2275 = vst.msk [vmem:[#allocation2 + $0x64] sm:$0xf] %vm2249_vm12, %v2204_v12  ;;  %v2202_v13 = vpop.permute.xlu0 %2201 }
 0x23e   : > { %2274 = vst.msk [vmem:[#allocation2 + $0x60] sm:$0xf] %vm2249_vm12, %v2202_v13 }
 0x240   : > { %v2208_v14 = vpop.permute.xlu1 %2207 }
 0x241   : > { %2277 = vst.msk [vmem:[#allocation2 + $0x6c] sm:$0xf] %vm2249_vm12, %v2208_v14  ;;  %v2206_v15 = vpop.permute.xlu0 %2205 }
 0x242   : > { %2276 = vst.msk [vmem:[#allocation2 + $0x68] sm:$0xf] %vm2249_vm12, %v2206_v15 }
 0x244   : > { %v2398_v16 = vpop.permute.xlu1 %2397 }
 0x245   : > { %2469 = vst.msk [vmem:[#allocation2 + $0x64] sm:$0xf] %vm2443_vm13, %v2398_v16  ;;  %v2396_v17 = vpop.permute.xlu0 %2395 }
 0x246   : > { %2468 = vst.msk [vmem:[#allocation2 + $0x60] sm:$0xf] %vm2443_vm13, %v2396_v17  ;;  %v4581_v18 = vpop.f32.mrf.mxu0 }
 0x247   : > { %v4518_v19 = vpack.c.bf16 %v4581_v18, %v4581_v18  ;;  %v3779_v35 = vmul.f32 %v4581_v18, %v4581_v18 }
 0x248   : > { %v2402_v20 = vpop.permute.xlu1 %2401  ;;  %v3625_v22 = vpop.f32.mrf.mxu0 }
 0x249   : > { %2471 = vst.msk [vmem:[#allocation2 + $0x6c] sm:$0xf] %vm2443_vm13, %v2402_v20  ;;  %v2400_v21 = vpop.permute.xlu0 %2399  ;;  %v3739_v23 = vadd.f32 %v3738_v0, %v3625_v22  ;;  %v3777_v24 = vmul.f32 %v3625_v22, %v3625_v22  ;;  %v4516_v25 = vpack.c.bf16 %v3625_v22, %v3625_v22 }
 0x24a   : > { %3979 = vst.msk [vmem:[%s6136_s18 + $0x18] sm:$0xf] %vm253_vm3, %v4518_v19  ;;  %v4582_v26 = vpop.f32.mrf.mxu0 }
 0x24b   : > { %2470 = vst.msk [vmem:[#allocation2 + $0x68] sm:$0xf] %vm2443_vm13, %v2400_v21  ;;  %v3808_v28 = vadd.f32 %v3807_v2, %v3777_v24  ;;  %v4519_v29 = vpack.c.bf16 %v4582_v26, %v4582_v26  ;;  %v3780_v40 = vmul.f32 %v4582_v26, %v4582_v26 }
 0x24c   : > { %3977 = vst.msk [vmem:[%s6136_s18 + $0x10] sm:$0xf] %vm253_vm3, %v4516_v25  ;;  %v2959_v30 = vpop.permute.xlu1 %2958  ;;  %v3628_v27 = vpop.f32.mrf.mxu0 }
 0x24d   : > { %3030 = vst.msk [vmem:[#allocation2 + $0x64] sm:$0xf] %vm3004_vm14, %v2959_v30  ;;  %v2957_v31 = vpop.permute.xlu0 %2956  ;;  %v3740_v32 = vadd.f32 %v3739_v23, %v3628_v27  ;;  %v3778_v33 = vmul.f32 %v3628_v27, %v3628_v27  ;;  %v4517_v34 = vpack.c.bf16 %v3628_v27, %v3628_v27 }
 0x24e   : > { %3980 = vst.msk [vmem:[%s6136_s18 + $0x1c] sm:$0xf] %vm253_vm3, %v4519_v29 }
 0x24f   : > { %3029 = vst.msk [vmem:[#allocation2 + $0x60] sm:$0xf] %vm3004_vm14, %v2957_v31  ;;  %v3741_v36 = vadd.f32 %v4581_v18, %v3740_v32  ;;  %v3809_v37 = vadd.f32 %v3808_v28, %v3778_v33 }
 0x250   : > { %3978 = vst.msk [vmem:[%s6136_s18 + $0x14] sm:$0xf] %vm253_vm3, %v4517_v34  ;;  %v2963_v38 = vpop.permute.xlu1 %2962 }
 0x251   : > { %3032 = vst.msk [vmem:[#allocation2 + $0x6c] sm:$0xf] %vm3004_vm14, %v2963_v38  ;;  %v2961_v39 = vpop.permute.xlu0 %2960  ;;  %v3810_v62 = vadd.f32 %v3809_v37, %v3779_v35  ;;  %v3742_v41 = vadd.f32 %v4582_v26, %v3741_v36 }
 0x252   : > { %3031 = vst.msk [vmem:[#allocation2 + $0x68] sm:$0xf] %vm3004_vm14, %v2961_v39 }
 0x253   : > { %v3811_v43 = vadd.f32 %v3810_v62, %v3780_v40 }
 0x254   : > { %v3296_v42 = vpop.permute.xlu1 %3295 }
 0x255   : > { %3367 = vst.msk [vmem:[#allocation2 + $0x64] sm:$0xf] %vm3341_vm15, %v3296_v42  ;;  %v3294_v44 = vpop.permute.xlu0 %3293 }
 0x256   : > { %3366 = vst.msk [vmem:[#allocation2 + $0x60] sm:$0xf] %vm3341_vm15, %v3294_v44 }
 0x258   : > { %v3300_v46 = vpop.permute.xlu1 %3299 }
 0x259   : > { %3369 = vst.msk [vmem:[#allocation2 + $0x6c] sm:$0xf] %vm3341_vm15, %v3300_v46  ;;  %v3298_v45 = vpop.permute.xlu0 %3297 }
 0x25a   : > { %3368 = vst.msk [vmem:[#allocation2 + $0x68] sm:$0xf] %vm3341_vm15, %v3298_v45 }
 0x25c   : > { %v1314_v47 = vpop.permute.xlu1 %1313 }
 0x25d   : > { %1381 = vst.msk [vmem:[#allocation2 + $0x74] sm:$0xf] %vm1351_vm10, %v1314_v47  ;;  %v1312_v48 = vpop.permute.xlu0 %1311  ;;  %v4669_v49 = vld [vmem:[#allocation2 + $0x60] sm:$0xff]  }
 0x25e   : > { %1380 = vst.msk [vmem:[#allocation2 + $0x70] sm:$0xf] %vm1351_vm10, %v1312_v48  ;;  %4599 = vmatprep.mubr.msk.bf16.mxu1 %vm3522_vm0, %v4669_v49 }
 0x260   : > { %v1318_v50 = vpop.permute.xlu1 %1317 }
 0x261   : > { %1383 = vst.msk [vmem:[#allocation2 + $0x7c] sm:$0xf] %vm1351_vm10, %v1318_v50  ;;  %v1316_v51 = vpop.permute.xlu0 %1315  ;;  %v4670_v52 = vld [vmem:[#allocation2 + $0x68] sm:$0xff]  }
 0x262   : > { %1382 = vst.msk [vmem:[#allocation2 + $0x78] sm:$0xf] %vm1351_vm10, %v1316_v51  ;;  %4600 = vmatmul.mubr.msk.bf16.gmra.mxu1 %vm3522_vm0, %v4670_v52 }
 0x264   : > { %v1875_v53 = vpop.permute.xlu1 %1874 }
 0x265   : > { %1942 = vst.msk [vmem:[#allocation2 + $0x74] sm:$0xf] %vm1912_vm11, %v1875_v53  ;;  %v1873_v54 = vpop.permute.xlu0 %1872 }
 0x266   : > { %1941 = vst.msk [vmem:[#allocation2 + $0x70] sm:$0xf] %vm1912_vm11, %v1873_v54 }
 0x268   : > { %v1879_v55 = vpop.permute.xlu1 %1878 }
 0x269   : > { %1944 = vst.msk [vmem:[#allocation2 + $0x7c] sm:$0xf] %vm1912_vm11, %v1879_v55  ;;  %v1877_v56 = vpop.permute.xlu0 %1876 }
 0x26a   : > { %1943 = vst.msk [vmem:[#allocation2 + $0x78] sm:$0xf] %vm1912_vm11, %v1877_v56 }
 0x26c   : > { %v2212_v57 = vpop.permute.xlu1 %2211 }
 0x26d   : > { %2279 = vst.msk [vmem:[#allocation2 + $0x74] sm:$0xf] %vm2249_vm12, %v2212_v57  ;;  %v2210_v58 = vpop.permute.xlu0 %2209 }
 0x26e   : > { %2278 = vst.msk [vmem:[#allocation2 + $0x70] sm:$0xf] %vm2249_vm12, %v2210_v58  ;;  %v4585_v59 = vpop.f32.mrf.mxu0 }
 0x26f   : > { %v4522_v60 = vpack.c.bf16 %v4585_v59, %v4585_v59  ;;  %v3783_v13 = vmul.f32 %v4585_v59, %v4585_v59 }
 0x270   : > { %v2216_v61 = vpop.permute.xlu1 %2215  ;;  %v3641_v0 = vpop.f32.mrf.mxu0 }
 0x271   : > { %2281 = vst.msk [vmem:[#allocation2 + $0x7c] sm:$0xf] %vm2249_vm12, %v2216_v61  ;;  %v2214_v63 = vpop.permute.xlu0 %2213  ;;  %v3743_v1 = vadd.f32 %v3742_v41, %v3641_v0  ;;  %v3781_v2 = vmul.f32 %v3641_v0, %v3641_v0  ;;  %v4520_v3 = vpack.c.bf16 %v3641_v0, %v3641_v0 }
 0x272   : > { %3983 = vst.msk [vmem:[%s6136_s18 + $0x28] sm:$0xf] %vm253_vm3, %v4522_v60  ;;  %v4586_v4 = vpop.f32.mrf.mxu0 }
 0x273   : > { %2280 = vst.msk [vmem:[#allocation2 + $0x78] sm:$0xf] %vm2249_vm12, %v2214_v63  ;;  %v3812_v5 = vadd.f32 %v3811_v43, %v3781_v2  ;;  %v4523_v6 = vpack.c.bf16 %v4586_v4, %v4586_v4  ;;  %v3784_v18 = vmul.f32 %v4586_v4, %v4586_v4 }
 0x274   : > { %3981 = vst.msk [vmem:[%s6136_s18 + $0x20] sm:$0xf] %vm253_vm3, %v4520_v3  ;;  %v2406_v7 = vpop.permute.xlu1 %2405  ;;  %v3644_v9 = vpop.f32.mrf.mxu0 }
 0x275   : > { %2473 = vst.msk [vmem:[#allocation2 + $0x74] sm:$0xf] %vm2443_vm13, %v2406_v7  ;;  %v2404_v8 = vpop.permute.xlu0 %2403  ;;  %v3744_v10 = vadd.f32 %v3743_v1, %v3644_v9  ;;  %v3782_v11 = vmul.f32 %v3644_v9, %v3644_v9  ;;  %v4521_v12 = vpack.c.bf16 %v3644_v9, %v3644_v9 }
 0x276   : > { %3984 = vst.msk [vmem:[%s6136_s18 + $0x2c] sm:$0xf] %vm253_vm3, %v4523_v6 }
 0x277   : > { %2472 = vst.msk [vmem:[#allocation2 + $0x70] sm:$0xf] %vm2443_vm13, %v2404_v8  ;;  %v3745_v14 = vadd.f32 %v4585_v59, %v3744_v10  ;;  %v3813_v15 = vadd.f32 %v3812_v5, %v3782_v11 }
 0x278   : > { %3982 = vst.msk [vmem:[%s6136_s18 + $0x24] sm:$0xf] %vm253_vm3, %v4521_v12  ;;  %v2410_v16 = vpop.permute.xlu1 %2409 }
 0x279   : > { %2475 = vst.msk [vmem:[#allocation2 + $0x7c] sm:$0xf] %vm2443_vm13, %v2410_v16  ;;  %v2408_v17 = vpop.permute.xlu0 %2407  ;;  %v3814_v19 = vadd.f32 %v3813_v15, %v3783_v13  ;;  %v3746_v20 = vadd.f32 %v4586_v4, %v3745_v14 }
 0x27a   : > { %2474 = vst.msk [vmem:[#allocation2 + $0x78] sm:$0xf] %vm2443_vm13, %v2408_v17 }
 0x27b   : > { %v3815_v22 = vadd.f32 %v3814_v19, %v3784_v18 }
 0x27c   : > { %v2967_v21 = vpop.permute.xlu1 %2966 }
 0x27d   : > { %3034 = vst.msk [vmem:[#allocation2 + $0x74] sm:$0xf] %vm3004_vm14, %v2967_v21  ;;  %v2965_v23 = vpop.permute.xlu0 %2964 }
 0x27e   : > { %3033 = vst.msk [vmem:[#allocation2 + $0x70] sm:$0xf] %vm3004_vm14, %v2965_v23 }
 0x280   : > { %v2971_v24 = vpop.permute.xlu1 %2970 }
 0x281   : > { %3036 = vst.msk [vmem:[#allocation2 + $0x7c] sm:$0xf] %vm3004_vm14, %v2971_v24  ;;  %v2969_v25 = vpop.permute.xlu0 %2968 }
 0x282   : > { %3035 = vst.msk [vmem:[#allocation2 + $0x78] sm:$0xf] %vm3004_vm14, %v2969_v25 }
 0x284   : > { %v3304_v26 = vpop.permute.xlu1 %3303 }
 0x285   : > { %3371 = vst.msk [vmem:[#allocation2 + $0x74] sm:$0xf] %vm3341_vm15, %v3304_v26  ;;  %v3302_v28 = vpop.permute.xlu0 %3301 }
 0x286   : > { %3370 = vst.msk [vmem:[#allocation2 + $0x70] sm:$0xf] %vm3341_vm15, %v3302_v28 }
 0x288   : > { %v3308_v29 = vpop.permute.xlu1 %3307 }
 0x289   : > { %3373 = vst.msk [vmem:[#allocation2 + $0x7c] sm:$0xf] %vm3341_vm15, %v3308_v29  ;;  %v3306_v30 = vpop.permute.xlu0 %3305 }
 0x28a   : > { %3372 = vst.msk [vmem:[#allocation2 + $0x78] sm:$0xf] %vm3341_vm15, %v3306_v30 }
 0x28d   : > { %v4671_v31 = vld [vmem:[#allocation2 + $0x70] sm:$0xff]  }
 0x28e   : > { %4603 = vmatprep.mubr.msk.bf16.mxu1 %vm3522_vm0, %v4671_v31 }
 0x291   : > { %v4672_v27 = vld [vmem:[#allocation2 + $0x78] sm:$0xff]  }
 0x292   : > { %4604 = vmatmul.mubr.msk.bf16.gmra.mxu1 %vm3522_vm0, %v4672_v27 }
 0x296   : > { %v4589_v32 = vpop.f32.mrf.mxu0 }
 0x297   : > { %v4526_v33 = vpack.c.bf16 %v4589_v32, %v4589_v32  ;;  %v3787_v44 = vmul.f32 %v4589_v32, %v4589_v32 }
 0x298   : > { %v3657_v34 = vpop.f32.mrf.mxu0 }
 0x299   : > { %3987 = vst.msk [vmem:[%s6136_s18 + $0x38] sm:$0xf] %vm253_vm3, %v4526_v33  ;;  %v3747_v35 = vadd.f32 %v3746_v20, %v3657_v34  ;;  %v3785_v36 = vmul.f32 %v3657_v34, %v3657_v34  ;;  %v4524_v37 = vpack.c.bf16 %v3657_v34, %v3657_v34 }
 0x29a   : > { %v4590_v38 = vpop.f32.mrf.mxu0 }
 0x29b   : > { %v3816_v39 = vadd.f32 %v3815_v22, %v3785_v36  ;;  %3985 = vst.msk [vmem:[%s6136_s18 + $0x30] sm:$0xf] %vm253_vm3, %v4524_v37  ;;  %v4527_v40 = vpack.c.bf16 %v4590_v38, %v4590_v38  ;;  %v3788_v47 = vmul.f32 %v4590_v38, %v4590_v38 }
 0x29c   : > { %v3660_v62 = vpop.f32.mrf.mxu0 }
 0x29d   : > { %3988 = vst.msk [vmem:[%s6136_s18 + $0x3c] sm:$0xf] %vm253_vm3, %v4527_v40  ;;  %v3748_v41 = vadd.f32 %v3747_v35, %v3660_v62  ;;  %v3786_v42 = vmul.f32 %v3660_v62, %v3660_v62  ;;  %v4525_v43 = vpack.c.bf16 %v3660_v62, %v3660_v62 }
 0x29f   : > { %v3749_v46 = vadd.f32 %v4589_v32, %v3748_v41  ;;  %v3817_v45 = vadd.f32 %v3816_v39, %v3786_v42  ;;  %3986 = vst.msk [vmem:[%s6136_s18 + $0x34] sm:$0xf] %vm253_vm3, %v4525_v43 }
 0x2a1   : > { %v3818_v48 = vadd.f32 %v3817_v45, %v3787_v44  ;;  %v3750_v49 = vadd.f32 %v4590_v38, %v3749_v46 }
 0x2a3   : > { %v3819_v50 = vadd.f32 %v3818_v48, %v3788_v47 }
 0x2c2   : > { %v4593_v51 = vpop.f32.mrf.mxu1 }
 0x2c3   : > { %v4530_v52 = vpack.c.bf16 %v4593_v51, %v4593_v51  ;;  %v3791_v1 = vmul.f32 %v4593_v51, %v4593_v51 }
 0x2c4   : > { %v3673_v53 = vpop.f32.mrf.mxu1 }
 0x2c5   : > { %3991 = vst.msk [vmem:[%s6136_s18 + $0x48] sm:$0xf] %vm253_vm3, %v4530_v52  ;;  %v3751_v54 = vadd.f32 %v3750_v49, %v3673_v53  ;;  %v3789_v55 = vmul.f32 %v3673_v53, %v3673_v53  ;;  %v4528_v56 = vpack.c.bf16 %v3673_v53, %v3673_v53 }
 0x2c6   : > { %v4594_v57 = vpop.f32.mrf.mxu1 }
 0x2c7   : > { %v3820_v58 = vadd.f32 %v3819_v50, %v3789_v55  ;;  %3989 = vst.msk [vmem:[%s6136_s18 + $0x40] sm:$0xf] %vm253_vm3, %v4528_v56  ;;  %v4531_v59 = vpack.c.bf16 %v4594_v57, %v4594_v57  ;;  %v3792_v4 = vmul.f32 %v4594_v57, %v4594_v57 }
 0x2c8   : > { %v3676_v60 = vpop.f32.mrf.mxu1 }
 0x2c9   : > { %3992 = vst.msk [vmem:[%s6136_s18 + $0x4c] sm:$0xf] %vm253_vm3, %v4531_v59  ;;  %v3752_v61 = vadd.f32 %v3751_v54, %v3676_v60  ;;  %v3790_v63 = vmul.f32 %v3676_v60, %v3676_v60  ;;  %v4529_v0 = vpack.c.bf16 %v3676_v60, %v3676_v60 }
 0x2cb   : > { %v3753_v2 = vadd.f32 %v4593_v51, %v3752_v61  ;;  %v3821_v3 = vadd.f32 %v3820_v58, %v3790_v63  ;;  %3990 = vst.msk [vmem:[%s6136_s18 + $0x44] sm:$0xf] %vm253_vm3, %v4529_v0 }
 0x2cd   : > { %v3822_v5 = vadd.f32 %v3821_v3, %v3791_v1  ;;  %v3754_v6 = vadd.f32 %v4594_v57, %v3753_v2 }
 0x2cf   : > { %v3823_v7 = vadd.f32 %v3822_v5, %v3792_v4 }
 0x2f2   : > { %v4597_v8 = vpop.f32.mrf.mxu1 }
 0x2f3   : > { %v4534_v9 = vpack.c.bf16 %v4597_v8, %v4597_v8  ;;  %v3795_v21 = vmul.f32 %v4597_v8, %v4597_v8 }
 0x2f4   : > { %v3689_v10 = vpop.f32.mrf.mxu1 }
 0x2f5   : > { %3995 = vst.msk [vmem:[%s6136_s18 + $0x58] sm:$0xf] %vm253_vm3, %v4534_v9  ;;  %v3755_v11 = vadd.f32 %v3754_v6, %v3689_v10  ;;  %v3793_v12 = vmul.f32 %v3689_v10, %v3689_v10  ;;  %v4532_v13 = vpack.c.bf16 %v3689_v10, %v3689_v10 }
 0x2f6   : > { %v4598_v14 = vpop.f32.mrf.mxu1 }
 0x2f7   : > { %v3824_v15 = vadd.f32 %v3823_v7, %v3793_v12  ;;  %3993 = vst.msk [vmem:[%s6136_s18 + $0x50] sm:$0xf] %vm253_vm3, %v4532_v13  ;;  %v4535_v16 = vpack.c.bf16 %v4598_v14, %v4598_v14  ;;  %v3796_v24 = vmul.f32 %v4598_v14, %v4598_v14 }
 0x2f8   : > { %v3692_v17 = vpop.f32.mrf.mxu1 }
 0x2f9   : > { %3996 = vst.msk [vmem:[%s6136_s18 + $0x5c] sm:$0xf] %vm253_vm3, %v4535_v16  ;;  %v3756_v18 = vadd.f32 %v3755_v11, %v3692_v17  ;;  %v3794_v19 = vmul.f32 %v3692_v17, %v3692_v17  ;;  %v4533_v20 = vpack.c.bf16 %v3692_v17, %v3692_v17 }
 0x2fb   : > { %v3757_v22 = vadd.f32 %v4597_v8, %v3756_v18  ;;  %v3825_v23 = vadd.f32 %v3824_v15, %v3794_v19  ;;  %3994 = vst.msk [vmem:[%s6136_s18 + $0x54] sm:$0xf] %vm253_vm3, %v4533_v20 }
 0x2fd   : > { %v3826_v25 = vadd.f32 %v3825_v23, %v3795_v21  ;;  %v3758_v26 = vadd.f32 %v4598_v14, %v3757_v22 }
 0x2ff   : > { %v3827_v28 = vadd.f32 %v3826_v25, %v3796_v24 }
 0x322   : > { %v4601_v29 = vpop.f32.mrf.mxu1 }
 0x323   : > { %v4538_v30 = vpack.c.bf16 %v4601_v29, %v4601_v29  ;;  %v3799_v41 = vmul.f32 %v4601_v29, %v4601_v29 }
 0x324   : > { %v3705_v31 = vpop.f32.mrf.mxu1 }
 0x325   : > { %3999 = vst.msk [vmem:[%s6136_s18 + $0x68] sm:$0xf] %vm253_vm3, %v4538_v30  ;;  %v4536_v27 = vpack.c.bf16 %v3705_v31, %v3705_v31  ;;  %v3797_v36 = vmul.f32 %v3705_v31, %v3705_v31  ;;  %v3759_v37 = vadd.f32 %v3758_v26, %v3705_v31 }
 0x326   : > { %v4602_v32 = vpop.f32.mrf.mxu1 }
 0x327   : > { %3997 = vst.msk [vmem:[%s6136_s18 + $0x60] sm:$0xf] %vm253_vm3, %v4536_v27  ;;  %v4539_v33 = vpack.c.bf16 %v4602_v32, %v4602_v32  ;;  %v3828_v39 = vadd.f32 %v3827_v28, %v3797_v36  ;;  %v3800_v47 = vmul.f32 %v4602_v32, %v4602_v32 }
 0x328   : > { %v3708_v34 = vpop.f32.mrf.mxu1 }
 0x329   : > { %4000 = vst.msk [vmem:[%s6136_s18 + $0x6c] sm:$0xf] %vm253_vm3, %v4539_v33  ;;  %v4537_v35 = vpack.c.bf16 %v3708_v34, %v3708_v34  ;;  %v3798_v38 = vmul.f32 %v3708_v34, %v3708_v34  ;;  %v3760_v40 = vadd.f32 %v3759_v37, %v3708_v34 }
 0x32b   : > { %3998 = vst.msk [vmem:[%s6136_s18 + $0x64] sm:$0xf] %vm253_vm3, %v4537_v35  ;;  %v3829_v62 = vadd.f32 %v3828_v39, %v3798_v38  ;;  %v3761_v42 = vadd.f32 %v4601_v29, %v3760_v40 }
 0x32d   : > { %v3830_v44 = vadd.f32 %v3829_v62, %v3799_v41  ;;  %v3762_v48 = vadd.f32 %v4602_v32, %v3761_v42 }
 0x32f   : > { %v3831_v53 = vadd.f32 %v3830_v44, %v3800_v47 }
 0x352   : > { %v4605_v43 = vpop.f32.mrf.mxu1 }
 0x353   : > { %v4542_v46 = vpack.c.bf16 %v4605_v43, %v4605_v43  ;;  %v3803_v60 = vmul.f32 %v4605_v43, %v4605_v43 }
 0x354   : > { %v3721_v45 = vpop.f32.mrf.mxu1 }
 0x355   : > { %4003 = vst.msk [vmem:[%s6136_s18 + $0x78] sm:$0xf] %vm253_vm3, %v4542_v46  ;;  %v3801_v49 = vmul.f32 %v3721_v45, %v3721_v45  ;;  %v4540_v50 = vpack.c.bf16 %v3721_v45, %v3721_v45  ;;  %v3763_v52 = vadd.f32 %v3762_v48, %v3721_v45 }
 0x356   : > { %v4606_v51 = vpop.f32.mrf.mxu1 }
 0x357   : > { %4001 = vst.msk [vmem:[%s6136_s18 + $0x70] sm:$0xf] %vm253_vm3, %v4540_v50  ;;  %v4543_v54 = vpack.c.bf16 %v4606_v51, %v4606_v51  ;;  %v3832_v56 = vadd.f32 %v3831_v53, %v3801_v49  ;;  %v3804_v0 = vmul.f32 %v4606_v51, %v4606_v51 }
 0x358   : > { %v3724_v55 = vpop.f32.mrf.mxu1 }
 0x359   : > { %4004 = vst.msk [vmem:[%s6136_s18 + $0x7c] sm:$0xf] %vm253_vm3, %v4543_v54  ;;  %v3764_v57 = vadd.f32 %v3763_v52, %v3724_v55  ;;  %v3802_v58 = vmul.f32 %v3724_v55, %v3724_v55  ;;  %v4541_v59 = vpack.c.bf16 %v3724_v55, %v3724_v55 }
 0x35b   : > { %v3765_v61 = vadd.f32 %v4605_v43, %v3764_v57  ;;  %v3833_v63 = vadd.f32 %v3832_v56, %v3802_v58  ;;  %4002 = vst.msk [vmem:[%s6136_s18 + $0x74] sm:$0xf] %vm253_vm3, %v4541_v59 }
 0x35d   : > { %v3766_v1 = vadd.f32 %v4606_v51, %v3765_v61  ;;  %v3834_v2 = vadd.f32 %v3833_v63, %v3803_v60 }
 0x35f   : > { %v3767_v3 = vrot.slane %v3766_v1, 4  ;;  %v3835_v4 = vadd.f32 %v3834_v2, %v3804_v0 }
 0x361   : > { %v3768_v5 = vadd.f32 %v3767_v3, %v3766_v1  ;;  %v3836_v6 = vrot.slane %v3835_v4, 4 }
 0x363   : > { %v3769_v7 = vrot.slane %v3768_v5, 2  ;;  %v3837_v8 = vadd.f32 %v3836_v6, %v3835_v4 }
 0x365   : > { %v3770_v9 = vadd.f32 %v3769_v7, %v3768_v5  ;;  %v3838_v10 = vrot.slane %v3837_v8, 2 }
 0x367   : > { %v3771_v11 = vrot.slane %v3770_v9, 1  ;;  %v3839_v12 = vadd.f32 %v3838_v10, %v3837_v8 }
 0x369   : > { %v3840_v13 = vrot.slane %v3839_v12, 1  ;;  %v3772_v14 = vadd.f32 %v3771_v11, %v3770_v9 }
 0x36b   : > { %v3841_v15 = vadd.f32 %v3840_v13, %v3839_v12 }
 0x36d   : > { %v3843_v16 = vsel %vm3842_vm1, %v3772_v14, %v3841_v15 }
 0x36e   : > { %3844 = vst [vmem:[%s219_s22] sm:$0x3] %v3843_v16 }
 0x36f PF: > { %s14_s14 = sadd.s32 1, %s4695_s14   ;;  %s6283_s12 = smov %s4691_s13 }
 0x370   : > { %p11_p5 = scmp.ge.s32.totalorder %s14_s14, 4   ;;  %s6284_s13 = smov %s6286_s15 }
 0x372   :  { %13 = sbr.rel (!%p11_p5) target bundleno = 2 (0x2), region = 72 }

</bundles_post_ra>
